<compile_context>
chip_gen: v7x
topology: tpu7x:2x2x1
jax: 0.10.0
libtpu: 0.0.40
codegen_flags: <defaults>
</compile_context>

<pallas_src>
import jax
import jax.numpy as jnp
from jax.experimental import pallas as pl
from jax.experimental.pallas import tpu as pltpu

C = 64        # feature-map width everywhere in this net
KPAD = 128    # fc output padded to a full lane tile, sliced back to num_classes


# --------------------------------------------------------------------------
# Fused per-image forward kernel: conv/BN/ReLU -> maxpool -> residual block
# --------------------------------------------------------------------------
def _make_fused_kernel(Ho, Wo):
    P = Ho * Wo
    Wp = Wo + 2                                   # padded width for packed convs

    def kernel(xcol_ref, wpre_ref, w1p_ref, w2p_ref, bn_ref, o_ref, pp_ref, mx_ref):
        f32 = jnp.float32

        def bn_row(i):                            # (1, C) f32 scale/bias row
            return bn_ref[i:i + 1, :]

        # ---- pre conv (Cin=3): one K=27 matmul over all 4 output-parity groups
        y = jnp.dot(xcol_ref[0], wpre_ref[...], preferred_element_type=f32)  # (4P, C)
        y = jnp.maximum(y * bn_row(0) + bn_row(1), 0.0)
        y4 = y.reshape(4, Ho, Wo, C)
        A, B, Cc, D = y4[0], y4[1], y4[2], y4[3]  # conv output at (even/odd row, even/odd col)

        # ---- maxpool 3x3 stride 2 pad 1, fused + subsampled (no strided slices):
        # pooled[h,w] = max of the 9 conv outputs around (2h, 2w); out-of-range
        # taps are simply omitted (equivalent to -inf padding).
        mx_ref[...] = jnp.maximum(jnp.maximum(A, B), jnp.maximum(Cc, D))
        mx_ref[:, 1:, :] = jnp.maximum(mx_ref[:, 1:, :], jnp.maximum(B, D)[:, :-1, :])
        mx_ref[1:, :, :] = jnp.maximum(mx_ref[1:, :, :], jnp.maximum(Cc, D)[:-1, :, :])
        mx_ref[1:, 1:, :] = jnp.maximum(mx_ref[1:, 1:, :], D[:-1, :-1, :])

        # pooled map -> zero-bordered VMEM scratch (border = conv zero padding)
        pp_ref[...] = jnp.zeros(pp_ref.shape, pp_ref.dtype)
        pp_ref[1:Ho + 1, 1:Wo + 1, :] = mx_ref[...].astype(pp_ref.dtype)

        def conv3x3_packed(w_ref, n_out):
            """3 output-packed matmuls (one per kernel row) over the padded scratch."""
            acc = jnp.zeros((Ho, Wo, C), f32)
            r_dy1 = None
            for dy in range(3):
                lhs = pp_ref[dy:dy + Ho, :, :].reshape(Ho * Wp, C)            # bf16
                r = jnp.dot(lhs, w_ref[dy], preferred_element_type=f32)       # (Ho*Wp, n_out)
                r = r.reshape(Ho, Wp, n_out)
                for dx in range(3):
                    acc = acc + r[:, dx:dx + Wo, dx * C:(dx + 1) * C]
                if dy == 1:
                    r_dy1 = r
            return acc, r_dy1

        # ---- layer1 / left conv1 (+ fused 1x1 shortcut in the extra RHS columns)
        acc1, r1 = conv3x3_packed(w1p_ref, 4 * C)
        sc = r1[:, 1:1 + Wo, 3 * C:4 * C].reshape(P, C)        # pooled @ w_shortcut
        sc = sc * bn_row(6) + bn_row(7)                         # shortcut BN
        h1 = jnp.maximum(acc1.reshape(P, C) * bn_row(2) + bn_row(3), 0.0)

        # reuse the padded scratch for the second conv's input (border stays zero)
        pp_ref[1:Ho + 1, 1:Wo + 1, :] = h1.reshape(Ho, Wo, C).astype(pp_ref.dtype)

        # ---- layer1 / left conv2 + BN + residual add + ReLU
        acc2, _ = conv3x3_packed(w2p_ref, 3 * C)
        out = jnp.maximum(acc2.reshape(P, C) * bn_row(4) + bn_row(5) + sc, 0.0)
        o_ref[...] = out.reshape(1, Ho, Wo, C).astype(o_ref.dtype)

    return kernel


def fused_forward(xcol, wpre, w1p, w2p, bn, *, Ho, Wo, N):
    P4 = 4 * Ho * Wo
    return pl.pallas_call(
        _make_fused_kernel(Ho, Wo),
        out_shape=jax.ShapeDtypeStruct((N, Ho, Wo, C), jnp.bfloat16),
        grid=(N,),
        in_specs=[
            pl.BlockSpec((1, P4, 27), lambda n: (n, 0, 0)),
            pl.BlockSpec((27, C), lambda n: (0, 0)),
            pl.BlockSpec((3, C, 4 * C), lambda n: (0, 0, 0)),
            pl.BlockSpec((3, C, 3 * C), lambda n: (0, 0, 0)),
            pl.BlockSpec((8, C), lambda n: (0, 0)),
        ],
        out_specs=pl.BlockSpec((1, Ho, Wo, C), lambda n: (n, 0, 0, 0)),
        scratch_shapes=[
            pltpu.VMEM((Ho + 2, Wo + 2, C), jnp.bfloat16),   # padded conv input
            pltpu.VMEM((Ho, Wo, C), jnp.float32),            # pool max accumulator
        ],
        compiler_params=pltpu.CompilerParams(dimension_semantics=("parallel",)),
    )(xcol, wpre, w1p, w2p, bn)


# --------------------------------------------------------------------------
# fc (Linear) on the NHWC-flattened features, classes padded to 128 lanes
# --------------------------------------------------------------------------
def _fc_kernel(x_ref, w_ref, b_ref, o_ref):
    o_ref[...] = (jnp.dot(x_ref[...], w_ref[...], preferred_element_type=jnp.float32)
                  + b_ref[...]).astype(o_ref.dtype)


def fc_forward(x, w, b):
    N, F = x.shape
    return pl.pallas_call(
        _fc_kernel,
        out_shape=jax.ShapeDtypeStruct((N, KPAD), jnp.float32),
        grid=(1,),
        in_specs=[pl.BlockSpec((N, F), lambda i: (0, 0)),
                  pl.BlockSpec((F, KPAD), lambda i: (0, 0)),
                  pl.BlockSpec((1, KPAD), lambda i: (0, 0))],
        out_specs=pl.BlockSpec((N, KPAD), lambda i: (0, 0)),
    )(x, w, b)


# --------------------------------------------------------------------------
# Parameters (deterministic, synthetic) with all layout packing done at init
# --------------------------------------------------------------------------
def _fold_bn(gamma, beta, mean, var, eps=1e-5):
    scale = gamma * jax.lax.rsqrt(var + eps)
    return scale, beta - mean * scale


def _make_bn(key, c):
    k1, k2, k3, k4 = jax.random.split(key, 4)
    gamma = 0.5 + jax.random.uniform(k1, (c,), jnp.float32)
    beta = 0.1 * jax.random.normal(k2, (c,), jnp.float32)
    mean = 0.1 * jax.random.normal(k3, (c,), jnp.float32)
    var = 0.5 + jax.random.uniform(k4, (c,), jnp.float32)
    return _fold_bn(gamma, beta, mean, var)


def init_params(key, *, num_classes, Ho, Wo):
    ks = jax.random.split(key, 10)
    w_pre = 0.10 * jax.random.normal(ks[0], (3, 3, 3, C), jnp.float32)   # HWIO
    w_sc = 0.10 * jax.random.normal(ks[2], (C, C), jnp.float32)
    w_l1 = 0.05 * jax.random.normal(ks[4], (3, 3, C, C), jnp.float32)
    w_l2 = 0.05 * jax.random.normal(ks[6], (3, 3, C, C), jnp.float32)
    s_pre, b_pre = _make_bn(ks[1], C)
    s_sc, b_sc = _make_bn(ks[3], C)
    s_l1, b_l1 = _make_bn(ks[5], C)
    s_l2, b_l2 = _make_bn(ks[7], C)

    # pre conv as a (27, C) im2col weight (tap order: dy, dx, cin).
    wpre_col = w_pre.reshape(27, C).astype(jnp.bfloat16)

    # output-packed 3x3 weights: per kernel row, RHS columns = [dx=0 | dx=1 | dx=2
    # (| 1x1 shortcut on the dy=1 row)].
    def pack(w, extra=None):
        rows = []
        for dy in range(3):
            cols = [w[dy, dx] for dx in range(3)]
            if extra is not None:
                cols.append(extra if dy == 1 else jnp.zeros_like(extra))
            rows.append(jnp.concatenate(cols, axis=1))
        return jnp.stack(rows, axis=0)

    w1p = pack(w_l1, extra=w_sc).astype(jnp.bfloat16)   # (3, C, 4C)
    w2p = pack(w_l2).astype(jnp.bfloat16)               # (3, C, 3C)

    bn = jnp.stack([s_pre, b_pre, s_l1, b_l1, s_l2, b_l2, s_sc, b_sc]
                   ).astype(jnp.float32)                # (8, C)

    # fc: generated in the torch layout (num_classes, C*Ho*Wo with NCHW flatten),
    # then rows permuted once so it consumes the NHWC flatten (p*C + c).
    P = Ho * Wo
    feat = C * P
    fc_w = 0.01 * jax.random.normal(ks[8], (num_classes, feat), jnp.float32)
    fc_b = 0.01 * jax.random.normal(ks[9], (num_classes,), jnp.float32)
    wT = fc_w.T.reshape(C, P, num_classes).transpose(1, 0, 2).reshape(feat, num_classes)
    wT = jnp.pad(wT, ((0, 0), (0, KPAD - num_classes))).astype(jnp.bfloat16)
    fc_bias = jnp.pad(fc_b, (0, KPAD - num_classes)).reshape(1, KPAD).astype(jnp.float32)

    return {"wpre_col": wpre_col, "w1p": w1p, "w2p": w2p, "bn": bn,
            "fc_wT": wT, "fc_b": fc_bias}


# --------------------------------------------------------------------------
# Full forward pass
# --------------------------------------------------------------------------
def one_layer_resnet(params, x_nchw, *, num_classes):
    N, Cin, H, W = x_nchw.shape
    assert Cin == 3 and H % 2 == 0 and W % 2 == 0
    Ho, Wo = H // 2, W // 2

    # NCHW -> NHWC (tiny 3-channel input), 3x3 im2col (K=27), then split by the
    # parity of the conv-output pixel so the kernel never needs a strided
    # spatial subsample for the stride-2 maxpool.
    x = jnp.transpose(x_nchw, (0, 2, 3, 1)).astype(jnp.float32)
    xp = jnp.pad(x, ((0, 0), (1, 1), (1, 1), (0, 0)))
    cols = jnp.concatenate(
        [xp[:, dy:dy + H, dx:dx + W, :] for dy in range(3) for dx in range(3)],
        axis=-1)                                               # (N, H, W, 27)
    groups = [cols[:, 0::2, 0::2], cols[:, 0::2, 1::2],
              cols[:, 1::2, 0::2], cols[:, 1::2, 1::2]]
    xcol = jnp.stack(groups, axis=1).reshape(N, 4 * Ho * Wo, 27).astype(jnp.bfloat16)

    feats = fused_forward(xcol, params["wpre_col"], params["w1p"], params["w2p"],
                          params["bn"], Ho=Ho, Wo=Wo, N=N)     # (N, Ho, Wo, 64) bf16
    flat = feats.reshape(N, Ho * Wo * C)                        # free NHWC flatten
    logits = fc_forward(flat, params["fc_wT"], params["fc_b"])  # (N, 128)
    return logits[:, :num_classes]


if __name__ == "__main__":
    key = jax.random.PRNGKey(0)
    k_x, k_p = jax.random.split(key)

    N, Cin, H, W = 2, 3, 16, 16                # small demo shapes (NCHW input)
    num_classes = 2
    Ho, Wo = H // 2, W // 2

    x = jax.random.normal(k_x, (N, Cin, H, W), jnp.float32)
    params = init_params(k_p, num_classes=num_classes, Ho=Ho, Wo=Wo)

    fwd = jax.jit(lambda p, xx: one_layer_resnet(p, xx, num_classes=num_classes))
    out = jax.block_until_ready(fwd(params, x))

    assert out.shape == (N, num_classes)
    assert bool(jnp.all(jnp.isfinite(out)))
    print("KERNEL_OK")
</pallas_src>

<mosaic_0001>
module attributes {stable_mosaic.version = 11 : i64} {
  func.func @kernel(%arg0: i32, %arg1: memref<1x256x27xbf16, #tpu.memory_space<vmem>>, %arg2: memref<27x64xbf16, #tpu.memory_space<vmem>>, %arg3: memref<3x64x256xbf16, #tpu.memory_space<vmem>>, %arg4: memref<3x64x192xbf16, #tpu.memory_space<vmem>>, %arg5: memref<8x64xf32, #tpu.memory_space<vmem>>, %arg6: memref<1x8x8x64xbf16, #tpu.memory_space<vmem>>, %arg7: memref<10x10x64xbf16, #tpu.memory_space<vmem>>, %arg8: memref<8x8x64xf32, #tpu.memory_space<vmem>>) attributes {dimension_semantics = [#tpu.dimension_semantics<parallel>], iteration_bounds = array<i64: 2>, scalar_prefetch = 0 : i64, scratch_operands = 2 : i64, tpu.core_type = #tpu.core_type<tc>, window_params = [{transform_indices = @transform_0, window_bounds = array<i64: 1, 256, 27>}, {pipeline_mode = #tpu.pipeline_mode<synchronous>, transform_indices = @transform_1, window_bounds = array<i64: 27, 64>}, {pipeline_mode = #tpu.pipeline_mode<synchronous>, transform_indices = @transform_2, window_bounds = array<i64: 3, 64, 256>}, {pipeline_mode = #tpu.pipeline_mode<synchronous>, transform_indices = @transform_3, window_bounds = array<i64: 3, 64, 192>}, {pipeline_mode = #tpu.pipeline_mode<synchronous>, transform_indices = @transform_4, window_bounds = array<i64: 8, 64>}, {transform_indices = @transform_5, window_bounds = array<i64: 1, 8, 8, 64>}]} {
    %c0 = arith.constant 0 : index
    %c0_0 = arith.constant 0 : index
    %c0_1 = arith.constant 0 : index
    %0 = vector.load %arg1[%c0, %c0_0, %c0_1] : memref<1x256x27xbf16, #tpu.memory_space<vmem>>, vector<1x256x27xbf16>
    %1 = vector.shape_cast %0 : vector<1x256x27xbf16> to vector<256x27xbf16>
    %c0_2 = arith.constant 0 : index
    %c0_3 = arith.constant 0 : index
    %2 = vector.load %arg2[%c0_2, %c0_3] : memref<27x64xbf16, #tpu.memory_space<vmem>>, vector<27x64xbf16>
    %cst = arith.constant dense<0.000000e+00> : vector<256x64xf32>
    %3 = tpu.matmul %1, %2, %cst {dimension_numbers = #tpu.dot_dimension_numbers<[1], [0], [0], [1], [0, 0, 1, 1], [], []>} : vector<256x27xbf16>, vector<27x64xbf16>, vector<256x64xf32> -> vector<256x64xf32>
    %c0_4 = arith.constant 0 : index
    %c0_5 = arith.constant 0 : index
    %4 = vector.load %arg5[%c0_4, %c0_5] : memref<8x64xf32, #tpu.memory_space<vmem>>, vector<1x64xf32>
    %5 = vector.broadcast %4 : vector<1x64xf32> to vector<256x64xf32>
    %6 = arith.mulf %3, %5 : vector<256x64xf32>
    %c1 = arith.constant 1 : index
    %c0_6 = arith.constant 0 : index
    %7 = vector.load %arg5[%c1, %c0_6] : memref<8x64xf32, #tpu.memory_space<vmem>>, vector<1x64xf32>
    %8 = vector.broadcast %7 : vector<1x64xf32> to vector<256x64xf32>
    %9 = arith.addf %6, %8 : vector<256x64xf32>
    %cst_7 = arith.constant 0.000000e+00 : f32
    %10 = vector.broadcast %cst_7 : f32 to vector<256x64xf32>
    %11 = arith.maximumf %9, %10 : vector<256x64xf32>
    %12 = vector.shape_cast %11 : vector<256x64xf32> to vector<4x8x8x64xf32>
    %13 = vector.extract_strided_slice %12 {offsets = [0, 0, 0, 0], sizes = [1, 8, 8, 64], strides = [1, 1, 1, 1]} : vector<4x8x8x64xf32> to vector<1x8x8x64xf32>
    %14 = vector.shape_cast %13 : vector<1x8x8x64xf32> to vector<8x8x64xf32>
    %15 = vector.extract_strided_slice %12 {offsets = [1, 0, 0, 0], sizes = [1, 8, 8, 64], strides = [1, 1, 1, 1]} : vector<4x8x8x64xf32> to vector<1x8x8x64xf32>
    %16 = vector.shape_cast %15 : vector<1x8x8x64xf32> to vector<8x8x64xf32>
    %17 = vector.extract_strided_slice %12 {offsets = [2, 0, 0, 0], sizes = [1, 8, 8, 64], strides = [1, 1, 1, 1]} : vector<4x8x8x64xf32> to vector<1x8x8x64xf32>
    %18 = vector.shape_cast %17 : vector<1x8x8x64xf32> to vector<8x8x64xf32>
    %19 = vector.extract_strided_slice %12 {offsets = [3, 0, 0, 0], sizes = [1, 8, 8, 64], strides = [1, 1, 1, 1]} : vector<4x8x8x64xf32> to vector<1x8x8x64xf32>
    %20 = vector.shape_cast %19 : vector<1x8x8x64xf32> to vector<8x8x64xf32>
    %21 = arith.maximumf %14, %16 : vector<8x8x64xf32>
    %22 = arith.maximumf %18, %20 : vector<8x8x64xf32>
    %23 = arith.maximumf %21, %22 : vector<8x8x64xf32>
    %c0_8 = arith.constant 0 : index
    %c0_9 = arith.constant 0 : index
    %c0_10 = arith.constant 0 : index
    %24 = vector.load %arg8[%c0_8, %c0_9, %c0_10] : memref<8x8x64xf32, #tpu.memory_space<vmem>>, vector<8x8x64xf32>
    tpu.vector_store %arg8[%c0_8, %c0_9, %c0_10], %23 {strides = array<i32>} : memref<8x8x64xf32, #tpu.memory_space<vmem>>, vector<8x8x64xf32>,
    %c0_11 = arith.constant 0 : index
    %c1_12 = arith.constant 1 : index
    %c0_13 = arith.constant 0 : index
    %25 = vector.load %arg8[%c0_11, %c1_12, %c0_13] : memref<8x8x64xf32, #tpu.memory_space<vmem>>, vector<8x7x64xf32>
    %26 = arith.maximumf %16, %20 : vector<8x8x64xf32>
    %27 = vector.extract_strided_slice %26 {offsets = [0, 0, 0], sizes = [8, 7, 64], strides = [1, 1, 1]} : vector<8x8x64xf32> to vector<8x7x64xf32>
    %28 = arith.maximumf %25, %27 : vector<8x7x64xf32>
    %c0_14 = arith.constant 0 : index
    %c1_15 = arith.constant 1 : index
    %c0_16 = arith.constant 0 : index
    %29 = vector.load %arg8[%c0_14, %c1_15, %c0_16] : memref<8x8x64xf32, #tpu.memory_space<vmem>>, vector<8x7x64xf32>
    tpu.vector_store %arg8[%c0_14, %c1_15, %c0_16], %28 {strides = array<i32>} : memref<8x8x64xf32, #tpu.memory_space<vmem>>, vector<8x7x64xf32>,
    %c1_17 = arith.constant 1 : index
    %c0_18 = arith.constant 0 : index
    %c0_19 = arith.constant 0 : index
    %30 = vector.load %arg8[%c1_17, %c0_18, %c0_19] : memref<8x8x64xf32, #tpu.memory_space<vmem>>, vector<7x8x64xf32>
    %31 = arith.maximumf %18, %20 : vector<8x8x64xf32>
    %32 = vector.extract_strided_slice %31 {offsets = [0, 0, 0], sizes = [7, 8, 64], strides = [1, 1, 1]} : vector<8x8x64xf32> to vector<7x8x64xf32>
    %33 = arith.maximumf %30, %32 : vector<7x8x64xf32>
    %c1_20 = arith.constant 1 : index
    %c0_21 = arith.constant 0 : index
    %c0_22 = arith.constant 0 : index
    %34 = vector.load %arg8[%c1_20, %c0_21, %c0_22] : memref<8x8x64xf32, #tpu.memory_space<vmem>>, vector<7x8x64xf32>
    tpu.vector_store %arg8[%c1_20, %c0_21, %c0_22], %33 {strides = array<i32>} : memref<8x8x64xf32, #tpu.memory_space<vmem>>, vector<7x8x64xf32>,
    %c1_23 = arith.constant 1 : index
    %c1_24 = arith.constant 1 : index
    %c0_25 = arith.constant 0 : index
    %35 = vector.load %arg8[%c1_23, %c1_24, %c0_25] : memref<8x8x64xf32, #tpu.memory_space<vmem>>, vector<7x7x64xf32>
    %36 = vector.extract_strided_slice %20 {offsets = [0, 0, 0], sizes = [7, 7, 64], strides = [1, 1, 1]} : vector<8x8x64xf32> to vector<7x7x64xf32>
    %37 = arith.maximumf %35, %36 : vector<7x7x64xf32>
    %c1_26 = arith.constant 1 : index
    %c1_27 = arith.constant 1 : index
    %c0_28 = arith.constant 0 : index
    %38 = vector.load %arg8[%c1_26, %c1_27, %c0_28] : memref<8x8x64xf32, #tpu.memory_space<vmem>>, vector<7x7x64xf32>
    tpu.vector_store %arg8[%c1_26, %c1_27, %c0_28], %37 {strides = array<i32>} : memref<8x8x64xf32, #tpu.memory_space<vmem>>, vector<7x7x64xf32>,
    %cst_29 = arith.constant 0.000000e+00 : bf16
    %39 = vector.broadcast %cst_29 : bf16 to vector<10x10x64xbf16>
    %c0_30 = arith.constant 0 : index
    %c0_31 = arith.constant 0 : index
    %c0_32 = arith.constant 0 : index
    %40 = vector.load %arg7[%c0_30, %c0_31, %c0_32] : memref<10x10x64xbf16, #tpu.memory_space<vmem>>, vector<10x10x64xbf16>
    tpu.vector_store %arg7[%c0_30, %c0_31, %c0_32], %39 {strides = array<i32>} : memref<10x10x64xbf16, #tpu.memory_space<vmem>>, vector<10x10x64xbf16>,
    %c0_33 = arith.constant 0 : index
    %c0_34 = arith.constant 0 : index
    %c0_35 = arith.constant 0 : index
    %41 = vector.load %arg8[%c0_33, %c0_34, %c0_35] : memref<8x8x64xf32, #tpu.memory_space<vmem>>, vector<8x8x64xf32>
    %42 = arith.truncf %41 : vector<8x8x64xf32> to vector<8x8x64xbf16>
    %c1_36 = arith.constant 1 : index
    %c1_37 = arith.constant 1 : index
    %c0_38 = arith.constant 0 : index
    %43 = vector.load %arg7[%c1_36, %c1_37, %c0_38] : memref<10x10x64xbf16, #tpu.memory_space<vmem>>, vector<8x8x64xbf16>
    tpu.vector_store %arg7[%c1_36, %c1_37, %c0_38], %42 {strides = array<i32>} : memref<10x10x64xbf16, #tpu.memory_space<vmem>>, vector<8x8x64xbf16>,
    %cst_39 = arith.constant 0.000000e+00 : f32
    %44 = vector.broadcast %cst_39 : f32 to vector<8x8x64xf32>
    %c0_40 = arith.constant 0 : index
    %c0_41 = arith.constant 0 : index
    %c0_42 = arith.constant 0 : index
    %45 = vector.load %arg7[%c0_40, %c0_41, %c0_42] : memref<10x10x64xbf16, #tpu.memory_space<vmem>>, vector<8x10x64xbf16>
    %46 = vector.shape_cast %45 : vector<8x10x64xbf16> to vector<80x64xbf16>
    %c0_43 = arith.constant 0 : index
    %c0_44 = arith.constant 0 : index
    %c0_45 = arith.constant 0 : index
    %47 = vector.load %arg3[%c0_43, %c0_44, %c0_45] : memref<3x64x256xbf16, #tpu.memory_space<vmem>>, vector<1x64x256xbf16>
    %48 = vector.shape_cast %47 : vector<1x64x256xbf16> to vector<64x256xbf16>
    %cst_46 = arith.constant dense<0.000000e+00> : vector<80x256xf32>
    %49 = tpu.matmul %46, %48, %cst_46 {dimension_numbers = #tpu.dot_dimension_numbers<[1], [0], [0], [1], [0, 0, 1, 1], [], []>} : vector<80x64xbf16>, vector<64x256xbf16>, vector<80x256xf32> -> vector<80x256xf32>
    %50 = vector.shape_cast %49 : vector<80x256xf32> to vector<8x10x256xf32>
    %51 = vector.extract_strided_slice %50 {offsets = [0, 0, 0], sizes = [8, 8, 64], strides = [1, 1, 1]} : vector<8x10x256xf32> to vector<8x8x64xf32>
    %52 = arith.addf %44, %51 : vector<8x8x64xf32>
    %53 = vector.extract_strided_slice %50 {offsets = [0, 1, 64], sizes = [8, 8, 64], strides = [1, 1, 1]} : vector<8x10x256xf32> to vector<8x8x64xf32>
    %54 = arith.addf %52, %53 : vector<8x8x64xf32>
    %55 = vector.extract_strided_slice %50 {offsets = [0, 2, 128], sizes = [8, 8, 64], strides = [1, 1, 1]} : vector<8x10x256xf32> to vector<8x8x64xf32>
    %56 = arith.addf %54, %55 : vector<8x8x64xf32>
    %c1_47 = arith.constant 1 : index
    %c0_48 = arith.constant 0 : index
    %c0_49 = arith.constant 0 : index
    %57 = vector.load %arg7[%c1_47, %c0_48, %c0_49] : memref<10x10x64xbf16, #tpu.memory_space<vmem>>, vector<8x10x64xbf16>
    %58 = vector.shape_cast %57 : vector<8x10x64xbf16> to vector<80x64xbf16>
    %c1_50 = arith.constant 1 : index
    %c0_51 = arith.constant 0 : index
    %c0_52 = arith.constant 0 : index
    %59 = vector.load %arg3[%c1_50, %c0_51, %c0_52] : memref<3x64x256xbf16, #tpu.memory_space<vmem>>, vector<1x64x256xbf16>
    %60 = vector.shape_cast %59 : vector<1x64x256xbf16> to vector<64x256xbf16>
    %cst_53 = arith.constant dense<0.000000e+00> : vector<80x256xf32>
    %61 = tpu.matmul %58, %60, %cst_53 {dimension_numbers = #tpu.dot_dimension_numbers<[1], [0], [0], [1], [0, 0, 1, 1], [], []>} : vector<80x64xbf16>, vector<64x256xbf16>, vector<80x256xf32> -> vector<80x256xf32>
    %62 = vector.shape_cast %61 : vector<80x256xf32> to vector<8x10x256xf32>
    %63 = vector.extract_strided_slice %62 {offsets = [0, 0, 0], sizes = [8, 8, 64], strides = [1, 1, 1]} : vector<8x10x256xf32> to vector<8x8x64xf32>
    %64 = arith.addf %56, %63 : vector<8x8x64xf32>
    %65 = vector.extract_strided_slice %62 {offsets = [0, 1, 64], sizes = [8, 8, 64], strides = [1, 1, 1]} : vector<8x10x256xf32> to vector<8x8x64xf32>
    %66 = arith.addf %64, %65 : vector<8x8x64xf32>
    %67 = vector.extract_strided_slice %62 {offsets = [0, 2, 128], sizes = [8, 8, 64], strides = [1, 1, 1]} : vector<8x10x256xf32> to vector<8x8x64xf32>
    %68 = arith.addf %66, %67 : vector<8x8x64xf32>
    %c2 = arith.constant 2 : index
    %c0_54 = arith.constant 0 : index
    %c0_55 = arith.constant 0 : index
    %69 = vector.load %arg7[%c2, %c0_54, %c0_55] : memref<10x10x64xbf16, #tpu.memory_space<vmem>>, vector<8x10x64xbf16>
    %70 = vector.shape_cast %69 : vector<8x10x64xbf16> to vector<80x64xbf16>
    %c2_56 = arith.constant 2 : index
    %c0_57 = arith.constant 0 : index
    %c0_58 = arith.constant 0 : index
    %71 = vector.load %arg3[%c2_56, %c0_57, %c0_58] : memref<3x64x256xbf16, #tpu.memory_space<vmem>>, vector<1x64x256xbf16>
    %72 = vector.shape_cast %71 : vector<1x64x256xbf16> to vector<64x256xbf16>
    %cst_59 = arith.constant dense<0.000000e+00> : vector<80x256xf32>
    %73 = tpu.matmul %70, %72, %cst_59 {dimension_numbers = #tpu.dot_dimension_numbers<[1], [0], [0], [1], [0, 0, 1, 1], [], []>} : vector<80x64xbf16>, vector<64x256xbf16>, vector<80x256xf32> -> vector<80x256xf32>
    %74 = vector.shape_cast %73 : vector<80x256xf32> to vector<8x10x256xf32>
    %75 = vector.extract_strided_slice %74 {offsets = [0, 0, 0], sizes = [8, 8, 64], strides = [1, 1, 1]} : vector<8x10x256xf32> to vector<8x8x64xf32>
    %76 = arith.addf %68, %75 : vector<8x8x64xf32>
    %77 = vector.extract_strided_slice %74 {offsets = [0, 1, 64], sizes = [8, 8, 64], strides = [1, 1, 1]} : vector<8x10x256xf32> to vector<8x8x64xf32>
    %78 = arith.addf %76, %77 : vector<8x8x64xf32>
    %79 = vector.extract_strided_slice %74 {offsets = [0, 2, 128], sizes = [8, 8, 64], strides = [1, 1, 1]} : vector<8x10x256xf32> to vector<8x8x64xf32>
    %80 = arith.addf %78, %79 : vector<8x8x64xf32>
    %81 = vector.extract_strided_slice %62 {offsets = [0, 1, 192], sizes = [8, 8, 64], strides = [1, 1, 1]} : vector<8x10x256xf32> to vector<8x8x64xf32>
    %82 = vector.shape_cast %81 : vector<8x8x64xf32> to vector<64x64xf32>
    %c6 = arith.constant 6 : index
    %c0_60 = arith.constant 0 : index
    %83 = vector.load %arg5[%c6, %c0_60] : memref<8x64xf32, #tpu.memory_space<vmem>>, vector<1x64xf32>
    %84 = vector.broadcast %83 : vector<1x64xf32> to vector<64x64xf32>
    %85 = arith.mulf %82, %84 : vector<64x64xf32>
    %c7 = arith.constant 7 : index
    %c0_61 = arith.constant 0 : index
    %86 = vector.load %arg5[%c7, %c0_61] : memref<8x64xf32, #tpu.memory_space<vmem>>, vector<1x64xf32>
    %87 = vector.broadcast %86 : vector<1x64xf32> to vector<64x64xf32>
    %88 = arith.addf %85, %87 : vector<64x64xf32>
    %89 = vector.shape_cast %80 : vector<8x8x64xf32> to vector<64x64xf32>
    %c2_62 = arith.constant 2 : index
    %c0_63 = arith.constant 0 : index
    %90 = vector.load %arg5[%c2_62, %c0_63] : memref<8x64xf32, #tpu.memory_space<vmem>>, vector<1x64xf32>
    %91 = vector.broadcast %90 : vector<1x64xf32> to vector<64x64xf32>
    %92 = arith.mulf %89, %91 : vector<64x64xf32>
    %c3 = arith.constant 3 : index
    %c0_64 = arith.constant 0 : index
    %93 = vector.load %arg5[%c3, %c0_64] : memref<8x64xf32, #tpu.memory_space<vmem>>, vector<1x64xf32>
    %94 = vector.broadcast %93 : vector<1x64xf32> to vector<64x64xf32>
    %95 = arith.addf %92, %94 : vector<64x64xf32>
    %cst_65 = arith.constant 0.000000e+00 : f32
    %96 = vector.broadcast %cst_65 : f32 to vector<64x64xf32>
    %97 = arith.maximumf %95, %96 : vector<64x64xf32>
    %98 = vector.shape_cast %97 : vector<64x64xf32> to vector<8x8x64xf32>
    %99 = arith.truncf %98 : vector<8x8x64xf32> to vector<8x8x64xbf16>
    %c1_66 = arith.constant 1 : index
    %c1_67 = arith.constant 1 : index
    %c0_68 = arith.constant 0 : index
    %100 = vector.load %arg7[%c1_66, %c1_67, %c0_68] : memref<10x10x64xbf16, #tpu.memory_space<vmem>>, vector<8x8x64xbf16>
    tpu.vector_store %arg7[%c1_66, %c1_67, %c0_68], %99 {strides = array<i32>} : memref<10x10x64xbf16, #tpu.memory_space<vmem>>, vector<8x8x64xbf16>,
    %cst_69 = arith.constant 0.000000e+00 : f32
    %101 = vector.broadcast %cst_69 : f32 to vector<8x8x64xf32>
    %c0_70 = arith.constant 0 : index
    %c0_71 = arith.constant 0 : index
    %c0_72 = arith.constant 0 : index
    %102 = vector.load %arg7[%c0_70, %c0_71, %c0_72] : memref<10x10x64xbf16, #tpu.memory_space<vmem>>, vector<8x10x64xbf16>
    %103 = vector.shape_cast %102 : vector<8x10x64xbf16> to vector<80x64xbf16>
    %c0_73 = arith.constant 0 : index
    %c0_74 = arith.constant 0 : index
    %c0_75 = arith.constant 0 : index
    %104 = vector.load %arg4[%c0_73, %c0_74, %c0_75] : memref<3x64x192xbf16, #tpu.memory_space<vmem>>, vector<1x64x192xbf16>
    %105 = vector.shape_cast %104 : vector<1x64x192xbf16> to vector<64x192xbf16>
    %cst_76 = arith.constant dense<0.000000e+00> : vector<80x192xf32>
    %106 = tpu.matmul %103, %105, %cst_76 {dimension_numbers = #tpu.dot_dimension_numbers<[1], [0], [0], [1], [0, 0, 1, 1], [], []>} : vector<80x64xbf16>, vector<64x192xbf16>, vector<80x192xf32> -> vector<80x192xf32>
    %107 = vector.shape_cast %106 : vector<80x192xf32> to vector<8x10x192xf32>
    %108 = vector.extract_strided_slice %107 {offsets = [0, 0, 0], sizes = [8, 8, 64], strides = [1, 1, 1]} : vector<8x10x192xf32> to vector<8x8x64xf32>
    %109 = arith.addf %101, %108 : vector<8x8x64xf32>
    %110 = vector.extract_strided_slice %107 {offsets = [0, 1, 64], sizes = [8, 8, 64], strides = [1, 1, 1]} : vector<8x10x192xf32> to vector<8x8x64xf32>
    %111 = arith.addf %109, %110 : vector<8x8x64xf32>
    %112 = vector.extract_strided_slice %107 {offsets = [0, 2, 128], sizes = [8, 8, 64], strides = [1, 1, 1]} : vector<8x10x192xf32> to vector<8x8x64xf32>
    %113 = arith.addf %111, %112 : vector<8x8x64xf32>
    %c1_77 = arith.constant 1 : index
    %c0_78 = arith.constant 0 : index
    %c0_79 = arith.constant 0 : index
    %114 = vector.load %arg7[%c1_77, %c0_78, %c0_79] : memref<10x10x64xbf16, #tpu.memory_space<vmem>>, vector<8x10x64xbf16>
    %115 = vector.shape_cast %114 : vector<8x10x64xbf16> to vector<80x64xbf16>
    %c1_80 = arith.constant 1 : index
    %c0_81 = arith.constant 0 : index
    %c0_82 = arith.constant 0 : index
    %116 = vector.load %arg4[%c1_80, %c0_81, %c0_82] : memref<3x64x192xbf16, #tpu.memory_space<vmem>>, vector<1x64x192xbf16>
    %117 = vector.shape_cast %116 : vector<1x64x192xbf16> to vector<64x192xbf16>
    %cst_83 = arith.constant dense<0.000000e+00> : vector<80x192xf32>
    %118 = tpu.matmul %115, %117, %cst_83 {dimension_numbers = #tpu.dot_dimension_numbers<[1], [0], [0], [1], [0, 0, 1, 1], [], []>} : vector<80x64xbf16>, vector<64x192xbf16>, vector<80x192xf32> -> vector<80x192xf32>
    %119 = vector.shape_cast %118 : vector<80x192xf32> to vector<8x10x192xf32>
    %120 = vector.extract_strided_slice %119 {offsets = [0, 0, 0], sizes = [8, 8, 64], strides = [1, 1, 1]} : vector<8x10x192xf32> to vector<8x8x64xf32>
    %121 = arith.addf %113, %120 : vector<8x8x64xf32>
    %122 = vector.extract_strided_slice %119 {offsets = [0, 1, 64], sizes = [8, 8, 64], strides = [1, 1, 1]} : vector<8x10x192xf32> to vector<8x8x64xf32>
    %123 = arith.addf %121, %122 : vector<8x8x64xf32>
    %124 = vector.extract_strided_slice %119 {offsets = [0, 2, 128], sizes = [8, 8, 64], strides = [1, 1, 1]} : vector<8x10x192xf32> to vector<8x8x64xf32>
    %125 = arith.addf %123, %124 : vector<8x8x64xf32>
    %c2_84 = arith.constant 2 : index
    %c0_85 = arith.constant 0 : index
    %c0_86 = arith.constant 0 : index
    %126 = vector.load %arg7[%c2_84, %c0_85, %c0_86] : memref<10x10x64xbf16, #tpu.memory_space<vmem>>, vector<8x10x64xbf16>
    %127 = vector.shape_cast %126 : vector<8x10x64xbf16> to vector<80x64xbf16>
    %c2_87 = arith.constant 2 : index
    %c0_88 = arith.constant 0 : index
    %c0_89 = arith.constant 0 : index
    %128 = vector.load %arg4[%c2_87, %c0_88, %c0_89] : memref<3x64x192xbf16, #tpu.memory_space<vmem>>, vector<1x64x192xbf16>
    %129 = vector.shape_cast %128 : vector<1x64x192xbf16> to vector<64x192xbf16>
    %cst_90 = arith.constant dense<0.000000e+00> : vector<80x192xf32>
    %130 = tpu.matmul %127, %129, %cst_90 {dimension_numbers = #tpu.dot_dimension_numbers<[1], [0], [0], [1], [0, 0, 1, 1], [], []>} : vector<80x64xbf16>, vector<64x192xbf16>, vector<80x192xf32> -> vector<80x192xf32>
    %131 = vector.shape_cast %130 : vector<80x192xf32> to vector<8x10x192xf32>
    %132 = vector.extract_strided_slice %131 {offsets = [0, 0, 0], sizes = [8, 8, 64], strides = [1, 1, 1]} : vector<8x10x192xf32> to vector<8x8x64xf32>
    %133 = arith.addf %125, %132 : vector<8x8x64xf32>
    %134 = vector.extract_strided_slice %131 {offsets = [0, 1, 64], sizes = [8, 8, 64], strides = [1, 1, 1]} : vector<8x10x192xf32> to vector<8x8x64xf32>
    %135 = arith.addf %133, %134 : vector<8x8x64xf32>
    %136 = vector.extract_strided_slice %131 {offsets = [0, 2, 128], sizes = [8, 8, 64], strides = [1, 1, 1]} : vector<8x10x192xf32> to vector<8x8x64xf32>
    %137 = arith.addf %135, %136 : vector<8x8x64xf32>
    %138 = vector.shape_cast %137 : vector<8x8x64xf32> to vector<64x64xf32>
    %c4 = arith.constant 4 : index
    %c0_91 = arith.constant 0 : index
    %139 = vector.load %arg5[%c4, %c0_91] : memref<8x64xf32, #tpu.memory_space<vmem>>, vector<1x64xf32>
    %140 = vector.broadcast %139 : vector<1x64xf32> to vector<64x64xf32>
    %141 = arith.mulf %138, %140 : vector<64x64xf32>
    %c5 = arith.constant 5 : index
    %c0_92 = arith.constant 0 : index
    %142 = vector.load %arg5[%c5, %c0_92] : memref<8x64xf32, #tpu.memory_space<vmem>>, vector<1x64xf32>
    %143 = vector.broadcast %142 : vector<1x64xf32> to vector<64x64xf32>
    %144 = arith.addf %141, %143 : vector<64x64xf32>
    %145 = arith.addf %144, %88 : vector<64x64xf32>
    %cst_93 = arith.constant 0.000000e+00 : f32
    %146 = vector.broadcast %cst_93 : f32 to vector<64x64xf32>
    %147 = arith.maximumf %145, %146 : vector<64x64xf32>
    %148 = vector.shape_cast %147 : vector<64x64xf32> to vector<1x8x8x64xf32>
    %149 = arith.truncf %148 : vector<1x8x8x64xf32> to vector<1x8x8x64xbf16>
    %c0_94 = arith.constant 0 : index
    %c0_95 = arith.constant 0 : index
    %c0_96 = arith.constant 0 : index
    %c0_97 = arith.constant 0 : index
    %150 = vector.load %arg6[%c0_94, %c0_95, %c0_96, %c0_97] : memref<1x8x8x64xbf16, #tpu.memory_space<vmem>>, vector<1x8x8x64xbf16>
    tpu.vector_store %arg6[%c0_94, %c0_95, %c0_96, %c0_97], %149 {strides = array<i32>} : memref<1x8x8x64xbf16, #tpu.memory_space<vmem>>, vector<1x8x8x64xbf16>,
    return
  }
  func.func @transform_0(%arg0: i32) -> (i32, i32, i32) {
    %c0_i32 = arith.constant 0 : i32
    %c0_i32_0 = arith.constant 0 : i32
    %c0_i32_1 = arith.constant 0 : i32
    return %arg0, %c0_i32, %c0_i32_0 : i32, i32, i32
  }
  func.func @transform_1(%arg0: i32) -> (i32, i32) {
    %c0_i32 = arith.constant 0 : i32
    %c0_i32_0 = arith.constant 0 : i32
    %c0_i32_1 = arith.constant 0 : i32
    return %c0_i32, %c0_i32_0 : i32, i32
  }
  func.func @transform_2(%arg0: i32) -> (i32, i32, i32) {
    %c0_i32 = arith.constant 0 : i32
    %c0_i32_0 = arith.constant 0 : i32
    %c0_i32_1 = arith.constant 0 : i32
    %c0_i32_2 = arith.constant 0 : i32
    return %c0_i32, %c0_i32_0, %c0_i32_1 : i32, i32, i32
  }
  func.func @transform_3(%arg0: i32) -> (i32, i32, i32) {
    %c0_i32 = arith.constant 0 : i32
    %c0_i32_0 = arith.constant 0 : i32
    %c0_i32_1 = arith.constant 0 : i32
    %c0_i32_2 = arith.constant 0 : i32
    return %c0_i32, %c0_i32_0, %c0_i32_1 : i32, i32, i32
  }
  func.func @transform_4(%arg0: i32) -> (i32, i32) {
    %c0_i32 = arith.constant 0 : i32
    %c0_i32_0 = arith.constant 0 : i32
    %c0_i32_1 = arith.constant 0 : i32
    return %c0_i32, %c0_i32_0 : i32, i32
  }
  func.func @transform_5(%arg0: i32) -> (i32, i32, i32, i32) {
    %c0_i32 = arith.constant 0 : i32
    %c0_i32_0 = arith.constant 0 : i32
    %c0_i32_1 = arith.constant 0 : i32
    %c0_i32_2 = arith.constant 0 : i32
    return %arg0, %c0_i32, %c0_i32_0, %c0_i32_1 : i32, i32, i32, i32
  }
}

module attributes {stable_mosaic.version = 11 : i64} {
  func.func @_fc_kernel(%arg0: i32, %arg1: memref<2x4096xbf16, #tpu.memory_space<vmem>>, %arg2: memref<4096x128xbf16, #tpu.memory_space<vmem>>, %arg3: memref<1x128xf32, #tpu.memory_space<vmem>>, %arg4: memref<2x128xf32, #tpu.memory_space<vmem>>) attributes {dimension_semantics = [#tpu.dimension_semantics<arbitrary>], iteration_bounds = array<i64: 1>, scalar_prefetch = 0 : i64, scratch_operands = 0 : i64, tpu.core_type = #tpu.core_type<tc>, window_params = [{pipeline_mode = #tpu.pipeline_mode<synchronous>, transform_indices = @transform_0, window_bounds = array<i64: 2, 4096>}, {pipeline_mode = #tpu.pipeline_mode<synchronous>, transform_indices = @transform_1, window_bounds = array<i64: 4096, 128>}, {pipeline_mode = #tpu.pipeline_mode<synchronous>, transform_indices = @transform_2, window_bounds = array<i64: 1, 128>}, {pipeline_mode = #tpu.pipeline_mode<synchronous>, transform_indices = @transform_3, window_bounds = array<i64: 2, 128>}]} {
    %c0 = arith.constant 0 : index
    %c0_0 = arith.constant 0 : index
    %0 = vector.load %arg1[%c0, %c0_0] : memref<2x4096xbf16, #tpu.memory_space<vmem>>, vector<2x4096xbf16>
    %c0_1 = arith.constant 0 : index
    %c0_2 = arith.constant 0 : index
    %1 = vector.load %arg2[%c0_1, %c0_2] : memref<4096x128xbf16, #tpu.memory_space<vmem>>, vector<4096x128xbf16>
    %cst = arith.constant dense<0.000000e+00> : vector<2x128xf32>
    %2 = tpu.matmul %0, %1, %cst {dimension_numbers = #tpu.dot_dimension_numbers<[1], [0], [0], [1], [0, 0, 1, 1], [], []>} : vector<2x4096xbf16>, vector<4096x128xbf16>, vector<2x128xf32> -> vector<2x128xf32>
    %c0_3 = arith.constant 0 : index
    %c0_4 = arith.constant 0 : index
    %3 = vector.load %arg3[%c0_3, %c0_4] : memref<1x128xf32, #tpu.memory_space<vmem>>, vector<1x128xf32>
    %4 = vector.broadcast %3 : vector<1x128xf32> to vector<2x128xf32>
    %5 = arith.addf %2, %4 : vector<2x128xf32>
    %c0_5 = arith.constant 0 : index
    %c0_6 = arith.constant 0 : index
    %6 = vector.load %arg4[%c0_5, %c0_6] : memref<2x128xf32, #tpu.memory_space<vmem>>, vector<2x128xf32>
    tpu.vector_store %arg4[%c0_5, %c0_6], %5 {strides = array<i32>} : memref<2x128xf32, #tpu.memory_space<vmem>>, vector<2x128xf32>,
    return
  }
  func.func @transform_0(%arg0: i32) -> (i32, i32) {
    %c0_i32 = arith.constant 0 : i32
    %c0_i32_0 = arith.constant 0 : i32
    %c0_i32_1 = arith.constant 0 : i32
    return %c0_i32, %c0_i32_0 : i32, i32
  }
  func.func @transform_1(%arg0: i32) -> (i32, i32) {
    %c0_i32 = arith.constant 0 : i32
    %c0_i32_0 = arith.constant 0 : i32
    %c0_i32_1 = arith.constant 0 : i32
    return %c0_i32, %c0_i32_0 : i32, i32
  }
  func.func @transform_2(%arg0: i32) -> (i32, i32) {
    %c0_i32 = arith.constant 0 : i32
    %c0_i32_0 = arith.constant 0 : i32
    %c0_i32_1 = arith.constant 0 : i32
    return %c0_i32, %c0_i32_0 : i32, i32
  }
  func.func @transform_3(%arg0: i32) -> (i32, i32) {
    %c0_i32 = arith.constant 0 : i32
    %c0_i32_0 = arith.constant 0 : i32
    %c0_i32_1 = arith.constant 0 : i32
    return %c0_i32, %c0_i32_0 : i32, i32
  }
}

</mosaic_0001>

<bundles_post_ra>
// kernel: _lambda_.3
= control target key start
LH: loop header
LB: loop body
LE: loop exit
PB: predicated region body
PF: predicated region fallthrough
CT: control target
= control target key end

     0   :  { %v547_v28 = vlaneseq  ;;  %v3857_v36 = vmov 1966171168   ;;  %s4720_s0 = inlined_call_operand.vmem [shape: bf16[2,4096], index: 0, kind: input, shape index: {}]   ;;  %s4721_s1 = inlined_call_operand.vmem [shape: bf16[4096,128], index: 1, kind: input, shape index: {}]   ;;  %s4722_s2 = inlined_call_operand.vmem [shape: f32[1,128], index: 2, kind: input, shape index: {}]   ;;  %s4723_s3 = inlined_call_operand.hbm [shape: f32[2,128], index: 3, kind: output, shape index: {}]  }
   0x1   :  { %v3573_v0 = vld [vmem:[%s4721_s1 + $0x40] sm:$0xff]   ;;  %v3577_v4 = vld [vmem:[%s4721_s1 + $0x48] sm:$0xff]   ;;  %v3581_v8 = vld [vmem:[%s4721_s1 + $0x50] sm:$0xff]   ;;  %v545_v37 = vunpack.c.l.s4 %v3857_v36 }
   0x2   :  { %v3574_v1 = vld [vmem:[%s4721_s1 + $0xc0] sm:$0xff]   ;;  %3219 = vmatprep.subr.bf16.mxu0 %v3573_v0  ;;  %v3578_v5 = vld [vmem:[%s4721_s1 + $0xc8] sm:$0xff]   ;;  %v3582_v9 = vld [vmem:[%s4721_s1 + $0xd0] sm:$0xff]   ;;  %v548_v33 = vshrl.u32 %v547_v28, 7 }
   0x3   :  { %v3575_v2 = vld [vmem:[%s4721_s1] sm:$0xff]   ;;  %3241 = vmatprep.subr.bf16.mxu1 %v3574_v1  ;;  %v3579_v6 = vld [vmem:[%s4721_s1 + $0x8] sm:$0xff]   ;;  %v3583_v10 = vld [vmem:[%s4721_s1 + $0x10] sm:$0xff]   ;;  %v546_v40 = vunpack.c.0.s8 %v545_v37 }
   0x4   :  { %v3576_v3 = vld [vmem:[%s4721_s1 + $0x80] sm:$0xff]   ;;  %3220 = vmatpush3.bf16.msra.mxu0 %v3575_v2  ;;  %v3580_v7 = vld [vmem:[%s4721_s1 + $0x88] sm:$0xff]   ;;  %v3584_v11 = vld [vmem:[%s4721_s1 + $0x90] sm:$0xff]  }
   0x5   :  { %3242 = vmatpush3.bf16.msra.mxu1 %v3576_v3  ;;  %3221 = vmatprep.subr.bf16.mxu0 %v3577_v4  ;;  %v3585_v12 = vld [vmem:[%s4721_s1 + $0x58] sm:$0xff]   ;;  %v3589_v16 = vld [vmem:[%s4721_s1 + $0x60] sm:$0xff]   ;;  %v3593_v20 = vld [vmem:[%s4721_s1 + $0x68] sm:$0xff]   ;;  %v3984_v41 = vsub.s32 %v546_v40, %v548_v33 }
   0x6   :  { %3243 = vmatprep.subr.bf16.mxu1 %v3578_v5  ;;  %v3586_v13 = vld [vmem:[%s4721_s1 + $0xd8] sm:$0xff]   ;;  %v3590_v17 = vld [vmem:[%s4721_s1 + $0xe0] sm:$0xff]   ;;  %v3594_v21 = vld [vmem:[%s4721_s1 + $0xe8] sm:$0xff]  }
   0x7   :  { %v3587_v14 = vld [vmem:[%s4721_s1 + $0x18] sm:$0xff]   ;;  %v3591_v18 = vld [vmem:[%s4721_s1 + $0x20] sm:$0xff]   ;;  %v3595_v22 = vld [vmem:[%s4721_s1 + $0x28] sm:$0xff]  }
   0x8   :  { %3222 = vmatpush3.bf16.msra.mxu0 %v3579_v6  ;;  %v3588_v15 = vld [vmem:[%s4721_s1 + $0x98] sm:$0xff]   ;;  %v3592_v19 = vld [vmem:[%s4721_s1 + $0xa0] sm:$0xff]   ;;  %v3596_v23 = vld [vmem:[%s4721_s1 + $0xa8] sm:$0xff]  }
   0x9   :  { %3244 = vmatpush3.bf16.msra.mxu1 %v3580_v7  ;;  %3223 = vmatprep.subr.bf16.mxu0 %v3581_v8  ;;  %v3597_v24 = vld [vmem:[%s4721_s1 + $0x70] sm:$0xff]   ;;  %v3601_v29 = vld [vmem:[%s4721_s1 + $0x78] sm:$0xff]   ;;  %v16_v34 = vld [vmem:[%s4720_s0] sm:$0xff] }
   0xa   :  { %3245 = vmatprep.subr.bf16.mxu1 %v3582_v9  ;;  %v3598_v25 = vld [vmem:[%s4721_s1 + $0xf0] sm:$0xff]   ;;  %v3602_v30 = vld [vmem:[%s4721_s1 + $0xf8] sm:$0xff]   ;;  %v3606_v35 = vld [vmem:[%s4721_s1 + $0x140] sm:$0xff]   ;;  %v543_v39 = vcombine.high %v16_v34, %v16_v34  ;;  %v550_v42 = vrot.slane %v16_v34, %v3984_v41 }
   0xb   :  { %v3599_v26 = vld [vmem:[%s4721_s1 + $0x30] sm:$0xff]   ;;  %v3603_v31 = vld [vmem:[%s4721_s1 + $0x38] sm:$0xff]   ;;  %v3607_v38 = vld [vmem:[%s4721_s1 + $0x1c0] sm:$0xff]  }
   0xc   :  { %3224 = vmatpush3.bf16.msra.mxu0 %v3583_v10  ;;  %v3600_v27 = vld [vmem:[%s4721_s1 + $0xb0] sm:$0xff]   ;;  %v3604_v32 = vld [vmem:[%s4721_s1 + $0xb8] sm:$0xff]   ;;  %v3988_v43 = vrot.slane %v543_v39, %v3984_v41  ;;  %v558_v44 = vcombine.high %v550_v42, %v550_v42  ;;  %v566_v45 = vrot.slane %v550_v42, %v3984_v41  ;;  %v3608_v47 = vld [vmem:[%s4721_s1 + $0x100] sm:$0xff]  }
   0xd   :  { %3246 = vmatpush3.bf16.msra.mxu1 %v3584_v11  ;;  %3225 = vmatprep.subr.bf16.mxu0 %v3585_v12  ;;  %v3609_v49 = vld [vmem:[%s4721_s1 + $0x180] sm:$0xff]   ;;  %v3610_v52 = vld [vmem:[%s4721_s1 + $0x148] sm:$0xff]   ;;  %v3614_v58 = vld [vmem:[%s4721_s1 + $0x150] sm:$0xff]  }
   0xe   :  { %3247 = vmatprep.subr.bf16.mxu1 %v3586_v13  ;;  %v559_v46 = vcombine.high %v3988_v43, %v3988_v43  ;;  %v580_v48 = vrot.slane %v558_v44, %v3984_v41  ;;  %v588_v51 = vcombine.high %v566_v45, %v566_v45  ;;  %v3611_v54 = vld [vmem:[%s4721_s1 + $0x1c8] sm:$0xff]   ;;  %v3615_v59 = vld [vmem:[%s4721_s1 + $0x1d0] sm:$0xff]   ;;  %v3618_v62 = vld [vmem:[%s4721_s1 + $0x158] sm:$0xff]  }
   0xf   :  { %v3612_v55 = vld [vmem:[%s4721_s1 + $0x108] sm:$0xff]   ;;  %v3616_v60 = vld [vmem:[%s4721_s1 + $0x110] sm:$0xff]   ;;  %v3619_v63 = vld [vmem:[%s4721_s1 + $0x1d8] sm:$0xff]  }
  0x10   :  { %3226 = vmatpush3.bf16.msra.mxu0 %v3587_v14  ;;  %v587_v50 = vrot.slane %v559_v46, %v3984_v41  ;;  %2339 = vmatprep.mubr.bf16.mxu0 %v580_v48  ;;  %v590_v53 = vcombine.high %v580_v48, %v580_v48  ;;  %v3613_v57 = vld [vmem:[%s4721_s1 + $0x188] sm:$0xff]   ;;  %v3617_v61 = vld [vmem:[%s4721_s1 + $0x190] sm:$0xff]   ;;  %v3620_v0 = vld [vmem:[%s4721_s1 + $0x118] sm:$0xff]  }
  0x11   :  { %3248 = vmatpush3.bf16.msra.mxu1 %v3588_v15  ;;  %3227 = vmatprep.subr.bf16.mxu0 %v3589_v16  ;;  %v3621_v1 = vld [vmem:[%s4721_s1 + $0x198] sm:$0xff]   ;;  %v3622_v2 = vld [vmem:[%s4721_s1 + $0x160] sm:$0xff]   ;;  %v3626_v6 = vld [vmem:[%s4721_s1 + $0x168] sm:$0xff]  }
  0x12   :  { %3249 = vmatprep.subr.bf16.mxu1 %v3590_v17  ;;  %v591_v56 = vcombine.high %v587_v50, %v587_v50  ;;  %2379 = vmatprep.mubr.bf16.mxu1 %v590_v53  ;;  %v3623_v3 = vld [vmem:[%s4721_s1 + $0x1e0] sm:$0xff]   ;;  %v3627_v7 = vld [vmem:[%s4721_s1 + $0x1e8] sm:$0xff]   ;;  %v3630_v10 = vld [vmem:[%s4721_s1 + $0x170] sm:$0xff]  }
  0x13   :  { %v3624_v4 = vld [vmem:[%s4721_s1 + $0x120] sm:$0xff]   ;;  %v3628_v8 = vld [vmem:[%s4721_s1 + $0x128] sm:$0xff]   ;;  %v3631_v11 = vld [vmem:[%s4721_s1 + $0x1f0] sm:$0xff]  }
  0x14   :  { %3228 = vmatpush3.bf16.msra.mxu0 %v3591_v18  ;;  %v3625_v5 = vld [vmem:[%s4721_s1 + $0x1a0] sm:$0xff]   ;;  %v3629_v9 = vld [vmem:[%s4721_s1 + $0x1a8] sm:$0xff]   ;;  %v3632_v12 = vld [vmem:[%s4721_s1 + $0x130] sm:$0xff]   ;;  %v573_v18 = vrot.slane %v3988_v43, %v3984_v41 }
  0x15   :  { %3250 = vmatpush3.bf16.msra.mxu1 %v3592_v19  ;;  %3229 = vmatprep.subr.bf16.mxu0 %v3593_v20  ;;  %v3633_v13 = vld [vmem:[%s4721_s1 + $0x1b0] sm:$0xff]   ;;  %v3634_v14 = vld [vmem:[%s4721_s1 + $0x178] sm:$0xff]   ;;  %v3638_v19 = vld [vmem:[%s4721_s1 + $0x240] sm:$0xff]  }
  0x16   :  { %3251 = vmatprep.subr.bf16.mxu1 %v3594_v21  ;;  %v3635_v15 = vld [vmem:[%s4721_s1 + $0x1f8] sm:$0xff]   ;;  %v3639_v20 = vld [vmem:[%s4721_s1 + $0x2c0] sm:$0xff]   ;;  %v3646_v28 = vld [vmem:[%s4721_s1 + $0x250] sm:$0xff]  }
  0x17   :  { %v3636_v16 = vld [vmem:[%s4721_s1 + $0x138] sm:$0xff]   ;;  %v3640_v21 = vld [vmem:[%s4721_s1 + $0x200] sm:$0xff]   ;;  %v3658_v40 = vld [vmem:[%s4721_s1 + $0x268] sm:$0xff]  }
  0x18   :  { %3230 = vmatpush3.bf16.msra.mxu0 %v3595_v22  ;;  %v3637_v17 = vld [vmem:[%s4721_s1 + $0x1b8] sm:$0xff]   ;;  %v3641_v22 = vld [vmem:[%s4721_s1 + $0x280] sm:$0xff]   ;;  %v3659_v42 = vld [vmem:[%s4721_s1 + $0x2e8] sm:$0xff]  }
  0x19   :  { %3252 = vmatpush3.bf16.msra.mxu1 %v3596_v23  ;;  %3231 = vmatprep.subr.bf16.mxu0 %v3597_v24  ;;  %v589_v23 = vcombine.high %v573_v18, %v573_v18  ;;  %v3642_v24 = vld [vmem:[%s4721_s1 + $0x248] sm:$0xff]   ;;  %v3651_v33 = vld [vmem:[%s4721_s1 + $0x2d8] sm:$0xff]   ;;  %v3654_v36 = vld [vmem:[%s4721_s1 + $0x260] sm:$0xff]  }
  0x1a   :  { %3253 = vmatprep.subr.bf16.mxu1 %v3598_v25  ;;  %v3643_v25 = vld [vmem:[%s4721_s1 + $0x2c8] sm:$0xff]   ;;  %v3652_v34 = vld [vmem:[%s4721_s1 + $0x218] sm:$0xff]   ;;  %v3655_v37 = vld [vmem:[%s4721_s1 + $0x2e0] sm:$0xff]  }
  0x1b   :  { %v3657_v39 = vld [vmem:[%s4721_s1 + $0x2a0] sm:$0xff]   ;;  %v3660_v43 = vld [vmem:[%s4721_s1 + $0x228] sm:$0xff]  }
  0x1c   :  { %3232 = vmatpush3.bf16.msra.mxu0 %v3599_v26  ;;  %v3644_v26 = vld [vmem:[%s4721_s1 + $0x208] sm:$0xff]  }
  0x1d   :  { %3254 = vmatpush3.bf16.msra.mxu1 %v3600_v27  ;;  %3233 = vmatprep.subr.bf16.mxu0 %v3601_v29  ;;  %v3645_v27 = vld [vmem:[%s4721_s1 + $0x288] sm:$0xff]   ;;  %v3647_v29 = vld [vmem:[%s4721_s1 + $0x2d0] sm:$0xff]  }
  0x1e   :  { %3255 = vmatprep.subr.bf16.mxu1 %v3602_v30  ;;  %v3648_v30 = vld [vmem:[%s4721_s1 + $0x210] sm:$0xff]   ;;  %v3661_v44 = vld [vmem:[%s4721_s1 + $0x2a8] sm:$0xff]  }
  0x1f   :  { %v17_v46 = vld [vmem:[%s4720_s0 + $0x8] sm:$0xff] }
  0x20   :  { %3234 = vmatpush3.bf16.msra.mxu0 %v3603_v31  ;;  %v3649_v31 = vld [vmem:[%s4721_s1 + $0x290] sm:$0xff]   ;;  %v599_v48 = vrot.slane %v17_v46, %v3984_v41 }
  0x21   :  { %3256 = vmatpush3.bf16.msra.mxu1 %v3604_v32  ;;  %3263 = vmatprep.subr.bf16.mxu0 %v3606_v35  ;;  %v3650_v32 = vld [vmem:[%s4721_s1 + $0x258] sm:$0xff]  }
  0x22   :  { %3285 = vmatprep.subr.bf16.mxu1 %v3607_v38  ;;  %v3653_v35 = vld [vmem:[%s4721_s1 + $0x298] sm:$0xff]   ;;  %v3656_v38 = vld [vmem:[%s4721_s1 + $0x220] sm:$0xff]  }
  0x23   :  { %2340 = vmatmul.mubr.bf16.vlgmr.msra.gmra.mrb[0].mxu0 %v566_v45  ;;  %v3662_v45 = vld [vmem:[%s4721_s1 + $0x270] sm:$0xff]  }
  0x24   :  { %3264 = vmatpush3.bf16.msra.mxu0 %v3608_v47  ;;  %2380 = vmatmul.mubr.bf16.vlgmr.msra.gmra.mrb[0].mxu1 %v588_v51  ;;  %v3663_v47 = vld [vmem:[%s4721_s1 + $0x2f0] sm:$0xff]  }
  0x25   :  { %3265 = vmatprep.subr.bf16.mxu0 %v3610_v52  ;;  %3286 = vmatpush3.bf16.msra.mxu1 %v3609_v49  ;;  %v592_v49 = vcombine.high %v17_v46, %v17_v46  ;;  %v3665_v51 = vld [vmem:[%s4721_s1 + $0x2b0] sm:$0xff]   ;;  %v607_v52 = vcombine.high %v599_v48, %v599_v48 }
  0x26   :  { %2419 = vmatprep.mubr.bf16.mxu0 %v587_v50  ;;  %3287 = vmatprep.subr.bf16.mxu1 %v3611_v54  ;;  %v3664_v50 = vld [vmem:[%s4721_s1 + $0x230] sm:$0xff]   ;;  %v3666_v54 = vld [vmem:[%s4721_s1 + $0x278] sm:$0xff]  }
  0x27   :  { %2459 = vmatprep.mubr.bf16.mxu1 %v591_v56  ;;  %v4176_v53 = vrot.slane %v592_v49, %v3984_v41  ;;  %v629_v56 = vrot.slane %v607_v52, %v3984_v41  ;;  %v3713_v46 = vld [vmem:[%s4721_s1 + $0x410] sm:$0xff]   ;;  %v3716_v49 = vld [vmem:[%s4721_s1 + $0x4d8] sm:$0xff]   ;;  %v3719_v52 = vld [vmem:[%s4721_s1 + $0x460] sm:$0xff]  }
  0x28   :  { %3266 = vmatpush3.bf16.msra.mxu0 %v3612_v55  ;;  %v3667_v55 = vld [vmem:[%s4721_s1 + $0x2f8] sm:$0xff]  }
  0x29   :  { %3267 = vmatprep.subr.bf16.mxu0 %v3614_v58  ;;  %3288 = vmatpush3.bf16.msra.mxu1 %v3613_v57  ;;  %v608_v57 = vcombine.high %v4176_v53, %v4176_v53  ;;  %v3668_v58 = vld [vmem:[%s4721_s1 + $0x238] sm:$0xff]  }
  0x2a   :  { %3289 = vmatprep.subr.bf16.mxu1 %v3615_v59  ;;  %v3669_v59 = vld [vmem:[%s4721_s1 + $0x2b8] sm:$0xff]  }
  0x2c   :  { %3268 = vmatpush3.bf16.msra.mxu0 %v3616_v60  ;;  %v639_v60 = vcombine.high %v629_v56, %v629_v56 }
  0x2d   :  { %3269 = vmatprep.subr.bf16.mxu0 %v3618_v62  ;;  %3290 = vmatpush3.bf16.msra.mxu1 %v3617_v61  ;;  %v615_v61 = vrot.slane %v599_v48, %v3984_v41  ;;  %v3670_v62 = vld [vmem:[%s4721_s1 + $0x340] sm:$0xff]   ;;  %v3715_v48 = vld [vmem:[%s4721_s1 + $0x458] sm:$0xff]  }
  0x2e   :  { %3291 = vmatprep.subr.bf16.mxu1 %v3619_v63  ;;  %v3671_v63 = vld [vmem:[%s4721_s1 + $0x3c0] sm:$0xff]  }
  0x30   :  { %3270 = vmatpush3.bf16.msra.mxu0 %v3620_v0  ;;  %v636_v0 = vrot.slane %v608_v57, %v3984_v41  ;;  %v3724_v57 = vld [vmem:[%s4721_s1 + $0x4e8] sm:$0xff]  }
  0x31   :  { %3271 = vmatprep.subr.bf16.mxu0 %v3622_v2  ;;  %3292 = vmatpush3.bf16.msra.mxu1 %v3621_v1  ;;  %v3672_v1 = vld [vmem:[%s4721_s1 + $0x300] sm:$0xff]  }
  0x32   :  { %3293 = vmatprep.subr.bf16.mxu1 %v3623_v3  ;;  %v3673_v2 = vld [vmem:[%s4721_s1 + $0x380] sm:$0xff]   ;;  %v637_v3 = vcombine.high %v615_v61, %v615_v61 }
  0x34   :  { %3272 = vmatpush3.bf16.msra.mxu0 %v3624_v4  ;;  %v3674_v4 = vld [vmem:[%s4721_s1 + $0x348] sm:$0xff]  }
  0x35   :  { %3273 = vmatprep.subr.bf16.mxu0 %v3626_v6  ;;  %3294 = vmatpush3.bf16.msra.mxu1 %v3625_v5  ;;  %v3675_v5 = vld [vmem:[%s4721_s1 + $0x3c8] sm:$0xff]   ;;  %v640_v6 = vcombine.high %v636_v0, %v636_v0 }
  0x36   :  { %3295 = vmatprep.subr.bf16.mxu1 %v3627_v7  ;;  %v3676_v7 = vld [vmem:[%s4721_s1 + $0x308] sm:$0xff]  }
  0x38   :  { %3274 = vmatpush3.bf16.msra.mxu0 %v3628_v8  ;;  %v3677_v8 = vld [vmem:[%s4721_s1 + $0x388] sm:$0xff]  }
  0x39   :  { %3275 = vmatprep.subr.bf16.mxu0 %v3630_v10  ;;  %3296 = vmatpush3.bf16.msra.mxu1 %v3629_v9  ;;  %v3678_v9 = vld [vmem:[%s4721_s1 + $0x350] sm:$0xff]  }
  0x3a   :  { %3297 = vmatprep.subr.bf16.mxu1 %v3631_v11  ;;  %v3679_v10 = vld [vmem:[%s4721_s1 + $0x3d0] sm:$0xff]  }
  0x3b   :  { %v3680_v11 = vld [vmem:[%s4721_s1 + $0x310] sm:$0xff]  }
  0x3c   :  { %3276 = vmatpush3.bf16.msra.mxu0 %v3632_v12  ;;  %v3681_v12 = vld [vmem:[%s4721_s1 + $0x390] sm:$0xff]  }
  0x3d   :  { %3277 = vmatprep.subr.bf16.mxu0 %v3634_v14  ;;  %3298 = vmatpush3.bf16.msra.mxu1 %v3633_v13  ;;  %v3682_v13 = vld [vmem:[%s4721_s1 + $0x358] sm:$0xff]  }
  0x3e   :  { %3299 = vmatprep.subr.bf16.mxu1 %v3635_v15  ;;  %v3683_v14 = vld [vmem:[%s4721_s1 + $0x3d8] sm:$0xff]  }
  0x3f   :  { %v3684_v15 = vld [vmem:[%s4721_s1 + $0x318] sm:$0xff]  }
  0x40   :  { %3278 = vmatpush3.bf16.msra.mxu0 %v3636_v16  ;;  %v3685_v16 = vld [vmem:[%s4721_s1 + $0x398] sm:$0xff]  }
  0x41   :  { %3307 = vmatprep.subr.bf16.mxu0 %v3638_v19  ;;  %3300 = vmatpush3.bf16.msra.mxu1 %v3637_v17  ;;  %v3686_v17 = vld [vmem:[%s4721_s1 + $0x360] sm:$0xff]  }
  0x42   :  { %3329 = vmatprep.subr.bf16.mxu1 %v3639_v20  ;;  %v3688_v19 = vld [vmem:[%s4721_s1 + $0x320] sm:$0xff]  }
  0x43   :  { %2420 = vmatmul.mubr.bf16.vlgmr.msra.gmra.mrb[4].mxu0 %v573_v18  ;;  %v3687_v18 = vld [vmem:[%s4721_s1 + $0x3e0] sm:$0xff]  }
  0x44   :  { %3308 = vmatpush3.bf16.msra.mxu0 %v3640_v21  ;;  %2460 = vmatmul.mubr.bf16.vlgmr.msra.gmra.mrb[4].mxu1 %v589_v23  ;;  %v3689_v20 = vld [vmem:[%s4721_s1 + $0x3a0] sm:$0xff]   ;;  %v3690_v21 = vld [vmem:[%s4721_s1 + $0x368] sm:$0xff]  }
  0x45   :  { %3309 = vmatprep.subr.bf16.mxu0 %v3642_v24  ;;  %3330 = vmatpush3.bf16.msra.mxu1 %v3641_v22  ;;  %v3691_v22 = vld [vmem:[%s4721_s1 + $0x3e8] sm:$0xff]  }
  0x46   :  { %3331 = vmatprep.subr.bf16.mxu1 %v3643_v25  ;;  %2499 = vmatprep.mubr.bf16.mxu0 %v629_v56  ;;  %v3692_v23 = vld [vmem:[%s4721_s1 + $0x328] sm:$0xff]   ;;  %v3694_v25 = vld [vmem:[%s4721_s1 + $0x370] sm:$0xff]  }
  0x47   :  { %2539 = vmatprep.mubr.bf16.mxu1 %v639_v60  ;;  %v3693_v24 = vld [vmem:[%s4721_s1 + $0x3a8] sm:$0xff]   ;;  %v3727_v60 = vld [vmem:[%s4721_s1 + $0x470] sm:$0xff]  }
  0x48   :  { %3310 = vmatpush3.bf16.msra.mxu0 %v3644_v26  ;;  %v3695_v26 = vld [vmem:[%s4721_s1 + $0x3f0] sm:$0xff]   ;;  %v3723_v56 = vld [vmem:[%s4721_s1 + $0x468] sm:$0xff]  }
  0x49   :  { %3311 = vmatprep.subr.bf16.mxu0 %v3646_v28  ;;  %3332 = vmatpush3.bf16.msra.mxu1 %v3645_v27  ;;  %v3696_v27 = vld [vmem:[%s4721_s1 + $0x330] sm:$0xff]  }
  0x4a   :  { %3333 = vmatprep.subr.bf16.mxu1 %v3647_v29  ;;  %v3697_v28 = vld [vmem:[%s4721_s1 + $0x3b0] sm:$0xff]   ;;  %v3698_v29 = vld [vmem:[%s4721_s1 + $0x378] sm:$0xff]  }
  0x4c   :  { %3312 = vmatpush3.bf16.msra.mxu0 %v3648_v30  ;;  %v3699_v30 = vld [vmem:[%s4721_s1 + $0x3f8] sm:$0xff]  }
  0x4d   :  { %3313 = vmatprep.subr.bf16.mxu0 %v3650_v32  ;;  %3334 = vmatpush3.bf16.msra.mxu1 %v3649_v31  ;;  %v3700_v31 = vld [vmem:[%s4721_s1 + $0x338] sm:$0xff]  }
  0x4e   :  { %3335 = vmatprep.subr.bf16.mxu1 %v3651_v33  ;;  %v3701_v32 = vld [vmem:[%s4721_s1 + $0x3b8] sm:$0xff]   ;;  %v622_v33 = vrot.slane %v4176_v53, %v3984_v41  ;;  %v3720_v53 = vld [vmem:[%s4721_s1 + $0x4e0] sm:$0xff]  }
  0x50   :  { %3314 = vmatpush3.bf16.msra.mxu0 %v3652_v34  ;;  %v3703_v34 = vld [vmem:[%s4721_s1 + $0x440] sm:$0xff]  }
  0x51   :  { %3315 = vmatprep.subr.bf16.mxu0 %v3654_v36  ;;  %3336 = vmatpush3.bf16.msra.mxu1 %v3653_v35  ;;  %v3704_v35 = vld [vmem:[%s4721_s1 + $0x4c0] sm:$0xff]  }
  0x52   :  { %3337 = vmatprep.subr.bf16.mxu1 %v3655_v37  ;;  %v3705_v36 = vld [vmem:[%s4721_s1 + $0x400] sm:$0xff]  }
  0x53   :  { %v3706_v37 = vld [vmem:[%s4721_s1 + $0x480] sm:$0xff]  }
  0x54   :  { %3316 = vmatpush3.bf16.msra.mxu0 %v3656_v38  ;;  %v638_v38 = vcombine.high %v622_v33, %v622_v33 }
  0x55   :  { %3317 = vmatprep.subr.bf16.mxu0 %v3658_v40  ;;  %3338 = vmatpush3.bf16.msra.mxu1 %v3657_v39  ;;  %v3707_v39 = vld [vmem:[%s4721_s1 + $0x448] sm:$0xff]  }
  0x56   :  { %3339 = vmatprep.subr.bf16.mxu1 %v3659_v42  ;;  %v3708_v40 = vld [vmem:[%s4721_s1 + $0x4c8] sm:$0xff]  }
  0x57   :  { %v3709_v42 = vld [vmem:[%s4721_s1 + $0x408] sm:$0xff]  }
  0x58   :  { %3318 = vmatpush3.bf16.msra.mxu0 %v3660_v43  ;;  %v3710_v43 = vld [vmem:[%s4721_s1 + $0x488] sm:$0xff]  }
  0x59   :  { %3319 = vmatprep.subr.bf16.mxu0 %v3662_v45  ;;  %3340 = vmatpush3.bf16.msra.mxu1 %v3661_v44  ;;  %v3711_v44 = vld [vmem:[%s4721_s1 + $0x450] sm:$0xff]  }
  0x5a   :  { %3341 = vmatprep.subr.bf16.mxu1 %v3663_v47  ;;  %v3712_v45 = vld [vmem:[%s4721_s1 + $0x4d0] sm:$0xff]  }
  0x5b   :  { %v3714_v47 = vld [vmem:[%s4721_s1 + $0x490] sm:$0xff]  }
  0x5c   :  { %3320 = vmatpush3.bf16.msra.mxu0 %v3664_v50  ;;  %v3717_v50 = vld [vmem:[%s4721_s1 + $0x418] sm:$0xff]  }
  0x5d   :  { %3321 = vmatprep.subr.bf16.mxu0 %v3666_v54  ;;  %3342 = vmatpush3.bf16.msra.mxu1 %v3665_v51  ;;  %v3718_v51 = vld [vmem:[%s4721_s1 + $0x498] sm:$0xff]   ;;  %v3721_v54 = vld [vmem:[%s4721_s1 + $0x420] sm:$0xff]  }
  0x5e   :  { %3343 = vmatprep.subr.bf16.mxu1 %v3667_v55  ;;  %v3722_v55 = vld [vmem:[%s4721_s1 + $0x4a0] sm:$0xff]  }
  0x60   :  { %3322 = vmatpush3.bf16.msra.mxu0 %v3668_v58  ;;  %v3725_v58 = vld [vmem:[%s4721_s1 + $0x428] sm:$0xff]  }
  0x61   :  { %3351 = vmatprep.subr.bf16.mxu0 %v3670_v62  ;;  %3344 = vmatpush3.bf16.msra.mxu1 %v3669_v59  ;;  %v3726_v59 = vld [vmem:[%s4721_s1 + $0x4a8] sm:$0xff]   ;;  %v3728_v62 = vld [vmem:[%s4721_s1 + $0x4f0] sm:$0xff]  }
  0x62   :  { %3373 = vmatprep.subr.bf16.mxu1 %v3671_v63 }
  0x63   :  { %2500 = vmatmul.mubr.bf16.vlgmr.msra.gmra.mrb[8].mxu0 %v615_v61  ;;  %v18_v61 = vld [vmem:[%s4720_s0 + $0x10] sm:$0xff] }
  0x64   :  { %3352 = vmatpush3.bf16.msra.mxu0 %v3672_v1  ;;  %2579 = vmatprep.mubr.bf16.mxu0 %v636_v0  ;;  %v648_v63 = vrot.slane %v18_v61, %v3984_v41  ;;  %v641_v0 = vcombine.high %v18_v61, %v18_v61  ;;  %v3729_v1 = vld [vmem:[%s4721_s1 + $0x430] sm:$0xff]  }
  0x65   :  { %2540 = vmatmul.mubr.bf16.vlgmr.msra.gmra.mrb[8].mxu1 %v637_v3  ;;  %3353 = vmatprep.subr.bf16.mxu0 %v3674_v4  ;;  %v3778_v61 = vld [vmem:[%s4721_s1 + $0x610] sm:$0xff]  }
  0x66   :  { %3374 = vmatpush3.bf16.msra.mxu1 %v3673_v2  ;;  %2619 = vmatprep.mubr.bf16.mxu1 %v640_v6  ;;  %v3730_v2 = vld [vmem:[%s4721_s1 + $0x4b0] sm:$0xff]   ;;  %v656_v3 = vcombine.high %v648_v63, %v648_v63  ;;  %v4382_v4 = vrot.slane %v641_v0, %v3984_v41  ;;  %v3732_v6 = vld [vmem:[%s4721_s1 + $0x4f8] sm:$0xff]  }
  0x67   :  { %3375 = vmatprep.subr.bf16.mxu1 %v3675_v5  ;;  %v3731_v5 = vld [vmem:[%s4721_s1 + $0x478] sm:$0xff]  }
  0x68   :  { %3354 = vmatpush3.bf16.msra.mxu0 %v3676_v7  ;;  %v678_v7 = vrot.slane %v656_v3, %v3984_v41  ;;  %v3781_v0 = vld [vmem:[%s4721_s1 + $0x6d8] sm:$0xff]   ;;  %v3784_v3 = vld [vmem:[%s4721_s1 + $0x660] sm:$0xff]  }
  0x69   :  { %3355 = vmatprep.subr.bf16.mxu0 %v3678_v9  ;;  %v3733_v9 = vld [vmem:[%s4721_s1 + $0x438] sm:$0xff]  }
  0x6a   :  { %3376 = vmatpush3.bf16.msra.mxu1 %v3677_v8  ;;  %v657_v8 = vcombine.high %v4382_v4, %v4382_v4 }
  0x6b   :  { %3377 = vmatprep.subr.bf16.mxu1 %v3679_v10  ;;  %v3734_v10 = vld [vmem:[%s4721_s1 + $0x4b8] sm:$0xff]  }
  0x6c   :  { %3356 = vmatpush3.bf16.msra.mxu0 %v3680_v11  ;;  %v688_v11 = vcombine.high %v678_v7, %v678_v7 }
  0x6d   :  { %3357 = vmatprep.subr.bf16.mxu0 %v3682_v13  ;;  %v3735_v13 = vld [vmem:[%s4721_s1 + $0x540] sm:$0xff]  }
  0x6e   :  { %3378 = vmatpush3.bf16.msra.mxu1 %v3681_v12  ;;  %v664_v12 = vrot.slane %v648_v63, %v3984_v41  ;;  %v3780_v63 = vld [vmem:[%s4721_s1 + $0x658] sm:$0xff]  }
  0x6f   :  { %3379 = vmatprep.subr.bf16.mxu1 %v3683_v14  ;;  %v3736_v14 = vld [vmem:[%s4721_s1 + $0x5c0] sm:$0xff]  }
  0x70   :  { %3358 = vmatpush3.bf16.msra.mxu0 %v3684_v15  ;;  %v685_v15 = vrot.slane %v657_v8, %v3984_v41  ;;  %v3789_v8 = vld [vmem:[%s4721_s1 + $0x6e8] sm:$0xff]  }
  0x71   :  { %3359 = vmatprep.subr.bf16.mxu0 %v3686_v17  ;;  %v3738_v17 = vld [vmem:[%s4721_s1 + $0x580] sm:$0xff]  }
  0x72   :  { %3380 = vmatpush3.bf16.msra.mxu1 %v3685_v16  ;;  %v3737_v16 = vld [vmem:[%s4721_s1 + $0x500] sm:$0xff]  }
  0x73   :  { %3381 = vmatprep.subr.bf16.mxu1 %v3687_v18  ;;  %v686_v18 = vcombine.high %v664_v12, %v664_v12 }
  0x74   :  { %3360 = vmatpush3.bf16.msra.mxu0 %v3688_v19  ;;  %v3739_v19 = vld [vmem:[%s4721_s1 + $0x548] sm:$0xff]  }
  0x75   :  { %3361 = vmatprep.subr.bf16.mxu0 %v3690_v21  ;;  %v689_v21 = vcombine.high %v685_v15, %v685_v15 }
  0x76   :  { %3382 = vmatpush3.bf16.msra.mxu1 %v3689_v20  ;;  %v3740_v20 = vld [vmem:[%s4721_s1 + $0x5c8] sm:$0xff]  }
  0x77   :  { %3383 = vmatprep.subr.bf16.mxu1 %v3691_v22  ;;  %v3741_v22 = vld [vmem:[%s4721_s1 + $0x508] sm:$0xff]  }
  0x78   :  { %3362 = vmatpush3.bf16.msra.mxu0 %v3692_v23  ;;  %v3742_v23 = vld [vmem:[%s4721_s1 + $0x588] sm:$0xff]  }
  0x79   :  { %3363 = vmatprep.subr.bf16.mxu0 %v3694_v25  ;;  %v3744_v25 = vld [vmem:[%s4721_s1 + $0x5d0] sm:$0xff]  }
  0x7a   :  { %3384 = vmatpush3.bf16.msra.mxu1 %v3693_v24  ;;  %v3743_v24 = vld [vmem:[%s4721_s1 + $0x550] sm:$0xff]  }
  0x7b   :  { %3385 = vmatprep.subr.bf16.mxu1 %v3695_v26  ;;  %v3745_v26 = vld [vmem:[%s4721_s1 + $0x510] sm:$0xff]  }
  0x7c   :  { %3364 = vmatpush3.bf16.msra.mxu0 %v3696_v27  ;;  %v3746_v27 = vld [vmem:[%s4721_s1 + $0x590] sm:$0xff]  }
  0x7d   :  { %3365 = vmatprep.subr.bf16.mxu0 %v3698_v29  ;;  %v3748_v29 = vld [vmem:[%s4721_s1 + $0x5d8] sm:$0xff]  }
  0x7e   :  { %3386 = vmatpush3.bf16.msra.mxu1 %v3697_v28  ;;  %v3747_v28 = vld [vmem:[%s4721_s1 + $0x558] sm:$0xff]  }
  0x7f   :  { %3387 = vmatprep.subr.bf16.mxu1 %v3699_v30  ;;  %v3749_v30 = vld [vmem:[%s4721_s1 + $0x518] sm:$0xff]  }
  0x80   :  { %3366 = vmatpush3.bf16.msra.mxu0 %v3700_v31  ;;  %v3750_v31 = vld [vmem:[%s4721_s1 + $0x598] sm:$0xff]  }
  0x81   :  { %3395 = vmatprep.subr.bf16.mxu0 %v3703_v34  ;;  %v3753_v34 = vld [vmem:[%s4721_s1 + $0x520] sm:$0xff]  }
  0x82   :  { %3388 = vmatpush3.bf16.msra.mxu1 %v3701_v32  ;;  %v3751_v32 = vld [vmem:[%s4721_s1 + $0x560] sm:$0xff]  }
  0x83   :  { %2580 = vmatmul.mubr.bf16.vlgmr.msra.gmra.mrb[12].mxu0 %v622_v33  ;;  %3417 = vmatprep.subr.bf16.mxu1 %v3704_v35  ;;  %v3752_v33 = vld [vmem:[%s4721_s1 + $0x5e0] sm:$0xff]  }
  0x84   :  { %3396 = vmatpush3.bf16.msra.mxu0 %v3705_v36  ;;  %2659 = vmatprep.mubr.bf16.mxu0 %v678_v7  ;;  %v3754_v35 = vld [vmem:[%s4721_s1 + $0x5a0] sm:$0xff]   ;;  %v3755_v36 = vld [vmem:[%s4721_s1 + $0x568] sm:$0xff]  }
  0x85   :  { %2620 = vmatmul.mubr.bf16.vlgmr.msra.gmra.mrb[12].mxu1 %v638_v38  ;;  %3397 = vmatprep.subr.bf16.mxu0 %v3707_v39  ;;  %v3757_v38 = vld [vmem:[%s4721_s1 + $0x528] sm:$0xff]  }
  0x86   :  { %3418 = vmatpush3.bf16.msra.mxu1 %v3706_v37  ;;  %2699 = vmatprep.mubr.bf16.mxu1 %v688_v11  ;;  %v3756_v37 = vld [vmem:[%s4721_s1 + $0x5e8] sm:$0xff]   ;;  %v3792_v11 = vld [vmem:[%s4721_s1 + $0x670] sm:$0xff]  }
  0x87   :  { %3419 = vmatprep.subr.bf16.mxu1 %v3708_v40  ;;  %v3758_v39 = vld [vmem:[%s4721_s1 + $0x5a8] sm:$0xff]   ;;  %v3759_v40 = vld [vmem:[%s4721_s1 + $0x570] sm:$0xff]  }
  0x88   :  { %3398 = vmatpush3.bf16.msra.mxu0 %v3709_v42  ;;  %v3760_v42 = vld [vmem:[%s4721_s1 + $0x5f0] sm:$0xff]   ;;  %v3788_v7 = vld [vmem:[%s4721_s1 + $0x668] sm:$0xff]  }
  0x89   :  { %3399 = vmatprep.subr.bf16.mxu0 %v3711_v44  ;;  %v3762_v44 = vld [vmem:[%s4721_s1 + $0x5b0] sm:$0xff]  }
  0x8a   :  { %3420 = vmatpush3.bf16.msra.mxu1 %v3710_v43  ;;  %v3761_v43 = vld [vmem:[%s4721_s1 + $0x530] sm:$0xff]  }
  0x8b   :  { %3421 = vmatprep.subr.bf16.mxu1 %v3712_v45  ;;  %v3763_v45 = vld [vmem:[%s4721_s1 + $0x578] sm:$0xff]  }
  0x8c   :  { %3400 = vmatpush3.bf16.msra.mxu0 %v3713_v46  ;;  %v3764_v46 = vld [vmem:[%s4721_s1 + $0x5f8] sm:$0xff]  }
  0x8d   :  { %3401 = vmatprep.subr.bf16.mxu0 %v3715_v48  ;;  %v3766_v48 = vld [vmem:[%s4721_s1 + $0x5b8] sm:$0xff]  }
  0x8e   :  { %3422 = vmatpush3.bf16.msra.mxu1 %v3714_v47  ;;  %v3765_v47 = vld [vmem:[%s4721_s1 + $0x538] sm:$0xff]  }
  0x8f   :  { %3423 = vmatprep.subr.bf16.mxu1 %v3716_v49  ;;  %v671_v49 = vrot.slane %v4382_v4, %v3984_v41  ;;  %v3785_v4 = vld [vmem:[%s4721_s1 + $0x6e0] sm:$0xff]  }
  0x90   :  { %3402 = vmatpush3.bf16.msra.mxu0 %v3717_v50  ;;  %v3768_v50 = vld [vmem:[%s4721_s1 + $0x640] sm:$0xff]  }
  0x91   :  { %3403 = vmatprep.subr.bf16.mxu0 %v3719_v52  ;;  %v3770_v52 = vld [vmem:[%s4721_s1 + $0x600] sm:$0xff]  }
  0x92   :  { %3424 = vmatpush3.bf16.msra.mxu1 %v3718_v51  ;;  %v3769_v51 = vld [vmem:[%s4721_s1 + $0x6c0] sm:$0xff]  }
  0x93   :  { %3425 = vmatprep.subr.bf16.mxu1 %v3720_v53  ;;  %v3771_v53 = vld [vmem:[%s4721_s1 + $0x680] sm:$0xff]  }
  0x94   :  { %3404 = vmatpush3.bf16.msra.mxu0 %v3721_v54  ;;  %v687_v54 = vcombine.high %v671_v49, %v671_v49 }
  0x95   :  { %3405 = vmatprep.subr.bf16.mxu0 %v3723_v56  ;;  %v3773_v56 = vld [vmem:[%s4721_s1 + $0x6c8] sm:$0xff]  }
  0x96   :  { %3426 = vmatpush3.bf16.msra.mxu1 %v3722_v55  ;;  %v3772_v55 = vld [vmem:[%s4721_s1 + $0x648] sm:$0xff]  }
  0x97   :  { %3427 = vmatprep.subr.bf16.mxu1 %v3724_v57  ;;  %v3774_v57 = vld [vmem:[%s4721_s1 + $0x608] sm:$0xff]  }
  0x98   :  { %3406 = vmatpush3.bf16.msra.mxu0 %v3725_v58  ;;  %v3775_v58 = vld [vmem:[%s4721_s1 + $0x688] sm:$0xff]  }
  0x99   :  { %3407 = vmatprep.subr.bf16.mxu0 %v3727_v60  ;;  %v3777_v60 = vld [vmem:[%s4721_s1 + $0x6d0] sm:$0xff]  }
  0x9a   :  { %3428 = vmatpush3.bf16.msra.mxu1 %v3726_v59  ;;  %v3776_v59 = vld [vmem:[%s4721_s1 + $0x650] sm:$0xff]  }
  0x9b   :  { %3429 = vmatprep.subr.bf16.mxu1 %v3728_v62  ;;  %v3779_v62 = vld [vmem:[%s4721_s1 + $0x690] sm:$0xff]  }
  0x9c   :  { %3408 = vmatpush3.bf16.msra.mxu0 %v3729_v1  ;;  %v3782_v1 = vld [vmem:[%s4721_s1 + $0x618] sm:$0xff]  }
  0x9d   :  { %3409 = vmatprep.subr.bf16.mxu0 %v3731_v5  ;;  %v3786_v5 = vld [vmem:[%s4721_s1 + $0x620] sm:$0xff]  }
  0x9e   :  { %3430 = vmatpush3.bf16.msra.mxu1 %v3730_v2  ;;  %v3783_v2 = vld [vmem:[%s4721_s1 + $0x698] sm:$0xff]  }
  0x9f   :  { %3431 = vmatprep.subr.bf16.mxu1 %v3732_v6  ;;  %v3787_v6 = vld [vmem:[%s4721_s1 + $0x6a0] sm:$0xff]  }
  0xa0   :  { %3410 = vmatpush3.bf16.msra.mxu0 %v3733_v9  ;;  %v3790_v9 = vld [vmem:[%s4721_s1 + $0x628] sm:$0xff]  }
  0xa1   :  { %3439 = vmatprep.subr.bf16.mxu0 %v3735_v13  ;;  %v3793_v13 = vld [vmem:[%s4721_s1 + $0x6f0] sm:$0xff]  }
  0xa2   :  { %3432 = vmatpush3.bf16.msra.mxu1 %v3734_v10  ;;  %v3791_v10 = vld [vmem:[%s4721_s1 + $0x6a8] sm:$0xff]  }
  0xa3   :  { %2660 = vmatmul.mubr.bf16.vlgmr.msra.gmra.mrb[16].mxu0 %v664_v12  ;;  %3461 = vmatprep.subr.bf16.mxu1 %v3736_v14  ;;  %v19_v12 = vld [vmem:[%s4720_s0 + $0x18] sm:$0xff] }
  0xa4   :  { %3440 = vmatpush3.bf16.msra.mxu0 %v3737_v16  ;;  %2739 = vmatprep.mubr.bf16.mxu0 %v685_v15  ;;  %v697_v14 = vrot.slane %v19_v12, %v3984_v41  ;;  %v690_v15 = vcombine.high %v19_v12, %v19_v12  ;;  %v3794_v16 = vld [vmem:[%s4721_s1 + $0x630] sm:$0xff]  }
  0xa5   :  { %2700 = vmatmul.mubr.bf16.vlgmr.msra.gmra.mrb[16].mxu1 %v686_v18  ;;  %3441 = vmatprep.subr.bf16.mxu0 %v3739_v19 }
  0xa6   :  { %3462 = vmatpush3.bf16.msra.mxu1 %v3738_v17  ;;  %2779 = vmatprep.mubr.bf16.mxu1 %v689_v21  ;;  %v3796_v17 = vld [vmem:[%s4721_s1 + $0x678] sm:$0xff]   ;;  %v705_v18 = vcombine.high %v697_v14, %v697_v14  ;;  %v4588_v19 = vrot.slane %v690_v15, %v3984_v41 }
  0xa7   :  { %3463 = vmatprep.subr.bf16.mxu1 %v3740_v20  ;;  %v3795_v20 = vld [vmem:[%s4721_s1 + $0x6b0] sm:$0xff]   ;;  %v3797_v21 = vld [vmem:[%s4721_s1 + $0x6f8] sm:$0xff]  }
  0xa8   :  { %3442 = vmatpush3.bf16.msra.mxu0 %v3741_v22  ;;  %v727_v22 = vrot.slane %v705_v18, %v3984_v41 }
  0xa9   :  { %3443 = vmatprep.subr.bf16.mxu0 %v3743_v24  ;;  %v3798_v24 = vld [vmem:[%s4721_s1 + $0x638] sm:$0xff]  }
  0xaa   :  { %3464 = vmatpush3.bf16.msra.mxu1 %v3742_v23  ;;  %v706_v23 = vcombine.high %v4588_v19, %v4588_v19 }
  0xab   :  { %3465 = vmatprep.subr.bf16.mxu1 %v3744_v25  ;;  %v737_v25 = vcombine.high %v727_v22, %v727_v22 }
  0xac   :  { %3444 = vmatpush3.bf16.msra.mxu0 %v3745_v26  ;;  %v713_v26 = vrot.slane %v697_v14, %v3984_v41 }
  0xad   :  { %3445 = vmatprep.subr.bf16.mxu0 %v3747_v28  ;;  %v3799_v28 = vld [vmem:[%s4721_s1 + $0x6b8] sm:$0xff]  }
  0xae   :  { %3466 = vmatpush3.bf16.msra.mxu1 %v3746_v27  ;;  %v3800_v27 = vld [vmem:[%s4721_s1 + $0x740] sm:$0xff]  }
  0xaf   :  { %3467 = vmatprep.subr.bf16.mxu1 %v3748_v29  ;;  %v734_v29 = vrot.slane %v706_v23, %v3984_v41 }
  0xb0   :  { %3446 = vmatpush3.bf16.msra.mxu0 %v3749_v30  ;;  %v3801_v30 = vld [vmem:[%s4721_s1 + $0x7c0] sm:$0xff]  }
  0xb1   :  { %3447 = vmatprep.subr.bf16.mxu0 %v3751_v32  ;;  %v735_v32 = vcombine.high %v713_v26, %v713_v26 }
  0xb2   :  { %3468 = vmatpush3.bf16.msra.mxu1 %v3750_v31  ;;  %v3802_v31 = vld [vmem:[%s4721_s1 + $0x700] sm:$0xff]  }
  0xb3   :  { %3469 = vmatprep.subr.bf16.mxu1 %v3752_v33  ;;  %v3804_v33 = vld [vmem:[%s4721_s1 + $0x748] sm:$0xff]  }
  0xb4   :  { %3448 = vmatpush3.bf16.msra.mxu0 %v3753_v34  ;;  %v3803_v34 = vld [vmem:[%s4721_s1 + $0x780] sm:$0xff]  }
  0xb5   :  { %3449 = vmatprep.subr.bf16.mxu0 %v3755_v36  ;;  %v3805_v36 = vld [vmem:[%s4721_s1 + $0x7c8] sm:$0xff]  }
  0xb6   :  { %3470 = vmatpush3.bf16.msra.mxu1 %v3754_v35  ;;  %v738_v35 = vcombine.high %v734_v29, %v734_v29 }
  0xb7   :  { %3471 = vmatprep.subr.bf16.mxu1 %v3756_v37  ;;  %v3806_v37 = vld [vmem:[%s4721_s1 + $0x708] sm:$0xff]  }
  0xb8   :  { %3450 = vmatpush3.bf16.msra.mxu0 %v3757_v38  ;;  %v3808_v38 = vld [vmem:[%s4721_s1 + $0x750] sm:$0xff]  }
  0xb9   :  { %3451 = vmatprep.subr.bf16.mxu0 %v3759_v40  ;;  %v3809_v40 = vld [vmem:[%s4721_s1 + $0x7d0] sm:$0xff]  }
  0xba   :  { %3472 = vmatpush3.bf16.msra.mxu1 %v3758_v39  ;;  %v3807_v39 = vld [vmem:[%s4721_s1 + $0x788] sm:$0xff]  }
  0xbb   :  { %3473 = vmatprep.subr.bf16.mxu1 %v3760_v42  ;;  %v3810_v42 = vld [vmem:[%s4721_s1 + $0x710] sm:$0xff]  }
  0xbc   :  { %3452 = vmatpush3.bf16.msra.mxu0 %v3761_v43  ;;  %v3812_v43 = vld [vmem:[%s4721_s1 + $0x758] sm:$0xff]  }
  0xbd   :  { %3453 = vmatprep.subr.bf16.mxu0 %v3763_v45  ;;  %v3813_v45 = vld [vmem:[%s4721_s1 + $0x7d8] sm:$0xff]  }
  0xbe   :  { %3474 = vmatpush3.bf16.msra.mxu1 %v3762_v44  ;;  %v3811_v44 = vld [vmem:[%s4721_s1 + $0x790] sm:$0xff]  }
  0xbf   :  { %3475 = vmatprep.subr.bf16.mxu1 %v3764_v46  ;;  %v3814_v46 = vld [vmem:[%s4721_s1 + $0x718] sm:$0xff]  }
  0xc0   :  { %3454 = vmatpush3.bf16.msra.mxu0 %v3765_v47  ;;  %v3816_v47 = vld [vmem:[%s4721_s1 + $0x760] sm:$0xff]  }
  0xc1   :  { %3483 = vmatprep.subr.bf16.mxu0 %v3768_v50  ;;  %v3818_v50 = vld [vmem:[%s4721_s1 + $0x720] sm:$0xff]  }
  0xc2   :  { %3476 = vmatpush3.bf16.msra.mxu1 %v3766_v48  ;;  %v3815_v48 = vld [vmem:[%s4721_s1 + $0x798] sm:$0xff]  }
  0xc3   :  { %2740 = vmatmul.mubr.bf16.vlgmr.msra.gmra.mrb[20].mxu0 %v671_v49  ;;  %3505 = vmatprep.subr.bf16.mxu1 %v3769_v51  ;;  %v3817_v49 = vld [vmem:[%s4721_s1 + $0x7e0] sm:$0xff]   ;;  %v3820_v51 = vld [vmem:[%s4721_s1 + $0x768] sm:$0xff]  }
  0xc4   :  { %3484 = vmatpush3.bf16.msra.mxu0 %v3770_v52  ;;  %2819 = vmatprep.mubr.bf16.mxu0 %v727_v22  ;;  %v3819_v52 = vld [vmem:[%s4721_s1 + $0x7a0] sm:$0xff]  }
  0xc5   :  { %2780 = vmatmul.mubr.bf16.vlgmr.msra.gmra.mrb[20].mxu1 %v687_v54  ;;  %3485 = vmatprep.subr.bf16.mxu0 %v3772_v55  ;;  %v3822_v54 = vld [vmem:[%s4721_s1 + $0x728] sm:$0xff]   ;;  %v3824_v55 = vld [vmem:[%s4721_s1 + $0x770] sm:$0xff]  }
  0xc6   :  { %3506 = vmatpush3.bf16.msra.mxu1 %v3771_v53  ;;  %2859 = vmatprep.mubr.bf16.mxu1 %v737_v25  ;;  %v3821_v53 = vld [vmem:[%s4721_s1 + $0x7e8] sm:$0xff]  }
  0xc7   :  { %3507 = vmatprep.subr.bf16.mxu1 %v3773_v56 }
  0xc8   :  { %3486 = vmatpush3.bf16.msra.mxu0 %v3774_v57  ;;  %v3823_v57 = vld [vmem:[%s4721_s1 + $0x7a8] sm:$0xff]  }
  0xc9   :  { %3487 = vmatprep.subr.bf16.mxu0 %v3776_v59 }
  0xca   :  { %3508 = vmatpush3.bf16.msra.mxu1 %v3775_v58 }
  0xcb   :  { %3509 = vmatprep.subr.bf16.mxu1 %v3777_v60 }
  0xcc   :  { %3488 = vmatpush3.bf16.msra.mxu0 %v3778_v61 }
  0xcd   :  { %3489 = vmatprep.subr.bf16.mxu0 %v3780_v63 }
  0xce   :  { %3510 = vmatpush3.bf16.msra.mxu1 %v3779_v62 }
  0xcf   :  { %3511 = vmatprep.subr.bf16.mxu1 %v3781_v0 }
  0xd0   :  { %3490 = vmatpush3.bf16.msra.mxu0 %v3782_v1 }
  0xd1   :  { %3491 = vmatprep.subr.bf16.mxu0 %v3784_v3 }
  0xd2   :  { %3512 = vmatpush3.bf16.msra.mxu1 %v3783_v2 }
  0xd3   :  { %3513 = vmatprep.subr.bf16.mxu1 %v3785_v4 }
  0xd4   :  { %3492 = vmatpush3.bf16.msra.mxu0 %v3786_v5 }
  0xd5   :  { %3493 = vmatprep.subr.bf16.mxu0 %v3788_v7 }
  0xd6   :  { %3514 = vmatpush3.bf16.msra.mxu1 %v3787_v6 }
  0xd7   :  { %3515 = vmatprep.subr.bf16.mxu1 %v3789_v8 }
  0xd8   :  { %3494 = vmatpush3.bf16.msra.mxu0 %v3790_v9 }
  0xd9   :  { %3495 = vmatprep.subr.bf16.mxu0 %v3792_v11 }
  0xda   :  { %3516 = vmatpush3.bf16.msra.mxu1 %v3791_v10 }
  0xdb   :  { %3517 = vmatprep.subr.bf16.mxu1 %v3793_v13 }
  0xdc   :  { %3496 = vmatpush3.bf16.msra.mxu0 %v3794_v16 }
  0xdd   :  { %3497 = vmatprep.subr.bf16.mxu0 %v3796_v17 }
  0xde   :  { %3518 = vmatpush3.bf16.msra.mxu1 %v3795_v20 }
  0xdf   :  { %3519 = vmatprep.subr.bf16.mxu1 %v3797_v21 }
  0xe0   :  { %3498 = vmatpush3.bf16.msra.mxu0 %v3798_v24 }
  0xe1   :  { %3527 = vmatprep.subr.bf16.mxu0 %v3800_v27 }
  0xe2   :  { %3520 = vmatpush3.bf16.msra.mxu1 %v3799_v28 }
  0xe3   :  { %2820 = vmatmul.mubr.bf16.vlgmr.msra.gmra.mrb[24].mxu0 %v713_v26  ;;  %3549 = vmatprep.subr.bf16.mxu1 %v3801_v30 }
  0xe4   :  { %3528 = vmatpush3.bf16.msra.mxu0 %v3802_v31  ;;  %2899 = vmatprep.mubr.bf16.mxu0 %v734_v29 }
  0xe5   :  { %2860 = vmatmul.mubr.bf16.vlgmr.msra.gmra.mrb[24].mxu1 %v735_v32  ;;  %3529 = vmatprep.subr.bf16.mxu0 %v3804_v33 }
  0xe6   :  { %3550 = vmatpush3.bf16.msra.mxu1 %v3803_v34  ;;  %2939 = vmatprep.mubr.bf16.mxu1 %v738_v35 }
  0xe7   :  { %3551 = vmatprep.subr.bf16.mxu1 %v3805_v36 }
  0xe8   :  { %3530 = vmatpush3.bf16.msra.mxu0 %v3806_v37 }
  0xe9   :  { %3531 = vmatprep.subr.bf16.mxu0 %v3808_v38 }
  0xea   :  { %3552 = vmatpush3.bf16.msra.mxu1 %v3807_v39 }
  0xeb   :  { %3553 = vmatprep.subr.bf16.mxu1 %v3809_v40 }
  0xec   :  { %3532 = vmatpush3.bf16.msra.mxu0 %v3810_v42 }
  0xed   :  { %3533 = vmatprep.subr.bf16.mxu0 %v3812_v43 }
  0xee   :  { %3554 = vmatpush3.bf16.msra.mxu1 %v3811_v44 }
  0xef   :  { %3555 = vmatprep.subr.bf16.mxu1 %v3813_v45 }
  0xf0   :  { %3534 = vmatpush3.bf16.msra.mxu0 %v3814_v46 }
  0xf1   :  { %3535 = vmatprep.subr.bf16.mxu0 %v3816_v47 }
  0xf2   :  { %3556 = vmatpush3.bf16.msra.mxu1 %v3815_v48 }
  0xf3   :  { %3557 = vmatprep.subr.bf16.mxu1 %v3817_v49 }
  0xf4   :  { %3536 = vmatpush3.bf16.msra.mxu0 %v3818_v50 }
  0xf5   :  { %3537 = vmatprep.subr.bf16.mxu0 %v3820_v51 }
  0xf6   :  { %3558 = vmatpush3.bf16.msra.mxu1 %v3819_v52  ;;  %v3235_v56 = vpop.f32.mrb[0].mxu0 }
  0xf7   :  { %8 = vsyncpa [#allocation3], 0  ;;  %v2962_v58 = vld [vmem:[%s4722_s2] ss:$0 sm:$0xff]  ;;  %v3236_v59 = vpop.f32.mrb[1].mxu0  ;;  %3559 = vmatprep.subr.bf16.mxu1 %v3821_v53  ;;  %v3825_v60 = vld [vmem:[%s4721_s1 + $0x7f0] sm:$0xff]   ;;  %v720_v12 = vrot.slane %v4588_v19, %v3984_v41 }
  0xf8   :  { %v3257_v61 = vpop.f32.mrb[0].mxu1  ;;  %v3237_v62 = vadd.f32 %v3236_v59, %v3235_v56  ;;  %v3238_v63 = vpop.f32.mrb[2].mxu0  ;;  %3538 = vmatpush3.bf16.msra.mxu0 %v3822_v54  ;;  %v3826_v0 = vld [vmem:[%s4721_s1 + $0x730] sm:$0xff]   ;;  %v3828_v3 = vld [vmem:[%s4721_s1 + $0x778] sm:$0xff]  }
  0xf9   :  { %v3258_v1 = vpop.f32.mrb[1].mxu1  ;;  %v3239_v2 = vpop.f32.mrb[3].mxu0  ;;  %3539 = vmatprep.subr.bf16.mxu0 %v3824_v55  ;;  %v3827_v7 = vld [vmem:[%s4721_s1 + $0x7b0] sm:$0xff]   ;;  %v3829_v9 = vld [vmem:[%s4721_s1 + $0x7f8] sm:$0xff]   ;;  %v736_v14 = vcombine.high %v720_v12, %v720_v12 }
  0xfa   :  { %v2342_v4 = vadd.f32 %v3237_v62, %v2962_v58  ;;  %v3259_v5 = vadd.f32 %v3258_v1, %v3257_v61  ;;  %v3260_v6 = vpop.f32.mrb[2].mxu1  ;;  %3560 = vmatpush3.bf16.msra.mxu1 %v3823_v57  ;;  %v3830_v11 = vld [vmem:[%s4721_s1 + $0x738] sm:$0xff]  }
  0xfb   :  { %v3261_v8 = vpop.f32.mrb[3].mxu1  ;;  %3561 = vmatprep.subr.bf16.mxu1 %v3825_v60  ;;  %v3831_v13 = vld [vmem:[%s4721_s1 + $0x7b8] sm:$0xff]   ;;  %s3858_s1 = smov [#allocation2]  }
  0xfc   :  { %v2382_v10 = vadd.f32 %v3259_v5, %v2342_v4  ;;  %3540 = vmatpush3.bf16.msra.mxu0 %v3826_v0  ;;  %s2954_s17 = sshll.u32 %s3858_s1, 4  ;;  %s2955_s17 = int_to_ptr.vmem [resolvable:$true] %s2954_s17 }
  0xfd   :  { %3541 = vmatprep.subr.bf16.mxu0 %v3828_v3  ;;  %s3833_s18 = scalar_lea.vmem %s2955_s17, 32  ;;  %p3838_p1 = scmp.lt.s32.totalorder %s2955_s17, %s2955_s17 }
  0xfe   :  { %3562 = vmatpush3.bf16.msra.mxu1 %v3827_v7  ;;  %p3834_p0 = scmp.ne.s32.totalorder %s2955_s17, %s3833_s18  ;;  %p3839_p2 = scmp.lt.s32.totalorder %s3833_s18, %s3833_s18 }
  0xff   :  { %3563 = vmatprep.subr.bf16.mxu1 %v3829_v9 }
 0x100   :  { %3542 = vmatpush3.bf16.msra.mxu0 %v3830_v11  ;;  %p3840_p3 = por %p3839_p2, %p3838_p1 }
 0x102   :  { %3564 = vmatpush3.bf16.msra.mxu1 %v3831_v13  ;;  %p3841_p4 = pnand %p3840_p3, %p3834_p0 }
 0x103   :  { %2900 = vmatmul.mubr.bf16.vlgmr.msra.gmra.mrb[28].mxu0 %v720_v12 }
 0x105   :  { %2940 = vmatmul.mubr.bf16.vlgmr.msra.gmra.mrb[28].mxu1 %v736_v14 }
 0x116   :  { %v3279_v15 = vpop.f32.mrb[4].mxu0 }
 0x117   :  { %v3280_v16 = vpop.f32.mrb[5].mxu0  ;;  %v3301_v17 = vpop.f32.mrb[4].mxu1 }
 0x118   :  { %v3281_v18 = vadd.f32 %v3280_v16, %v3279_v15  ;;  %v3282_v20 = vpop.f32.mrb[6].mxu0  ;;  %v3302_v21 = vpop.f32.mrb[5].mxu1 }
 0x119   :  { %v3283_v22 = vpop.f32.mrb[7].mxu0  ;;  %v3303_v41 = vadd.f32 %v3302_v21, %v3301_v17  ;;  %v3304_v19 = vpop.f32.mrb[6].mxu1 }
 0x11a   :  { %v2422_v23 = vadd.f32 %v3281_v18, %v2382_v10  ;;  %v3305_v24 = vpop.f32.mrb[7].mxu1 }
 0x11c   :  { %v2462_v25 = vadd.f32 %v3303_v41, %v2422_v23 }
 0x136   :  { %v3323_v26 = vpop.f32.mrb[8].mxu0 }
 0x137   :  { %v3324_v27 = vpop.f32.mrb[9].mxu0 }
 0x138   :  { %v3345_v28 = vpop.f32.mrb[8].mxu1  ;;  %v3325_v29 = vadd.f32 %v3324_v27, %v3323_v26  ;;  %v3326_v30 = vpop.f32.mrb[10].mxu0 }
 0x139   :  { %v3346_v31 = vpop.f32.mrb[9].mxu1  ;;  %v3327_v32 = vpop.f32.mrb[11].mxu0 }
 0x13a   :  { %v2502_v33 = vadd.f32 %v3325_v29, %v2462_v25  ;;  %v3347_v34 = vadd.f32 %v3346_v31, %v3345_v28  ;;  %v3348_v35 = vpop.f32.mrb[10].mxu1 }
 0x13b   :  { %v3349_v36 = vpop.f32.mrb[11].mxu1 }
 0x13c   :  { %v2542_v37 = vadd.f32 %v3347_v34, %v2502_v33 }
 0x156   :  { %v3367_v38 = vpop.f32.mrb[12].mxu0 }
 0x157   :  { %v3368_v39 = vpop.f32.mrb[13].mxu0 }
 0x158   :  { %v3389_v40 = vpop.f32.mrb[12].mxu1  ;;  %v3369_v42 = vadd.f32 %v3368_v39, %v3367_v38  ;;  %v3370_v43 = vpop.f32.mrb[14].mxu0 }
 0x159   :  { %v3390_v44 = vpop.f32.mrb[13].mxu1  ;;  %v3371_v45 = vpop.f32.mrb[15].mxu0 }
 0x15a   :  { %v2582_v46 = vadd.f32 %v3369_v42, %v2542_v37  ;;  %v3391_v47 = vadd.f32 %v3390_v44, %v3389_v40  ;;  %v3392_v48 = vpop.f32.mrb[14].mxu1 }
 0x15b   :  { %v3393_v49 = vpop.f32.mrb[15].mxu1 }
 0x15c   :  { %v2622_v50 = vadd.f32 %v3391_v47, %v2582_v46 }
 0x176   :  { %v3411_v51 = vpop.f32.mrb[16].mxu0 }
 0x177   :  { %v3412_v52 = vpop.f32.mrb[17].mxu0 }
 0x178   :  { %v3433_v53 = vpop.f32.mrb[16].mxu1  ;;  %v3413_v54 = vadd.f32 %v3412_v52, %v3411_v51  ;;  %v3414_v55 = vpop.f32.mrb[18].mxu0 }
 0x179   :  { %v3434_v56 = vpop.f32.mrb[17].mxu1  ;;  %v3415_v57 = vpop.f32.mrb[19].mxu0 }
 0x17a   :  { %v2662_v58 = vadd.f32 %v3413_v54, %v2622_v50  ;;  %v3435_v59 = vadd.f32 %v3434_v56, %v3433_v53  ;;  %v3436_v60 = vpop.f32.mrb[18].mxu1 }
 0x17b   :  { %v3437_v61 = vpop.f32.mrb[19].mxu1 }
 0x17c   :  { %v2702_v62 = vadd.f32 %v3435_v59, %v2662_v58 }
 0x196   :  { %v3455_v63 = vpop.f32.mrb[20].mxu0 }
 0x197   :  { %v3456_v0 = vpop.f32.mrb[21].mxu0 }
 0x198   :  { %v3477_v1 = vpop.f32.mrb[20].mxu1  ;;  %v3457_v2 = vadd.f32 %v3456_v0, %v3455_v63  ;;  %v3458_v3 = vpop.f32.mrb[22].mxu0 }
 0x199   :  { %v3478_v4 = vpop.f32.mrb[21].mxu1  ;;  %v3459_v5 = vpop.f32.mrb[23].mxu0 }
 0x19a   :  { %v2742_v6 = vadd.f32 %v3457_v2, %v2702_v62  ;;  %v3479_v7 = vadd.f32 %v3478_v4, %v3477_v1  ;;  %v3480_v8 = vpop.f32.mrb[22].mxu1 }
 0x19b   :  { %v3481_v9 = vpop.f32.mrb[23].mxu1 }
 0x19c   :  { %v2782_v10 = vadd.f32 %v3479_v7, %v2742_v6 }
 0x1b6   :  { %v3499_v11 = vpop.f32.mrb[24].mxu0 }
 0x1b7   :  { %v3500_v12 = vpop.f32.mrb[25].mxu0 }
 0x1b8   :  { %v3521_v13 = vpop.f32.mrb[24].mxu1  ;;  %v3501_v14 = vadd.f32 %v3500_v12, %v3499_v11  ;;  %v3502_v15 = vpop.f32.mrb[26].mxu0 }
 0x1b9   :  { %v3522_v16 = vpop.f32.mrb[25].mxu1  ;;  %v3503_v17 = vpop.f32.mrb[27].mxu0 }
 0x1ba   :  { %v2822_v18 = vadd.f32 %v3501_v14, %v2782_v10  ;;  %v3523_v20 = vadd.f32 %v3522_v16, %v3521_v13  ;;  %v3524_v21 = vpop.f32.mrb[26].mxu1 }
 0x1bb   :  { %v3525_v22 = vpop.f32.mrb[27].mxu1 }
 0x1bc   :  { %v2862_v23 = vadd.f32 %v3523_v20, %v2822_v18 }
 0x1d6   :  { %v3543_v41 = vpop.f32.mrb[28].mxu0 }
 0x1d7   :  { %v3544_v19 = vpop.f32.mrb[29].mxu0 }
 0x1d8   :  { %v3565_v24 = vpop.f32.mrb[28].mxu1  ;;  %v3545_v25 = vadd.f32 %v3544_v19, %v3543_v41  ;;  %v3546_v26 = vpop.f32.mrb[30].mxu0 }
 0x1d9   :  { %v3566_v27 = vpop.f32.mrb[29].mxu1  ;;  %v3547_v28 = vpop.f32.mrb[31].mxu0 }
 0x1da   :  { %v2902_v29 = vadd.f32 %v3545_v25, %v2862_v23  ;;  %v3567_v30 = vadd.f32 %v3566_v27, %v3565_v24  ;;  %v3568_v31 = vpop.f32.mrb[30].mxu1 }
 0x1db   :  { %v3569_v32 = vpop.f32.mrb[31].mxu1 }
 0x1dc   :  { %v2942_v33 = vadd.f32 %v3567_v30, %v2902_v29 }
 0x1de   :  { %2947 = vst [vmem:[#allocation2] sm:$0x3] %v2942_v33 }
 0x1df   :  { %3844 = shalt.err (!%p3841_p4)
}
 0x1e0   :  { %s3845_s21 = scalar_lea.hbm %s4723_s3, 32 }
 0x1e1   :  { %p3846_p5 = scmp.ne.s32.totalorder %s4723_s3, %s3845_s21  ;;  %p3849_p6 = scmp.lt.u32.totalorder %s3845_s21, %s4723_s3 }
 0x1e3   :  { %p3851_p7 = pnand %p3849_p6, %p3846_p5 }
 0x1e5   :  { %3854 = shalt.err (!%p3851_p7)
}
 0x1e6   :  { %2957 = dma.vmem_to_hbm [thread:$0]  %s2955_s17, 32, %s4723_s3, [#allocation3]  }
 0x1e7   :  { %3855 = dma.done.wait [#allocation3], 32  }
 0x1e8   :  { %3856 = vsyncadd [#allocation3], 4294967264 }
 0x1e9   :  { %2961 = vsyncpa [#allocation3], 1 }

// kernel: _lambda_.2
= control target key start
LH: loop header
LB: loop body
LE: loop exit
PB: predicated region body
PF: predicated region fallthrough
CT: control target
= control target key end

     0   :  { %s10578_s18 = smov 0   ;;  %s15733_s0 = inlined_call_operand.vmem [shape: bf16[2,256,27], index: 0, kind: input, shape index: {}]   ;;  %s15734_s1 = inlined_call_operand.vmem [shape: bf16[27,64], index: 1, kind: input, shape index: {}]   ;;  %s15735_s2 = inlined_call_operand.vmem [shape: bf16[3,64,256], index: 2, kind: input, shape index: {}]   ;;  %s15736_s3 = inlined_call_operand.vmem [shape: bf16[3,64,192], index: 3, kind: input, shape index: {}]   ;;  %s15737_s4 = inlined_call_operand.vmem [shape: f32[8,64], index: 4, kind: input, shape index: {}]   ;;  %s15738_s5 = inlined_call_operand.vmem [shape: bf16[2,8,8,64], index: 5, kind: output, shape index: {}]  }
   0x1 LB: > { %s10005_s19 = sadd.s32 4294967295, %s10541_s18   ;;  %p10009_p0 = scmp.ge.s32.totalorder %s10541_s18, 1  ;;  %s10541_s18 = sphi %s10578_s18, %s15_s18  }
   0x2   : > { %p187_p1 = scmp.lt.s32.totalorder %s10541_s18, 3 }
   0x4   : > { %p188_p2 = pnand %p10009_p0, %p187_p1 }
   0x6   : > { %191 = sbr.rel (%p188_p2) target bundleno = 1481 (0x5c9), region = 40 }
   0xd   : > { %v10445_v0 = vld [vmem:[%s15734_s1] sm:$0xff]   ;;  %vm402_vm0 = vcmask 1044480   ;;  %v10446_v1 = vld [vmem:[%s15734_s1 + $0x8] sm:$0x3f]   ;;  %vm403_vm1 = vcmask 1045504   ;;  %p215_p3 = scmp.lt.s32.totalorder %s10005_s19, 1 }
   0xe   : > { %10388 = vmatprep.subr.bf16.mxu0 %v10445_v0  ;;  %v10543_v2 = vmov 65535   ;;  %vm353_vm2 = vcmask 220160   ;;  %vm785_vm3 = vcmask 519168   ;;  %v15739_v22 = vmov 0   ;;  %v10469_v23 = vld [vmem:[%s15735_s2 + $0x4] ss:$8 sps:$4 sm:$0xff]  }
   0xf   : > { %10389 = vmatpush3.bf16.msra.mxu0 %v10445_v0  ;;  %v404_v3 = vsel %vm402_vm0, 4294967295, %v10543_v2  ;;  %s17155_s19 = smov (!%p215_p3, %s10005_s19), 1  ;;  %789 = vst.msk [vmem:[#allocation2 + $0x8] sm:$0xf] %vm785_vm3, %v15739_v22  ;;  %786 = vst.msk [vmem:[#allocation2] sm:$0xf] %vm785_vm3, %v15739_v22  ;;  %1658 = vmatprep.mubr.bf16.mxu1 %v15739_v22 }
  0x10   : > { %v405_v4 = vsel %vm403_vm1, %v404_v3, 0  ;;  %s10352_s24 = sshll.u32 %s17155_s19, 7  ;;  %791 = vst.msk [vmem:[#allocation2 + $0x10] sm:$0xf] %vm785_vm3, %v15739_v22  ;;  %793 = vst.msk [vmem:[#allocation2 + $0x18] sm:$0xf] %vm785_vm3, %v15739_v22  ;;  %1626 = vmatprep.subr.bf16.mxu1 %v10469_v23 }
  0x11   : > { %v407_v5 = vand.u32 %v10446_v1, %v405_v4  ;;  %s10598_s27 = scalar_lea.vmem %s15733_s0, %s10352_s24  ;;  %795 = vst.msk [vmem:[#allocation2 + $0x20] sm:$0xf] %vm785_vm3, %v15739_v22  ;;  %797 = vst.msk [vmem:[#allocation2 + $0x28] sm:$0xf] %vm785_vm3, %v15739_v22  ;;  %vm787_vm4 = vcmask 516096   ;;  %vm700_vm5 = vcmask 523264  }
  0x12   : > { %v10447_v6 = vld [vmem:[%s10598_s27] sm:$0xff]   ;;  %v10448_v7 = vld [vmem:[%s10598_s27 + $0x8] sm:$0xff]   ;;  %v10449_v8 = vld [vmem:[%s10598_s27 + $0x10] sm:$0xff]   ;;  %799 = vst.msk [vmem:[#allocation2 + $0x30] sm:$0xf] %vm785_vm3, %v15739_v22  ;;  %vm733_vm6 = vcmask 522240  }
  0x13   : > { %10390 = vmatprep.subr.bf16.mxu0 %v407_v5  ;;  %10392 = vmatprep.mubr.msk.bf16.mxu0 %vm353_vm2, %v10447_v6  ;;  %v10450_v9 = vld [vmem:[%s10598_s27 + $0x18] sm:$0xff]   ;;  %v10451_v10 = vld [vmem:[%s10598_s27 + $0x20] sm:$0xff]   ;;  %v10452_v11 = vld [vmem:[%s10598_s27 + $0x28] sm:$0xff]   ;;  %801 = vst.msk [vmem:[#allocation2 + $0x38] sm:$0xf] %vm785_vm3, %v15739_v22  ;;  %vm1973_vm11 = vcmask 1040384  }
  0x14   : > { %10391 = vmatpush3.bf16.msra.mxu0 %v407_v5  ;;  %v10453_v12 = vld [vmem:[%s10598_s27 + $0x30] sm:$0xff]   ;;  %v10454_v13 = vld [vmem:[%s10598_s27 + $0x38] sm:$0xff]   ;;  %v10455_v14 = vld [vmem:[%s10598_s27 + $0x40] sm:$0xff]   ;;  %803 = vst.msk [vmem:[#allocation2 + $0x40] sm:$0xf] %vm785_vm3, %v15739_v22  ;;  %vm1974_vm12 = vcmask 1042434  }
  0x15   : > { %v10456_v15 = vld [vmem:[%s10598_s27 + $0x48] sm:$0xff]   ;;  %v10457_v16 = vld [vmem:[%s10598_s27 + $0x50] sm:$0xff]   ;;  %v10458_v17 = vld [vmem:[%s10598_s27 + $0x58] sm:$0xff]   ;;  %805 = vst.msk [vmem:[#allocation2 + $0x48] sm:$0xf] %vm785_vm3, %v15739_v22  ;;  %vm1976_vm14 = vcmask 1044484  }
  0x16   : > { %v10459_v18 = vld [vmem:[%s10598_s27 + $0x60] sm:$0xff]   ;;  %v10460_v19 = vld [vmem:[%s10598_s27 + $0x68] sm:$0xff]   ;;  %v10461_v20 = vld [vmem:[%s10598_s27 + $0x70] sm:$0xff]   ;;  %788 = vst.msk [vmem:[#allocation2 + $0x4] sm:$0x1] %vm787_vm4, %v15739_v22  ;;  %vm1978_vm15 = vcmask 1046534  }
  0x17   : > { %10393 = vmatmul.mubr.msk.bf16.vlgmr.msra.gmra.mrb[0].mxu0 %vm353_vm2, %v10448_v7  ;;  %v10462_v21 = vld [vmem:[%s10598_s27 + $0x78] sm:$0xff]   ;;  %790 = vst.msk [vmem:[#allocation2 + $0xc] sm:$0x1] %vm787_vm4, %v15739_v22  ;;  %792 = vst.msk [vmem:[#allocation2 + $0x14] sm:$0x1] %vm787_vm4, %v15739_v22  ;;  %s10547_s9 = smov 64  }
  0x18   : > { %10396 = vmatprep.mubr.msk.bf16.mxu0 %vm353_vm2, %v10449_v8  ;;  %794 = vst.msk [vmem:[#allocation2 + $0x1c] sm:$0x1] %vm787_vm4, %v15739_v22  ;;  %796 = vst.msk [vmem:[#allocation2 + $0x24] sm:$0x1] %vm787_vm4, %v15739_v22  ;;  %v10471_v24 = vld [vmem:[%s15735_s2] ss:$8 sps:$4 sm:$0xff]  }
  0x19   : > { %798 = vst.msk [vmem:[#allocation2 + $0x2c] sm:$0x1] %vm787_vm4, %v15739_v22  ;;  %800 = vst.msk [vmem:[#allocation2 + $0x34] sm:$0x1] %vm787_vm4, %v15739_v22  ;;  %1627 = vmatpush1.bf16.msra.mxu1 %v10471_v24  ;;  %v10472_v25 = vld [vmem:[%s15735_s2 + $0x14] ss:$8 sps:$4 sm:$0xff]  }
  0x1a   : > { %802 = vst.msk [vmem:[#allocation2 + $0x3c] sm:$0x1] %vm787_vm4, %v15739_v22  ;;  %804 = vst.msk [vmem:[#allocation2 + $0x44] sm:$0x1] %vm787_vm4, %v15739_v22  ;;  %v10474_v26 = vld [vmem:[%s15735_s2 + $0x10] ss:$8 sps:$4 sm:$0xff]   ;;  %1628 = vmatprep.subr.bf16.mxu1 %v10472_v25 }
  0x1b   : > { %806 = vst.msk [vmem:[#allocation2 + $0x4c] sm:$0x1] %vm787_vm4, %v15739_v22  ;;  %v10475_v27 = vld [vmem:[%s15735_s2 + $0x24] ss:$8 sps:$4 sm:$0xff]   ;;  %v10477_v28 = vld [vmem:[%s15735_s2 + $0x20] ss:$8 sps:$4 sm:$0xff]   ;;  %vm1975_vm13 = vmor %vm1973_vm11, %vm1974_vm12 }
  0x1c   : > { %v10481_v29 = vld [vmem:[%s15735_s2 + $0x34] ss:$8 sps:$4 sm:$0xff]   ;;  %v10483_v30 = vld [vmem:[%s15735_s2 + $0x30] ss:$8 sps:$4 sm:$0xff]   ;;  %v10465_v31 = vld [vmem:[%s15735_s2 + $0x84] ss:$8 sps:$4 sm:$0xff]  }
  0x1d   : > { %1629 = vmatpush1.bf16.msra.mxu1 %v10474_v26  ;;  %v10463_v32 = vld [vmem:[%s15735_s2 + $0x80] ss:$8 sps:$4 sm:$0xff]   ;;  %v10468_v33 = vld [vmem:[%s15735_s2 + $0x94] ss:$8 sps:$4 sm:$0xff]   ;;  %4274 = vmatprep.subr.bf16.mxu0 %v10465_v31  ;;  %v10466_v34 = vld [vmem:[%s15735_s2 + $0x90] ss:$8 sps:$4 sm:$0xff]  }
  0x1e   : > { %1630 = vmatprep.subr.bf16.mxu1 %v10475_v27  ;;  %4275 = vmatpush1.bf16.msra.mxu0 %v10463_v32  ;;  %v10480_v35 = vld [vmem:[%s15735_s2 + $0xa4] ss:$8 sps:$4 sm:$0xff]   ;;  %v10478_v36 = vld [vmem:[%s15735_s2 + $0xa0] ss:$8 sps:$4 sm:$0xff]   ;;  %v10486_v37 = vld [vmem:[%s15735_s2 + $0xb4] ss:$8 sps:$4 sm:$0xff]  }
  0x1f   : > { %10397 = vmatmul.mubr.msk.bf16.gmra.mrb[4].mxu0 %vm353_vm2, %v10450_v9  ;;  %4276 = vmatprep.subr.bf16.mxu0 %v10468_v33  ;;  %v10484_v38 = vld [vmem:[%s15735_s2 + $0xb0] ss:$8 sps:$4 sm:$0xff]   ;;  %v10725_v45 = vld [vmem:[%s15737_s4] ss:$0 sm:$0xff]  ;;  %v10731_v49 = vld [vmem:[%s15737_s4 + $0x1] ss:$0 sm:$0xff] }
  0x20   : > { %10400 = vmatprep.mubr.msk.bf16.mxu0 %vm353_vm2, %v10451_v10  ;;  %v10489_v0 = vld [vmem:[%s15735_s2 + $0x44] ss:$8 sps:$4 sm:$0xff]   ;;  %vm929_vm7 = vsmask.f32 7938  ;;  %vm935_vm8 = vsmask.f32 256  ;;  %vm1977_vm0 = vmor %vm1975_vm13, %vm1976_vm14 }
  0x21   : > { %1631 = vmatpush1.bf16.msra.mxu1 %v10477_v28  ;;  %vm10952_vm9 = vmand %vm785_vm3, %vm929_vm7  ;;  %s10353_s27 = sshll.u32 %s17155_s19, 5 }
  0x22   : > { %1632 = vmatprep.subr.bf16.mxu1 %v10481_v29  ;;  %4277 = vmatpush1.bf16.msra.mxu0 %v10466_v34  ;;  %vm10961_vm10 = vmand %vm787_vm4, %vm935_vm8  ;;  %s15567_s29 = scalar_lea.vmem %s15738_s5, %s10353_s27 }
  0x23   : > { %4278 = vmatprep.subr.bf16.mxu0 %v10480_v35  ;;  %vm11371_vm1 = vmor %vm1977_vm0, %vm1978_vm15 }
  0x25   : > { %1633 = vmatpush1.bf16.msra.mxu1 %v10483_v30 }
  0x26   : > { %4279 = vmatpush1.bf16.msra.mxu0 %v10478_v36  ;;  %2953 = vmatprep.subr.bf16.mxu1 %v10489_v0 }
  0x27   : > { %10401 = vmatmul.mubr.msk.bf16.gmra.mrb[8].mxu0 %vm353_vm2, %v10452_v11  ;;  %4280 = vmatprep.subr.bf16.mxu0 %v10486_v37 }
  0x28   : > { %10404 = vmatprep.mubr.msk.bf16.mxu0 %vm353_vm2, %v10453_v12 }
  0x2a   : > { %4281 = vmatpush1.bf16.msra.mxu0 %v10484_v38 }
  0x2f   : > { %10405 = vmatmul.mubr.msk.bf16.gmra.mrb[12].mxu0 %vm353_vm2, %v10454_v13 }
  0x30   : > { %10408 = vmatprep.mubr.msk.bf16.mxu0 %vm353_vm2, %v10455_v14 }
  0x37   : > { %10409 = vmatmul.mubr.msk.bf16.gmra.mrb[16].mxu0 %vm353_vm2, %v10456_v15 }
  0x38   : > { %10412 = vmatprep.mubr.msk.bf16.mxu0 %vm353_vm2, %v10457_v16 }
  0x3f   : > { %10413 = vmatmul.mubr.msk.bf16.gmra.mrb[20].mxu0 %vm353_vm2, %v10458_v17 }
  0x40   : > { %10416 = vmatprep.mubr.msk.bf16.mxu0 %vm353_vm2, %v10459_v18 }
  0x47   : > { %10417 = vmatmul.mubr.msk.bf16.gmra.mrb[24].mxu0 %vm353_vm2, %v10460_v19 }
  0x48   : > { %10420 = vmatprep.mubr.msk.bf16.mxu0 %vm353_vm2, %v10461_v20 }
  0x4f   : > { %10421 = vmatmul.mubr.msk.bf16.gmra.mrb[28].mxu0 %vm353_vm2, %v10462_v21 }
  0x50   : > { %4306 = vmatprep.mubr.bf16.mxu0 %v15739_v22 }
  0xea   : > { %v10394_v39 = vpop.f32.mrb[0].mxu0 }
  0xeb   : > { %v443_v40 = vpop.f32.mrb[1].mxu0  ;;  %v577_v48 = vmul.f32 %v10394_v39, %v10725_v45 }
  0xec   : > { %v10395_v41 = vpop.f32.mrb[2].mxu0  ;;  %v575_v50 = vmul.f32 %v10725_v45, %v443_v40 }
  0xed   : > { %v446_v42 = vpop.f32.mrb[3].mxu0  ;;  %v578_v51 = vmul.f32 %v10395_v41, %v10725_v45  ;;  %v614_v54 = vadd.f32 %v10731_v49, %v577_v48 }
  0xee   : > { %v576_v52 = vmul.f32 %v10725_v45, %v446_v42  ;;  %v612_v57 = vadd.f32 %v10731_v49, %v575_v50 }
  0xef   : > { %v615_v60 = vadd.f32 %v10731_v49, %v578_v51  ;;  %v646_v4 = vmax.f32 %v614_v54, 0.0 }
  0xf0   : > { %v613_v1 = vadd.f32 %v10731_v49, %v576_v52  ;;  %v644_v8 = vmax.f32 %v612_v57, 0.0 }
  0xf1   : > { %v647_v12 = vmax.f32 %v615_v60, 0.0 }
  0xf2   : > { %v10398_v43 = vpop.f32.mrb[4].mxu0  ;;  %v645_v16 = vmax.f32 %v613_v1, 0.0 }
  0xf3   : > { %v459_v44 = vpop.f32.mrb[5].mxu0  ;;  %v581_v5 = vmul.f32 %v10398_v43, %v10725_v45 }
  0xf4   : > { %v10399_v46 = vpop.f32.mrb[6].mxu0  ;;  %v579_v9 = vmul.f32 %v10725_v45, %v459_v44 }
  0xf5   : > { %v462_v47 = vpop.f32.mrb[7].mxu0  ;;  %v582_v13 = vmul.f32 %v10399_v46, %v10725_v45  ;;  %v618_v21 = vadd.f32 %v10731_v49, %v581_v5 }
  0xf6   : > { %v580_v17 = vmul.f32 %v10725_v45, %v462_v47  ;;  %v616_v26 = vadd.f32 %v10731_v49, %v579_v9 }
  0xf7   : > { %v619_v30 = vadd.f32 %v10731_v49, %v582_v13  ;;  %v650_v37 = vmax.f32 %v618_v21, 0.0 }
  0xf8   : > { %v617_v34 = vadd.f32 %v10731_v49, %v580_v17  ;;  %v648_v40 = vmax.f32 %v616_v26, 0.0 }
  0xf9   : > { %v651_v43 = vmax.f32 %v619_v30, 0.0 }
  0xfa   : > { %v10402_v53 = vpop.f32.mrb[8].mxu0  ;;  %v649_v47 = vmax.f32 %v617_v34, 0.0 }
  0xfb   : > { %v585_v55 = vmul.f32 %v10402_v53, %v10725_v45  ;;  %v475_v56 = vpop.f32.mrb[9].mxu0 }
  0xfc   : > { %v583_v58 = vmul.f32 %v10725_v45, %v475_v56  ;;  %v10403_v59 = vpop.f32.mrb[10].mxu0 }
  0xfd   : > { %v10742_v61 = vadd.f32 %v10731_v49, %v585_v55  ;;  %v586_v62 = vmul.f32 %v10403_v59, %v10725_v45  ;;  %v478_v63 = vpop.f32.mrb[11].mxu0 }
  0xfe   : > { %v10750_v2 = vadd.f32 %v10731_v49, %v583_v58  ;;  %v584_v3 = vmul.f32 %v10725_v45, %v478_v63 }
  0xff   : > { %v654_v6 = vmax.f32 %v10742_v61, 0.0  ;;  %v10756_v7 = vadd.f32 %v10731_v49, %v586_v62 }
 0x100   : > { %v652_v10 = vmax.f32 %v10750_v2, 0.0  ;;  %v10761_v11 = vadd.f32 %v10731_v49, %v584_v3 }
 0x101   : > { %v10766_v14 = vmax.f32 %v646_v4, %v654_v6  ;;  %v655_v15 = vmax.f32 %v10756_v7, 0.0 }
 0x102   : > { %v10772_v18 = vmax.f32 %v644_v8, %v652_v10  ;;  %v653_v19 = vmax.f32 %v10761_v11, 0.0  ;;  %v10406_v20 = vpop.f32.mrb[12].mxu0 }
 0x103   : > { %v10778_v23 = vmax.f32 %v647_v12, %v655_v15  ;;  %v589_v24 = vmul.f32 %v10406_v20, %v10725_v45  ;;  %v491_v25 = vpop.f32.mrb[13].mxu0 }
 0x104   : > { %v10784_v27 = vmax.f32 %v645_v16, %v653_v19  ;;  %v587_v28 = vmul.f32 %v10725_v45, %v491_v25  ;;  %v10407_v29 = vpop.f32.mrb[14].mxu0 }
 0x105   : > { %v10789_v31 = vadd.f32 %v10731_v49, %v589_v24  ;;  %v590_v32 = vmul.f32 %v10407_v29, %v10725_v45  ;;  %v494_v33 = vpop.f32.mrb[15].mxu0 }
 0x106   : > { %v10794_v35 = vadd.f32 %v10731_v49, %v587_v28  ;;  %v588_v36 = vmul.f32 %v10725_v45, %v494_v33 }
 0x107   : > { %v658_v38 = vmax.f32 %v10789_v31, 0.0  ;;  %v10799_v39 = vadd.f32 %v10731_v49, %v590_v32 }
 0x108   : > { %v656_v41 = vmax.f32 %v10794_v35, 0.0  ;;  %v10803_v42 = vadd.f32 %v10731_v49, %v588_v36 }
 0x109   : > { %v10807_v44 = vmax.f32 %v650_v37, %v658_v38  ;;  %v659_v46 = vmax.f32 %v10799_v39, 0.0 }
 0x10a   : > { %v10812_v48 = vmax.f32 %v648_v40, %v656_v41  ;;  %v657_v50 = vmax.f32 %v10803_v42, 0.0  ;;  %v10410_v51 = vpop.f32.mrb[16].mxu0 }
 0x10b   : > { %v10817_v52 = vmax.f32 %v651_v43, %v659_v46  ;;  %v507_v53 = vpop.f32.mrb[17].mxu0  ;;  %v593_v62 = vmul.f32 %v10410_v51, %v10725_v45 }
 0x10c   : > { %v10821_v54 = vmax.f32 %v649_v47, %v657_v50  ;;  %v10411_v55 = vpop.f32.mrb[18].mxu0  ;;  %v591_v63 = vmul.f32 %v10725_v45, %v507_v53 }
 0x10d   : > { %v510_v56 = vpop.f32.mrb[19].mxu0  ;;  %v594_v0 = vmul.f32 %v10411_v55, %v10725_v45  ;;  %v630_v3 = vadd.f32 %v10731_v49, %v593_v62 }
 0x10e   : > { %v592_v1 = vmul.f32 %v10725_v45, %v510_v56  ;;  %v628_v4 = vadd.f32 %v10731_v49, %v591_v63 }
 0x10f   : > { %v631_v8 = vadd.f32 %v10731_v49, %v594_v0  ;;  %v662_v28 = vmax.f32 %v630_v3, 0.0 }
 0x110   : > { %v629_v9 = vadd.f32 %v10731_v49, %v592_v1  ;;  %v660_v29 = vmax.f32 %v628_v4, 0.0 }
 0x111   : > { %v663_v33 = vmax.f32 %v631_v8, 0.0 }
 0x112   : > { %v10414_v57 = vpop.f32.mrb[20].mxu0  ;;  %v661_v34 = vmax.f32 %v629_v9, 0.0 }
 0x113   : > { %v523_v58 = vpop.f32.mrb[21].mxu0  ;;  %v597_v16 = vmul.f32 %v10414_v57, %v10725_v45 }
 0x114   : > { %v10415_v59 = vpop.f32.mrb[22].mxu0  ;;  %v595_v21 = vmul.f32 %v10725_v45, %v523_v58 }
 0x115   : > { %v526_v60 = vpop.f32.mrb[23].mxu0  ;;  %v634_v40 = vadd.f32 %v10731_v49, %v597_v16  ;;  %v598_v43 = vmul.f32 %v10415_v59, %v10725_v45 }
 0x116   : > { %v632_v53 = vadd.f32 %v10731_v49, %v595_v21  ;;  %v596_v58 = vmul.f32 %v10725_v45, %v526_v60 }
 0x117   : > { %v635_v8 = vadd.f32 %v10731_v49, %v598_v43  ;;  %v666_v16 = vmax.f32 %v634_v40, 0.0 }
 0x11a   : > { %v10418_v5 = vpop.f32.mrb[24].mxu0 }
 0x11b   : > { %v601_v12 = vmul.f32 %v10418_v5, %v10725_v45  ;;  %v539_v13 = vpop.f32.mrb[25].mxu0 }
 0x11c   : > { %v599_v17 = vmul.f32 %v10725_v45, %v539_v13  ;;  %v10419_v20 = vpop.f32.mrb[26].mxu0 }
 0x11d   : > { %v638_v24 = vadd.f32 %v10731_v49, %v601_v12  ;;  %v602_v25 = vmul.f32 %v10419_v20, %v10725_v45  ;;  %v542_v26 = vpop.f32.mrb[27].mxu0  ;;  %v633_v12 = vadd.f32 %v10731_v49, %v596_v58  ;;  %v664_v20 = vmax.f32 %v632_v53, 0.0 }
 0x11e   : > { %v636_v30 = vadd.f32 %v10731_v49, %v599_v17  ;;  %v600_v32 = vmul.f32 %v10725_v45, %v542_v26 }
 0x11f   : > { %v10839_v36 = vmax.f32 %v638_v24, 0.0  ;;  %v639_v37 = vadd.f32 %v10731_v49, %v602_v25  ;;  %v667_v25 = vmax.f32 %v635_v8, 0.0 }
 0x120   : > { %v10844_v47 = vmax.f32 %v636_v30, 0.0  ;;  %v637_v51 = vadd.f32 %v10731_v49, %v600_v32 }
 0x121   : > { %v10849_v55 = vmax.f32 %v662_v28, %v10839_v36  ;;  %v719_v56 = vmax.f32 %v654_v6, %v10839_v36  ;;  %v10854_v57 = vmax.f32 %v639_v37, 0.0  ;;  %v665_v28 = vmax.f32 %v633_v12, 0.0 }
 0x122   : > { %v10858_v62 = vmax.f32 %v660_v29, %v10844_v47  ;;  %v717_v59 = vmax.f32 %v652_v10, %v10844_v47  ;;  %v10863_v63 = vmax.f32 %v637_v51, 0.0  ;;  %v10422_v0 = vpop.f32.mrb[28].mxu0 }
 0x123   : > { %v694_v1 = vmax.f32 %v10766_v14, %v10849_v55  ;;  %v10868_v61 = vmax.f32 %v663_v33, %v10854_v57  ;;  %v720_v6 = vmax.f32 %v655_v15, %v10854_v57  ;;  %v605_v60 = vmul.f32 %v10422_v0, %v10725_v45  ;;  %v555_v3 = vpop.f32.mrb[29].mxu0 }
 0x124   : > { %v692_v2 = vmax.f32 %v10772_v18, %v10858_v62  ;;  %v10877_v10 = vmax.f32 %v661_v34, %v10863_v63  ;;  %v718_v14 = vmax.f32 %v653_v19, %v10863_v63  ;;  %v603_v4 = vmul.f32 %v10725_v45, %v555_v3  ;;  %v10423_v5 = vpop.f32.mrb[30].mxu0 }
 0x125   : > { %703 = vst.msk [vmem:[#allocation3 + $0x10] sm:$0xff] %vm700_vm5, %v694_v1  ;;  %v695_v7 = vmax.f32 %v10778_v23, %v10868_v61  ;;  %v642_v15 = vadd.f32 %v10731_v49, %v605_v60  ;;  %v606_v18 = vmul.f32 %v10423_v5, %v10725_v45  ;;  %v558_v9 = vpop.f32.mrb[31].mxu0 }
 0x126   : > { %701 = vst.msk [vmem:[#allocation3] sm:$0xff] %vm700_vm5, %v692_v2  ;;  %v693_v11 = vmax.f32 %v10784_v27, %v10877_v10  ;;  %v640_v19 = vadd.f32 %v10731_v49, %v603_v4  ;;  %v604_v13 = vmul.f32 %v10725_v45, %v558_v9 }
 0x127   : > { %704 = vst.msk [vmem:[#allocation3 + $0x18] sm:$0xff] %vm700_vm5, %v695_v7  ;;  %v10896_v23 = vmax.f32 %v642_v15, 0.0  ;;  %v643_v17 = vadd.f32 %v10731_v49, %v606_v18 }
 0x128   : > { %702 = vst.msk [vmem:[#allocation3 + $0x8] sm:$0xff] %vm700_vm5, %v693_v11  ;;  %v10900_v21 = vmax.f32 %v640_v19, 0.0  ;;  %v641_v24 = vadd.f32 %v10731_v49, %v604_v13 }
 0x129   : > { %v10904_v27 = vmax.f32 %v666_v16, %v10896_v23  ;;  %v723_v45 = vmax.f32 %v658_v38, %v10896_v23  ;;  %v675_v26 = vmax.f32 %v643_v17, 0.0  ;;  %v16149_v16 = vmov 0  ;;  %v931_v17 = vld [vmem:[#allocation2 + $0x8] sm:$0xf] }
 0x12a   : > { %v10910_v29 = vmax.f32 %v664_v20, %v10900_v21  ;;  %v721_v30 = vmax.f32 %v656_v41, %v10900_v21  ;;  %v10915_v32 = vmax.f32 %v641_v24, 0.0  ;;  %v16150_v16 = vsel %vm10952_vm9, 4294967295, %v16149_v16  ;;  %v937_v20 = vld [vmem:[#allocation2 + $0xc] sm:$0x1] }
 0x12b   : > { %v698_v49 = vmax.f32 %v10807_v44, %v10904_v27  ;;  %v691_v33 = vmax.f32 %v667_v25, %v675_v26  ;;  %v724_v34 = vmax.f32 %v659_v46, %v675_v26  ;;  %16151 = vst [vmem:[#allocation4_spill] sm:$0xff] %v16150_v16 }
 0x12c   : > { %v711_v31 = vld [vmem:[#allocation3 + $0x11] sm:$0x7f]  ;;  %v696_v38 = vmax.f32 %v10812_v48, %v10910_v29  ;;  %v10924_v37 = vmax.f32 %v665_v28, %v10915_v32  ;;  %v722_v35 = vmax.f32 %v657_v50, %v10915_v32 }
 0x12d   : > { %v727_v41 = vmax.f32 %v711_v31, %v719_v56  ;;  %v709_v40 = vld [vmem:[#allocation3 + $0x1] sm:$0x7f]  ;;  %707 = vst.msk [vmem:[#allocation3 + $0x30] sm:$0xff] %vm700_vm5, %v698_v49  ;;  %v699_v44 = vmax.f32 %v10817_v52, %v691_v33  ;;  %v10545_v52 = vmov 1966171168   ;;  %v1025_v56 = vlaneseq }
 0x12e   : > { %v725_v39 = vmax.f32 %v709_v40, %v717_v59  ;;  %v712_v46 = vld [vmem:[#allocation3 + $0x19] sm:$0x7f]  ;;  %705 = vst.msk [vmem:[#allocation3 + $0x20] sm:$0xff] %vm700_vm5, %v696_v38  ;;  %v697_v48 = vmax.f32 %v10821_v54, %v10924_v37  ;;  %v1023_v53 = vunpack.c.l.s4 %v10545_v52 }
 0x12f   : > { %736 = vst.msk [vmem:[#allocation3 + $0x11] sm:$0x7f] %vm733_vm6, %v727_v41  ;;  %v728_v43 = vmax.f32 %v712_v46, %v720_v6  ;;  %v710_v51 = vld [vmem:[#allocation3 + $0x9] sm:$0x7f]  ;;  %v10943_v15 = vshrl.u32 %v1025_v56, 7 }
 0x130   : > { %708 = vst.msk [vmem:[#allocation3 + $0x38] sm:$0xff] %vm700_vm5, %v699_v44  ;;  %v726_v42 = vmax.f32 %v710_v51, %v718_v14  ;;  %706 = vst.msk [vmem:[#allocation3 + $0x28] sm:$0xff] %vm700_vm5, %v697_v48  ;;  %v10058_v59 = vld.sshfl [vmem:[#allocation2] sm:$0x33 pattern:$0x75316420]  ;;  %v1024_v7 = vunpack.c.0.s8 %v1023_v53 }
 0x131   : > { %734 = vst.msk [vmem:[#allocation3 + $0x1] sm:$0x7f] %vm733_vm6, %v725_v39  ;;  %737 = vst.msk [vmem:[#allocation3 + $0x19] sm:$0x7f] %vm733_vm6, %v728_v43  ;;  %v1021_v11 = vcombine.high %v10058_v59, %v10058_v59 }
 0x132   : > { %735 = vst.msk [vmem:[#allocation3 + $0x9] sm:$0x7f] %vm733_vm6, %v726_v42 }
 0x134   : > { %v715_v50 = vld [vmem:[#allocation3 + $0x31] sm:$0x7f] }
 0x135   : > { %v731_v54 = vmax.f32 %v715_v50, %v723_v45  ;;  %v713_v58 = vld [vmem:[#allocation3 + $0x21] sm:$0x7f] }
 0x136   : > { %v744_v0 = vld [vmem:[#allocation3 + $0x10] sm:$0xff]  ;;  %v729_v1 = vmax.f32 %v713_v58, %v721_v30 }
 0x137   : > { %v716_v6 = vld [vmem:[#allocation3 + $0x39] sm:$0x7f]  ;;  %v751_v3 = vmax.f32 %v744_v0, %v10877_v10  ;;  %740 = vst.msk [vmem:[#allocation3 + $0x31] sm:$0x7f] %vm733_vm6, %v731_v54  ;;  %v714_v14 = vld [vmem:[#allocation3 + $0x29] sm:$0x7f] }
 0x138   : > { %v807_v60 = vld [vmem:[#allocation3] sm:$0xff]  ;;  %v732_v2 = vmax.f32 %v716_v6, %v724_v34  ;;  %v745_v5 = vld [vmem:[#allocation3 + $0x18] sm:$0xff]  ;;  %738 = vst.msk [vmem:[#allocation3 + $0x21] sm:$0x7f] %vm733_vm6, %v729_v1  ;;  %v730_v8 = vmax.f32 %v714_v14, %v722_v35 }
 0x139   : > { %v10354_v4 = vpack.c.bf16 %v807_v60, %v807_v60  ;;  %v752_v18 = vmax.f32 %v745_v5, %v10849_v55  ;;  %v743_v9 = vld [vmem:[#allocation3 + $0x8] sm:$0xff]  ;;  %758 = vst.msk [vmem:[#allocation3 + $0x10] sm:$0xff] %vm700_vm5, %v751_v3  ;;  %v10958_v55 = vsub.s32 %v1024_v7, %v10943_v15  ;;  %v10162_v54 = vld.sshfl [vmem:[#allocation2 + $0x48] sm:$0x33 pattern:$0x75316420] }
 0x13a   : > { %741 = vst.msk [vmem:[#allocation3 + $0x39] sm:$0x7f] %vm733_vm6, %v732_v2  ;;  %v750_v12 = vmax.f32 %v743_v9, %v10858_v62  ;;  %739 = vst.msk [vmem:[#allocation3 + $0x29] sm:$0x7f] %vm733_vm6, %v730_v8  ;;  %v16153_v62 = vmov 0  ;;  %v3934_v5 = vcombine.high %v10162_v54, %v10162_v54 }
 0x13b   : > { %v848_v10 = vshrl.u32 %v10354_v4, 16  ;;  %759 = vst.msk [vmem:[#allocation3 + $0x18] sm:$0xff] %vm700_vm5, %v752_v18  ;;  %v851_v13 = vshll.u32 %v10354_v4, 16  ;;  %16152 = vst [vmem:[#allocation5_spill] sm:$0xff] %v10958_v55  ;;  %v16154_v62 = vsel %vm10961_vm10, 4294967295, %v16153_v62  ;;  %v1028_v26 = vrot.slane %v10058_v59, %v10958_v55 }
 0x13c   : > { %757 = vst.msk [vmem:[#allocation3 + $0x8] sm:$0xff] %vm700_vm5, %v750_v12  ;;  %16155 = vst [vmem:[#allocation6_spill] sm:$0xff] %v16154_v62  ;;  %v1035_v28 = vrot.slane %v1021_v11, %v10958_v55 }
 0x13d   : > { %v850_v19 = vrot.slane %v848_v10, 7 }
 0x13e   : > { %v748_v45 = vld [vmem:[#allocation3 + $0x30] sm:$0xff]  ;;  %v1326_v46 = vcombine.low %v1028_v26, %v1035_v28 }
 0x13f   : > { %v853_v24 = vor.u32 %v851_v13, %v850_v19  ;;  %v854_v25 = vrot.slane %v850_v19, 4  ;;  %v746_v30 = vld [vmem:[#allocation3 + $0x20] sm:$0xff]  ;;  %v755_v49 = vmax.f32 %v748_v45, %v10924_v37  ;;  %v11015_v45 = vrot.slane %v10162_v54, %v10958_v55 }
 0x140   : > { %v765_v34 = vld [vmem:[#allocation3 + $0x11] sm:$0x7f]  ;;  %v753_v31 = vmax.f32 %v746_v30, %v10868_v61  ;;  %v10074_v61 = vcombine.high %v1028_v26, %v1035_v28  ;;  %v11018_v26 = vrot.slane %v3934_v5, %v10958_v55 }
 0x141   : > { %v932_v33 = vsel %vm10952_vm9, %v853_v24, %v931_v17  ;;  %v749_v38 = vld [vmem:[#allocation3 + $0x38] sm:$0xff]  ;;  %v938_v35 = vsel %vm10961_vm10, %v854_v25, %v937_v20  ;;  %v772_v41 = vmax.f32 %v765_v34, %v10863_v63  ;;  %v747_v44 = vld [vmem:[#allocation3 + $0x28] sm:$0xff]  ;;  %762 = vst.msk [vmem:[#allocation3 + $0x30] sm:$0xff] %vm700_vm5, %v755_v49 }
 0x142   : > { %933 = vst [vmem:[#allocation2 + $0x8] sm:$0xf] %v932_v33  ;;  %v756_v40 = vmax.f32 %v749_v38, %v10904_v27  ;;  %939 = vst [vmem:[#allocation2 + $0xc] sm:$0x1] %v938_v35  ;;  %v766_v37 = vld [vmem:[#allocation3 + $0x19] sm:$0x7f]  ;;  %v754_v39 = vmax.f32 %v747_v44, %v10910_v29  ;;  %v1336_v29 = vrot.slane %v1326_v46, %v10958_v55 }
 0x143   : > { %760 = vst.msk [vmem:[#allocation3 + $0x20] sm:$0xff] %vm700_vm5, %v753_v31  ;;  %v773_v48 = vmax.f32 %v766_v37, %v10839_v36  ;;  %v764_v43 = vld [vmem:[#allocation3 + $0x9] sm:$0x7f]  ;;  %v1343_v51 = vrot.slane %v10074_v61, %v10958_v55 }
 0x144   : > { %779 = vst.msk [vmem:[#allocation3 + $0x11] sm:$0x7f] %vm733_vm6, %v772_v41  ;;  %v771_v63 = vmax.f32 %v764_v43, %v10844_v47  ;;  %v10059_v27 = vld.sshfl [vmem:[#allocation2 + $0x4] sm:$0x1 pattern:$0x75316420] }
 0x145   : > { %763 = vst.msk [vmem:[#allocation3 + $0x38] sm:$0xff] %vm700_vm5, %v756_v40  ;;  %761 = vst.msk [vmem:[#allocation3 + $0x28] sm:$0xff] %vm700_vm5, %v754_v39  ;;  %v1051_v50 = vrot.slane %v10059_v27, %v10958_v55  ;;  %v1358_v1 = vcombine.low %v1336_v29, %v1343_v51  ;;  %v946_v34 = vld [vmem:[#allocation2 + $0x18] sm:$0xf]  ;;  %v943_v43 = vld [vmem:[#allocation2 + $0x14] sm:$0x1] }
 0x146   : > { %780 = vst.msk [vmem:[#allocation3 + $0x19] sm:$0x7f] %vm733_vm6, %v773_v48  ;;  %778 = vst.msk [vmem:[#allocation3 + $0x9] sm:$0x7f] %vm733_vm6, %v771_v63  ;;  %v940_v48 = vld [vmem:[#allocation2 + $0x10] sm:$0xf] }
 0x147   : > { %v1366_v11 = vrot.slane %v1358_v1, %v10958_v55  ;;  %v949_v63 = vld [vmem:[#allocation2 + $0x1c] sm:$0x1] }
 0x148   : > { %v769_v42 = vld [vmem:[#allocation3 + $0x31] sm:$0x7f]  ;;  %v10492_v1 = vld [vmem:[%s15735_s2 + $0x54] ss:$8 sps:$4 sm:$0xff]  }
 0x149   : > { %v10060_v36 = vld.sshfl [vmem:[#allocation2 + $0x8] sm:$0x33 pattern:$0x75316420]  ;;  %v776_v53 = vmax.f32 %v769_v42, %v10915_v32 }
 0x14a   : > { %v767_v52 = vld [vmem:[#allocation3 + $0x21] sm:$0x7f]  ;;  %v1059_v56 = vcombine.high %v10060_v36, %v10060_v36  ;;  %v10990_v47 = vrot.slane %v10060_v36, %v10958_v55  ;;  %v10061_v9 = vld.sshfl [vmem:[#allocation2 + $0xc] sm:$0x1 pattern:$0x75316420] }
 0x14b   : > { %v809_v58 = vld [vmem:[#allocation3 + $0x10] sm:$0xff]  ;;  %v774_v59 = vmax.f32 %v767_v52, %v10854_v57  ;;  %783 = vst.msk [vmem:[#allocation3 + $0x31] sm:$0x7f] %vm733_vm6, %v776_v53  ;;  %v11012_v25 = vrot.slane %v10061_v9, %v10958_v55 }
 0x14c   : > { %v770_v0 = vld [vmem:[#allocation3 + $0x39] sm:$0x7f]  ;;  %v10356_v6 = vpack.c.bf16 %v809_v58, %v809_v58  ;;  %v768_v3 = vld [vmem:[#allocation3 + $0x29] sm:$0x7f]  ;;  %v10996_v2 = vrot.slane %v1059_v56, %v10958_v55  ;;  %v1074_v32 = vcombine.high %v10990_v47, %v10990_v47  ;;  %v1328_v57 = vcombine.low %v1051_v50, %v10990_v47  ;;  %v952_v50 = vld [vmem:[#allocation2 + $0x20] sm:$0xf] }
 0x14d   : > { %v777_v60 = vmax.f32 %v770_v0, %v10896_v23  ;;  %v810_v14 = vld [vmem:[#allocation3 + $0x18] sm:$0xff]  ;;  %781 = vst.msk [vmem:[#allocation3 + $0x21] sm:$0x7f] %vm733_vm6, %v774_v59  ;;  %v775_v4 = vmax.f32 %v768_v3, %v10900_v21  ;;  %v808_v7 = vld [vmem:[#allocation3 + $0x8] sm:$0xff]  ;;  %v955_v0 = vld [vmem:[#allocation2 + $0x24] sm:$0x1] }
 0x14e   : > { %v10357_v8 = vpack.c.bf16 %v810_v14, %v810_v14  ;;  %v864_v23 = vshrl.u32 %v10356_v6, 16  ;;  %v1329_v18 = vcombine.low %v10996_v2, %v1074_v32  ;;  %v10355_v10 = vpack.c.bf16 %v808_v7, %v808_v7  ;;  %v10487_v52 = vld [vmem:[%s15735_s2 + $0x40] ss:$8 sps:$4 sm:$0xff]   ;;  %v970_v14 = vld [vmem:[#allocation2 + $0x38] sm:$0xf] }
 0x14f   : > { %784 = vst.msk [vmem:[#allocation3 + $0x39] sm:$0x7f] %vm733_vm6, %v777_v60  ;;  %v867_v12 = vshll.u32 %v10356_v6, 16  ;;  %782 = vst.msk [vmem:[#allocation3 + $0x29] sm:$0x7f] %vm733_vm6, %v775_v4  ;;  %v1075_v21 = vcombine.high %v10996_v2, %v10996_v2  ;;  %v1350_v17 = vrot.slane %v1328_v57, %v10958_v55 }
 0x150   : > { %v872_v19 = vshrl.u32 %v10357_v8, 16  ;;  %v866_v13 = vrot.slane %v864_v23, 7  ;;  %v1357_v20 = vrot.slane %v1329_v18, %v10958_v55  ;;  %v856_v24 = vshrl.u32 %v10355_v10, 16  ;;  %v973_v4 = vld [vmem:[#allocation2 + $0x3c] sm:$0x1] }
 0x151   : > { %v875_v30 = vshll.u32 %v10357_v8, 16  ;;  %v859_v38 = vshll.u32 %v10355_v10, 16  ;;  %v11023_v40 = vcombine.low %v1075_v21, %v11012_v25  ;;  %v958_v23 = vld [vmem:[#allocation2 + $0x28] sm:$0xf]  ;;  %v961_v18 = vld [vmem:[#allocation2 + $0x2c] sm:$0x1] }
 0x152   : > { %v11020_v28 = vrot.slane %v872_v19, 7  ;;  %v869_v49 = vor.u32 %v867_v12, %v866_v13  ;;  %v1359_v33 = vcombine.low %v1350_v17, %v1357_v20  ;;  %v858_v31 = vrot.slane %v856_v24, 7  ;;  %v813_v41 = vld [vmem:[#allocation3 + $0x30] sm:$0xff]  ;;  %v10490_v21 = vld [vmem:[%s15735_s2 + $0x50] ss:$8 sps:$4 sm:$0xff]  }
 0x153   : > { %v870_v35 = vrot.slane %v866_v13, 4  ;;  %v10360_v46 = vpack.c.bf16 %v813_v41, %v813_v41  ;;  %v964_v24 = vld [vmem:[#allocation2 + $0x30] sm:$0xf] }
 0x154   : > { %v877_v44 = vor.u32 %v875_v30, %v11020_v28  ;;  %v878_v37 = vrot.slane %v11020_v28, 4  ;;  %v811_v39 = vld [vmem:[#allocation3 + $0x20] sm:$0xff]  ;;  %v1373_v61 = vrot.slane %v1359_v33, %v10958_v55  ;;  %v861_v27 = vor.u32 %v859_v38, %v858_v31  ;;  %v10495_v30 = vld [vmem:[%s15735_s2 + $0x64] ss:$8 sps:$4 sm:$0xff]  }
 0x155   : > { %v862_v29 = vrot.slane %v858_v31, 4  ;;  %v10358_v51 = vpack.c.bf16 %v811_v39, %v811_v39  ;;  %v947_v36 = vsel %vm10952_vm9, %v869_v49, %v946_v34  ;;  %v896_v54 = vshrl.u32 %v10360_v46, 16  ;;  %v967_v28 = vld [vmem:[#allocation2 + $0x34] sm:$0x1]  ;;  %v976_v49 = vld [vmem:[#allocation2 + $0x40] sm:$0xf] }
 0x156   : > { %v814_v42 = vld [vmem:[#allocation3 + $0x38] sm:$0xff]  ;;  %v812_v56 = vld [vmem:[#allocation3 + $0x28] sm:$0xff]  ;;  %v899_v58 = vshll.u32 %v10360_v46, 16  ;;  %v1374_v59 = vcombine.low %v1366_v11, %v1373_v61  ;;  %948 = vst [vmem:[#allocation2 + $0x18] sm:$0xf] %v947_v36  ;;  %v941_v32 = vsel %vm10952_vm9, %v861_v27, %v940_v48  ;;  %v950_v11 = vsel %vm10961_vm10, %v870_v35, %v949_v63 }
 0x157   : > { %v10361_v53 = vpack.c.bf16 %v814_v42, %v814_v42  ;;  %v880_v6 = vshrl.u32 %v10358_v51, 16  ;;  %v883_v60 = vshll.u32 %v10358_v51, 16  ;;  %v10359_v3 = vpack.c.bf16 %v812_v56, %v812_v56  ;;  %942 = vst [vmem:[#allocation2 + $0x10] sm:$0xf] %v941_v32  ;;  %951 = vst [vmem:[#allocation2 + $0x1c] sm:$0x1] %v950_v11 }
 0x158   : > { %v898_v8 = vrot.slane %v896_v54, 7  ;;  %10086 = vmatmul.mubr.msk.bf16.vlgmr.msra.gmra.mrb[0].mxu1 %vm700_vm5, %v1374_v59  ;;  %v944_v7 = vsel %vm10961_vm10, %v862_v29, %v943_v43  ;;  %v953_v20 = vsel %vm10952_vm9, %v877_v44, %v952_v50  ;;  %v956_v38 = vsel %vm10961_vm10, %v878_v37, %v955_v0  ;;  %v11054_v35 = vld.sshfl [vmem:[#allocation2 + $0x4c] sm:$0x1 pattern:$0x75316420] }
 0x159   : > { %v904_v57 = vshrl.u32 %v10361_v53, 16  ;;  %v907_v5 = vshll.u32 %v10361_v53, 16  ;;  %v882_v9 = vrot.slane %v880_v6, 7  ;;  %v888_v10 = vshrl.u32 %v10359_v3, 16  ;;  %1668 = vmatprep.mubr.bf16.mxu1 %v15739_v22  ;;  %945 = vst [vmem:[#allocation2 + $0x14] sm:$0x1] %v944_v7  ;;  %2954 = vmatpush1.bf16.msra.mxu1 %v10487_v52 }
 0x15a   : > { %v891_v12 = vshll.u32 %v10359_v3, 16  ;;  %v901_v13 = vor.u32 %v899_v58, %v898_v8  ;;  %v902_v17 = vrot.slane %v898_v8, 4  ;;  %2955 = vmatprep.subr.bf16.mxu1 %v10492_v1  ;;  %954 = vst [vmem:[#allocation2 + $0x20] sm:$0xf] %v953_v20  ;;  %957 = vst [vmem:[#allocation2 + $0x24] sm:$0x1] %v956_v38  ;;  %v3949_v52 = vcombine.high %v11015_v45, %v11015_v45 }
 0x15b   : > { %v906_v19 = vrot.slane %v904_v57, 7  ;;  %v885_v33 = vor.u32 %v883_v60, %v882_v9  ;;  %v886_v34 = vrot.slane %v882_v9, 4  ;;  %v890_v31 = vrot.slane %v888_v10, 7  ;;  %v10493_v61 = vld [vmem:[%s15735_s2 + $0x60] ss:$8 sps:$4 sm:$0xff]  }
 0x15c   : > { %v971_v44 = vsel %vm10952_vm9, %v901_v13, %v970_v14  ;;  %v974_v46 = vsel %vm10961_vm10, %v902_v17, %v973_v4  ;;  %v979_v48 = vld [vmem:[#allocation2 + $0x44] sm:$0x1]  ;;  %v10498_v50 = vld [vmem:[%s15735_s2 + $0x74] ss:$8 sps:$4 sm:$0xff]   ;;  %v3964_v59 = vrot.slane %v11054_v35, %v10958_v55  ;;  %v3950_v3 = vcombine.high %v11018_v26, %v11018_v26 }
 0x15d   : > { %v909_v41 = vor.u32 %v907_v5, %v906_v19  ;;  %v910_v39 = vrot.slane %v906_v19, 4  ;;  %v893_v43 = vor.u32 %v891_v12, %v890_v31  ;;  %v894_v63 = vrot.slane %v890_v31, 4  ;;  %v10064_v27 = vld.sshfl [vmem:[#allocation2 + $0x18] sm:$0x33 pattern:$0x75316420]  ;;  %2956 = vmatpush1.bf16.msra.mxu1 %v10490_v21 }
 0x15e   : > { %v959_v37 = vsel %vm10952_vm9, %v885_v33, %v958_v23  ;;  %v962_v29 = vsel %vm10961_vm10, %v886_v34, %v961_v18  ;;  %972 = vst [vmem:[#allocation2 + $0x38] sm:$0xf] %v971_v44  ;;  %975 = vst [vmem:[#allocation2 + $0x3c] sm:$0x1] %v974_v46  ;;  %v11068_v51 = vrot.slane %v10064_v27, %v10958_v55  ;;  %2957 = vmatprep.subr.bf16.mxu1 %v10495_v30  ;;  %v10496_v5 = vld [vmem:[%s15735_s2 + $0x70] ss:$8 sps:$4 sm:$0xff]  }
 0x15f   : > { %v3706_v42 = vcombine.high %v10064_v27, %v10064_v27  ;;  %960 = vst [vmem:[#allocation2 + $0x28] sm:$0xf] %v959_v37  ;;  %963 = vst [vmem:[#allocation2 + $0x2c] sm:$0x1] %v962_v29  ;;  %v977_v36 = vsel %vm10952_vm9, %v909_v41, %v976_v49  ;;  %v965_v56 = vsel %vm10952_vm9, %v893_v43, %v964_v24 }
 0x160   : > { %v10062_v53 = vld.sshfl [vmem:[#allocation2 + $0x10] sm:$0x33 pattern:$0x75316420]  ;;  %v968_v54 = vsel %vm10961_vm10, %v894_v63, %v967_v28  ;;  %978 = vst [vmem:[#allocation2 + $0x40] sm:$0xf] %v977_v36  ;;  %v980_v58 = vsel %vm10961_vm10, %v910_v39, %v979_v48  ;;  %v3721_v60 = vcombine.high %v11068_v51, %v11068_v51  ;;  %v1385_v4 = vrot.slane %v11023_v40, %v10958_v55 }
 0x161   : > { %v10063_v0 = vld.sshfl [vmem:[#allocation2 + $0x14] sm:$0x1 pattern:$0x75316420]  ;;  %v1097_v1 = vcombine.high %v10062_v53, %v10062_v53  ;;  %v11086_v6 = vrot.slane %v3706_v42, %v10958_v55  ;;  %966 = vst [vmem:[#allocation2 + $0x30] sm:$0xf] %v965_v56  ;;  %v11093_v32 = vrot.slane %v10062_v53, %v10958_v55  ;;  %2958 = vmatpush1.bf16.msra.mxu1 %v10493_v61 }
 0x162   : > { %969 = vst [vmem:[#allocation2 + $0x34] sm:$0x1] %v968_v54  ;;  %981 = vst [vmem:[#allocation2 + $0x44] sm:$0x1] %v980_v58  ;;  %v11096_v14 = vrot.slane %v10063_v0, %v10958_v55  ;;  %2959 = vmatprep.subr.bf16.mxu1 %v10498_v50 }
 0x163   : > { %v10065_v57 = vld.sshfl [vmem:[#allocation2 + $0x1c] sm:$0x1 pattern:$0x75316420]  ;;  %v11104_v8 = vrot.slane %v1097_v1, %v10958_v55  ;;  %v3977_v7 = vcombine.low %v11086_v6, %v3721_v60  ;;  %v1151_v18 = vcombine.high %v11086_v6, %v11086_v6 }
 0x164   : > { %v10066_v23 = vld.sshfl [vmem:[#allocation2 + $0x20] sm:$0x33 pattern:$0x75316420]  ;;  %v11110_v9 = vrot.slane %v10065_v57, %v10958_v55  ;;  %v1378_v40 = vcombine.low %v11096_v14, %v11068_v51 }
 0x165   : > { %v1173_v10 = vcombine.high %v10066_v23, %v10066_v23  ;;  %v11115_v12 = vrot.slane %v10066_v23, %v10958_v55  ;;  %v10153_v11 = vld.sshfl [vmem:[#allocation2 + $0x24] sm:$0x1 pattern:$0x75316420]  ;;  %v1376_v21 = vcombine.low %v11093_v32, %v11104_v8  ;;  %v10075_v19 = vcombine.high %v11093_v32, %v11104_v8  ;;  %2960 = vmatpush1.bf16.msra.mxu1 %v10496_v5 }
 0x166   : > { %v4005_v13 = vrot.slane %v3977_v7, %v10958_v55  ;;  %v1425_v17 = vcombine.low %v1151_v18, %v11110_v9  ;;  %v1406_v20 = vrot.slane %v1378_v40, %v10958_v55  ;;  %v10154_v28 = vld.sshfl [vmem:[#allocation2 + $0x28] sm:$0x33 pattern:$0x75316420]  ;;  %v11131_v34 = vrot.slane %v10153_v11, %v10958_v55 }
 0x167   : > { %v11125_v24 = vrot.slane %v1173_v10, %v10958_v55  ;;  %v1392_v30 = vrot.slane %v1376_v21, %v10958_v55  ;;  %v1399_v49 = vrot.slane %v10075_v19, %v10958_v55  ;;  %v11138_v39 = vrot.slane %v10154_v28, %v10958_v55  ;;  %v10069_v37 = vld.sshfl [vmem:[#allocation2 + $0x2c] sm:$0x1 pattern:$0x75316420] }
 0x168   : > { %v1441_v33 = vrot.slane %v1425_v17, %v10958_v55  ;;  %v4007_v31 = vcombine.low %v1406_v20, %v4005_v13  ;;  %v10070_v54 = vld.sshfl [vmem:[#allocation2 + $0x30] sm:$0x33 pattern:$0x75316420]  ;;  %v1211_v58 = vcombine.high %v10154_v28, %v10154_v28 }
 0x169   : > { %v1426_v38 = vcombine.low %v11115_v12, %v11125_v24  ;;  %v10076_v41 = vcombine.high %v11115_v12, %v11125_v24  ;;  %v1407_v44 = vcombine.low %v1385_v4, %v1392_v30  ;;  %v1408_v46 = vcombine.low %v1399_v49, %v1406_v20  ;;  %v10072_v18 = vld.sshfl [vmem:[#allocation2 + $0x38] sm:$0x33 pattern:$0x75316420] }
 0x16a   : > { %v4006_v61 = vcombine.low %v1392_v30, %v1399_v49  ;;  %v1456_v48 = vcombine.low %v4005_v13, %v1441_v33  ;;  %v4021_v43 = vrot.slane %v4007_v31, %v10958_v55  ;;  %v4026_v56 = vcombine.low %v11131_v34, %v11138_v39  ;;  %v10071_v11 = vld.sshfl [vmem:[#allocation2 + $0x34] sm:$0x1 pattern:$0x75316420] }
 0x16b   : > { %v1448_v63 = vrot.slane %v1426_v38, %v10958_v55  ;;  %v1455_v27 = vrot.slane %v10076_v41, %v10958_v55  ;;  %v1415_v29 = vrot.slane %v1407_v44, %v10958_v55  ;;  %v1422_v42 = vrot.slane %v1408_v46, %v10958_v55 }
 0x16c   : > { %v4014_v36 = vrot.slane %v4006_v61, %v10958_v55  ;;  %v1464_v50 = vrot.slane %v1456_v48, %v10958_v55  ;;  %v1226_v60 = vcombine.high %v11138_v39, %v11138_v39  ;;  %v11152_v4 = vrot.slane %v10069_v37, %v10958_v55  ;;  %v10073_v61 = vld.sshfl [vmem:[#allocation2 + $0x3c] sm:$0x1 pattern:$0x75316420] }
 0x16d   : > { %v1457_v53 = vcombine.low %v1448_v63, %v1455_v27  ;;  %v1423_v0 = vcombine.low %v1415_v29, %v1422_v42  ;;  %v4054_v5 = vrot.slane %v4026_v56, %v10958_v55  ;;  %v4055_v7 = vcombine.low %v1441_v33, %v1448_v63 }
 0x16e   : > { %v4022_v1 = vcombine.low %v4014_v36, %v4021_v43  ;;  %v11157_v23 = vrot.slane %v1211_v58, %v10958_v55  ;;  %v1249_v40 = vcombine.high %v10070_v54, %v10070_v54  ;;  %v11162_v10 = vrot.slane %v10070_v54, %v10958_v55 }
 0x16f   : > { %v1471_v57 = vrot.slane %v1457_v53, %v10958_v55  ;;  %10087 = vmatmul.mubr.msk.bf16.gmra.mrb[4].mxu1 %vm700_vm5, %v1423_v0  ;;  %v4056_v19 = vcombine.low %v1455_v27, %v4054_v5  ;;  %v4063_v13 = vrot.slane %v4055_v7, %v10958_v55  ;;  %v11175_v49 = vrot.slane %v10071_v11, %v10958_v55  ;;  %v10160_v0 = vld.sshfl [vmem:[#allocation2 + $0x40] sm:$0x33 pattern:$0x75316420] }
 0x170   : > { %10184 = vmatmul.mubr.msk.bf16.vlgmr.msra.gmra.mrb[32].mxu0 %vm700_vm5, %v4022_v1  ;;  %1678 = vmatprep.mubr.bf16.mxu1 %v15739_v22  ;;  %v1227_v17 = vcombine.high %v11157_v23, %v11157_v23  ;;  %v11170_v20 = vrot.slane %v1249_v40, %v10958_v55  ;;  %v1474_v28 = vcombine.low %v11157_v23, %v1226_v60 }
 0x171   : > { %4316 = vmatprep.mubr.bf16.mxu0 %v15739_v22  ;;  %v1472_v21 = vcombine.low %v1464_v50, %v1471_v57  ;;  %v4070_v30 = vrot.slane %v4056_v19, %v10958_v55  ;;  %v1287_v33 = vcombine.high %v10072_v18, %v10072_v18  ;;  %v11178_v31 = vrot.slane %v10072_v18, %v10958_v55 }
 0x172   : > { %v1475_v38 = vcombine.low %v1227_v17, %v11152_v4  ;;  %v1476_v41 = vcombine.low %v11162_v10, %v11170_v20  ;;  %v1490_v44 = vrot.slane %v1474_v28, %v10958_v55  ;;  %v10174_v46 = vcombine.high %v11162_v10, %v11170_v20 }
 0x173   : > { %v4071_v48 = vcombine.low %v4063_v13, %v4070_v30  ;;  %v11187_v43 = vrot.slane %v1287_v33, %v10958_v55  ;;  %v1302_v63 = vcombine.high %v11178_v31, %v11178_v31  ;;  %v11197_v50 = vrot.slane %v10073_v61, %v10958_v55  ;;  %v10161_v13 = vld.sshfl [vmem:[#allocation2 + $0x44] sm:$0x1 pattern:$0x75316420] }
 0x174   : > { %v1497_v27 = vrot.slane %v1475_v38, %v10958_v55  ;;  %v1504_v37 = vrot.slane %v1476_v41, %v10958_v55  ;;  %v1505_v29 = vcombine.low %v4054_v5, %v1490_v44  ;;  %v4103_v42 = vrot.slane %v10174_v46, %v10958_v55 }
 0x175   : > { %v1303_v36 = vcombine.high %v11187_v43, %v11187_v43  ;;  %v1523_v53 = vcombine.low %v11175_v49, %v11178_v31  ;;  %v1524_v60 = vcombine.low %v11187_v43, %v1302_v63  ;;  %v3896_v19 = vcombine.high %v10160_v0, %v10160_v0 }
 0x176   : > { %v1506_v56 = vcombine.low %v1497_v27, %v1504_v37  ;;  %v1513_v54 = vrot.slane %v1505_v29, %v10958_v55  ;;  %v4104_v58 = vcombine.low %v1490_v44, %v1497_v27  ;;  %v4105_v1 = vcombine.low %v1504_v37, %v4103_v42 }
 0x177   : > { %10088 = vmatmul.mubr.msk.bf16.gmra.mrb[8].mxu1 %vm700_vm5, %v1472_v21  ;;  %v1525_v57 = vcombine.low %v1303_v36, %v11197_v50  ;;  %v1539_v18 = vrot.slane %v1523_v53, %v10958_v55  ;;  %v1546_v11 = vrot.slane %v1524_v60, %v10958_v55  ;;  %v2400_v17 = vcombine.high %v11093_v32, %v11093_v32 }
 0x178   : > { %10185 = vmatmul.mubr.msk.bf16.gmra.mrb[36].mxu0 %vm700_vm5, %v4071_v48  ;;  %1688 = vmatprep.mubr.bf16.mxu1 %v15739_v22  ;;  %v1520_v5 = vrot.slane %v1506_v56, %v10958_v55  ;;  %v4112_v7 = vrot.slane %v4104_v58, %v10958_v55  ;;  %v4119_v40 = vrot.slane %v4105_v1, %v10958_v55 }
 0x179   : > { %4326 = vmatprep.mubr.bf16.mxu0 %v15739_v22  ;;  %v1553_v21 = vrot.slane %v1525_v57, %v10958_v55  ;;  %v2653_v28 = vcombine.low %v10990_v47, %v10996_v2  ;;  %v4172_v30 = vcombine.low %v11018_v26, %v3949_v52  ;;  %v4173_v33 = vcombine.low %v3950_v3, %v3964_v59 }
 0x17a   : > { %v1521_v38 = vcombine.low %v1513_v54, %v1520_v5  ;;  %v1554_v41 = vcombine.low %v4103_v42, %v1539_v18  ;;  %v11229_v44 = vrot.slane %v10160_v0, %v10958_v55  ;;  %v11232_v46 = vrot.slane %v3896_v19, %v10958_v55 }
 0x17b   : > { %v4120_v61 = vcombine.low %v4112_v7, %v4119_v40  ;;  %v1555_v48 = vcombine.low %v1546_v11, %v1553_v21  ;;  %v2656_v63 = vcombine.low %v11104_v8, %v2400_v17  ;;  %v11236_v52 = vrot.slane %v10161_v13, %v10958_v55 }
 0x17c   : > { %v4124_v35 = vcombine.low %v11229_v44, %v11232_v46  ;;  %v4153_v26 = vcombine.low %v1539_v18, %v1546_v11  ;;  %v10123_v59 = vcombine.high %v10990_v47, %v10996_v2  ;;  %v10175_v3 = vcombine.high %v11229_v44, %v11232_v46 }
 0x17d   : > { %v2655_v27 = vcombine.low %v11012_v25, %v11093_v32  ;;  %v4194_v37 = vrot.slane %v4172_v30, %v10958_v55  ;;  %v4201_v29 = vrot.slane %v4173_v33, %v10958_v55  ;;  %v2663_v2 = vrot.slane %v2653_v28, %v10958_v55 }
 0x17e   : > { %v4152_v47 = vrot.slane %v4124_v35, %v10958_v55  ;;  %v4171_v42 = vcombine.low %v11236_v52, %v11015_v45  ;;  %v1562_v36 = vrot.slane %v1554_v41, %v10958_v55  ;;  %v1569_v53 = vrot.slane %v1555_v48, %v10958_v55 }
 0x17f   : > { %10089 = vmatmul.mubr.msk.bf16.gmra.mrb[12].mxu1 %vm700_vm5, %v1521_v38  ;;  %v2684_v25 = vrot.slane %v2656_v63, %v10958_v55  ;;  %v2401_v32 = vcombine.high %v11104_v8, %v11104_v8  ;;  %v4161_v54 = vrot.slane %v4153_v26, %v10958_v55  ;;  %v2670_v58 = vrot.slane %v10123_v59, %v10958_v55 }
 0x180   : > { %10186 = vmatmul.mubr.msk.bf16.gmra.mrb[40].mxu0 %vm700_vm5, %v4120_v61  ;;  %1698 = vmatprep.mubr.bf16.mxu1 %v15739_v22  ;;  %v4154_v56 = vcombine.low %v1553_v21, %v4152_v47  ;;  %v4180_v0 = vrot.slane %v10175_v3, %v10958_v55  ;;  %v2677_v1 = vrot.slane %v2655_v27, %v10958_v55 }
 0x181   : > { %4336 = vmatprep.mubr.bf16.mxu0 %v15739_v22  ;;  %v4187_v60 = vrot.slane %v4171_v42, %v10958_v55  ;;  %v1570_v57 = vcombine.low %v1562_v36, %v1569_v53  ;;  %v2702_v7 = vcombine.low %v2401_v32, %v11096_v14  ;;  %v2685_v40 = vcombine.low %v2663_v2, %v2670_v58 }
 0x182   : > { %v4168_v45 = vrot.slane %v4154_v56, %v10958_v55  ;;  %v2686_v5 = vcombine.low %v2677_v1, %v2684_v25  ;;  %v4203_v11 = vcombine.low %v4194_v37, %v4201_v29  ;;  %v2703_v21 = vcombine.low %v11068_v51, %v11086_v6 }
 0x183   : > { %v4202_v8 = vcombine.low %v4180_v0, %v4187_v60  ;;  %v10124_v19 = vcombine.high %v11068_v51, %v11086_v6  ;;  %v2705_v13 = vcombine.low %v11110_v9, %v11115_v12  ;;  %v2712_v17 = vrot.slane %v2702_v7, %v10958_v55 }
 0x184   : > { %v4169_v18 = vcombine.low %v4161_v54, %v4168_v45  ;;  %v2700_v14 = vrot.slane %v2686_v5, %v10958_v55  ;;  %v2693_v28 = vrot.slane %v2685_v40, %v10958_v55  ;;  %v4217_v33 = vrot.slane %v4203_v11, %v10958_v55 }
 0x185   : > { %v4210_v30 = vrot.slane %v4202_v8, %v10958_v55  ;;  %v2719_v51 = vrot.slane %v2703_v21, %v10958_v55  ;;  %v2726_v6 = vrot.slane %v10124_v19, %v10958_v55  ;;  %v2733_v9 = vrot.slane %v2705_v13, %v10958_v55 }
 0x186   : > { %v2477_v38 = vcombine.high %v11125_v24, %v11125_v24  ;;  %v2476_v41 = vcombine.high %v11115_v12, %v11115_v12  ;;  %v2701_v61 = vcombine.low %v2693_v28, %v2700_v14  ;;  %v2753_v63 = vcombine.low %v11138_v39, %v11157_v23 }
 0x187   : > { %10090 = vmatmul.mubr.msk.bf16.gmra.mrb[16].mxu1 %vm700_vm5, %v1570_v57  ;;  %v2734_v48 = vcombine.low %v2712_v17, %v2719_v51  ;;  %v10125_v35 = vcombine.high %v11138_v39, %v11157_v23  ;;  %v4218_v26 = vcombine.low %v4210_v30, %v4217_v33  ;;  %v2735_v59 = vcombine.low %v2726_v6, %v2733_v9 }
 0x188   : > { %10187 = vmatmul.mubr.msk.bf16.gmra.mrb[44].mxu0 %vm700_vm5, %v4169_v18  ;;  %2985 = vmatprep.mubr.bf16.mxu1 %v15739_v22  ;;  %v2752_v3 = vcombine.low %v2477_v38, %v11131_v34  ;;  %v2751_v12 = vcombine.low %v11125_v24, %v2476_v41  ;;  %v2775_v37 = vrot.slane %v2753_v63, %v10958_v55  ;;  %v10546_v17 = vmov 1983009808  }
 0x189   : > { %4346 = vmatprep.mubr.bf16.mxu0 %v15739_v22  ;;  %v2742_v27 = vrot.slane %v2734_v48, %v10958_v55  ;;  %v2782_v29 = vrot.slane %v10125_v35, %v10958_v55  ;;  %v2553_v39 = vcombine.high %v11170_v20, %v11170_v20  ;;  %v2749_v23 = vrot.slane %v2735_v59, %v10958_v55 }
 0x18a   : > { %v2768_v34 = vrot.slane %v2752_v3, %v10958_v55  ;;  %v2552_v47 = vcombine.high %v11162_v10, %v11162_v10  ;;  %v2761_v24 = vrot.slane %v2751_v12, %v10958_v55  ;;  %v2803_v32 = vcombine.low %v11178_v31, %v11187_v43 }
 0x18b   : > { %v2750_v2 = vcombine.low %v2742_v27, %v2749_v23  ;;  %v2784_v42 = vcombine.low %v2775_v37, %v2782_v29  ;;  %v2802_v36 = vcombine.low %v2553_v39, %v11175_v49  ;;  %v2800_v54 = vcombine.low %v11152_v4, %v11162_v10 }
 0x18c   : > { %v2783_v53 = vcombine.low %v2761_v24, %v2768_v34  ;;  %v2801_v25 = vcombine.low %v11170_v20, %v2552_v47  ;;  %v2629_v49 = vcombine.high %v11232_v46, %v11232_v46  ;;  %v2831_v20 = vrot.slane %v2803_v32, %v10958_v55 }
 0x18d   : > { %v2798_v56 = vrot.slane %v2784_v42, %v10958_v55  ;;  %v2824_v58 = vrot.slane %v2802_v36, %v10958_v55  ;;  %v2628_v45 = vcombine.high %v11229_v44, %v11229_v44  ;;  %v2810_v57 = vrot.slane %v2800_v54, %v10958_v55 }
 0x18e   : > { %v2791_v0 = vrot.slane %v2783_v53, %v10958_v55  ;;  %v2817_v1 = vrot.slane %v2801_v25, %v10958_v55  ;;  %v2852_v4 = vcombine.low %v2629_v49, %v11236_v52  ;;  %v10126_v7 = vcombine.high %v11178_v31, %v11187_v43 }
 0x18f   : > { %10135 = vmatmul.mubr.msk.bf16.vlgmr.msra.gmra.mrb[20].mxu1 %vm700_vm5, %v2701_v61  ;;  %v2833_v5 = vcombine.low %v2824_v58, %v2831_v20  ;;  %v2850_v18 = vcombine.low %v11197_v50, %v11229_v44  ;;  %v2851_v40 = vcombine.low %v11232_v46, %v2628_v45  ;;  %v1732_v28 = vunpack.c.l.s4 %v10546_v17 }
 0x190   : > { %10188 = vmatmul.mubr.msk.bf16.gmra.mrb[48].mxu0 %vm700_vm5, %v4218_v26  ;;  %2995 = vmatprep.mubr.bf16.mxu1 %v15739_v22  ;;  %v2799_v60 = vcombine.low %v2791_v0, %v2798_v56  ;;  %v2832_v10 = vcombine.low %v2810_v57, %v2817_v1  ;;  %v2880_v11 = vrot.slane %v2852_v4, %v10958_v55  ;;  %v16158_v27 = vmov 0 }
 0x191   : > { %7613 = vmatprep.mubr.bf16.mxu0 %v15739_v22  ;;  %v2847_v8 = vrot.slane %v2833_v5, %v10958_v55  ;;  %v2859_v52 = vrot.slane %v10126_v7, %v10958_v55  ;;  %v2866_v19 = vrot.slane %v2850_v18, %v10958_v55  ;;  %v2873_v13 = vrot.slane %v2851_v40, %v10958_v55 }
 0x192   : > { %v2840_v21 = vrot.slane %v2832_v10, %v10958_v55  ;;  %v1733_v30 = vunpack.c.0.s8 %v1732_v28  ;;  %v16159_v27 = vsel %vm11371_vm1, 4294967295, %v16158_v27 }
 0x193   : > { %v2882_v43 = vcombine.low %v2873_v13, %v2880_v11  ;;  %v2881_v50 = vcombine.low %v2859_v52, %v2866_v19  ;;  %16160 = vst [vmem:[#allocation9_spill] sm:$0xff] %v16159_v27 }
 0x194   : > { %v2848_v31 = vcombine.low %v2840_v21, %v2847_v8  ;;  %v11349_v51 = vsub.s32 %v1733_v30, %v10943_v15 }
 0x195   : > { %v2896_v44 = vrot.slane %v2882_v43, %v10958_v55  ;;  %v2889_v46 = vrot.slane %v2881_v50, %v10958_v55 }
 0x196   : > { %16156 = vst [vmem:[#allocation7_spill] sm:$0xff] %v11349_v51 }
 0x197   : > { %10136 = vmatmul.mubr.msk.bf16.gmra.mrb[24].mxu1 %vm700_vm5, %v2750_v2  ;;  %v2897_v14 = vcombine.low %v2889_v46, %v2896_v44 }
 0x198   : > { %3005 = vmatprep.mubr.bf16.mxu1 %v15739_v22 }
 0x19f   : > { %10137 = vmatmul.mubr.msk.bf16.gmra.mrb[28].mxu1 %vm700_vm5, %v2799_v60 }
 0x1a0   : > { %3015 = vmatprep.mubr.bf16.mxu1 %v15739_v22 }
 0x1a7   : > { %10138 = vmatmul.mubr.msk.bf16.gmra.mrb[32].mxu1 %vm700_vm5, %v2848_v31 }
 0x1a8   : > { %3025 = vmatprep.mubr.bf16.mxu1 %v15739_v22 }
 0x1af   : > { %10139 = vmatmul.mubr.msk.bf16.gmra.mrb[36].mxu1 %vm700_vm5, %v2897_v14 }
 0x1b0   : > { %6293 = vmatprep.mubr.bf16.mxu1 %v15739_v22 }
 0x22b   : > { %v1660_v33 = vpop.f32.mrb[0].mxu1 }
 0x22c   : > { %v1662_v6 = vpop.f32.mrb[1].mxu1 }
 0x22d   : > { %v1729_v9 = vcombine.low %v1660_v33, %v1662_v6  ;;  %v1730_v38 = vcombine.high %v1660_v33, %v1662_v6  ;;  %v1664_v41 = vpop.f32.mrb[2].mxu1 }
 0x22e   : > { %v1666_v61 = vpop.f32.mrb[3].mxu1 }
 0x22f   : > { %v11352_v48 = vrot.slane %v1729_v9, %v11349_v51  ;;  %v11355_v63 = vrot.slane %v1730_v38, %v11349_v51  ;;  %v1747_v35 = vcombine.low %v1664_v41, %v1666_v61  ;;  %v1748_v26 = vcombine.high %v1664_v41, %v1666_v61 }
 0x231   : > { %16157 = vst [vmem:[#allocation8_spill] sm:$0xff] %v11352_v48  ;;  %v11359_v15 = vcombine.high %v11352_v48, %v11352_v48  ;;  %v11362_v59 = vrot.slane %v1747_v35, %v11349_v51  ;;  %v11366_v3 = vcombine.high %v11355_v63, %v11355_v63  ;;  %v11369_v12 = vrot.slane %v1748_v26, %v11349_v51 }
 0x232   : > { %v1985_v37 = vrot.slane %v11355_v63, 7  ;;  %v10091_v39 = vrot.slane %v11352_v48, 9 }
 0x233   : > { %v1988_v29 = vrot.slane %v11366_v3, 7  ;;  %v1982_v23 = vrot.slane %v11359_v15, 7  ;;  %v11383_v24 = vcombine.high %v11362_v59, %v11362_v59  ;;  %v11390_v53 = vcombine.high %v11369_v12, %v11369_v12 }
 0x234   : > { %v1987_v34 = vrot.slane %v1985_v37, 2  ;;  %v1995_v25 = vrot.slane %v11369_v12, 7  ;;  %v1991_v32 = vrot.slane %v11362_v59, 7 }
 0x235   : > { %v1983_v47 = vsel %vm11371_vm1, %v10091_v39, %v1982_v23  ;;  %v1984_v2 = vrot.slane %v1982_v23, 2  ;;  %16161 = vst [vmem:[#allocation10_spill] sm:$0xff] %v11383_v24  ;;  %v1990_v36 = vrot.slane %v1988_v29, 2  ;;  %v10092_v54 = vrot.slane %v11383_v24, 9 }
 0x236   : > { %v1989_v42 = vsel %vm11371_vm1, %v1987_v34, %v1988_v29  ;;  %2084 = vrot.lane.b32.xlu0 %v1983_v47, %s10547_s9  ;;  %v1997_v49 = vrot.slane %v1995_v25, 2  ;;  %v1998_v0 = vrot.slane %v11390_v53, 7 }
 0x237   : > { %2088 = vrot.lane.b32.xlu1 %v1989_v42, %s10547_s9  ;;  %v1986_v56 = vsel %vm11371_vm1, %v1984_v2, %v1985_v37  ;;  %v1992_v58 = vsel %vm11371_vm1, %v1990_v36, %v1991_v32  ;;  %v1996_v1 = vsel %vm11371_vm1, %v10092_v54, %v1995_v25 }
 0x238   : > { %v1999_v20 = vsel %vm11371_vm1, %v1997_v49, %v1998_v0  ;;  %v2000_v46 = vrot.slane %v1998_v0, 2 }
 0x23a   : > { %2086 = vrot.lane.b32.xlu0 %v1986_v56, %s10547_s9 }
 0x23b   : > { %2090 = vrot.lane.b32.xlu1 %v1992_v58, %s10547_s9 }
 0x23e   : > { %2092 = vrot.lane.b32.xlu0 %v1996_v1, %s10547_s9 }
 0x23f   : > { %2094 = vrot.lane.b32.xlu1 %v1999_v20, %s10547_s9 }
 0x242   : > { %v1670_v45 = vpop.f32.mrb[4].mxu1 }
 0x243   : > { %v4308_v60 = vpop.f32.mrb[32].mxu0  ;;  %v1672_v57 = vpop.f32.mrb[5].mxu1 }
 0x244   : > { %v4310_v5 = vpop.f32.mrb[33].mxu0  ;;  %v1765_v4 = vcombine.low %v1670_v45, %v1672_v57  ;;  %v1766_v10 = vcombine.high %v1670_v45, %v1672_v57  ;;  %v11409_v40 = vpop.f32.mrb[6].mxu1 }
 0x245   : > { %v4377_v7 = vcombine.low %v4308_v60, %v4310_v5  ;;  %v4378_v18 = vcombine.high %v4308_v60, %v4310_v5  ;;  %v11411_v8 = vpop.f32.mrb[34].mxu0  ;;  %v11413_v11 = vpop.f32.mrb[7].mxu1 }
 0x246   : > { %v11415_v21 = vpop.f32.mrb[35].mxu0  ;;  %v11418_v52 = vrot.slane %v1765_v4, %v11349_v51  ;;  %v11421_v19 = vrot.slane %v1766_v10, %v11349_v51  ;;  %v1783_v13 = vcombine.low %v11409_v40, %v11413_v11  ;;  %v1784_v31 = vcombine.high %v11409_v40, %v11413_v11 }
 0x247   : > { %v4395_v43 = vcombine.low %v11411_v8, %v11415_v21  ;;  %v4396_v50 = vcombine.high %v11411_v8, %v11415_v21  ;;  %v11437_v17 = vrot.slane %v4377_v7, %v11349_v51  ;;  %v11477_v25 = vrot.slane %v4378_v18, %v11349_v51 }
 0x248   : > { %16162 = vst [vmem:[#allocation11_spill] sm:$0xff] %v11418_v52  ;;  %16163 = vst [vmem:[#allocation12_spill] sm:$0xff] %v11421_v19  ;;  %v11433_v44 = vcombine.high %v11421_v19, %v11421_v19  ;;  %v2001_v14 = vrot.slane %v11418_v52, 7  ;;  %v11447_v6 = vcombine.high %v11418_v52, %v11418_v52  ;;  %v10093_v61 = vrot.slane %v11421_v19, 9 }
 0x249   : > { %16165 = vst [vmem:[#allocation14_spill] sm:$0xff] %v11437_v17  ;;  %v11469_v47 = vrot.slane %v1783_v13, %v11349_v51  ;;  %v11481_v32 = vcombine.high %v11437_v17, %v11437_v17  ;;  %v10189_v5 = vrot.slane %v11437_v17, 9  ;;  %v4626_v10 = vrot.slane %v11477_v25, 7 }
 0x24a   : > { %16164 = vst [vmem:[#allocation13_spill] sm:$0xff] %v11433_v44  ;;  %v11439_v28 = vpop.f32.mrb[8].mxu1  ;;  %v2002_v33 = vsel %vm11371_vm1, %v2000_v46, %v2001_v14  ;;  %16166 = vst [vmem:[#allocation15_spill] sm:$0xff] %v11447_v6  ;;  %v2003_v41 = vrot.slane %v2001_v14, 2  ;;  %v2008_v35 = vrot.slane %v11433_v44, 7  ;;  %v2004_v2 = vrot.slane %v11447_v6, 7 }
 0x24b   : > { %v11441_v30 = vpop.f32.mrb[36].mxu0  ;;  %2096 = vrot.lane.b32.xlu0 %v2002_v33, %s10547_s9  ;;  %v11450_v9 = vpop.f32.mrb[9].mxu1  ;;  %16167 = vst [vmem:[#allocation16_spill] sm:$0xff] %v11469_v47  ;;  %16168 = vst [vmem:[#allocation17_spill] sm:$0xff] %v11481_v32  ;;  %v2011_v45 = vrot.slane %v11469_v47, 7  ;;  %v4623_v4 = vrot.slane %v11481_v32, 7  ;;  %v11543_v22 = vrot.slane %v4396_v50, %v11349_v51 }
 0x24c   : > { %v11452_v38 = vpop.f32.mrb[37].mxu0  ;;  %v1801_v26 = vcombine.low %v11439_v28, %v11450_v9  ;;  %v11464_v23 = vpop.f32.mrb[10].mxu1  ;;  %v2009_v56 = vsel %vm11371_vm1, %v10093_v61, %v2008_v35  ;;  %v2010_v54 = vrot.slane %v2008_v35, 2  ;;  %v2005_v58 = vsel %vm11371_vm1, %v2003_v41, %v2004_v2 }
 0x24d   : > { %v11466_v34 = vpop.f32.mrb[38].mxu0  ;;  %v11472_v42 = vpop.f32.mrb[11].mxu1  ;;  %2098 = vrot.lane.b32.xlu1 %v2005_v58, %s10547_s9  ;;  %v4624_v21 = vsel %vm11371_vm1, %v10189_v5, %v4623_v4  ;;  %v11524_v41 = vcombine.high %v11477_v25, %v11477_v25  ;;  %v4625_v2 = vrot.slane %v4623_v4, 2  ;;  %v11536_v58 = vrot.slane %v4395_v43, %v11349_v51  ;;  %16171 = vst [vmem:[#allocation20_spill] sm:$0xff] %v11543_v22 }
 0x24e   : > { %v11474_v36 = vpop.f32.mrb[39].mxu0  ;;  %v2012_v7 = vsel %vm11371_vm1, %v2010_v54, %v2011_v45  ;;  %v11569_v35 = vcombine.high %v11543_v22, %v11543_v22  ;;  %v16178_v55 = vcombine.high %v11441_v30, %v11452_v38  ;;  %v16180_v17 = vcombine.high %v11439_v28, %v11450_v9 }
 0x24f   : > { %2100 = vrot.lane.b32.xlu0 %v2009_v56, %s10547_s9  ;;  %16169 = vst [vmem:[#allocation18_spill] sm:$0xff] %v11524_v41  ;;  %16170 = vst [vmem:[#allocation19_spill] sm:$0xff] %v11536_v58  ;;  %v4627_v4 = vsel %vm11371_vm1, %v4625_v2, %v4626_v10  ;;  %v4629_v5 = vrot.slane %v11524_v41, 7  ;;  %v4632_v50 = vrot.slane %v11536_v58, 7  ;;  %v11563_v2 = vcombine.high %v11469_v47, %v11469_v47 }
 0x250   : > { %16173 = vst [vmem:[#allocation22_spill] sm:$0xff] %v11569_v35  ;;  %v4639_v1 = vrot.slane %v11569_v35, 7  ;;  %v11654_v35 = vrot.slane %v16180_v17, %v11349_v51 }
 0x251   : > { %2102 = vrot.lane.b32.xlu1 %v2012_v7, %s10547_s9  ;;  %v4631_v61 = vrot.slane %v4629_v5, 2  ;;  %16172 = vst [vmem:[#allocation21_spill] sm:$0xff] %v11563_v2 }
 0x252   : > { %v11498_v60 = vpop.f32.mrb[12].mxu1  ;;  %16181 = vst [vmem:[#allocation28_spill] sm:$0xff] %v11654_v35 }
 0x253   : > { %v11500_v57 = vpop.f32.mrb[40].mxu0  ;;  %v11507_v18 = vpop.f32.mrb[13].mxu1  ;;  %4725 = vrot.lane.b32.xlu0 %v4624_v21, %s10547_s9  ;;  %v4628_v21 = vrot.slane %v4626_v10, 2 }
 0x254   : > { %v11509_v8 = vpop.f32.mrb[41].mxu0  ;;  %v11518_v14 = vpop.f32.mrb[14].mxu1 }
 0x255   : > { %v11520_v33 = vpop.f32.mrb[42].mxu0  ;;  %v11531_v56 = vpop.f32.mrb[15].mxu1  ;;  %4727 = vrot.lane.b32.xlu1 %v4627_v4, %s10547_s9  ;;  %v4630_v7 = vsel %vm11371_vm1, %v4628_v21, %v4629_v5  ;;  %v2013_v4 = vrot.slane %v2011_v45, 2  ;;  %v4633_v5 = vsel %vm11371_vm1, %v4631_v61, %v4632_v50  ;;  %v2014_v45 = vrot.slane %v11563_v2, 7 }
 0x256   : > { %v11533_v54 = vpop.f32.mrb[43].mxu0  ;;  %v11605_v61 = vrot.slane %v1801_v26, %v11349_v51  ;;  %v11620_v26 = vcombine.high %v11536_v58, %v11536_v58  ;;  %v16345_v27 = vld [vmem:[#allocation19_spill] sm:$0xff] }
 0x257   : > { %4729 = vrot.lane.b32.xlu0 %v4630_v7, %s10547_s9  ;;  %v4636_v7 = vrot.slane %v11543_v22, 7  ;;  %v2015_v0 = vsel %vm11371_vm1, %v2013_v4, %v2014_v45  ;;  %v2016_v40 = vrot.slane %v2014_v45, 2 }
 0x258   : > { %16175 = vst [vmem:[#allocation24_spill] sm:$0xff] %v11605_v61  ;;  %16176 = vst [vmem:[#allocation25_spill] sm:$0xff] %v11620_v26  ;;  %v11679_v9 = vcombine.high %v11605_v61, %v11605_v61 }
 0x259   : > { %4731 = vrot.lane.b32.xlu1 %v4633_v5, %s10547_s9  ;;  %v11599_v5 = vrot.slane %v1784_v31, %v11349_v51  ;;  %v4638_v37 = vrot.slane %v4636_v7, 2 }
 0x25a   : > { %v11556_v46 = vpop.f32.mrb[16].mxu1  ;;  %16184 = vst [vmem:[#allocation30_spill] sm:$0xff] %v11679_v9 }
 0x25b   : > { %v11559_v10 = vpop.f32.mrb[44].mxu0  ;;  %v11565_v43 = vpop.f32.mrb[17].mxu1  ;;  %16174 = vst [vmem:[#allocation23_spill] sm:$0xff] %v11599_v5  ;;  %2104 = vrot.lane.b32.xlu0 %v2015_v0, %s10547_s9  ;;  %v4640_v4 = vsel %vm11371_vm1, %v4638_v37, %v4639_v1  ;;  %v10190_v0 = vrot.slane %v11620_v26, 9  ;;  %v11632_v11 = vcombine.high %v11599_v5, %v11599_v5  ;;  %v11640_v37 = vrot.slane %v16178_v55, %v11349_v51 }
 0x25c   : > { %v11577_v13 = vpop.f32.mrb[45].mxu0  ;;  %v11579_v20 = vpop.f32.mrb[18].mxu1  ;;  %v2017_v62 = vrot.slane %v11599_v5, 7  ;;  %v16182_v55 = vcombine.low %v11441_v30, %v11452_v38  ;;  %v2024_v30 = vrot.slane %v11679_v9, 7 }
 0x25d   : > { %v11587_v50 = vpop.f32.mrb[46].mxu0  ;;  %v11589_v21 = vpop.f32.mrb[19].mxu1  ;;  %4735 = vrot.lane.b32.xlu1 %v4640_v4, %s10547_s9  ;;  %16177 = vst [vmem:[#allocation26_spill] sm:$0xff] %v11632_v11  ;;  %16179 = vst [vmem:[#allocation27_spill] sm:$0xff] %v11640_v37  ;;  %v2021_v4 = vrot.slane %v11605_v61, 7  ;;  %v4637_v19 = vsel %vm11371_vm1, %v10190_v0, %v4636_v7  ;;  %v10094_v7 = vrot.slane %v11632_v11, 9  ;;  %v16186_v0 = vcombine.low %v11464_v23, %v11472_v42 }
 0x25e   : > { %v11593_v49 = vpop.f32.mrb[47].mxu0  ;;  %v11660_v41 = vrot.slane %v16182_v55, %v11349_v51  ;;  %v2018_v17 = vsel %vm11371_vm1, %v2016_v40, %v2017_v62  ;;  %v11689_v40 = vcombine.high %v11640_v37, %v11640_v37  ;;  %v4641_v11 = vrot.slane %v4639_v1, 2 }
 0x25f   : > { %4733 = vrot.lane.b32.xlu0 %v4637_v19, %s10547_s9  ;;  %v2023_v19 = vrot.slane %v2021_v4, 2  ;;  %v11695_v55 = vrot.slane %v16186_v0, %v11349_v51  ;;  %v2027_v62 = vrot.slane %v11654_v35, 7  ;;  %v10191_v52 = vrot.slane %v11640_v37, 9 }
 0x260   : > { %16183 = vst [vmem:[#allocation29_spill] sm:$0xff] %v11660_v41  ;;  %16185 = vst [vmem:[#allocation31_spill] sm:$0xff] %v11689_v40  ;;  %v4642_v9 = vrot.slane %v11660_v41, 7  ;;  %v4649_v1 = vrot.slane %v11689_v40, 7  ;;  %v2026_v47 = vrot.slane %v2024_v30, 2  ;;  %v16199_v37 = vcombine.low %v11498_v60, %v11507_v18 }
 0x261   : > { %2106 = vrot.lane.b32.xlu1 %v2018_v17, %s10547_s9  ;;  %16187 = vst [vmem:[#allocation32_spill] sm:$0xff] %v11695_v55  ;;  %v2022_v17 = vsel %vm11371_vm1, %v10094_v7, %v2021_v4  ;;  %v2025_v0 = vsel %vm11371_vm1, %v2023_v19, %v2024_v30  ;;  %v11712_v4 = vcombine.high %v11654_v35, %v11654_v35  ;;  %v2029_v61 = vrot.slane %v2027_v62, 2 }
 0x262   : > { %v11624_v29 = vpop.f32.mrb[20].mxu1  ;;  %v11732_v35 = vcombine.high %v11660_v41, %v11660_v41  ;;  %v4644_v48 = vrot.slane %v4642_v9, 2 }
 0x263   : > { %v11628_v39 = vpop.f32.mrb[48].mxu0  ;;  %v11634_v31 = vpop.f32.mrb[21].mxu1  ;;  %2108 = vrot.lane.b32.xlu0 %v2022_v17, %s10547_s9  ;;  %16188 = vst [vmem:[#allocation33_spill] sm:$0xff] %v11712_v4  ;;  %v4643_v17 = vsel %vm11371_vm1, %v4641_v11, %v4642_v9  ;;  %v2030_v19 = vrot.slane %v11712_v4, 7  ;;  %v11738_v11 = vcombine.high %v11695_v55, %v11695_v55  ;;  %v16191_v4 = vcombine.low %v11466_v34, %v11474_v36 }
 0x264   : > { %v11646_v16 = vpop.f32.mrb[49].mxu0  ;;  %v11648_v26 = vpop.f32.mrb[22].mxu1  ;;  %16189 = vst [vmem:[#allocation34_spill] sm:$0xff] %v11732_v35  ;;  %v4645_v40 = vrot.slane %v11732_v35, 7  ;;  %v11816_v35 = vrot.slane %v16199_v37, %v11349_v51 }
 0x265   : > { %v11666_v5 = vpop.f32.mrb[50].mxu0  ;;  %v11668_v2 = vpop.f32.mrb[23].mxu1  ;;  %2110 = vrot.lane.b32.xlu1 %v2025_v0, %s10547_s9  ;;  %16190 = vst [vmem:[#allocation35_spill] sm:$0xff] %v11738_v11  ;;  %v11744_v6 = vrot.slane %v16191_v4, %v11349_v51  ;;  %v2031_v24 = vsel %vm11371_vm1, %v2029_v61, %v2030_v19  ;;  %v16193_v4 = vcombine.high %v11464_v23, %v11472_v42  ;;  %v4651_v19 = vrot.slane %v4649_v1, 2 }
 0x266   : > { %v11681_v38 = vpop.f32.mrb[51].mxu0  ;;  %v4650_v0 = vsel %vm11371_vm1, %v10191_v52, %v4649_v1  ;;  %v2034_v23 = vrot.slane %v11738_v11, 7  ;;  %v10095_v52 = vrot.slane %v11695_v55, 9  ;;  %16200 = vst [vmem:[#allocation41_spill] sm:$0xff] %v11816_v35 }
 0x267   : > { %16192 = vst [vmem:[#allocation36_spill] sm:$0xff] %v11744_v6  ;;  %4737 = vrot.lane.b32.xlu0 %v4643_v17, %s10547_s9  ;;  %v11760_v17 = vrot.slane %v16193_v4, %v11349_v51  ;;  %v11769_v9 = vcombine.high %v11744_v6, %v11744_v6  ;;  %v2028_v4 = vsel %vm11371_vm1, %v2026_v47, %v2027_v62 }
 0x268   : > { %v2036_v62 = vrot.slane %v2034_v23, 2  ;;  %v2035_v30 = vsel %vm11371_vm1, %v10095_v52, %v2034_v23 }
 0x269   : > { %2114 = vrot.lane.b32.xlu1 %v2031_v24, %s10547_s9  ;;  %16194 = vst [vmem:[#allocation37_spill] sm:$0xff] %v11760_v17  ;;  %16195 = vst [vmem:[#allocation38_spill] sm:$0xff] %v11769_v9  ;;  %v4646_v24 = vsel %vm11371_vm1, %v4644_v48, %v4645_v40  ;;  %v4652_v48 = vrot.slane %v11744_v6, 7  ;;  %v2037_v40 = vrot.slane %v11760_v17, 7  ;;  %v4655_v11 = vrot.slane %v11769_v9, 7 }
 0x26a   : > { %v11714_v7 = vpop.f32.mrb[24].mxu1 }
 0x26b   : > { %v11718_v28 = vpop.f32.mrb[25].mxu1  ;;  %4741 = vrot.lane.b32.xlu0 %v4650_v0, %s10547_s9  ;;  %v4653_v47 = vsel %vm11371_vm1, %v4651_v19, %v4652_v48  ;;  %v2039_v55 = vrot.slane %v2037_v40, 2  ;;  %v2038_v23 = vsel %vm11371_vm1, %v2036_v62, %v2037_v40  ;;  %v4657_v52 = vrot.slane %v4655_v11, 2 }
 0x26c   : > { %v11724_v45 = vpop.f32.mrb[26].mxu1 }
 0x26d   : > { %v11734_v44 = vpop.f32.mrb[27].mxu1  ;;  %4739 = vrot.lane.b32.xlu1 %v4646_v24, %s10547_s9  ;;  %v11791_v24 = vcombine.high %v11760_v17, %v11760_v17 }
 0x26f   : > { %16196 = vst [vmem:[#allocation39_spill] sm:$0xff] %v11791_v24  ;;  %2112 = vrot.lane.b32.xlu0 %v2028_v4, %s10547_s9  ;;  %v16197_v4 = vcombine.high %v11466_v34, %v11474_v36  ;;  %v2040_v19 = vrot.slane %v11791_v24, 7  ;;  %v16201_v34 = vcombine.high %v11498_v60, %v11507_v18  ;;  %v16203_v60 = vcombine.low %v11500_v57, %v11509_v8 }
 0x271   : > { %4743 = vrot.lane.b32.xlu1 %v4653_v47, %s10547_s9  ;;  %v11807_v17 = vrot.slane %v16197_v4, %v11349_v51  ;;  %v11825_v36 = vrot.slane %v16201_v34, %v11349_v51  ;;  %v11842_v18 = vrot.slane %v16203_v60, %v11349_v51  ;;  %v2041_v40 = vsel %vm11371_vm1, %v2039_v55, %v2040_v19 }
 0x272   : > { %v11765_v61 = vpop.f32.mrb[28].mxu1  ;;  %v4654_v34 = vrot.slane %v4652_v48, 2  ;;  %v2042_v6 = vrot.slane %v2040_v19, 2 }
 0x273   : > { %v11774_v42 = vpop.f32.mrb[29].mxu1  ;;  %16198 = vst [vmem:[#allocation40_spill] sm:$0xff] %v11807_v17  ;;  %2116 = vrot.lane.b32.xlu0 %v2035_v30, %s10547_s9  ;;  %16202 = vst [vmem:[#allocation42_spill] sm:$0xff] %v11825_v36  ;;  %v4658_v62 = vrot.slane %v11807_v17, 7  ;;  %v2043_v30 = vrot.slane %v11816_v35, 7  ;;  %v11859_v55 = vcombine.high %v11807_v17, %v11807_v17  ;;  %v11863_v48 = vcombine.high %v11825_v36, %v11825_v36 }
 0x274   : > { %v11781_v0 = vpop.f32.mrb[30].mxu1  ;;  %16204 = vst [vmem:[#allocation43_spill] sm:$0xff] %v11842_v18  ;;  %v4656_v37 = vsel %vm11371_vm1, %v4654_v34, %v4655_v11  ;;  %v4662_v24 = vrot.slane %v11842_v18, 7  ;;  %v11891_v41 = vcombine.high %v11842_v18, %v11842_v18 }
 0x275   : > { %v11787_v1 = vpop.f32.mrb[31].mxu1  ;;  %2118 = vrot.lane.b32.xlu1 %v2038_v23, %s10547_s9  ;;  %v4659_v60 = vsel %vm11371_vm1, %v4657_v52, %v4658_v62  ;;  %16205 = vst [vmem:[#allocation44_spill] sm:$0xff] %v11859_v55  ;;  %16206 = vst [vmem:[#allocation45_spill] sm:$0xff] %v11863_v48  ;;  %v11872_v52 = vcombine.high %v11816_v35, %v11816_v35  ;;  %v16208_v62 = vcombine.high %v11500_v57, %v11509_v8 }
 0x276   : > { %v2044_v19 = vsel %vm11371_vm1, %v2042_v6, %v2043_v30  ;;  %v10192_v11 = vrot.slane %v11859_v55, 9  ;;  %16210 = vst [vmem:[#allocation48_spill] sm:$0xff] %v11891_v41  ;;  %v16213_v57 = vcombine.low %v11520_v33, %v11533_v54 }
 0x277   : > { %2120 = vrot.lane.b32.xlu0 %v2041_v40, %s10547_s9  ;;  %v2047_v40 = vrot.slane %v11825_v36, 7  ;;  %16207 = vst [vmem:[#allocation46_spill] sm:$0xff] %v11872_v52  ;;  %v11878_v17 = vrot.slane %v16208_v62, %v11349_v51  ;;  %v2050_v36 = vrot.slane %v11863_v48, 7  ;;  %v10096_v55 = vrot.slane %v11872_v52, 9 }
 0x278   : > { %v4663_v62 = vsel %vm11371_vm1, %v10192_v11, %v4662_v24  ;;  %v11915_v6 = vrot.slane %v16213_v57, %v11349_v51  ;;  %v4664_v48 = vrot.slane %v4662_v24, 2  ;;  %v4665_v52 = vrot.slane %v11891_v41, 7 }
 0x279   : > { %4747 = vrot.lane.b32.xlu1 %v4659_v60, %s10547_s9  ;;  %16209 = vst [vmem:[#allocation47_spill] sm:$0xff] %v11878_v17  ;;  %v2049_v34 = vrot.slane %v2047_v40, 2  ;;  %v11927_v22 = vcombine.high %v11878_v17, %v11878_v17  ;;  %v4668_v57 = vrot.slane %v11878_v17, 7  ;;  %v16216_v24 = vcombine.high %v11518_v14, %v11531_v56 }
 0x27a   : > { %v11819_v47 = vpop.f32.mrb[32].mxu1  ;;  %16214 = vst [vmem:[#allocation50_spill] sm:$0xff] %v11915_v6  ;;  %v2048_v18 = vsel %vm11371_vm1, %v10096_v55, %v2047_v40 }
 0x27b   : > { %v11829_v4 = vpop.f32.mrb[33].mxu1  ;;  %4745 = vrot.lane.b32.xlu0 %v4656_v37, %s10547_s9  ;;  %v16211_v37 = vcombine.low %v11518_v14, %v11531_v56  ;;  %v2051_v11 = vsel %vm11371_vm1, %v2049_v34, %v2050_v36  ;;  %16215 = vst [vmem:[#allocation51_spill] sm:$0xff] %v11927_v22  ;;  %v2052_v34 = vrot.slane %v2050_v36, 2  ;;  %v4670_v17 = vrot.slane %v4668_v57, 2 }
 0x27c   : > { %v11836_v9 = vpop.f32.mrb[34].mxu1  ;;  %v4671_v14 = vrot.slane %v11927_v22, 7  ;;  %v16220_v36 = vcombine.high %v11624_v29, %v11634_v31 }
 0x27d   : > { %v11847_v23 = vpop.f32.mrb[35].mxu1  ;;  %2122 = vrot.lane.b32.xlu1 %v2044_v19, %s10547_s9  ;;  %v11904_v30 = vrot.slane %v16211_v37, %v11349_v51  ;;  %v11941_v37 = vcombine.high %v11915_v6, %v11915_v6 }
 0x27e   : > { %v11956_v55 = vrot.slane %v16220_v36, %v11349_v51  ;;  %v16225_v36 = vcombine.high %v11648_v26, %v11668_v2 }
 0x27f   : > { %16212 = vst [vmem:[#allocation49_spill] sm:$0xff] %v11904_v30  ;;  %4749 = vrot.lane.b32.xlu0 %v4663_v62, %s10547_s9  ;;  %v11935_v62 = vrot.slane %v16216_v24, %v11349_v51  ;;  %16218 = vst [vmem:[#allocation53_spill] sm:$0xff] %v11941_v37  ;;  %v2053_v41 = vrot.slane %v11904_v30, 7  ;;  %v11950_v56 = vcombine.high %v11904_v30, %v11904_v30  ;;  %v4667_v30 = vrot.slane %v4665_v52, 2 }
 0x280   : > { %16221 = vst [vmem:[#allocation55_spill] sm:$0xff] %v11956_v55  ;;  %v11975_v22 = vrot.slane %v16225_v36, %v11349_v51  ;;  %v16232_v36 = vcombine.low %v11556_v46, %v11565_v43 }
 0x281   : > { %2126 = vrot.lane.b32.xlu1 %v2051_v11, %s10547_s9  ;;  %16217 = vst [vmem:[#allocation52_spill] sm:$0xff] %v11935_v62  ;;  %v4666_v11 = vsel %vm11371_vm1, %v4664_v48, %v4665_v52  ;;  %16219 = vst [vmem:[#allocation54_spill] sm:$0xff] %v11950_v56  ;;  %v16223_v48 = vcombine.low %v11648_v26, %v11668_v2  ;;  %v2054_v24 = vsel %vm11371_vm1, %v2052_v34, %v2053_v41 }
 0x282   : > { %v11883_v60 = vpop.f32.mrb[36].mxu1  ;;  %16226 = vst [vmem:[#allocation58_spill] sm:$0xff] %v11975_v22  ;;  %v2055_v58 = vrot.slane %v2053_v41, 2  ;;  %v2056_v32 = vrot.slane %v11950_v56, 7  ;;  %v16227_v52 = vcombine.low %v11714_v7, %v11718_v28  ;;  %v11991_v2 = vcombine.high %v11956_v55, %v11956_v55 }
 0x283   : > { %v11887_v35 = vpop.f32.mrb[37].mxu1  ;;  %2124 = vrot.lane.b32.xlu0 %v2048_v18, %s10547_s9  ;;  %v11961_v18 = vcombine.high %v11935_v62, %v11935_v62  ;;  %v11967_v40 = vrot.slane %v16223_v48, %v11349_v51  ;;  %v4675_v48 = vrot.slane %v11941_v37, 7  ;;  %v16229_v41 = vcombine.high %v11520_v33, %v11533_v54 }
 0x284   : > { %v11898_v8 = vpop.f32.mrb[38].mxu1  ;;  %v11986_v34 = vrot.slane %v16227_v52, %v11349_v51  ;;  %v10097_v33 = vrot.slane %v11935_v62, 9  ;;  %v15827_v54 = vrot.slane %v11991_v2, 7 }
 0x285   : > { %v11909_v19 = vpop.f32.mrb[39].mxu1  ;;  %4751 = vrot.lane.b32.xlu1 %v4666_v11, %s10547_s9  ;;  %16222 = vst [vmem:[#allocation56_spill] sm:$0xff] %v11961_v18  ;;  %16224 = vst [vmem:[#allocation57_spill] sm:$0xff] %v11967_v40  ;;  %v4672_v11 = vsel %vm11371_vm1, %v4670_v17, %v4671_v14  ;;  %v11997_v26 = vrot.slane %v16229_v41, %v11349_v51  ;;  %v4669_v17 = vsel %vm11371_vm1, %v4667_v30, %v4668_v57 }
 0x286   : > { %16228 = vst [vmem:[#allocation59_spill] sm:$0xff] %v11986_v34  ;;  %v2060_v14 = vrot.slane %v11961_v18, 7  ;;  %v12017_v30 = vcombine.high %v11975_v22, %v11975_v22  ;;  %v2057_v57 = vsel %vm11371_vm1, %v2055_v58, %v2056_v32  ;;  %v4677_v52 = vrot.slane %v4675_v48, 2 }
 0x287   : > { %2128 = vrot.lane.b32.xlu0 %v2054_v24, %s10547_s9  ;;  %16230 = vst [vmem:[#allocation60_spill] sm:$0xff] %v11997_v26  ;;  %v12004_v24 = vcombine.high %v11967_v40, %v11967_v40  ;;  %v15829_v18 = vrot.slane %v11975_v22, 7  ;;  %v4678_v32 = vrot.slane %v11997_v26, 7  ;;  %v12034_v58 = vcombine.high %v11997_v26, %v11997_v26 }
 0x288   : > { %16234 = vst [vmem:[#allocation63_spill] sm:$0xff] %v12017_v30  ;;  %v15831_v62 = vrot.slane %v12017_v30, 7  ;;  %v2061_v37 = vsel %vm11371_vm1, %v10097_v33, %v2060_v14 }
 0x289   : > { %4755 = vrot.lane.b32.xlu1 %v4672_v11, %s10547_s9  ;;  %16231 = vst [vmem:[#allocation61_spill] sm:$0xff] %v12004_v24  ;;  %v12010_v11 = vrot.slane %v16232_v36, %v11349_v51  ;;  %v10141_v41 = vrot.slane %v12004_v24, 9  ;;  %v3311_v36 = vrot.slane %v11967_v40, 7  ;;  %16235 = vst [vmem:[#allocation64_spill] sm:$0xff] %v12034_v58  ;;  %v4679_v40 = vsel %vm11371_vm1, %v4677_v52, %v4678_v32 }
 0x28a   : > { %v3320_v24 = vrot.slane %v15831_v62, 2 }
 0x28b   : > { %16233 = vst [vmem:[#allocation62_spill] sm:$0xff] %v12010_v11  ;;  %4753 = vrot.lane.b32.xlu0 %v4669_v17, %s10547_s9  ;;  %v3310_v17 = vrot.slane %v15827_v54, 2  ;;  %v16236_v54 = vcombine.low %v11559_v10, %v11577_v13  ;;  %v12077_v52 = vcombine.high %v12010_v11, %v12010_v11 }
 0x28d   : > { %2130 = vrot.lane.b32.xlu1 %v2057_v57, %s10547_s9  ;;  %v12040_v57 = vsel %vm11371_vm1, %v10141_v41, %v15829_v18  ;;  %v12046_v56 = vrot.slane %v16236_v54, %v11349_v51  ;;  %v12051_v33 = vsel %vm11371_vm1, %v3310_v17, %v3311_v36  ;;  %v16238_v41 = vcombine.high %v11559_v10, %v11577_v13 }
 0x28e   : > { %v10193_v54 = vrot.slane %v11915_v6, 9  ;;  %v2062_v17 = vrot.slane %v2060_v14, 2  ;;  %v16240_v36 = vrot.slane %v11986_v34, 7  ;;  %v4680_v10 = vrot.slane %v4678_v32, 2  ;;  %16241 = vst [vmem:[#allocation67_spill] sm:$0xff] %v12077_v52 }
 0x28f   : > { %16237 = vst [vmem:[#allocation65_spill] sm:$0xff] %v12046_v56  ;;  %2132 = vrot.lane.b32.xlu0 %v2061_v37, %s10547_s9  ;;  %v12059_v18 = vrot.slane %v16238_v41, %v11349_v51  ;;  %v2063_v37 = vrot.slane %v12010_v11, 7  ;;  %v4681_v41 = vrot.slane %v12034_v58, 7  ;;  %v4684_v14 = vrot.slane %v12046_v56, 7 }
 0x290   : > { %v12070_v62 = vsel %vm11371_vm1, %v3320_v24, %v16240_v36  ;;  %v4676_v13 = vsel %vm11371_vm1, %v10193_v54, %v4675_v48  ;;  %v16244_v6 = vcombine.low %v11624_v29, %v11634_v31  ;;  %v16247_v29 = vcombine.high %v11556_v46, %v11565_v43  ;;  %v16393_v11 = vld [vmem:[#allocation61_spill] sm:$0xff] }
 0x291   : > { %16239 = vst [vmem:[#allocation66_spill] sm:$0xff] %v12059_v18  ;;  %4759 = vrot.lane.b32.xlu1 %v4679_v40, %s10547_s9  ;;  %v2064_v40 = vsel %vm11371_vm1, %v2062_v17, %v2063_v37  ;;  %v12085_v24 = vcombine.high %v12059_v18, %v12059_v18  ;;  %v4688_v48 = vrot.slane %v12059_v18, 7  ;;  %v2065_v32 = vrot.slane %v2063_v37, 2 }
 0x292   : > { %v4682_v54 = vsel %vm11371_vm1, %v4680_v10, %v4681_v41  ;;  %v4683_v36 = vrot.slane %v4681_v41, 2  ;;  %v12094_v17 = vcombine.high %v12046_v56, %v12046_v56  ;;  %v12100_v58 = vrot.slane %v16244_v6, %v11349_v51  ;;  %v10519_v56 = vld [vmem:[%s15736_s3 + $0x64] ss:$8 sps:$4 sm:$0xff]  }
 0x293   : > { %4757 = vrot.lane.b32.xlu0 %v4676_v13, %s10547_s9  ;;  %16242 = vst [vmem:[#allocation68_spill] sm:$0xff] %v12085_v24  ;;  %v2066_v13 = vrot.slane %v12077_v52, 7  ;;  %v16245_v37 = vcombine.low %v11587_v50, %v11593_v49  ;;  %v4691_v52 = vrot.slane %v12085_v24, 7  ;;  %v12117_v31 = vrot.slane %v16247_v29, %v11349_v51 }
 0x294   : > { %16243 = vst [vmem:[#allocation69_spill] sm:$0xff] %v12094_v17  ;;  %v4685_v41 = vsel %vm11371_vm1, %v4683_v36, %v4684_v14 }
 0x295   : > { %2134 = vrot.lane.b32.xlu1 %v2064_v40, %s10547_s9  ;;  %v12107_v10 = vrot.slane %v16245_v37, %v11349_v51  ;;  %v4690_v40 = vrot.slane %v4688_v48, 2  ;;  %16248 = vst [vmem:[#allocation71_spill] sm:$0xff] %v12117_v31  ;;  %v2067_v6 = vsel %vm11371_vm1, %v2065_v32, %v2066_v13  ;;  %v12124_v37 = vcombine.high %v12100_v58, %v12100_v58 }
 0x296   : > { %v2068_v36 = vrot.slane %v2066_v13, 2  ;;  %v2069_v32 = vrot.slane %v12117_v31, 7  ;;  %v4693_v29 = vrot.slane %v4691_v52, 2 }
 0x297   : > { %4761 = vrot.lane.b32.xlu0 %v4682_v54, %s10547_s9  ;;  %16246 = vst [vmem:[#allocation70_spill] sm:$0xff] %v12107_v10  ;;  %v10194_v54 = vrot.slane %v12094_v17, 9  ;;  %v4692_v14 = vsel %vm11371_vm1, %v4690_v40, %v4691_v52  ;;  %v12132_v46 = vcombine.high %v12107_v10, %v12107_v10  ;;  %v3302_v17 = vrot.slane %v12124_v37, 7 }
 0x298   : > { %v2070_v40 = vsel %vm11371_vm1, %v2068_v36, %v2069_v32 }
 0x299   : > { %4763 = vrot.lane.b32.xlu1 %v4685_v41, %s10547_s9  ;;  %v4694_v41 = vrot.slane %v12107_v10, 7  ;;  %16249 = vst [vmem:[#allocation72_spill] sm:$0xff] %v12132_v46  ;;  %v4689_v43 = vsel %vm11371_vm1, %v10194_v54, %v4688_v48  ;;  %v3305_v48 = vrot.slane %v11956_v55, 7  ;;  %v10140_v54 = vrot.slane %v12100_v58, 9  ;;  %v16362_v10 = vld [vmem:[#allocation15_spill] sm:$0xff] }
 0x29a   : > { %v3304_v36 = vrot.slane %v3302_v17, 2 }
 0x29b   : > { %2136 = vrot.lane.b32.xlu0 %v2067_v6, %s10547_s9  ;;  %v4696_v13 = vrot.slane %v4694_v41, 2  ;;  %v4697_v6 = vrot.slane %v12132_v46, 7 }
 0x29d   : > { %4767 = vrot.lane.b32.xlu1 %v4692_v14, %s10547_s9  ;;  %v4695_v14 = vsel %vm11371_vm1, %v4693_v29, %v4694_v41  ;;  %v4698_v52 = vsel %vm11371_vm1, %v4696_v13, %v4697_v6  ;;  %v16250_v41 = vcombine.high %v11714_v7, %v11718_v28  ;;  %v3306_v13 = vsel %vm11371_vm1, %v3304_v36, %v3305_v48 }
 0x29e   : > { %v16252_v6 = vrot.slane %v11991_v2, 7  ;;  %v16254_v28 = vcombine.low %v11724_v45, %v11734_v44 }
 0x29f   : > { %4765 = vrot.lane.b32.xlu0 %v4689_v43, %s10547_s9  ;;  %v3303_v43 = vsel %vm11371_vm1, %v10140_v54, %v3302_v17  ;;  %v12161_v29 = vrot.slane %v16250_v41, %v11349_v51  ;;  %v16256_v54 = vrot.slane %v11975_v22, 7 }
 0x2a0   : > { %v12181_v7 = vrot.slane %v16254_v28, %v11349_v51 }
 0x2a1   : > { %2138 = vrot.lane.b32.xlu1 %v2070_v40, %s10547_s9  ;;  %v3307_v40 = vrot.slane %v3305_v48, 2  ;;  %16251 = vst [vmem:[#allocation73_spill] sm:$0xff] %v12161_v29  ;;  %v3317_v36 = vrot.slane %v16256_v54, 2 }
 0x2a2   : > { %16255 = vst [vmem:[#allocation75_spill] sm:$0xff] %v12181_v7  ;;  %v12205_v54 = vcombine.high %v12181_v7, %v12181_v7 }
 0x2a3   : > { %4769 = vrot.lane.b32.xlu0 %v4695_v14, %s10547_s9  ;;  %v3309_v17 = vsel %vm11371_vm1, %v3307_v40, %v16252_v6  ;;  %v16258_v40 = vrot.slane %v11986_v34, 7 }
 0x2a4   : > { %16260 = vst [vmem:[#allocation77_spill] sm:$0xff] %v12205_v54 }
 0x2a5   : > { %4771 = vrot.lane.b32.xlu1 %v4698_v52, %s10547_s9  ;;  %v12175_v52 = vcombine.high %v12161_v29, %v12161_v29  ;;  %v3323_v41 = vrot.slane %v16258_v40, 2 }
 0x2a7   : > { %3404 = vrot.lane.b32.xlu0 %v3303_v43, %s10547_s9  ;;  %16253 = vst [vmem:[#allocation74_spill] sm:$0xff] %v12175_v52  ;;  %v12189_v43 = vcombine.high %v11986_v34, %v11986_v34  ;;  %v3328_v28 = vrot.slane %v12175_v52, 7  ;;  %v3334_v34 = vrot.slane %v12205_v54, 7 }
 0x2a8   : > { %v12154_v32 = vpop.permute.xlu0 %2084 }
 0x2a9   : > { %3406 = vrot.lane.b32.xlu1 %v3306_v13, %s10547_s9  ;;  %v12170_v14 = vpop.permute.xlu1 %2088  ;;  %16257 = vst [vmem:[#allocation76_spill] sm:$0xff] %v12189_v43  ;;  %v16259_v13 = vrot.slane %v12017_v30, 7 }
 0x2aa   : > { %v2182_v26 = vadd.f32 %v12170_v14, %v11355_v63 }
 0x2ab   : > { %3408 = vrot.lane.b32.xlu0 %v3309_v17, %s10547_s9  ;;  %v3319_v6 = vsel %vm11371_vm1, %v3317_v36, %v16259_v13  ;;  %v3324_v17 = vrot.slane %v12189_v43, 7  ;;  %v3331_v36 = vrot.slane %v12181_v7, 7  ;;  %v16262_v13 = vcombine.high %v11724_v45, %v11734_v44 }
 0x2ac   : > { %v12183_v48 = vpop.permute.xlu0 %2086  ;;  %v10142_v43 = vrot.slane %v12161_v29, 9  ;;  %v3336_v29 = vrot.slane %v3334_v34, 2 }
 0x2ad   : > { %3410 = vrot.lane.b32.xlu1 %v12051_v33, %s10547_s9  ;;  %v2091_v33 = vpop.permute.xlu1 %2090  ;;  %v12221_v52 = vrot.slane %v16262_v13, %v11349_v51  ;;  %v3333_v45 = vrot.slane %v3331_v36, 2 }
 0x2ae   : > { %v2183_v7 = vadd.f32 %v2091_v33, %v11366_v3  ;;  %v3329_v44 = vsel %vm11371_vm1, %v10142_v43, %v3328_v28 }
 0x2af   : > { %3412 = vrot.lane.b32.xlu0 %v12040_v57, %s10547_s9  ;;  %v16261_v57 = vcombine.low %v11765_v61, %v11774_v42  ;;  %v12251_v43 = vcombine.high %v12221_v52, %v12221_v52  ;;  %v3337_v22 = vrot.slane %v12221_v52, 7 }
 0x2b0   : > { %v12214_v24 = vpop.permute.xlu0 %2092 }
 0x2b1   : > { %3414 = vrot.lane.b32.xlu1 %v3319_v6, %s10547_s9  ;;  %v12212_v40 = vrot.slane %v16261_v57, %v11349_v51  ;;  %v3325_v6 = vsel %vm11371_vm1, %v3323_v41, %v3324_v17  ;;  %v3330_v57 = vrot.slane %v3328_v28, 2  ;;  %v16264_v41 = vcombine.low %v11781_v0, %v11787_v1  ;;  %v12246_v54 = vpop.permute.xlu1 %2094  ;;  %16266 = vst [vmem:[#allocation80_spill] sm:$0xff] %v12251_v43 }
 0x2b2   : > { %v16267_v28 = vcombine.high %v11765_v61, %v11774_v42 }
 0x2b3   : > { %3416 = vrot.lane.b32.xlu0 %v12070_v62, %s10547_s9  ;;  %v12237_v62 = vcombine.high %v12212_v40, %v12212_v40  ;;  %v12243_v17 = vrot.slane %v16264_v41, %v11349_v51  ;;  %v3332_v41 = vsel %vm11371_vm1, %v3330_v57, %v3331_v36  ;;  %v10143_v57 = vrot.slane %v12251_v43, 9 }
 0x2b4   : > { %v12257_v33 = vrot.slane %v16267_v28, %v11349_v51  ;;  %v16270_v28 = vcombine.high %v11781_v0, %v11787_v1 }
 0x2b5   : > { %3418 = vrot.lane.b32.xlu1 %v3325_v6, %s10547_s9  ;;  %16263 = vst [vmem:[#allocation78_spill] sm:$0xff] %v12237_v62  ;;  %16265 = vst [vmem:[#allocation79_spill] sm:$0xff] %v12243_v17  ;;  %v2215_v6 = vrot.slane %v11362_v59, 2  ;;  %v3341_v59 = vrot.slane %v12212_v40, 7  ;;  %v3344_v61 = vrot.slane %v12237_v62, 7  ;;  %v12271_v42 = vcombine.high %v12243_v17, %v12243_v17 }
 0x2b6   : > { %16268 = vst [vmem:[#allocation81_spill] sm:$0xff] %v12257_v33 }
 0x2b7   : > { %3420 = vrot.lane.b32.xlu0 %v3329_v44, %s10547_s9  ;;  %v2279_v30 = vadd.f32 %v2215_v6, %v2183_v7  ;;  %v3335_v44 = vsel %vm11371_vm1, %v3333_v45, %v3334_v34  ;;  %v3338_v7 = vsel %vm11371_vm1, %v3336_v29, %v3337_v22  ;;  %v3343_v34 = vrot.slane %v3341_v59, 2 }
 0x2b8   : > { %v3347_v45 = vrot.slane %v12257_v33, 7  ;;  %v12282_v6 = vcombine.high %v12257_v33, %v12257_v33  ;;  %v3346_v43 = vrot.slane %v3344_v61, 2  ;;  %v3354_v1 = vrot.slane %v12271_v42, 7 }
 0x2b9   : > { %3422 = vrot.lane.b32.xlu1 %v3332_v41, %s10547_s9  ;;  %v12289_v41 = vrot.slane %v16270_v28, %v11349_v51  ;;  %v12294_v22 = vadd.f32 %v11991_v2, %v2279_v30 }
 0x2ba   : > { %16269 = vst [vmem:[#allocation82_spill] sm:$0xff] %v12282_v6  ;;  %v3349_v62 = vrot.slane %v3347_v45, 2  ;;  %v3350_v0 = vrot.slane %v12282_v6, 7 }
 0x2bb   : > { %3424 = vrot.lane.b32.xlu0 %v3335_v44, %s10547_s9  ;;  %v3342_v44 = vsel %vm11371_vm1, %v10143_v57, %v3341_v59  ;;  %16271 = vst [vmem:[#allocation83_spill] sm:$0xff] %v12294_v22  ;;  %v16273_v59 = vcombine.low %v11819_v47, %v11829_v4  ;;  %v16274_v57 = vcombine.high %v11819_v47, %v11829_v4  ;;  %v3357_v28 = vrot.slane %v12289_v41, 7 }
 0x2bc   : > { %v3351_v47 = vsel %vm11371_vm1, %v3349_v62, %v3350_v0  ;;  %v3356_v4 = vrot.slane %v3354_v1, 2  ;;  %v16281_v62 = vcombine.low %v11836_v9, %v11847_v23 }
 0x2bd   : > { %v12233_v13 = vpop.permute.xlu0 %2096  ;;  %3426 = vrot.lane.b32.xlu1 %v3338_v7, %s10547_s9  ;;  %v3345_v7 = vsel %vm11371_vm1, %v3343_v34, %v3344_v61  ;;  %v12309_v30 = vrot.slane %v16273_v59, %v11349_v51  ;;  %v12316_v61 = vrot.slane %v16274_v57, %v11349_v51  ;;  %v3348_v34 = vsel %vm11371_vm1, %v3346_v43, %v3347_v45 }
 0x2be   : > { %v3359_v57 = vrot.slane %v3357_v28, 2  ;;  %v12350_v0 = vrot.slane %v16281_v62, %v11349_v51 }
 0x2bf   : > { %v12274_v36 = vpop.permute.xlu1 %2098  ;;  %3428 = vrot.lane.b32.xlu0 %v3342_v44, %s10547_s9  ;;  %16275 = vst [vmem:[#allocation85_spill] sm:$0xff] %v12316_v61  ;;  %v12323_v44 = vcombine.high %v12289_v41, %v12289_v41 }
 0x2c0   : > { %16282 = vst [vmem:[#allocation91_spill] sm:$0xff] %v12350_v0 }
 0x2c1   : > { %v12266_v55 = vpop.permute.xlu0 %2100  ;;  %3430 = vrot.lane.b32.xlu1 %v3345_v7, %s10547_s9  ;;  %16276 = vst [vmem:[#allocation86_spill] sm:$0xff] %v12323_v44  ;;  %v10144_v7 = vrot.slane %v12243_v17, 9  ;;  %v3360_v22 = vrot.slane %v12323_v44, 7  ;;  %v12343_v17 = vcombine.high %v12316_v61, %v12316_v61 }
 0x2c3   : > { %v12297_v29 = vpop.permute.xlu1 %2102  ;;  %3432 = vrot.lane.b32.xlu0 %v3348_v34, %s10547_s9  ;;  %v3355_v43 = vsel %vm11371_vm1, %v10144_v7, %v3354_v1  ;;  %v12339_v34 = vcombine.high %v12309_v30, %v12309_v30  ;;  %16280 = vst [vmem:[#allocation90_spill] sm:$0xff] %v12343_v17  ;;  %v3358_v1 = vsel %vm11371_vm1, %v3356_v4, %v3357_v28  ;;  %v3370_v4 = vrot.slane %v12343_v17, 7 }
 0x2c4   : > { %v3361_v62 = vsel %vm11371_vm1, %v3359_v57, %v3360_v22  ;;  %v12383_v57 = vcombine.high %v12350_v0, %v12350_v0 }
 0x2c5   : > { %v12301_v33 = vpop.permute.xlu0 %4725  ;;  %3434 = vrot.lane.b32.xlu1 %v3351_v47, %s10547_s9  ;;  %16279 = vst [vmem:[#allocation89_spill] sm:$0xff] %v12339_v34  ;;  %v3363_v47 = vrot.slane %v12309_v30, 7  ;;  %v10145_v28 = vrot.slane %v12339_v34, 9  ;;  %v3372_v34 = vrot.slane %v3370_v4, 2 }
 0x2c6   : > { %16272 = vst [vmem:[#allocation84_spill] sm:$0xff] %v12301_v33  ;;  %v3362_v33 = vrot.slane %v3360_v22, 2  ;;  %v3373_v22 = vrot.slane %v12350_v0, 7 }
 0x2c7   : > { %v12326_v59 = vpop.permute.xlu1 %4727  ;;  %3436 = vrot.lane.b32.xlu0 %v3355_v43, %s10547_s9  ;;  %v16419_v44 = vld [vmem:[#allocation91_spill] sm:$0xff] }
 0x2c8   : > { %16277 = vst [vmem:[#allocation87_spill] sm:$0xff] %v12326_v59  ;;  %v16284_v59 = vcombine.high %v11836_v9, %v11847_v23  ;;  %v3364_v23 = vsel %vm11371_vm1, %v3362_v33, %v3363_v47  ;;  %v3375_v0 = vrot.slane %v3373_v22, 2 }
 0x2c9   : > { %v12334_v45 = vpop.permute.xlu0 %4729  ;;  %3438 = vrot.lane.b32.xlu1 %v3358_v1, %s10547_s9  ;;  %v10499_v1 = vld [vmem:[%s15736_s3] ss:$8 sps:$4 sm:$0xff]  }
 0x2ca   : > { %16278 = vst [vmem:[#allocation88_spill] sm:$0xff] %v12334_v45  ;;  %v3367_v45 = vrot.slane %v12316_v61, 7  ;;  %v12362_v43 = vrot.slane %v16284_v59, %v11349_v51 }
 0x2cb   : > { %v12354_v7 = vpop.permute.xlu1 %4731  ;;  %3440 = vrot.lane.b32.xlu0 %v3361_v62, %s10547_s9 }
 0x2cc   : > { %16283 = vst [vmem:[#allocation92_spill] sm:$0xff] %v12354_v7  ;;  %16285 = vst [vmem:[#allocation93_spill] sm:$0xff] %v12362_v43  ;;  %v16286_v7 = vcombine.low %v11883_v60, %v11887_v35  ;;  %v3369_v59 = vrot.slane %v3367_v45, 2  ;;  %v12394_v33 = vcombine.high %v12362_v43, %v12362_v43  ;;  %v3368_v62 = vsel %vm11371_vm1, %v10145_v28, %v3367_v45 }
 0x2cd   : > { %v12376_v9 = vpop.permute.xlu0 %2104  ;;  %3442 = vrot.lane.b32.xlu1 %v3364_v23, %s10547_s9  ;;  %v3376_v23 = vrot.slane %v12383_v57, 7 }
 0x2ce   : > { %v12373_v61 = vrot.slane %v16286_v7, %v11349_v51  ;;  %16287 = vst [vmem:[#allocation94_spill] sm:$0xff] %v12376_v9  ;;  %v10501_v7 = vld [vmem:[%s15736_s3 + $0x4] ss:$8 sps:$4 sm:$0xff]   ;;  %v3371_v9 = vsel %vm11371_vm1, %v3369_v59, %v3370_v4  ;;  %v3374_v4 = vsel %vm11371_vm1, %v3372_v34, %v3373_v22  ;;  %v3380_v59 = vrot.slane %v12394_v33, 7 }
 0x2cf   : > { %v12396_v47 = vpop.permute.xlu1 %4735  ;;  %6261 = vmatprep.subr.bf16.mxu1 %v10501_v7  ;;  %3444 = vrot.lane.b32.xlu0 %v3368_v62, %s10547_s9 }
 0x2d0   : > { %16288 = vst [vmem:[#allocation95_spill] sm:$0xff] %v12396_v47  ;;  %6262 = vmatpush1.bf16.msra.mxu1 %v10499_v1  ;;  %v12406_v17 = vcombine.high %v12373_v61, %v12373_v61  ;;  %v16289_v47 = vcombine.high %v11587_v50, %v11593_v49  ;;  %v3383_v7 = vrot.slane %v12373_v61, 7  ;;  %v16293_v49 = vcombine.low %v11628_v39, %v11646_v16 }
 0x2d1   : > { %v12414_v28 = vpop.permute.xlu0 %4733  ;;  %3446 = vrot.lane.b32.xlu1 %v3371_v9, %s10547_s9  ;;  %v3377_v9 = vsel %vm11371_vm1, %v3375_v0, %v3376_v23  ;;  %v3382_v23 = vrot.slane %v3380_v59, 2 }
 0x2d2   : > { %v12412_v45 = vrot.slane %v16289_v47, %v11349_v51  ;;  %16291 = vst [vmem:[#allocation97_spill] sm:$0xff] %v12414_v28  ;;  %v12428_v50 = vrot.slane %v16293_v49, %v11349_v51  ;;  %v10146_v47 = vrot.slane %v12362_v43, 9  ;;  %v3386_v62 = vrot.slane %v12406_v17, 7 }
 0x2d3   : > { %v12417_v1 = vpop.permute.xlu1 %2106  ;;  %3448 = vrot.lane.b32.xlu0 %v3374_v4, %s10547_s9  ;;  %v16297_v4 = vcombine.high %v11883_v60, %v11887_v35  ;;  %v3385_v43 = vrot.slane %v3383_v7, 2 }
 0x2d4   : > { %16290 = vst [vmem:[#allocation96_spill] sm:$0xff] %v12412_v45  ;;  %16292 = vst [vmem:[#allocation98_spill] sm:$0xff] %v12417_v1  ;;  %v12436_v34 = vcombine.high %v12412_v45, %v12412_v45  ;;  %v3381_v0 = vsel %vm11371_vm1, %v10146_v47, %v3380_v59  ;;  %v3388_v28 = vrot.slane %v3386_v62, 2  ;;  %v16300_v59 = vcombine.low %v11579_v20, %v11589_v21 }
 0x2d5   : > { %16294 = vst [vmem:[#allocation99_spill] sm:$0xff] %v12428_v50  ;;  %v12438_v22 = vpop.permute.xlu0 %2108  ;;  %3450 = vrot.lane.b32.xlu1 %v3377_v9, %s10547_s9  ;;  %v12445_v49 = vrot.slane %v16297_v4, %v11349_v51  ;;  %v12456_v9 = vcombine.high %v12428_v50, %v12428_v50 }
 0x2d6   : > { %16295 = vst [vmem:[#allocation100_spill] sm:$0xff] %v12436_v34  ;;  %16296 = vst [vmem:[#allocation101_spill] sm:$0xff] %v12438_v22  ;;  %v3384_v22 = vsel %vm11371_vm1, %v3382_v23, %v3383_v7  ;;  %v4701_v60 = vrot.slane %v12436_v34, 7  ;;  %v12466_v47 = vrot.slane %v16300_v59, %v11349_v51  ;;  %v3387_v7 = vsel %vm11371_vm1, %v3385_v43, %v3386_v62  ;;  %v10502_v23 = vld [vmem:[%s15736_s3 + $0x10] ss:$8 sps:$4 sm:$0xff]  }
 0x2d7   : > { %v12447_v1 = vpop.permute.xlu1 %2110  ;;  %3452 = vrot.lane.b32.xlu0 %v3381_v0, %s10547_s9  ;;  %v3389_v4 = vrot.slane %v12445_v49, 7  ;;  %v4704_v0 = vrot.slane %v12428_v50, 7  ;;  %v10195_v59 = vrot.slane %v12412_v45, 9  ;;  %v4707_v62 = vrot.slane %v12456_v9, 7 }
 0x2d8   : > { %16298 = vst [vmem:[#allocation102_spill] sm:$0xff] %v12447_v1  ;;  %16301 = vst [vmem:[#allocation104_spill] sm:$0xff] %v12466_v47  ;;  %v4703_v45 = vrot.slane %v4701_v60, 2 }
 0x2d9   : > { %v12458_v35 = vpop.permute.xlu0 %4737  ;;  %3454 = vrot.lane.b32.xlu1 %v3384_v22, %s10547_s9  ;;  %v10504_v22 = vld [vmem:[%s15736_s3 + $0x14] ss:$8 sps:$4 sm:$0xff]   ;;  %v3390_v43 = vsel %vm11371_vm1, %v3388_v28, %v3389_v4  ;;  %v12498_v28 = vcombine.high %v12117_v31, %v12117_v31  ;;  %v12502_v4 = vcombine.high %v12466_v47, %v12466_v47 }
 0x2da   : > { %16299 = vst [vmem:[#allocation103_spill] sm:$0xff] %v12458_v35  ;;  %6263 = vmatprep.subr.bf16.mxu1 %v10504_v22  ;;  %v16303_v35 = vcombine.high %v11628_v39, %v11646_v16  ;;  %v16309_v39 = vcombine.high %v11579_v20, %v11589_v21  ;;  %v2073_v22 = vrot.slane %v12466_v47, 7  ;;  %v16358_v47 = vld [vmem:[#allocation8_spill] sm:$0xff] }
 0x2db   : > { %v12478_v1 = vpop.permute.xlu1 %2114  ;;  %3456 = vrot.lane.b32.xlu0 %v3387_v7, %s10547_s9  ;;  %v4702_v7 = vsel %vm11371_vm1, %v10195_v59, %v4701_v60  ;;  %6264 = vmatpush1.bf16.msra.mxu1 %v10502_v23  ;;  %16306 = vst [vmem:[#allocation108_spill] sm:$0xff] %v12498_v28  ;;  %16307 = vst [vmem:[#allocation109_spill] sm:$0xff] %v12502_v4  ;;  %v4705_v60 = vsel %vm11371_vm1, %v4703_v45, %v4704_v0  ;;  %v4709_v23 = vrot.slane %v4707_v62, 2 }
 0x2dc   : > { %16302 = vst [vmem:[#allocation105_spill] sm:$0xff] %v12478_v1  ;;  %v12489_v50 = vrot.slane %v16303_v35, %v11349_v51  ;;  %v4706_v1 = vrot.slane %v4704_v0, 2  ;;  %v12511_v35 = vrot.slane %v16309_v39, %v11349_v51  ;;  %v16311_v59 = vcombine.low %v11898_v8, %v11909_v19 }
 0x2dd   : > { %v12491_v34 = vpop.permute.xlu0 %4741  ;;  %3458 = vrot.lane.b32.xlu1 %v3390_v43, %s10547_s9  ;;  %v10098_v45 = vrot.slane %v12498_v28, 9  ;;  %v2076_v0 = vrot.slane %v12502_v4, 7 }
 0x2de   : > { %16304 = vst [vmem:[#allocation106_spill] sm:$0xff] %v12489_v50  ;;  %16305 = vst [vmem:[#allocation107_spill] sm:$0xff] %v12491_v34  ;;  %v12520_v43 = vrot.slane %v16311_v59, %v11349_v51  ;;  %v4708_v20 = vsel %vm11371_vm1, %v4706_v1, %v4707_v62  ;;  %v4710_v21 = vrot.slane %v12489_v50, 7  ;;  %v2075_v59 = vrot.slane %v2073_v22, 2 }
 0x2df   : > { %v12504_v16 = vpop.permute.xlu1 %4739  ;;  %4773 = vrot.lane.b32.xlu0 %v4702_v7, %s10547_s9  ;;  %16310 = vst [vmem:[#allocation111_spill] sm:$0xff] %v12511_v35  ;;  %v2074_v62 = vsel %vm11371_vm1, %v10098_v45, %v2073_v22  ;;  %v2078_v28 = vrot.slane %v2076_v0, 2  ;;  %v10505_v22 = vld [vmem:[%s15736_s3 + $0x40] ss:$8 sps:$4 sm:$0xff]   ;;  %v10507_v45 = vld [vmem:[%s15736_s3 + $0x44] ss:$8 sps:$4 sm:$0xff]  }
 0x2e0   : > { %16308 = vst [vmem:[#allocation110_spill] sm:$0xff] %v12504_v16  ;;  %16312 = vst [vmem:[#allocation112_spill] sm:$0xff] %v12520_v43  ;;  %v4711_v39 = vsel %vm11371_vm1, %v4709_v23, %v4710_v21  ;;  %v12551_v23 = vcombine.high %v12520_v43, %v12520_v43  ;;  %v16319_v21 = vcombine.high %v11898_v8, %v11909_v19  ;;  %v3393_v19 = vrot.slane %v12520_v43, 7  ;;  %v16359_v16 = vld [vmem:[#allocation11_spill] sm:$0xff] }
 0x2e1   : > { %v12522_v34 = vpop.permute.xlu0 %2112  ;;  %4775 = vrot.lane.b32.xlu1 %v4705_v60, %s10547_s9  ;;  %v12538_v60 = vcombine.high %v12511_v35, %v12511_v35  ;;  %7581 = vmatprep.subr.bf16.mxu0 %v10507_v45 }
 0x2e2   : > { %16313 = vst [vmem:[#allocation113_spill] sm:$0xff] %v12522_v34  ;;  %v2079_v34 = vrot.slane %v12511_v35, 7  ;;  %16318 = vst [vmem:[#allocation118_spill] sm:$0xff] %v12551_v23  ;;  %v12557_v35 = vrot.slane %v16319_v21, %v11349_v51  ;;  %7582 = vmatpush1.bf16.msra.mxu0 %v10505_v22 }
 0x2e3   : > { %v12530_v7 = vpop.permute.xlu1 %4743  ;;  %4777 = vrot.lane.b32.xlu0 %v4708_v20, %s10547_s9  ;;  %16315 = vst [vmem:[#allocation115_spill] sm:$0xff] %v12538_v60  ;;  %v12547_v20 = vcombine.high %v12445_v49, %v12445_v49  ;;  %v2082_v8 = vrot.slane %v12538_v60, 7 }
 0x2e4   : > { %16314 = vst [vmem:[#allocation114_spill] sm:$0xff] %v12530_v7  ;;  %16320 = vst [vmem:[#allocation119_spill] sm:$0xff] %v12557_v35  ;;  %v2080_v7 = vsel %vm11371_vm1, %v2078_v28, %v2079_v34  ;;  %v3399_v60 = vrot.slane %v12557_v35, 7 }
 0x2e5   : > { %v12540_v1 = vpop.permute.xlu0 %2116  ;;  %4779 = vrot.lane.b32.xlu1 %v4711_v39, %s10547_s9  ;;  %16317 = vst [vmem:[#allocation117_spill] sm:$0xff] %v12547_v20  ;;  %v2077_v39 = vsel %vm11371_vm1, %v2075_v59, %v2076_v0  ;;  %v10147_v0 = vrot.slane %v12547_v20, 9  ;;  %v3396_v59 = vrot.slane %v12551_v23, 7 }
 0x2e6   : > { %16316 = vst [vmem:[#allocation116_spill] sm:$0xff] %v12540_v1  ;;  %v2081_v1 = vrot.slane %v2079_v34, 2 }
 0x2e7   : > { %v12559_v4 = vpop.permute.xlu1 %2118  ;;  %2140 = vrot.lane.b32.xlu0 %v2074_v62, %s10547_s9  ;;  %v16323_v62 = vcombine.low %v11666_v5, %v11681_v38  ;;  %v3394_v28 = vsel %vm11371_vm1, %v10147_v0, %v3393_v19  ;;  %v3398_v22 = vrot.slane %v3396_v59, 2  ;;  %v3401_v0 = vrot.slane %v3399_v60, 2 }
 0x2e8   : > { %16321 = vst [vmem:[#allocation120_spill] sm:$0xff] %v12559_v4  ;;  %v2083_v45 = vsel %vm11371_vm1, %v2081_v1, %v2082_v8  ;;  %v16330_v8 = vcombine.high %v11666_v5, %v11681_v38 }
 0x2e9   : > { %v12572_v21 = vpop.permute.xlu0 %2120  ;;  %2142 = vrot.lane.b32.xlu1 %v2077_v39, %s10547_s9  ;;  %v12579_v4 = vrot.slane %v16323_v62, %v11349_v51  ;;  %v3395_v39 = vrot.slane %v3393_v19, 2  ;;  %v12593_v62 = vcombine.high %v12557_v35, %v12557_v35  ;;  %v3400_v5 = vsel %vm11371_vm1, %v3398_v22, %v3399_v60 }
 0x2ea   : > { %16322 = vst [vmem:[#allocation121_spill] sm:$0xff] %v12572_v21  ;;  %v12612_v35 = vrot.slane %v16330_v8, %v11349_v51 }
 0x2eb   : > { %16324 = vst [vmem:[#allocation122_spill] sm:$0xff] %v12579_v4  ;;  %v12585_v43 = vpop.permute.xlu1 %4747  ;;  %2144 = vrot.lane.b32.xlu0 %v2080_v7, %s10547_s9  ;;  %16326 = vst [vmem:[#allocation124_spill] sm:$0xff] %v12593_v62  ;;  %v12602_v7 = vcombine.high %v12489_v50, %v12489_v50  ;;  %v12606_v1 = vcombine.high %v12579_v4, %v12579_v4  ;;  %v3397_v19 = vsel %vm11371_vm1, %v3395_v39, %v3396_v59 }
 0x2ec   : > { %16325 = vst [vmem:[#allocation123_spill] sm:$0xff] %v12585_v43  ;;  %16331 = vst [vmem:[#allocation128_spill] sm:$0xff] %v12612_v35  ;;  %v4714_v23 = vrot.slane %v12579_v4, 7  ;;  %v10516_v43 = vld [vmem:[%s15736_s3 + $0x34] ss:$8 sps:$4 sm:$0xff]  }
 0x2ed   : > { %v12595_v34 = vpop.permute.xlu0 %4745  ;;  %2146 = vrot.lane.b32.xlu1 %v2083_v45, %s10547_s9  ;;  %16328 = vst [vmem:[#allocation126_spill] sm:$0xff] %v12602_v7  ;;  %16329 = vst [vmem:[#allocation127_spill] sm:$0xff] %v12606_v1  ;;  %v3402_v45 = vrot.slane %v12593_v62, 7  ;;  %v10196_v38 = vrot.slane %v12602_v7, 9  ;;  %v4717_v8 = vrot.slane %v12606_v1, 7  ;;  %v4720_v62 = vrot.slane %v12612_v35, 7 }
 0x2ee   : > { %16327 = vst [vmem:[#allocation125_spill] sm:$0xff] %v12595_v34  ;;  %v4716_v39 = vrot.slane %v4714_v23, 2 }
 0x2ef   : > { %v12614_v20 = vpop.permute.xlu1 %2122  ;;  %3460 = vrot.lane.b32.xlu0 %v3394_v28, %s10547_s9  ;;  %v3403_v59 = vsel %vm11371_vm1, %v3401_v0, %v3402_v45  ;;  %v4715_v60 = vsel %vm11371_vm1, %v10196_v38, %v4714_v23  ;;  %v4719_v22 = vrot.slane %v4717_v8, 2  ;;  %v10510_v0 = vld [vmem:[%s15736_s3 + $0x24] ss:$8 sps:$4 sm:$0xff]   ;;  %v10513_v23 = vld [vmem:[%s15736_s3 + $0x54] ss:$8 sps:$4 sm:$0xff]   ;;  %v4722_v7 = vrot.slane %v4720_v62, 2 }
 0x2f0   : > { %16332 = vst [vmem:[#allocation129_spill] sm:$0xff] %v12614_v20  ;;  %v4718_v38 = vsel %vm11371_vm1, %v4716_v39, %v4717_v8  ;;  %6265 = vmatprep.subr.bf16.mxu1 %v10510_v0  ;;  %7583 = vmatprep.subr.bf16.mxu0 %v10513_v23  ;;  %v2212_v23 = vrot.slane %v11359_v15, 2 }
 0x2f1   : > { %v12621_v21 = vpop.permute.xlu0 %4749  ;;  %3462 = vrot.lane.b32.xlu1 %v3397_v19, %s10547_s9  ;;  %v12636_v19 = vcombine.high %v12612_v35, %v12612_v35 }
 0x2f2   : > { %16333 = vst [vmem:[#allocation130_spill] sm:$0xff] %v12621_v21 }
 0x2f3   : > { %v12628_v28 = vpop.permute.xlu1 %2126  ;;  %3464 = vrot.lane.b32.xlu0 %v3400_v5, %s10547_s9  ;;  %16335 = vst [vmem:[#allocation132_spill] sm:$0xff] %v12636_v19  ;;  %v10508_v5 = vld [vmem:[%s15736_s3 + $0x20] ss:$8 sps:$4 sm:$0xff]   ;;  %v4723_v35 = vrot.slane %v12636_v19, 7  ;;  %v2181_v19 = vadd.f32 %v12183_v48, %v11359_v15  ;;  %v16368_v15 = vld [vmem:[#allocation24_spill] sm:$0xff]  ;;  %v16409_v48 = vld [vmem:[#allocation81_spill] sm:$0xff] }
 0x2f4   : > { %16334 = vst [vmem:[#allocation131_spill] sm:$0xff] %v12628_v28  ;;  %6266 = vmatpush1.bf16.msra.mxu1 %v10508_v5  ;;  %v2214_v5 = vrot.slane %v11366_v3, 2  ;;  %v16361_v3 = vld [vmem:[#allocation10_spill] sm:$0xff]  ;;  %v2219_v28 = vrot.slane %v16362_v10, 2 }
 0x2f5   : > { %v12638_v4 = vpop.permute.xlu0 %2124  ;;  %3466 = vrot.lane.b32.xlu1 %v3403_v59, %s10547_s9  ;;  %v10511_v59 = vld [vmem:[%s15736_s3 + $0x50] ss:$8 sps:$4 sm:$0xff]   ;;  %v4724_v8 = vsel %vm11371_vm1, %v4722_v7, %v4723_v35  ;;  %v2216_v35 = vrot.slane %v11369_v12, 2  ;;  %6267 = vmatprep.subr.bf16.mxu1 %v10516_v43 }
 0x2f6   : > { %16336 = vst [vmem:[#allocation133_spill] sm:$0xff] %v12638_v4  ;;  %7584 = vmatpush1.bf16.msra.mxu0 %v10511_v59  ;;  %v2217_v59 = vrot.slane %v11390_v53, 2 }
 0x2f7   : > { %v12649_v45 = vpop.permute.xlu1 %4751  ;;  %4781 = vrot.lane.b32.xlu0 %v4715_v60, %s10547_s9  ;;  %v4721_v60 = vsel %vm11371_vm1, %v4719_v22, %v4720_v62  ;;  %v2213_v62 = vrot.slane %v11355_v63, 2  ;;  %v10514_v22 = vld [vmem:[%s15736_s3 + $0x30] ss:$8 sps:$4 sm:$0xff]   ;;  %7585 = vmatprep.subr.bf16.mxu0 %v10519_v56  ;;  %v2185_v63 = vadd.f32 %v12246_v54, %v11369_v12  ;;  %v16410_v12 = vld [vmem:[#allocation14_spill] sm:$0xff] }
 0x2f8   : > { %16337 = vst [vmem:[#allocation134_spill] sm:$0xff] %v12649_v45  ;;  %6268 = vmatpush1.bf16.msra.mxu1 %v10514_v22 }
 0x2f9   : > { %v12661_v1 = vpop.permute.xlu0 %2128  ;;  %4783 = vrot.lane.b32.xlu1 %v4718_v38, %s10547_s9  ;;  %v2277_v21 = vadd.f32 %v2213_v62, %v2181_v19 }
 0x2fa   : > { %16338 = vst [vmem:[#allocation135_spill] sm:$0xff] %v12661_v1 }
 0x2fb   : > { %v12666_v4 = vpop.permute.xlu1 %4755  ;;  %4785 = vrot.lane.b32.xlu0 %v4721_v60, %s10547_s9  ;;  %v16344_v60 = vld [vmem:[#allocation17_spill] sm:$0xff] }
 0x2fc   : > { %16339 = vst [vmem:[#allocation136_spill] sm:$0xff] %v12666_v4  ;;  %v2278_v4 = vadd.f32 %v2214_v5, %v2182_v26  ;;  %v10200_v26 = vld [vmem:[%s15737_s4 + $0x3] ss:$0 sm:$0xff]  ;;  %v2186_v5 = vadd.f32 %v12233_v13, %v11390_v53 }
 0x2fd   : > { %v12671_v39 = vpop.permute.xlu0 %4753  ;;  %4787 = vrot.lane.b32.xlu1 %v4724_v8, %s10547_s9  ;;  %v2218_v8 = vrot.slane %v16359_v16, 2  ;;  %v5196_v10 = vcombine.high %v10200_v26, %v10200_v26  ;;  %v12772_v13 = vrot.slane %v10200_v26, %v11349_v51 }
 0x2fe   : > { %16340 = vst [vmem:[#allocation137_spill] sm:$0xff] %v12671_v39  ;;  %v10199_v39 = vld [vmem:[%s15737_s4 + $0x2] ss:$0 sm:$0xff] }
 0x2ff   : > { %v12674_v0 = vpop.permute.xlu1 %2130  ;;  %v5137_v56 = vcombine.high %v10199_v39, %v10199_v39  ;;  %v12769_v53 = vrot.slane %v10199_v39, %v11349_v51  ;;  %v10522_v39 = vld [vmem:[%s15736_s3 + $0x74] ss:$8 sps:$4 sm:$0xff]   ;;  %v2282_v26 = vadd.f32 %v2218_v8, %v2186_v5 }
 0x300   : > { %16341 = vst [vmem:[#allocation138_spill] sm:$0xff] %v12674_v0 }
 0x301   : > { %v12676_v38 = vpop.permute.xlu0 %2132  ;;  %v12794_v0 = vrot.slane %v5137_v56, %v11349_v51  ;;  %v16389_v56 = vld [vmem:[#allocation18_spill] sm:$0xff] }
 0x302   : > { %16342 = vst [vmem:[#allocation139_spill] sm:$0xff] %v12676_v38  ;;  %v2184_v38 = vadd.f32 %v12214_v24, %v16361_v3 }
 0x303   : > { %v12684_v7 = vpop.permute.xlu1 %4759 }
 0x304   : > { %16343 = vst [vmem:[#allocation140_spill] sm:$0xff] %v12684_v7  ;;  %v10517_v7 = vld [vmem:[%s15736_s3 + $0x60] ss:$8 sps:$4 sm:$0xff]   ;;  %v2280_v43 = vadd.f32 %v2216_v35, %v2184_v38  ;;  %v16384_v38 = vld [vmem:[#allocation12_spill] sm:$0xff] }
 0x305   : > { %v12694_v34 = vpop.permute.xlu0 %4757  ;;  %7586 = vmatpush1.bf16.msra.mxu0 %v10517_v7  ;;  %v2188_v24 = vadd.f32 %v12266_v55, %v16384_v38 }
 0x306   : > { %16352 = vst [vmem:[#allocation17_spill] sm:$0xff] %v12694_v34  ;;  %v2180_v34 = vadd.f32 %v12154_v32, %v16358_v47  ;;  %v16364_v32 = vld [vmem:[#allocation16_spill] sm:$0xff]  ;;  %7587 = vmatprep.subr.bf16.mxu0 %v10522_v39  ;;  %v3272_v47 = vadd.f32 %v16393_v11, %v2280_v43  ;;  %v16397_v11 = vld [vmem:[#allocation59_spill] sm:$0xff]  ;;  %v16404_v43 = vld [vmem:[#allocation77_spill] sm:$0xff] }
 0x307   : > { %v12700_v50 = vpop.permute.xlu1 %2134  ;;  %v2221_v14 = vrot.slane %v16364_v32, 2 }
 0x308   : > { %16355 = vst [vmem:[#allocation19_spill] sm:$0xff] %v12700_v50  ;;  %v16363_v50 = vld [vmem:[#allocation13_spill] sm:$0xff]  ;;  %v2276_v45 = vadd.f32 %v2212_v23, %v2180_v34  ;;  %v2281_v34 = vadd.f32 %v2217_v59, %v2185_v63  ;;  %v12803_v59 = vcombine.high %v12769_v53, %v12769_v53 }
 0x309   : > { %v12724_v18 = vpop.permute.xlu0 %4761  ;;  %v2220_v46 = vrot.slane %v16363_v50, 2  ;;  %v2189_v54 = vadd.f32 %v12297_v29, %v16363_v50  ;;  %v3532_v29 = vrot.slane %v12124_v37, 2  ;;  %v16387_v50 = vld [vmem:[#allocation55_spill] sm:$0xff] }
 0x30a   : > { %16360 = vst [vmem:[#allocation8_spill] sm:$0xff] %v12724_v18  ;;  %v3268_v55 = vadd.f32 %v12100_v58, %v2276_v45  ;;  %v3533_v38 = vrot.slane %v16387_v50, 2  ;;  %v12807_v58 = vcombine.high %v12772_v13, %v12772_v13 }
 0x30b   : > { %v12737_v20 = vpop.permute.xlu1 %4763  ;;  %v2285_v45 = vadd.f32 %v2221_v14, %v2189_v54  ;;  %v16400_v14 = vld [vmem:[#allocation74_spill] sm:$0xff] }
 0x30c   : > { %16367 = vst [vmem:[#allocation11_spill] sm:$0xff] %v12737_v20  ;;  %v16414_v20 = vld [vmem:[#allocation84_spill] sm:$0xff] }
 0x30d   : > { %v12745_v18 = vpop.permute.xlu0 %2136  ;;  %v12844_v54 = vadd.f32 %v16400_v14, %v2285_v45  ;;  %v16420_v45 = vrot.slane %v16344_v60, 2 }
 0x30e   : > { %16374 = vst [vmem:[#allocation10_spill] sm:$0xff] %v12745_v18  ;;  %v2187_v18 = vadd.f32 %v12274_v36, %v16359_v16  ;;  %v10520_v16 = vld [vmem:[%s15736_s3 + $0x70] ss:$8 sps:$4 sm:$0xff]   ;;  %v3269_v36 = vadd.f32 %v12124_v37, %v2277_v21  ;;  %v3270_v37 = vadd.f32 %v16387_v50, %v2278_v4  ;;  %v2284_v21 = vadd.f32 %v2220_v46, %v2188_v24  ;;  %v16395_v24 = vld [vmem:[#allocation22_spill] sm:$0xff] }
 0x30f   : > { %v12759_v62 = vpop.permute.xlu1 %4767  ;;  %7588 = vmatpush1.bf16.msra.mxu0 %v10520_v16  ;;  %v12820_v4 = vcombine.high %v12794_v0, %v12794_v0  ;;  %16401 = vst [vmem:[#allocation18_spill] sm:$0xff] %v12844_v54 }
 0x310   : > { %16379 = vst [vmem:[#allocation15_spill] sm:$0xff] %v12759_v62  ;;  %v12797_v62 = vrot.slane %v5196_v10, %v11349_v51  ;;  %v2283_v8 = vadd.f32 %v2219_v28, %v2187_v18  ;;  %v3534_v10 = vrot.slane %v11991_v2, 2  ;;  %v16391_v28 = vld [vmem:[#allocation57_spill] sm:$0xff]  ;;  %v16394_v2 = vld [vmem:[#allocation63_spill] sm:$0xff] }
 0x311   : > { %v12766_v63 = vpop.permute.xlu0 %4765  ;;  %v3535_v31 = vrot.slane %v16391_v28, 2  ;;  %v12831_v50 = vadd.f32 %v16394_v2, %v2282_v26  ;;  %v16403_v26 = vld [vmem:[#allocation75_spill] sm:$0xff] }
 0x312   : > { %16383 = vst [vmem:[#allocation13_spill] sm:$0xff] %v12766_v63  ;;  %v12824_v46 = vcombine.high %v12797_v62, %v12797_v62 }
 0x313   : > { %v12787_v63 = vpop.permute.xlu1 %2138 }
 0x314   : > { %16386 = vst [vmem:[#allocation16_spill] sm:$0xff] %v12787_v63 }
 0x315   : > { %v12799_v5 = vpop.permute.xlu0 %4769 }
 0x316   : > { %16388 = vst [vmem:[#allocation24_spill] sm:$0xff] %v12799_v5  ;;  %v16392_v5 = vld [vmem:[#allocation58_spill] sm:$0xff] }
 0x317   : > { %v12812_v18 = vpop.permute.xlu1 %4771  ;;  %v3536_v63 = vrot.slane %v16392_v5, 2  ;;  %v3273_v7 = vadd.f32 %v16392_v5, %v2281_v34  ;;  %v12835_v34 = vadd.f32 %v16397_v11, %v2283_v8  ;;  %v16398_v5 = vld [vmem:[#allocation76_spill] sm:$0xff] }
 0x318   : > { %16390 = vst [vmem:[#allocation12_spill] sm:$0xff] %v12812_v18  ;;  %v16399_v18 = vld [vmem:[#allocation73_spill] sm:$0xff] }
 0x319   : > { %v12828_v16 = vpop.permute.xlu0 %3404  ;;  %v12840_v35 = vadd.f32 %v16399_v18, %v2284_v21  ;;  %v16406_v18 = vld [vmem:[#allocation78_spill] sm:$0xff] }
 0x31a   : > { %16396 = vst [vmem:[#allocation55_spill] sm:$0xff] %v12828_v16  ;;  %v3500_v39 = vadd.f32 %v12828_v16, %v3268_v55 }
 0x31b   : > { %v12846_v19 = vpop.permute.xlu1 %3406 }
 0x31c   : > { %16402 = vst [vmem:[#allocation57_spill] sm:$0xff] %v12846_v19  ;;  %v3596_v3 = vadd.f32 %v3532_v29, %v3500_v39  ;;  %v3501_v55 = vadd.f32 %v12846_v19, %v3269_v36 }
 0x31d   : > { %v12855_v16 = vpop.permute.xlu0 %3408 }
 0x31e   : > { %16407 = vst [vmem:[#allocation58_spill] sm:$0xff] %v12855_v16  ;;  %v4589_v8 = vadd.f32 %v16410_v12, %v3596_v3  ;;  %v3597_v28 = vadd.f32 %v3533_v38, %v3501_v55  ;;  %v3502_v39 = vadd.f32 %v12855_v16, %v3270_v37  ;;  %v16415_v3 = vld [vmem:[#allocation83_spill] sm:$0xff]  ;;  %v16416_v38 = vld [vmem:[#allocation90_spill] sm:$0xff]  ;;  %v16418_v37 = vld [vmem:[#allocation68_spill] sm:$0xff] }
 0x31f   : > { %v12865_v23 = vpop.permute.xlu1 %3410 }
 0x320   : > { %16411 = vst [vmem:[#allocation61_spill] sm:$0xff] %v12865_v23  ;;  %v4821_v6 = vadd.f32 %v16414_v20, %v4589_v8  ;;  %v4590_v1 = vadd.f32 %v16344_v60, %v3597_v28  ;;  %v3503_v12 = vadd.f32 %v12865_v23, %v16415_v3  ;;  %v3598_v36 = vadd.f32 %v3534_v10, %v3502_v39  ;;  %v16421_v20 = vld [vmem:[#allocation87_spill] sm:$0xff] }
 0x321   : > { %v12875_v29 = vpop.permute.xlu0 %3412  ;;  %v16423_v60 = vrot.slane %v11477_v25, 2  ;;  %v16471_v23 = vld [vmem:[#allocation31_spill] sm:$0xff] }
 0x322   : > { %16417 = vst [vmem:[#allocation63_spill] sm:$0xff] %v12875_v29  ;;  %v4917_v54 = vadd.f32 %v16420_v45, %v4821_v6  ;;  %v4822_v8 = vadd.f32 %v16421_v20, %v4590_v1  ;;  %v3599_v28 = vadd.f32 %v3535_v31, %v3503_v12  ;;  %v3504_v21 = vadd.f32 %v12875_v29, %v3272_v47  ;;  %v16424_v47 = vld [vmem:[#allocation94_spill] sm:$0xff] }
 0x323   : > { %v4591_v3 = vadd.f32 %v11477_v25, %v3598_v36  ;;  %v12885_v55 = vpop.permute.xlu1 %3414  ;;  %v2190_v45 = vadd.f32 %v16424_v47, %v16364_v32  ;;  %v16425_v36 = vld [vmem:[#allocation88_spill] sm:$0xff]  ;;  %v16427_v25 = vld [vmem:[#allocation25_spill] sm:$0xff]  ;;  %v16430_v32 = vrot.slane %v16394_v2, 2  ;;  %v16432_v47 = vld [vmem:[#allocation99_spill] sm:$0xff] }
 0x324   : > { %16422 = vst [vmem:[#allocation22_spill] sm:$0xff] %v12885_v55  ;;  %v5158_v22 = vmul.f32 %v12769_v53, %v4917_v54  ;;  %v4918_v6 = vadd.f32 %v16423_v60, %v4822_v8  ;;  %v4592_v1 = vadd.f32 %v16389_v56, %v3599_v28  ;;  %v3600_v31 = vadd.f32 %v3536_v63, %v3504_v21  ;;  %v16426_v54 = vld [vmem:[#allocation92_spill] sm:$0xff] }
 0x325   : > { %v4823_v12 = vadd.f32 %v16425_v36, %v4591_v3  ;;  %v3505_v20 = vadd.f32 %v12885_v55, %v3273_v7  ;;  %v12903_v60 = vpop.permute.xlu0 %3416  ;;  %v16429_v63 = vrot.slane %v16389_v56, 2  ;;  %v16431_v3 = vld [vmem:[#allocation100_spill] sm:$0xff] }
 0x326   : > { %v5217_v39 = vadd.f32 %v12772_v13, %v5158_v22  ;;  %v5159_v19 = vmul.f32 %v12803_v59, %v4918_v6  ;;  %v4824_v16 = vadd.f32 %v16426_v54, %v4592_v1  ;;  %v4593_v8 = vadd.f32 %v16427_v25, %v3600_v31  ;;  %16428 = vst [vmem:[#allocation59_spill] sm:$0xff] %v12903_v60  ;;  %v16434_v1 = vld [vmem:[#allocation97_spill] sm:$0xff]  ;;  %v16437_v2 = vld [vmem:[#allocation20_spill] sm:$0xff] }
 0x327   : > { %v4919_v21 = vadd.f32 %v16429_v63, %v4823_v12  ;;  %v3601_v28 = vadd.f32 %v16430_v32, %v3505_v20  ;;  %v16433_v6 = vrot.slane %v16345_v27, 2  ;;  %v16435_v25 = vld [vmem:[#allocation21_spill] sm:$0xff]  ;;  %v3506_v63 = vadd.f32 %v12903_v60, %v12831_v50  ;;  %v12922_v32 = vpop.permute.xlu1 %3418  ;;  %v16443_v50 = vld [vmem:[#allocation98_spill] sm:$0xff] }
 0x328   : > { %v5218_v22 = vadd.f32 %v12807_v58, %v5159_v19  ;;  %v4825_v54 = vadd.f32 %v16434_v1, %v4593_v8  ;;  %v16436_v55 = vrot.slane %v16435_v25, 2  ;;  %16438 = vst [vmem:[#allocation76_spill] sm:$0xff] %v12922_v32  ;;  %v5249_v19 = vmax.f32 %v5217_v39, 0.0  ;;  %v16440_v1 = vld [vmem:[#allocation95_spill] sm:$0xff] }
 0x329   : > { %v4920_v10 = vadd.f32 %v16433_v6, %v4824_v16  ;;  %v5160_v12 = vmul.f32 %v12794_v0, %v4919_v21  ;;  %v4594_v20 = vadd.f32 %v16437_v2, %v3601_v28  ;;  %v16439_v16 = vrot.slane %v16437_v2, 2  ;;  %v16442_v28 = vld [vmem:[#allocation106_spill] sm:$0xff]  ;;  %v16445_v2 = vld [vmem:[#allocation101_spill] sm:$0xff] }
 0x32a   : > { %v2286_v56 = vadd.f32 %v16436_v55, %v2190_v45  ;;  %v5250_v36 = vmax.f32 %v5218_v22, 0.0  ;;  %v16441_v45 = vrot.slane %v16397_v11, 2  ;;  %v2191_v7 = vadd.f32 %v16443_v50, %v16435_v25  ;;  %v16444_v22 = vld [vmem:[#allocation26_spill] sm:$0xff]  ;;  %v16449_v50 = vld [vmem:[#allocation103_spill] sm:$0xff] }
 0x32b   : > { %v5161_v27 = vmul.f32 %v12820_v4, %v4920_v10  ;;  %v4921_v8 = vadd.f32 %v16439_v16, %v4825_v54  ;;  %v5219_v6 = vadd.f32 %v12797_v62, %v5160_v12  ;;  %v4826_v55 = vadd.f32 %v16440_v1, %v4594_v20 }
 0x32c   : > { %v3602_v21 = vadd.f32 %v16441_v45, %v3506_v63  ;;  %v5313_v60 = vcombine.low %v5249_v19, %v5250_v36  ;;  %v2192_v54 = vadd.f32 %v16445_v2, %v16444_v22  ;;  %v16446_v12 = vrot.slane %v16395_v24, 2  ;;  %v12943_v63 = vpop.permute.xlu0 %3420  ;;  %v16448_v19 = vld [vmem:[#allocation104_spill] sm:$0xff] }
 0x32d   : > { %v5220_v39 = vadd.f32 %v12824_v46, %v5161_v27  ;;  %v5162_v10 = vmul.f32 %v12769_v53, %v4921_v8  ;;  %v3507_v11 = vadd.f32 %v12922_v32, %v12835_v34  ;;  %16447 = vst [vmem:[#allocation73_spill] sm:$0xff] %v12943_v63  ;;  %v5251_v1 = vmax.f32 %v5219_v6, 0.0  ;;  %v16452_v34 = vld [vmem:[#allocation23_spill] sm:$0xff]  ;;  %v16454_v6 = vld [vmem:[#allocation102_spill] sm:$0xff] }
 0x32e   : > { %v4922_v16 = vadd.f32 %v16446_v12, %v4826_v55  ;;  %v4595_v20 = vadd.f32 %v16395_v24, %v3602_v21  ;;  %v3278_v36 = vadd.f32 %v16403_v26, %v2286_v56  ;;  %v16450_v55 = vrot.slane %v16398_v5, 2  ;;  %v12952_v21 = vpop.permute.xlu1 %3422  ;;  %v16470_v32 = vld [vmem:[#allocation107_spill] sm:$0xff] }
 0x32f   : > { %v5252_v25 = vmax.f32 %v5220_v39, 0.0  ;;  %v5221_v8 = vadd.f32 %v12772_v13, %v5162_v10  ;;  %16451 = vst [vmem:[#allocation74_spill] sm:$0xff] %v12952_v21  ;;  %v16453_v2 = vrot.slane %v16452_v34, 2  ;;  %v2193_v39 = vadd.f32 %v16454_v6, %v16368_v15 }
 0x330   : > { %v5163_v45 = vmul.f32 %v12803_v59, %v4922_v16  ;;  %v4827_v22 = vadd.f32 %v16449_v50, %v4595_v20  ;;  %v3603_v24 = vadd.f32 %v16450_v55, %v3507_v11  ;;  %v3508_v27 = vadd.f32 %v12943_v63, %v12840_v35  ;;  %v16456_v50 = vld [vmem:[#allocation29_spill] sm:$0xff]  ;;  %v12974_v31 = vpop.permute.xlu0 %3424 }
 0x331   : > { %v2287_v12 = vadd.f32 %v16453_v2, %v2191_v7  ;;  %v5314_v56 = vcombine.low %v5251_v1, %v5252_v25  ;;  %v16455_v10 = vrot.slane %v16368_v15, 2  ;;  %v16457_v5 = vrot.slane %v16456_v50, 2  ;;  %v16459_v25 = vld [vmem:[#allocation18_spill] sm:$0xff]  ;;  %16461 = vst [vmem:[#allocation75_spill] sm:$0xff] %v12974_v31  ;;  %v16467_v63 = vld [vmem:[#allocation105_spill] sm:$0xff] }
 0x332   : > { %v5222_v20 = vadd.f32 %v12807_v58, %v5163_v45  ;;  %v4596_v55 = vadd.f32 %v16456_v50, %v3603_v24  ;;  %v5321_v34 = vrot.slane %v5313_v60, %v11349_v51  ;;  %v16458_v2 = vrot.slane %v16400_v14, 2  ;;  %v16460_v45 = vld [vmem:[#allocation110_spill] sm:$0xff] }
 0x333   : > { %v2288_v16 = vadd.f32 %v16455_v10, %v2192_v54  ;;  %v4923_v11 = vadd.f32 %v16457_v5, %v4827_v22  ;;  %v5328_v7 = vrot.slane %v5314_v56, %v11349_v51  ;;  %v3509_v35 = vadd.f32 %v12952_v21, %v16459_v25  ;;  %v16462_v22 = vld [vmem:[#allocation30_spill] sm:$0xff]  ;;  %v16464_v5 = vld [vmem:[#allocation27_spill] sm:$0xff] }
 0x334   : > { %v3604_v1 = vadd.f32 %v16458_v2, %v3508_v27  ;;  %v5253_v6 = vmax.f32 %v5221_v8, 0.0  ;;  %v5254_v15 = vmax.f32 %v5222_v20, 0.0  ;;  %v4828_v10 = vadd.f32 %v16460_v45, %v4596_v55  ;;  %v16466_v2 = vld [vmem:[#allocation28_spill] sm:$0xff]  ;;  %v16468_v20 = vld [vmem:[#allocation34_spill] sm:$0xff] }
 0x335   : > { %v5164_v54 = vmul.f32 %v12794_v0, %v4923_v11  ;;  %v16463_v24 = vrot.slane %v16462_v22, 2  ;;  %v5329_v60 = vcombine.low %v5321_v34, %v5328_v7  ;;  %v16465_v14 = vrot.slane %v16403_v26, 2  ;;  %v16472_v7 = vld [vmem:[#allocation113_spill] sm:$0xff] }
 0x336   : > { %v4597_v56 = vadd.f32 %v16464_v5, %v3604_v1  ;;  %v2195_v25 = vadd.f32 %v16467_v63, %v16466_v2  ;;  %v5330_v8 = vcombine.low %v5253_v6, %v5254_v15  ;;  %v16469_v21 = vrot.slane %v16468_v20, 2  ;;  %v16474_v6 = vld [vmem:[#allocation80_spill] sm:$0xff] }
 0x337   : > { %v2289_v50 = vadd.f32 %v16463_v24, %v2193_v39  ;;  %v3605_v27 = vadd.f32 %v16465_v14, %v3509_v35  ;;  %v3279_v55 = vadd.f32 %v16404_v43, %v2287_v12  ;;  %v10362_v45 = vpack.c.bf16 %v5329_v60, %v5329_v60  ;;  %v12993_v35 = vpop.permute.xlu1 %3426 }
 0x338   : > { %v4924_v11 = vadd.f32 %v16469_v21, %v4828_v10  ;;  %v4829_v29 = vadd.f32 %v16470_v32, %v4597_v56  ;;  %v3510_v34 = vadd.f32 %v12974_v31, %v3278_v36  ;;  %v2194_v26 = vadd.f32 %v16472_v7, %v16462_v22  ;;  %16473 = vst [vmem:[#allocation77_spill] sm:$0xff] %v12993_v35  ;;  %v16476_v32 = vld [vmem:[#allocation114_spill] sm:$0xff]  ;;  %v16477_v36 = vld [vmem:[#allocation33_spill] sm:$0xff] }
 0x339   : > { %v4598_v39 = vadd.f32 %v16471_v23, %v3605_v27  ;;  %v5223_v1 = vadd.f32 %v12797_v62, %v5164_v54  ;;  %v3280_v21 = vadd.f32 %v16474_v6, %v2288_v16  ;;  %v5490_v15 = vshrl.u32 %v10362_v45, 16 }
 0x33a   : > { %v5165_v63 = vmul.f32 %v12820_v4, %v4924_v11  ;;  %v16475_v12 = vrot.slane %v16471_v23, 2  ;;  %v3281_v60 = vadd.f32 %v12212_v40, %v2289_v50  ;;  %v16478_v5 = vrot.slane %v16477_v36, 2  ;;  %v16480_v11 = vld [vmem:[#allocation36_spill] sm:$0xff] }
 0x33b   : > { %v4830_v24 = vadd.f32 %v16476_v32, %v4598_v39  ;;  %v5493_v22 = vshll.u32 %v10362_v45, 16  ;;  %v16479_v14 = vrot.slane %v16404_v43, 2  ;;  %v5492_v20 = vrot.slane %v5490_v15, 7  ;;  %v10525_v43 = vld [vmem:[%s15736_s3 + $0x84] ss:$8 sps:$4 sm:$0xff]   ;;  %v16484_v32 = vld [vmem:[#allocation116_spill] sm:$0xff] }
 0x33c   : > { %v4925_v10 = vadd.f32 %v16475_v12, %v4829_v29  ;;  %v2291_v56 = vadd.f32 %v16478_v5, %v2195_v25  ;;  %v5224_v54 = vadd.f32 %v12824_v46, %v5165_v63  ;;  %v16481_v7 = vrot.slane %v16480_v11, 2  ;;  %10424 = vmatprep.subr.bf16.mxu1 %v10525_v43  ;;  %8901 = vmatprep.subr.bf16.mxu0 %v10525_v43 }
 0x33d   : > { %v3606_v27 = vadd.f32 %v16479_v14, %v3510_v34  ;;  %v3511_v29 = vadd.f32 %v12993_v35, %v3279_v55  ;;  %v16482_v39 = vrot.slane %v16466_v2, 2  ;;  %v5255_v6 = vmax.f32 %v5223_v1, 0.0  ;;  %v5572_v2 = vld [vmem:[#allocation2 + $0xc] sm:$0x1]  ;;  %v16485_v1 = vld [vmem:[#allocation125_spill] sm:$0xff]  ;;  %v13022_v14 = vpop.permute.xlu0 %3428 }
 0x33e   : > { %v5166_v16 = vmul.f32 %v12769_v53, %v4925_v10  ;;  %v4926_v23 = vadd.f32 %v16481_v7, %v4830_v24  ;;  %v5256_v12 = vmax.f32 %v5224_v54, 0.0  ;;  %v5495_v45 = vor.u32 %v5493_v22, %v5492_v20  ;;  %v16483_v10 = vld [vmem:[#allocation32_spill] sm:$0xff]  ;;  %v5569_v24 = vld [vmem:[#allocation2 + $0x8] sm:$0xf]  ;;  %16487 = vst [vmem:[#allocation78_spill] sm:$0xff] %v13022_v14 }
 0x33f   : > { %v2290_v50 = vadd.f32 %v16482_v39, %v2194_v26  ;;  %v4599_v25 = vadd.f32 %v16480_v11, %v3606_v27  ;;  %v5496_v34 = vrot.slane %v5492_v20, 4  ;;  %v2196_v55 = vadd.f32 %v16484_v32, %v16483_v10  ;;  %v13024_v27 = vpop.permute.xlu1 %3430  ;;  %v16489_v22 = vld [vmem:[#allocation35_spill] sm:$0xff]  ;;  %v16490_v20 = vld [vmem:[#allocation120_spill] sm:$0xff] }
 0x340   : > { %v5225_v63 = vadd.f32 %v12772_v13, %v5166_v16  ;;  %v5167_v15 = vmul.f32 %v12803_v59, %v4926_v23  ;;  %v5331_v26 = vcombine.low %v5255_v6, %v5256_v12  ;;  %v16486_v5 = vrot.slane %v12221_v52, 2  ;;  %16488 = vst [vmem:[#allocation81_spill] sm:$0xff] %v13024_v27  ;;  %v16493_v12 = vld [vmem:[#allocation38_spill] sm:$0xff] }
 0x341   : > { %v4831_v36 = vadd.f32 %v16485_v1, %v4599_v25  ;;  %v2197_v16 = vadd.f32 %v16490_v20, %v16489_v22  ;;  %v5570_v7 = vsel %vm10952_vm9, %v5495_v45, %v5569_v24  ;;  %v5573_v39 = vsel %vm10961_vm10, %v5496_v34, %v5572_v2  ;;  %v16496_v20 = vld [vmem:[#allocation109_spill] sm:$0xff]  ;;  %v10313_v11 = vld.sshfl [vmem:[#allocation2 + $0x48] sm:$0x33 pattern:$0x75316420] }
 0x342   : > { %v3607_v54 = vadd.f32 %v16486_v5, %v3511_v29  ;;  %v5226_v6 = vadd.f32 %v12807_v58, %v5167_v15  ;;  %5571 = vst [vmem:[#allocation2 + $0x8] sm:$0xf] %v5570_v7  ;;  %5574 = vst [vmem:[#allocation2 + $0xc] sm:$0x1] %v5573_v39  ;;  %v5338_v52 = vrot.slane %v5330_v8, %v11349_v51  ;;  %v16494_v25 = vrot.slane %v16493_v12, 2  ;;  %v16495_v15 = vld [vmem:[#allocation123_spill] sm:$0xff] }
 0x343   : > { %v5345_v29 = vrot.slane %v5331_v26, %v11349_v51  ;;  %v5257_v1 = vmax.f32 %v5225_v63, 0.0  ;;  %v3512_v45 = vadd.f32 %v13022_v14, %v3280_v21  ;;  %v3513_v34 = vadd.f32 %v13024_v27, %v3281_v60  ;;  %v16516_v14 = vld [vmem:[#allocation48_spill] sm:$0xff] }
 0x344   : > { %v4927_v10 = vadd.f32 %v16494_v25, %v4831_v36  ;;  %v4600_v32 = vadd.f32 %v16493_v12, %v3607_v54  ;;  %v5258_v5 = vmax.f32 %v5226_v6, 0.0  ;;  %v16497_v26 = vrot.slane %v16489_v22, 2  ;;  %v16500_v12 = vld [vmem:[#allocation40_spill] sm:$0xff] }
 0x345   : > { %v5346_v24 = vcombine.low %v5338_v52, %v5345_v29  ;;  %v16498_v36 = vrot.slane %v12212_v40, 2  ;;  %v16499_v63 = vrot.slane %v16406_v18, 2  ;;  %v16501_v60 = vrot.slane %v16500_v12, 2  ;;  %v13051_v29 = vpop.permute.xlu0 %3432  ;;  %v16507_v40 = vld [vmem:[#allocation43_spill] sm:$0xff]  ;;  %v16510_v12 = vld [vmem:[#allocation130_spill] sm:$0xff] }
 0x346   : > { %v5168_v43 = vmul.f32 %v12794_v0, %v4927_v10  ;;  %v4832_v2 = vadd.f32 %v16495_v15, %v4600_v32  ;;  %v2292_v7 = vadd.f32 %v16497_v26, %v2196_v55  ;;  %v5347_v39 = vcombine.low %v5257_v1, %v5258_v5  ;;  %16502 = vst [vmem:[#allocation14_spill] sm:$0xff] %v13051_v29  ;;  %v16503_v10 = vld [vmem:[#allocation111_spill] sm:$0xff]  ;;  %v16504_v15 = vld [vmem:[#allocation37_spill] sm:$0xff]  ;;  %v16506_v1 = vld [vmem:[#allocation44_spill] sm:$0xff] }
 0x347   : > { %v3608_v54 = vadd.f32 %v16498_v36, %v3512_v45  ;;  %v3609_v6 = vadd.f32 %v16499_v63, %v3513_v34  ;;  %v10363_v21 = vpack.c.bf16 %v5346_v24, %v5346_v24  ;;  %v3283_v25 = vadd.f32 %v16409_v48, %v2291_v56  ;;  %v13060_v34 = vpop.permute.xlu1 %3434  ;;  %v16509_v24 = vld [vmem:[#allocation121_spill] sm:$0xff]  ;;  %v16511_v32 = vld [vmem:[#allocation134_spill] sm:$0xff] }
 0x348   : > { %v4928_v52 = vadd.f32 %v16501_v60, %v4832_v2  ;;  %v16505_v22 = vrot.slane %v16504_v15, 2  ;;  %v3282_v26 = vadd.f32 %v16406_v18, %v2290_v50  ;;  %16508 = vst [vmem:[#allocation84_spill] sm:$0xff] %v13060_v34  ;;  %v2198_v2 = vadd.f32 %v16509_v24, %v16504_v15  ;;  %v16513_v15 = vld [vmem:[#allocation39_spill] sm:$0xff]  ;;  %v16514_v24 = vld [vmem:[#allocation129_spill] sm:$0xff] }
 0x349   : > { %v4601_v5 = vadd.f32 %v16506_v1, %v3608_v54  ;;  %v4602_v45 = vadd.f32 %v16507_v40, %v3609_v6  ;;  %v5498_v36 = vshrl.u32 %v10363_v21, 16  ;;  %v5227_v63 = vadd.f32 %v12797_v62, %v5168_v43 }
 0x34a   : > { %v2293_v55 = vadd.f32 %v16505_v22, %v2197_v16  ;;  %v5169_v56 = vmul.f32 %v12820_v4, %v4928_v52  ;;  %v3514_v54 = vadd.f32 %v13051_v29, %v3282_v26  ;;  %v16512_v22 = vld [vmem:[#allocation79_spill] sm:$0xff]  ;;  %v5501_v18 = vshll.u32 %v10363_v21, 16  ;;  %v13085_v29 = vpop.permute.xlu0 %3436 }
 0x34b   : > { %v4833_v60 = vadd.f32 %v16510_v12, %v4601_v5  ;;  %v4834_v16 = vadd.f32 %v16511_v32, %v4602_v45  ;;  %v3284_v6 = vadd.f32 %v16512_v22, %v2292_v7  ;;  %v5500_v1 = vrot.slane %v5498_v36, 7  ;;  %v5575_v22 = vld [vmem:[#allocation2 + $0x10] sm:$0xf]  ;;  %16521 = vst [vmem:[#allocation83_spill] sm:$0xff] %v13085_v29 }
 0x34c   : > { %v5228_v50 = vadd.f32 %v12824_v46, %v5169_v56  ;;  %v3515_v8 = vadd.f32 %v13060_v34, %v3283_v25  ;;  %v2199_v27 = vadd.f32 %v16514_v24, %v16513_v15  ;;  %v16515_v43 = vrot.slane %v16507_v40, 2  ;;  %v5578_v56 = vld [vmem:[#allocation2 + $0x14] sm:$0x1]  ;;  %v16519_v40 = vld [vmem:[#allocation82_spill] sm:$0xff] }
 0x34d   : > { %v16517_v5 = vrot.slane %v16516_v14, 2  ;;  %v16518_v32 = vrot.slane %v16409_v48, 2  ;;  %v5503_v26 = vor.u32 %v5501_v18, %v5500_v1  ;;  %v5504_v7 = vrot.slane %v5500_v1, 4  ;;  %v13093_v18 = vpop.permute.xlu1 %3438 }
 0x34e   : > { %v4929_v52 = vadd.f32 %v16515_v43, %v4833_v60  ;;  %v5259_v36 = vmax.f32 %v5227_v63, 0.0  ;;  %v5260_v21 = vmax.f32 %v5228_v50, 0.0  ;;  %v16520_v60 = vrot.slane %v16519_v40, 2  ;;  %16523 = vst [vmem:[#allocation90_spill] sm:$0xff] %v13093_v18  ;;  %v16524_v50 = vld [vmem:[#allocation41_spill] sm:$0xff]  ;;  %v16531_v40 = vld [vmem:[#allocation136_spill] sm:$0xff] }
 0x34f   : > { %v4930_v12 = vadd.f32 %v16517_v5, %v4834_v16  ;;  %v3610_v45 = vadd.f32 %v16518_v32, %v3514_v54  ;;  %v16522_v48 = vrot.slane %v16513_v15, 2  ;;  %v5576_v63 = vsel %vm10952_vm9, %v5503_v26, %v5575_v22  ;;  %v16526_v5 = vld [vmem:[#allocation137_spill] sm:$0xff]  ;;  %v16527_v15 = vld [vmem:[#allocation47_spill] sm:$0xff]  ;;  %v16528_v32 = vld [vmem:[#allocation42_spill] sm:$0xff] }
 0x350   : > { %v5170_v25 = vmul.f32 %v12769_v53, %v4929_v52  ;;  %v3611_v43 = vadd.f32 %v16520_v60, %v3515_v8  ;;  %v5579_v54 = vsel %vm10961_vm10, %v5504_v7, %v5578_v56  ;;  %v5348_v1 = vcombine.low %v5259_v36, %v5260_v21  ;;  %5577 = vst [vmem:[#allocation2 + $0x10] sm:$0xf] %v5576_v63  ;;  %v16532_v60 = vld [vmem:[#allocation46_spill] sm:$0xff] }
 0x351   : > { %v5171_v34 = vmul.f32 %v12803_v59, %v4930_v12  ;;  %v4603_v24 = vadd.f32 %v16516_v14, %v3610_v45  ;;  %v2294_v16 = vadd.f32 %v16522_v48, %v2198_v2  ;;  %v16525_v52 = vrot.slane %v16524_v50, 2  ;;  %5580 = vst [vmem:[#allocation2 + $0x14] sm:$0x1] %v5579_v54  ;;  %v16529_v45 = vld [vmem:[#allocation131_spill] sm:$0xff] }
 0x352   : > { %v4604_v2 = vadd.f32 %v16527_v15, %v3611_v43  ;;  %v2201_v26 = vadd.f32 %v16529_v45, %v16528_v32  ;;  %v5355_v22 = vrot.slane %v5347_v39, %v11349_v51  ;;  %v5362_v7 = vrot.slane %v5348_v1, %v11349_v51  ;;  %v16533_v43 = vld [vmem:[#allocation133_spill] sm:$0xff] }
 0x353   : > { %v2295_v14 = vadd.f32 %v16525_v52, %v2199_v27  ;;  %v5230_v8 = vadd.f32 %v12807_v58, %v5171_v34  ;;  %v4835_v12 = vadd.f32 %v16526_v5, %v4603_v24  ;;  %v3516_v36 = vadd.f32 %v13085_v29, %v3284_v6 }
 0x354   : > { %v5229_v21 = vadd.f32 %v12772_v13, %v5170_v25  ;;  %v16530_v27 = vrot.slane %v16527_v15, 2  ;;  %v4836_v34 = vadd.f32 %v16531_v40, %v4604_v2  ;;  %v3285_v24 = vadd.f32 %v12271_v42, %v2293_v55  ;;  %v16535_v25 = vld [vmem:[#allocation51_spill] sm:$0xff]  ;;  %v13119_v15 = vpop.permute.xlu0 %3440  ;;  %v16538_v55 = vld [vmem:[#allocation45_spill] sm:$0xff]  ;;  %v13125_v40 = vpop.permute.xlu1 %3442 }
 0x355   : > { %v2200_v48 = vadd.f32 %v16533_v43, %v16532_v60  ;;  %v5363_v63 = vcombine.low %v5355_v22, %v5362_v7  ;;  %v16534_v54 = vrot.slane %v12271_v42, 2  ;;  %v3286_v1 = vadd.f32 %v12289_v41, %v2294_v16  ;;  %16537 = vst [vmem:[#allocation68_spill] sm:$0xff] %v13119_v15  ;;  %v16540_v22 = vld [vmem:[#allocation50_spill] sm:$0xff]  ;;  %16542 = vst [vmem:[#allocation91_spill] sm:$0xff] %v13125_v40 }
 0x356   : > { %v4931_v56 = vadd.f32 %v16530_v27, %v4835_v12  ;;  %v5262_v50 = vmax.f32 %v5230_v8, 0.0  ;;  %v16536_v52 = vrot.slane %v16535_v25, 2  ;;  %v3517_v12 = vadd.f32 %v13093_v18, %v3285_v24  ;;  %v16541_v42 = vld [vmem:[#allocation86_spill] sm:$0xff] }
 0x357   : > { %v3612_v39 = vadd.f32 %v16534_v54, %v3516_v36  ;;  %v16539_v2 = vrot.slane %v16538_v55, 2  ;;  %v10364_v27 = vpack.c.bf16 %v5363_v63, %v5363_v63  ;;  %v3287_v36 = vadd.f32 %v16541_v42, %v2295_v14 }
 0x358   : > { %v5172_v6 = vmul.f32 %v12794_v0, %v4931_v56  ;;  %v4932_v5 = vadd.f32 %v16536_v52, %v4836_v34  ;;  %v5261_v16 = vmax.f32 %v5229_v21, 0.0  ;;  %v16543_v34 = vrot.slane %v12289_v41, 2  ;;  %v16547_v21 = vld [vmem:[#allocation53_spill] sm:$0xff] }
 0x359   : > { %v2297_v45 = vadd.f32 %v16539_v2, %v2201_v26  ;;  %v4605_v7 = vadd.f32 %v16540_v22, %v3612_v39  ;;  %v16544_v60 = vrot.slane %v16528_v32, 2  ;;  %v16545_v26 = vld [vmem:[#allocation135_spill] sm:$0xff]  ;;  %v5506_v54 = vshrl.u32 %v10364_v27, 16  ;;  %v16546_v39 = vld [vmem:[#allocation17_spill] sm:$0xff] }
 0x35a   : > { %v5231_v8 = vadd.f32 %v12797_v62, %v5172_v6  ;;  %v5173_v56 = vmul.f32 %v12820_v4, %v4932_v5  ;;  %v3613_v24 = vadd.f32 %v16543_v34, %v3517_v12  ;;  %v2202_v63 = vadd.f32 %v16545_v26, %v16538_v55  ;;  %v16549_v34 = vld [vmem:[#allocation140_spill] sm:$0xff] }
 0x35b   : > { %v2296_v43 = vadd.f32 %v16544_v60, %v2200_v48  ;;  %v4837_v25 = vadd.f32 %v16546_v39, %v4605_v7  ;;  %v5364_v14 = vcombine.low %v5261_v16, %v5262_v50  ;;  %v3518_v6 = vadd.f32 %v13119_v15, %v3286_v1  ;;  %v13145_v7 = vpop.permute.xlu0 %3444  ;;  %v16552_v16 = vld [vmem:[#allocation49_spill] sm:$0xff]  ;;  %v13150_v39 = vpop.permute.xlu1 %3446 }
 0x35c   : > { %v5232_v52 = vadd.f32 %v12824_v46, %v5173_v56  ;;  %v4606_v2 = vadd.f32 %v16547_v21, %v3613_v24  ;;  %v5508_v5 = vrot.slane %v5506_v54, 7  ;;  %v5509_v22 = vshll.u32 %v10364_v27, 16  ;;  %16551 = vst [vmem:[#allocation87_spill] sm:$0xff] %v13145_v7  ;;  %v16553_v56 = vld [vmem:[#allocation138_spill] sm:$0xff]  ;;  %v16554_v27 = vld [vmem:[#allocation89_spill] sm:$0xff]  ;;  %16555 = vst [vmem:[#allocation94_spill] sm:$0xff] %v13150_v39 }
 0x35d   : > { %v5263_v41 = vmax.f32 %v5231_v8, 0.0  ;;  %v16548_v12 = vrot.slane %v16547_v21, 2  ;;  %v16550_v55 = vrot.slane %v16541_v42, 2  ;;  %v3519_v50 = vadd.f32 %v13125_v40, %v3287_v36  ;;  %v5581_v21 = vld [vmem:[#allocation2 + $0x18] sm:$0xf] }
 0x35e   : > { %v5264_v48 = vmax.f32 %v5232_v52, 0.0  ;;  %v4838_v60 = vadd.f32 %v16549_v34, %v4606_v2  ;;  %v2203_v24 = vadd.f32 %v16553_v56, %v16552_v16  ;;  %v5511_v1 = vor.u32 %v5509_v22, %v5508_v5  ;;  %v5584_v2 = vld [vmem:[#allocation2 + $0x1c] sm:$0x1]  ;;  %v16561_v56 = vld [vmem:[#allocation54_spill] sm:$0xff] }
 0x35f   : > { %v4933_v32 = vadd.f32 %v16548_v12, %v4837_v25  ;;  %v3614_v26 = vadd.f32 %v16550_v55, %v3518_v6  ;;  %v5512_v54 = vrot.slane %v5508_v5, 4  ;;  %v3288_v8 = vadd.f32 %v16554_v27, %v2296_v43  ;;  %v16557_v6 = vld [vmem:[#allocation60_spill] sm:$0xff] }
 0x360   : > { %v16556_v25 = vrot.slane %v16552_v16, 2  ;;  %v5365_v42 = vcombine.low %v5263_v41, %v5264_v48  ;;  %v16558_v12 = vrot.slane %v16557_v6, 2  ;;  %v5582_v55 = vsel %vm10952_vm9, %v5511_v1, %v5581_v21  ;;  %v16564_v21 = vld [vmem:[#allocation85_spill] sm:$0xff] }
 0x361   : > { %v4607_v34 = vadd.f32 %v16557_v6, %v3614_v26  ;;  %v5585_v5 = vsel %vm10961_vm10, %v5512_v54, %v5584_v2  ;;  %v5372_v43 = vrot.slane %v5364_v14, %v11349_v51  ;;  %v16559_v22 = vrot.slane %v12309_v30, 2  ;;  %5583 = vst [vmem:[#allocation2 + $0x18] sm:$0xf] %v5582_v55  ;;  %v16566_v2 = vld [vmem:[#allocation139_spill] sm:$0xff]  ;;  %v13178_v55 = vpop.permute.xlu0 %3448 }
 0x362   : > { %v2298_v52 = vadd.f32 %v16556_v25, %v2202_v63  ;;  %v4934_v36 = vadd.f32 %v16558_v12, %v4838_v60  ;;  %5586 = vst [vmem:[#allocation2 + $0x1c] sm:$0x1] %v5585_v5  ;;  %v5379_v63 = vrot.slane %v5365_v42, %v11349_v51  ;;  %v5174_v41 = vmul.f32 %v12769_v53, %v4933_v32  ;;  %v16560_v60 = vld [vmem:[#allocation8_spill] sm:$0xff] }
 0x363   : > { %v3615_v16 = vadd.f32 %v16559_v22, %v3519_v50  ;;  %v4839_v26 = vadd.f32 %v16560_v60, %v4607_v34  ;;  %v16562_v1 = vrot.slane %v16561_v56, 2  ;;  %v16563_v25 = vld [vmem:[#allocation64_spill] sm:$0xff]  ;;  %v3520_v14 = vadd.f32 %v13145_v7, %v3288_v8  ;;  %16568 = vst [vmem:[#allocation88_spill] sm:$0xff] %v13178_v55  ;;  %v16569_v34 = vld [vmem:[#allocation11_spill] sm:$0xff] }
 0x364   : > { %v5175_v48 = vmul.f32 %v12803_v59, %v4934_v36  ;;  %v3289_v30 = vadd.f32 %v16564_v21, %v2297_v45  ;;  %v16565_v50 = vld [vmem:[#allocation52_spill] sm:$0xff]  ;;  %v5380_v12 = vcombine.low %v5372_v43, %v5379_v63  ;;  %v16567_v32 = vrot.slane %v16563_v25, 2  ;;  %v16572_v45 = vld [vmem:[#allocation115_spill] sm:$0xff] }
 0x365   : > { %v2299_v27 = vadd.f32 %v16562_v1, %v2203_v24  ;;  %v4608_v54 = vadd.f32 %v16563_v25, %v3615_v16  ;;  %v2204_v6 = vadd.f32 %v16566_v2, %v16565_v50  ;;  %v16570_v24 = vrot.slane %v16564_v21, 2  ;;  %v13184_v16 = vpop.permute.xlu1 %3450  ;;  %v16573_v1 = vld [vmem:[#allocation56_spill] sm:$0xff]  ;;  %v16574_v25 = vld [vmem:[#allocation19_spill] sm:$0xff]  ;;  %v16575_v50 = vld [vmem:[#allocation65_spill] sm:$0xff] }
 0x366   : > { %v5234_v42 = vadd.f32 %v12807_v58, %v5175_v48  ;;  %v4935_v36 = vadd.f32 %v16567_v32, %v4839_v26  ;;  %v3521_v8 = vadd.f32 %v13150_v39, %v3289_v30  ;;  %16571 = vst [vmem:[#allocation92_spill] sm:$0xff] %v13184_v16  ;;  %v10365_v56 = vpack.c.bf16 %v5380_v12, %v5380_v12  ;;  %v10209_v26 = vld.sshfl [vmem:[#allocation2] sm:$0x33 pattern:$0x75316420]  ;;  %v16577_v2 = vld [vmem:[#allocation69_spill] sm:$0xff] }
 0x367   : > { %v4840_v5 = vadd.f32 %v16569_v34, %v4608_v54  ;;  %v3616_v22 = vadd.f32 %v16570_v24, %v3520_v14  ;;  %v5233_v43 = vadd.f32 %v12772_v13, %v5174_v41  ;;  %v3290_v48 = vadd.f32 %v16416_v38, %v2298_v52 }
 0x368   : > { %v5176_v63 = vmul.f32 %v12794_v0, %v4935_v36  ;;  %v2205_v54 = vadd.f32 %v16574_v25, %v16573_v1  ;;  %v16576_v21 = vrot.slane %v16575_v50, 2  ;;  %v16578_v32 = vrot.slane %v16416_v38, 2  ;;  %v16580_v25 = vld [vmem:[#allocation66_spill] sm:$0xff] }
 0x369   : > { %v4609_v30 = vadd.f32 %v16577_v2, %v3616_v22  ;;  %v16579_v12 = vrot.slane %v16573_v1, 2  ;;  %v5514_v41 = vshrl.u32 %v10365_v56, 16  ;;  %v5266_v60 = vmax.f32 %v5234_v42, 0.0  ;;  %v16581_v2 = vld [vmem:[#allocation13_spill] sm:$0xff]  ;;  %v16583_v1 = vld [vmem:[#allocation62_spill] sm:$0xff] }
 0x36a   : > { %v4936_v14 = vadd.f32 %v16576_v21, %v4840_v5  ;;  %v3617_v34 = vadd.f32 %v16578_v32, %v3521_v8  ;;  %v3291_v36 = vadd.f32 %v16419_v44, %v2299_v27  ;;  %v5235_v52 = vadd.f32 %v12797_v62, %v5176_v63  ;;  %v13204_v8 = vpop.permute.xlu0 %3452  ;;  %v16585_v27 = vld [vmem:[#allocation15_spill] sm:$0xff] }
 0x36b   : > { %v2300_v24 = vadd.f32 %v16579_v12, %v2204_v6  ;;  %v5656_v50 = vcombine.high %v10209_v26, %v10209_v26  ;;  %v5516_v5 = vrot.slane %v5514_v41, 7  ;;  %v5517_v21 = vshll.u32 %v10365_v56, 16  ;;  %16582 = vst [vmem:[#allocation25_spill] sm:$0xff] %v13204_v8 }
 0x36c   : > { %v5177_v39 = vmul.f32 %v12820_v4, %v4936_v14  ;;  %v4610_v7 = vadd.f32 %v16580_v25, %v3617_v34  ;;  %v5265_v22 = vmax.f32 %v5233_v43, 0.0  ;;  %v4841_v38 = vadd.f32 %v16581_v2, %v4609_v30  ;;  %v13211_v14 = vpop.permute.xlu1 %3454  ;;  %v16587_v34 = vld [vmem:[#allocation10_spill] sm:$0xff] }
 0x36d   : > { %v16584_v6 = vrot.slane %v16583_v1, 2  ;;  %v3522_v63 = vadd.f32 %v13178_v55, %v3290_v48  ;;  %16586 = vst [vmem:[#allocation100_spill] sm:$0xff] %v13211_v14  ;;  %v2206_v41 = vadd.f32 %v16587_v34, %v16583_v1  ;;  %v5519_v56 = vor.u32 %v5517_v21, %v5516_v5  ;;  %v5587_v30 = vld [vmem:[#allocation2 + $0x20] sm:$0xf]  ;;  %v5590_v2 = vld [vmem:[#allocation2 + $0x24] sm:$0x1] }
 0x36e   : > { %v5236_v42 = vadd.f32 %v12824_v46, %v5177_v39  ;;  %v4842_v12 = vadd.f32 %v16585_v27, %v4610_v7  ;;  %v5520_v43 = vrot.slane %v5516_v5, 4  ;;  %v5381_v40 = vcombine.low %v5265_v22, %v5266_v60  ;;  %v16591_v60 = vld [vmem:[#allocation93_spill] sm:$0xff]  ;;  %v16592_v1 = vld [vmem:[#allocation67_spill] sm:$0xff] }
 0x36f   : > { %v2301_v32 = vadd.f32 %v16584_v6, %v2205_v54  ;;  %v5267_v15 = vmax.f32 %v5235_v52, 0.0  ;;  %v16588_v54 = vrot.slane %v16418_v37, 2  ;;  %v16589_v39 = vrot.slane %v16419_v44, 2  ;;  %v16593_v52 = vld [vmem:[#allocation16_spill] sm:$0xff] }
 0x370   : > { %v5268_v18 = vmax.f32 %v5236_v42, 0.0  ;;  %v5588_v48 = vsel %vm10952_vm9, %v5519_v56, %v5587_v30  ;;  %v5591_v27 = vsel %vm10961_vm10, %v5520_v43, %v5590_v2  ;;  %v16590_v21 = vrot.slane %v16580_v25, 2  ;;  %v13233_v25 = vpop.permute.xlu0 %3456 }
 0x371   : > { %v4938_v6 = vadd.f32 %v16588_v54, %v4842_v12  ;;  %v3618_v7 = vadd.f32 %v16589_v39, %v3522_v63  ;;  %v3292_v22 = vadd.f32 %v16591_v60, %v2300_v24  ;;  %v2207_v42 = vadd.f32 %v16593_v52, %v16592_v1  ;;  %5589 = vst [vmem:[#allocation2 + $0x20] sm:$0xf] %v5588_v48  ;;  %v16594_v63 = vld [vmem:[#allocation5_spill] sm:$0xff]  ;;  %v16601_v48 = vld [vmem:[#allocation71_spill] sm:$0xff] }
 0x372   : > { %v4937_v5 = vadd.f32 %v16590_v21, %v4841_v38  ;;  %5592 = vst [vmem:[#allocation2 + $0x24] sm:$0x1] %v5591_v27  ;;  %v5382_v12 = vcombine.low %v5267_v15, %v5268_v18  ;;  %v5663_v34 = vrot.slane %v10209_v26, %v16594_v63  ;;  %v3523_v30 = vadd.f32 %v13184_v16, %v3291_v36  ;;  %v13241_v26 = vpop.permute.xlu1 %3458 }
 0x373   : > { %v4611_v44 = vadd.f32 %v16418_v37, %v3618_v7  ;;  %v5179_v56 = vmul.f32 %v12803_v59, %v4938_v6  ;;  %v3293_v43 = vadd.f32 %v12394_v33, %v2301_v32  ;;  %16595 = vst [vmem:[#allocation99_spill] sm:$0xff] %v13233_v25  ;;  %v5670_v24 = vrot.slane %v5656_v50, %v16594_v63  ;;  %v16597_v37 = vld [vmem:[#allocation24_spill] sm:$0xff] }
 0x374   : > { %v16596_v38 = vrot.slane %v16592_v1, 2  ;;  %v5389_v54 = vrot.slane %v5381_v40, %v11349_v51  ;;  %v5396_v18 = vrot.slane %v5382_v12, %v11349_v51  ;;  %16598 = vst [vmem:[#allocation97_spill] sm:$0xff] %v13241_v26  ;;  %v5178_v6 = vmul.f32 %v12769_v53, %v4937_v5  ;;  %v16600_v7 = vld [vmem:[#allocation112_spill] sm:$0xff]  ;;  %v16603_v40 = vld [vmem:[#allocation70_spill] sm:$0xff] }
 0x375   : > { %v4843_v15 = vadd.f32 %v16597_v37, %v4611_v44  ;;  %v16599_v36 = vrot.slane %v12383_v57, 2  ;;  %v3524_v39 = vadd.f32 %v13204_v8, %v3292_v22  ;;  %v16602_v27 = vrot.slane %v16601_v48, 2  ;;  %v10210_v44 = vld.sshfl [vmem:[#allocation2 + $0x4] sm:$0x1 pattern:$0x75316420] }
 0x376   : > { %v2302_v2 = vadd.f32 %v16596_v38, %v2206_v41  ;;  %v5397_v21 = vcombine.low %v5389_v54, %v5396_v18  ;;  %v16604_v60 = vrot.slane %v16603_v40, 2  ;;  %v3525_v52 = vadd.f32 %v13211_v14, %v3293_v43  ;;  %v16606_v18 = vld [vmem:[#allocation12_spill] sm:$0xff] }
 0x377   : > { %v3619_v32 = vadd.f32 %v16599_v36, %v3523_v30  ;;  %v2303_v41 = vadd.f32 %v16602_v27, %v2207_v42  ;;  %v5238_v12 = vadd.f32 %v12807_v58, %v5179_v56  ;;  %v5961_v57 = vcombine.low %v5663_v34, %v5670_v24  ;;  %v16605_v36 = vld [vmem:[#allocation118_spill] sm:$0xff]  ;;  %v4774_v27 = vpop.permute.xlu0 %4773 }
 0x378   : > { %v4939_v1 = vadd.f32 %v16604_v60, %v4843_v15  ;;  %v10225_v30 = vcombine.high %v5663_v34, %v5670_v24  ;;  %v10366_v38 = vpack.c.bf16 %v5397_v21, %v5397_v21  ;;  %v3294_v37 = vadd.f32 %v12373_v61, %v2302_v2  ;;  %v4776_v21 = vpop.permute.xlu1 %4775 }
 0x379   : > { %v4612_v5 = vadd.f32 %v16603_v40, %v3619_v32  ;;  %v5237_v54 = vadd.f32 %v12772_v13, %v5178_v6  ;;  %v16607_v43 = vrot.slane %v12394_v33, 2  ;;  %v16608_v56 = vrot.slane %v12373_v61, 2 }
 0x37a   : > { %v5180_v22 = vmul.f32 %v12794_v0, %v4939_v1  ;;  %v5522_v40 = vshrl.u32 %v10366_v38, 16  ;;  %v3526_v34 = vadd.f32 %v13233_v25, %v3294_v37  ;;  %v3295_v24 = vadd.f32 %v12406_v17, %v2303_v41  ;;  %v16609_v1 = vld [vmem:[#allocation72_spill] sm:$0xff] }
 0x37b   : > { %v4844_v15 = vadd.f32 %v16606_v18, %v4612_v5  ;;  %v3620_v48 = vadd.f32 %v16607_v43, %v3524_v39  ;;  %v3621_v32 = vadd.f32 %v16608_v56, %v3525_v52  ;;  %v5686_v2 = vrot.slane %v10210_v44, %v16594_v63  ;;  %v16611_v43 = vld [vmem:[#allocation96_spill] sm:$0xff]  ;;  %v10211_v44 = vld.sshfl [vmem:[#allocation2 + $0x8] sm:$0x33 pattern:$0x75316420] }
 0x37c   : > { %v5270_v60 = vmax.f32 %v5238_v12, 0.0  ;;  %v16610_v6 = vrot.slane %v16609_v1, 2  ;;  %v5971_v5 = vrot.slane %v5961_v57, %v16594_v63  ;;  %v5978_v33 = vrot.slane %v10225_v30, %v16594_v63 }
 0x37d   : > { %v5524_v39 = vrot.slane %v5522_v40, 7  ;;  %v5525_v61 = vshll.u32 %v10366_v38, 16  ;;  %v5239_v52 = vadd.f32 %v12797_v62, %v5180_v22  ;;  %v3527_v18 = vadd.f32 %v13241_v26, %v3295_v24  ;;  %v5593_v40 = vld [vmem:[#allocation2 + $0x28] sm:$0xf]  ;;  %v5596_v22 = vld [vmem:[#allocation2 + $0x2c] sm:$0x1]  ;;  %v4778_v26 = vpop.permute.xlu0 %4777 }
 0x37e   : > { %v4940_v42 = vadd.f32 %v16610_v6, %v4844_v15  ;;  %v5269_v37 = vmax.f32 %v5237_v54, 0.0  ;;  %v4613_v56 = vadd.f32 %v16611_v43, %v3620_v48  ;;  %v4614_v12 = vadd.f32 %v16431_v3, %v3621_v32 }
 0x37f   : > { %v5527_v1 = vor.u32 %v5525_v61, %v5524_v39  ;;  %v5528_v15 = vrot.slane %v5524_v39, 4  ;;  %v16612_v57 = vrot.slane %v12406_v17, 2  ;;  %v16613_v30 = vrot.slane %v12445_v49, 2 }
 0x380   : > { %v5181_v41 = vmul.f32 %v12820_v4, %v4940_v42  ;;  %v5398_v50 = vcombine.low %v5269_v37, %v5270_v60  ;;  %v4845_v24 = vadd.f32 %v4774_v27, %v4613_v56  ;;  %v4846_v42 = vadd.f32 %v4776_v21, %v4614_v12 }
 0x381   : > { %v3622_v6 = vadd.f32 %v16612_v57, %v3526_v34  ;;  %v3623_v38 = vadd.f32 %v16613_v30, %v3527_v18  ;;  %v5594_v48 = vsel %vm10952_vm9, %v5527_v1, %v5593_v40  ;;  %v5597_v32 = vsel %vm10961_vm10, %v5528_v15, %v5596_v22  ;;  %v4780_v34 = vpop.permute.xlu1 %4779  ;;  %v10251_v40 = vld.sshfl [vmem:[#allocation2 + $0xc] sm:$0x1 pattern:$0x75316420] }
 0x382   : > { %v5240_v54 = vadd.f32 %v12824_v46, %v5181_v41  ;;  %v5271_v39 = vmax.f32 %v5239_v52, 0.0  ;;  %v5694_v17 = vcombine.high %v10211_v44, %v10211_v44  ;;  %5595 = vst [vmem:[#allocation2 + $0x28] sm:$0xf] %v5594_v48  ;;  %5598 = vst [vmem:[#allocation2 + $0x2c] sm:$0x1] %v5597_v32  ;;  %v16614_v61 = vrot.slane %v16431_v3, 2 }
 0x383   : > { %v16615_v18 = vrot.slane %v16432_v47, 2  ;;  %v13290_v21 = vrot.slane %v10211_v44, %v16594_v63  ;;  %v5993_v41 = vcombine.low %v5971_v5, %v5978_v33  ;;  %v4615_v52 = vadd.f32 %v16432_v47, %v3622_v6  ;;  %v16618_v48 = vld [vmem:[#allocation122_spill] sm:$0xff] }
 0x384   : > { %v5272_v49 = vmax.f32 %v5240_v54, 0.0  ;;  %v4941_v60 = vadd.f32 %v16614_v61, %v4845_v24  ;;  %v13293_v37 = vrot.slane %v5694_v17, %v16594_v63  ;;  %v4616_v43 = vadd.f32 %v12456_v9, %v3623_v38  ;;  %v2141_v38 = vpop.permute.xlu0 %2140 }
 0x385   : > { %v4942_v27 = vadd.f32 %v16615_v18, %v4846_v42  ;;  %v5709_v1 = vcombine.high %v13290_v21, %v13290_v21  ;;  %v5406_v15 = vrot.slane %v5398_v50, %v11349_v51  ;;  %v5963_v44 = vcombine.low %v5686_v2, %v13290_v21  ;;  %v10252_v42 = vld.sshfl [vmem:[#allocation2 + $0x10] sm:$0x33 pattern:$0x75316420] }
 0x386   : > { %v5399_v56 = vcombine.low %v5271_v39, %v5272_v49  ;;  %v5182_v12 = vmul.f32 %v12769_v53, %v4941_v60  ;;  %v4847_v57 = vadd.f32 %v4778_v26, %v4615_v52  ;;  %v4848_v30 = vadd.f32 %v4780_v34, %v4616_v43  ;;  %v2143_v26 = vpop.permute.xlu1 %2142 }
 0x387   : > { %v5183_v3 = vmul.f32 %v12803_v59, %v4942_v27  ;;  %v5964_v6 = vcombine.low %v13293_v37, %v5709_v1  ;;  %v6001_v22 = vrot.slane %v5993_v41, %v16594_v63  ;;  %v16616_v54 = vrot.slane %v12456_v9, 2  ;;  %v16619_v9 = vld [vmem:[#allocation108_spill] sm:$0xff] }
 0x388   : > { %v5413_v5 = vrot.slane %v5399_v56, %v11349_v51  ;;  %v5241_v47 = vadd.f32 %v12772_v13, %v5182_v12  ;;  %v16617_v50 = vrot.slane %v16442_v28, 2  ;;  %v5985_v34 = vrot.slane %v5963_v44, %v16594_v63 }
 0x389   : > { %v5242_v33 = vadd.f32 %v12807_v58, %v5183_v3  ;;  %v4943_v24 = vadd.f32 %v16616_v54, %v4847_v57  ;;  %v5992_v49 = vrot.slane %v5964_v6, %v16594_v63  ;;  %v2208_v27 = vadd.f32 %v2141_v38, %v16619_v9 }
 0x38a   : > { %v4944_v2 = vadd.f32 %v16617_v50, %v4848_v30  ;;  %v5414_v39 = vcombine.low %v5406_v15, %v5413_v5  ;;  %v5273_v61 = vmax.f32 %v5241_v47, 0.0  ;;  %v13319_v52 = vrot.slane %v10251_v40, %v16594_v63  ;;  %v2145_v5 = vpop.permute.xlu0 %2144  ;;  %v2147_v40 = vpop.permute.xlu1 %2146 }
 0x38b   : > { %v5274_v17 = vmax.f32 %v5242_v33, 0.0  ;;  %v5184_v60 = vmul.f32 %v12794_v0, %v4943_v24  ;;  %v5994_v28 = vcombine.low %v5985_v34, %v5992_v49  ;;  %v7013_v43 = vcombine.high %v10252_v42, %v10252_v42 }
 0x38c   : > { %v5185_v18 = vmul.f32 %v12820_v4, %v4944_v2  ;;  %v10367_v41 = vpack.c.bf16 %v5414_v39, %v5414_v39  ;;  %v13324_v3 = vrot.slane %v10252_v42, %v16594_v63  ;;  %v7281_v1 = vcombine.low %v13290_v21, %v13293_v37  ;;  %v13341_v42 = vld [vmem:[%s15736_s3 + $0x80] ss:$8 sps:$4 sm:$0xff]  }
 0x38d   : > { %v5243_v56 = vadd.f32 %v12797_v62, %v5184_v60  ;;  %v5415_v57 = vcombine.low %v5273_v61, %v5274_v17  ;;  %v6008_v30 = vrot.slane %v5994_v28, %v16594_v63  ;;  %v13330_v6 = vrot.slane %v7013_v43, %v16594_v63 }
 0x38e   : > { %v5244_v12 = vadd.f32 %v12824_v46, %v5185_v18  ;;  %v5530_v15 = vshrl.u32 %v10367_v41, 16  ;;  %v5533_v44 = vshll.u32 %v10367_v41, 16  ;;  %v7028_v38 = vcombine.high %v13324_v3, %v13324_v3  ;;  %v5599_v41 = vld [vmem:[#allocation2 + $0x30] sm:$0xf] }
 0x38f   : > { %v5275_v47 = vmax.f32 %v5243_v56, 0.0  ;;  %v6009_v24 = vcombine.low %v6001_v22, %v6008_v30  ;;  %v10274_v50 = vcombine.high %v13290_v21, %v13293_v37  ;;  %v7283_v2 = vcombine.low %v13319_v52, %v13324_v3  ;;  %v13349_v22 = vld [vmem:[%s15736_s3 + $0x94] ss:$8 sps:$4 sm:$0xff]  }
 0x390   : > { %v5276_v33 = vmax.f32 %v5244_v12, 0.0  ;;  %v5532_v54 = vrot.slane %v5530_v15, 7  ;;  %v2209_v17 = vadd.f32 %v2143_v26, %v16448_v19  ;;  %v7284_v34 = vcombine.low %v13330_v6, %v7028_v38  ;;  %v5602_v26 = vld [vmem:[#allocation2 + $0x34] sm:$0x1] }
 0x391   : > { %v7291_v49 = vrot.slane %v7281_v1, %v16594_v63  ;;  %10237 = vmatmul.mubr.msk.bf16.vlgmr.msra.gmra.mrb[40].mxu1 %vm700_vm5, %v6009_v24  ;;  %v16620_v60 = vrot.slane %v16448_v19, 2  ;;  %v7298_v9 = vrot.slane %v10274_v50, %v16594_v63  ;;  %v5423_v28 = vrot.slane %v5415_v57, %v11349_v51  ;;  %v13366_v30 = vld.sshfl [vmem:[#allocation2 + $0x18] sm:$0x33 pattern:$0x75316420]  ;;  %v13376_v50 = vpop.permute.xlu1 %3462 }
 0x392   : > { %v5416_v39 = vcombine.low %v5275_v47, %v5276_v33  ;;  %v5535_v21 = vor.u32 %v5533_v44, %v5532_v54  ;;  %v5536_v61 = vrot.slane %v5532_v54, 4  ;;  %v7305_v56 = vrot.slane %v7283_v2, %v16594_v63  ;;  %v13364_v44 = vpop.permute.xlu0 %3460  ;;  %10428 = vmatpush1.bf16.msra.mxu1 %v13341_v42  ;;  %v13372_v57 = vld [vmem:[%s15736_s3 + $0x90] ss:$8 sps:$4 sm:$0xff]   ;;  %16624 = vst [vmem:[#allocation20_spill] sm:$0xff] %v13376_v50  ;;  %v13382_v2 = vld [vmem:[%s15736_s3 + $0xa4] ss:$8 sps:$4 sm:$0xff]  }
 0x393   : > { %v2304_v18 = vadd.f32 %v16620_v60, %v2208_v27  ;;  %v7312_v12 = vrot.slane %v7284_v34, %v16594_v63  ;;  %v16621_v1 = vmov 0   ;;  %v7313_v27 = vcombine.low %v7291_v49, %v7298_v9  ;;  %16622 = vst [vmem:[#allocation21_spill] sm:$0xff] %v13364_v44  ;;  %v10214_v24 = vld.sshfl [vmem:[#allocation2 + $0x14] sm:$0x1 pattern:$0x75316420]  ;;  %10425 = vmatprep.subr.bf16.mxu1 %v13349_v22 }
 0x394   : > { %v5430_v43 = vrot.slane %v5416_v39, %v11349_v51  ;;  %6303 = vmatprep.mubr.bf16.mxu1 %v16621_v1  ;;  %v5600_v15 = vsel %vm10952_vm9, %v5535_v21, %v5599_v41  ;;  %v5603_v19 = vsel %vm10961_vm10, %v5536_v61, %v5602_v26  ;;  %v16623_v33 = vrot.slane %v16496_v20, 2  ;;  %v16625_v49 = vld [vmem:[#allocation117_spill] sm:$0xff] }
 0x395   : > { %5601 = vst [vmem:[#allocation2 + $0x30] sm:$0xf] %v5600_v15  ;;  %5604 = vst [vmem:[#allocation2 + $0x34] sm:$0x1] %v5603_v19  ;;  %v7314_v54 = vcombine.low %v7305_v56, %v7312_v12  ;;  %v2210_v39 = vadd.f32 %v2145_v5, %v16496_v20  ;;  %v2211_v34 = vadd.f32 %v2147_v40, %v16503_v10  ;;  %v13407_v40 = vld [vmem:[%s15736_s3 + $0xa0] ss:$8 sps:$4 sm:$0xff]  }
 0x396   : > { %v5431_v47 = vcombine.low %v5423_v28, %v5430_v43  ;;  %v2305_v38 = vadd.f32 %v16623_v33, %v2209_v17  ;;  %v3296_v21 = vadd.f32 %v16625_v49, %v2304_v18  ;;  %v5710_v17 = vcombine.high %v13293_v37, %v13293_v37  ;;  %10429 = vmatpush1.bf16.msra.mxu1 %v13372_v57  ;;  %v16626_v56 = vld [vmem:[#allocation127_spill] sm:$0xff]  ;;  %v13425_v33 = vpop.permute.xlu0 %3464  ;;  %v16634_v12 = vld [vmem:[#allocation124_spill] sm:$0xff] }
 0x397   : > { %v7321_v60 = vrot.slane %v7313_v27, %v16594_v63  ;;  %v7328_v9 = vrot.slane %v7314_v54, %v16594_v63  ;;  %v13393_v41 = vrot.slane %v13366_v30, %v16594_v63  ;;  %v13396_v26 = vrot.slane %v10214_v24, %v16594_v63  ;;  %10426 = vmatprep.subr.bf16.mxu1 %v13382_v2 }
 0x398   : > { %v10368_v61 = vpack.c.bf16 %v5431_v47, %v5431_v47  ;;  %v6010_v20 = vcombine.low %v5710_v17, %v13319_v52  ;;  %v6011_v5 = vcombine.low %v13324_v3, %v13330_v6  ;;  %v10226_v37 = vcombine.high %v13324_v3, %v13330_v6  ;;  %v13415_v52 = vld [vmem:[%s15736_s3 + $0xb4] ss:$8 sps:$4 sm:$0xff]   ;;  %16628 = vst [vmem:[#allocation95_spill] sm:$0xff] %v13425_v33 }
 0x399   : > { %v7329_v28 = vcombine.low %v7321_v60, %v7328_v9  ;;  %v3528_v43 = vadd.f32 %v13364_v44, %v3296_v21  ;;  %v16627_v3 = vrot.slane %v16503_v10, 2  ;;  %v6013_v19 = vcombine.low %v13396_v26, %v13393_v41 }
 0x39a   : > { %v5538_v18 = vshrl.u32 %v10368_v61, 16  ;;  %v6020_v27 = vrot.slane %v6010_v20, %v16594_v63  ;;  %v13423_v47 = vrot.slane %v6011_v5, %v16594_v63  ;;  %v5541_v24 = vshll.u32 %v10368_v61, 16  ;;  %v16631_v61 = vld [vmem:[#allocation119_spill] sm:$0xff]  ;;  %10430 = vmatpush1.bf16.msra.mxu1 %v13407_v40  ;;  %v4782_v32 = vpop.permute.xlu0 %4781 }
 0x39b   : > { %v2306_v15 = vadd.f32 %v16627_v3, %v2210_v39  ;;  %10286 = vmatmul.mubr.msk.bf16.vlgmr.msra.gmra.mrb[52].mxu0 %vm700_vm5, %v7329_v28  ;;  %v16629_v49 = vrot.slane %v16572_v45, 2  ;;  %v3297_v10 = vadd.f32 %v16600_v7, %v2305_v38  ;;  %v13431_v39 = vpop.permute.xlu1 %3466  ;;  %v13434_v17 = vrot.slane %v10226_v37, %v16594_v63  ;;  %v13446_v45 = vld [vmem:[%s15736_s3 + $0xb0] ss:$8 sps:$4 sm:$0xff]   ;;  %10427 = vmatprep.subr.bf16.mxu1 %v13415_v52 }
 0x39c   : > { %v5540_v54 = vrot.slane %v5538_v18, 7  ;;  %16630 = vst [vmem:[#allocation106_spill] sm:$0xff] %v13431_v39  ;;  %v13437_v60 = vrot.slane %v6013_v19, %v16594_v63  ;;  %v6042_v9 = vcombine.low %v6020_v27, %v13423_v47  ;;  %7623 = vmatprep.mubr.bf16.mxu0 %v16621_v1  ;;  %v5605_v38 = vld [vmem:[#allocation2 + $0x38] sm:$0xf]  ;;  %v16632_v18 = vrot.slane %v16600_v7, 2  ;;  %8902 = vmatpush1.bf16.msra.mxu0 %v13341_v42 }
 0x39d   : > { %v2307_v21 = vadd.f32 %v16629_v49, %v2211_v34  ;;  %v5608_v34 = vld [vmem:[#allocation2 + $0x3c] sm:$0x1]  ;;  %v3529_v3 = vadd.f32 %v13376_v50, %v3297_v10  ;;  %v16633_v49 = vld [vmem:[#allocation128_spill] sm:$0xff]  ;;  %8903 = vmatprep.subr.bf16.mxu0 %v13349_v22  ;;  %v3298_v42 = vadd.f32 %v16605_v36, %v2306_v15  ;;  %v7051_v15 = vcombine.high %v13366_v30, %v13366_v30 }
 0x39e   : > { %v5543_v5 = vor.u32 %v5541_v24, %v5540_v54  ;;  %v5544_v37 = vrot.slane %v5540_v54, 4  ;;  %v3624_v28 = vadd.f32 %v16632_v18, %v3528_v43  ;;  %v6043_v19 = vcombine.low %v13434_v17, %v13437_v60  ;;  %v10255_v27 = vld.sshfl [vmem:[#allocation2 + $0x1c] sm:$0x1 pattern:$0x75316420]  ;;  %v16636_v50 = vld [vmem:[#allocation132_spill] sm:$0xff]  ;;  %10431 = vmatpush1.bf16.msra.mxu1 %v13446_v45 }
 0x39f   : > { %v16635_v54 = vrot.slane %v16605_v36, 2  ;;  %v10256_v10 = vld.sshfl [vmem:[#allocation2 + $0x20] sm:$0x33 pattern:$0x75316420]  ;;  %v6050_v18 = vrot.slane %v6042_v9, %v16594_v63  ;;  %v3299_v22 = vadd.f32 %v16631_v61, %v2307_v21  ;;  %v7029_v36 = vcombine.high %v13330_v6, %v13330_v6  ;;  %v4784_v9 = vpop.permute.xlu1 %4783 }
 0x3a0   : > { %v5606_v7 = vsel %vm10952_vm9, %v5543_v5, %v5605_v38  ;;  %v5609_v43 = vsel %vm10961_vm10, %v5544_v37, %v5608_v34  ;;  %v6057_v20 = vrot.slane %v6043_v19, %v16594_v63  ;;  %v4884_v38 = vrot.slane %v16636_v50, 2  ;;  %v16637_v5 = vld [vmem:[#allocation126_spill] sm:$0xff]  ;;  %8904 = vmatpush1.bf16.msra.mxu0 %v13372_v57 }
 0x3a1   : > { %v3625_v24 = vadd.f32 %v16635_v54, %v3529_v3  ;;  %5607 = vst [vmem:[#allocation2 + $0x38] sm:$0xf] %v5606_v7  ;;  %5610 = vst [vmem:[#allocation2 + $0x3c] sm:$0x1] %v5609_v43  ;;  %v3530_v34 = vadd.f32 %v13425_v33, %v3298_v42  ;;  %v4617_v37 = vadd.f32 %v16637_v5, %v3624_v28  ;;  %8905 = vmatprep.subr.bf16.mxu0 %v13382_v2 }
 0x3a2   : > { %v6058_v3 = vcombine.low %v6050_v18, %v6057_v20  ;;  %v7081_v21 = vrot.slane %v10255_v27, %v16594_v63  ;;  %v13479_v19 = vrot.slane %v10256_v10, %v16594_v63  ;;  %v7065_v43 = vrot.slane %v7051_v15, %v16594_v63 }
 0x3a3   : > { %v4618_v7 = vadd.f32 %v16618_v48, %v3625_v24  ;;  %v4849_v28 = vadd.f32 %v4782_v32, %v4617_v37  ;;  %v7330_v6 = vcombine.low %v7029_v36, %v13396_v26  ;;  %v5785_v30 = vcombine.high %v13393_v41, %v13393_v41 }
 0x3a4   : > { %10238 = vmatmul.mubr.msk.bf16.gmra.mrb[44].mxu1 %vm700_vm5, %v6058_v3  ;;  %v3531_v57 = vadd.f32 %v13431_v39, %v3299_v22  ;;  %v7333_v20 = vcombine.low %v7081_v21, %v13479_v19  ;;  %v5808_v54 = vcombine.high %v10256_v10, %v10256_v10  ;;  %v16638_v24 = vrot.slane %v16618_v48, 2  ;;  %8906 = vmatpush1.bf16.msra.mxu0 %v13407_v40 }
 0x3a5   : > { %v4850_v27 = vadd.f32 %v4784_v9, %v4618_v7  ;;  %v7331_v32 = vcombine.low %v13393_v41, %v7065_v43  ;;  %v10275_v2 = vcombine.high %v13393_v41, %v7065_v43  ;;  %v7340_v26 = vrot.slane %v7330_v6, %v16594_v63  ;;  %6313 = vmatprep.mubr.bf16.mxu1 %v16621_v1 }
 0x3a6   : > { %v4945_v42 = vadd.f32 %v16638_v24, %v4849_v28  ;;  %v7361_v18 = vrot.slane %v7333_v20, %v16594_v63  ;;  %v16639_v5 = vrot.slane %v16626_v56, 2  ;;  %v5786_v37 = vcombine.high %v7065_v43, %v7065_v43  ;;  %8907 = vmatprep.subr.bf16.mxu0 %v13415_v52 }
 0x3a7   : > { %v5822_v36 = vrot.slane %v5808_v54, %v16594_v63  ;;  %v7347_v10 = vrot.slane %v7331_v32, %v16594_v63  ;;  %v7354_v41 = vrot.slane %v10275_v2, %v16594_v63  ;;  %v6059_v15 = vcombine.low %v7065_v43, %v5785_v30 }
 0x3a8   : > { %v4946_v22 = vadd.f32 %v16639_v5, %v4850_v27  ;;  %v5186_v48 = vmul.f32 %v12769_v53, %v4945_v42  ;;  %v6060_v3 = vcombine.low %v5786_v37, %v7081_v21  ;;  %8908 = vmatpush1.bf16.msra.mxu0 %v13446_v45  ;;  %v16640_v54 = vrot.slane %v16631_v61, 2  ;;  %v10258_v5 = vld.sshfl [vmem:[#allocation2 + $0x28] sm:$0x33 pattern:$0x75316420] }
 0x3a9   : > { %v6061_v7 = vcombine.low %v13479_v19, %v5822_v36  ;;  %v10227_v28 = vcombine.high %v13479_v19, %v5822_v36  ;;  %v7362_v20 = vcombine.low %v7340_v26, %v7347_v10  ;;  %v7363_v40 = vcombine.low %v7354_v41, %v7361_v18  ;;  %v4786_v26 = vpop.permute.xlu0 %4785 }
 0x3aa   : > { %v5187_v9 = vmul.f32 %v12803_v59, %v4946_v22  ;;  %v5245_v6 = vadd.f32 %v12772_v13, %v5186_v48  ;;  %v13510_v53 = vrot.slane %v6059_v15, %v16594_v63  ;;  %v13514_v43 = vrot.slane %v6060_v3, %v16594_v63  ;;  %v4788_v48 = vpop.permute.xlu1 %4787  ;;  %v10220_v3 = vld.sshfl [vmem:[#allocation2 + $0x2c] sm:$0x1 pattern:$0x75316420] }
 0x3ab   : > { %v13517_v52 = vrot.slane %v6061_v7, %v16594_v63  ;;  %v13520_v59 = vrot.slane %v10227_v28, %v16594_v63  ;;  %v7370_v13 = vrot.slane %v7362_v20, %v16594_v63  ;;  %v7377_v30 = vrot.slane %v7363_v40, %v16594_v63  ;;  %v10221_v28 = vld.sshfl [vmem:[#allocation2 + $0x30] sm:$0x33 pattern:$0x75316420] }
 0x3ac   : > { %v5246_v27 = vadd.f32 %v12807_v58, %v5187_v9  ;;  %v5277_v21 = vmax.f32 %v5245_v6, 0.0  ;;  %v3626_v24 = vadd.f32 %v16640_v54, %v3530_v34  ;;  %v10257_v58 = vld.sshfl [vmem:[#allocation2 + $0x24] sm:$0x1 pattern:$0x75316420]  ;;  %v6091_v32 = vcombine.low %v13510_v53, %v13514_v43 }
 0x3ad   : > { %v6092_v2 = vcombine.low %v13517_v52, %v13520_v59  ;;  %v16641_v18 = vrot.slane %v16634_v12, 2  ;;  %v7378_v22 = vcombine.low %v7370_v13, %v7377_v30  ;;  %v7104_v61 = vcombine.high %v13479_v19, %v13479_v19 }
 0x3ae   : > { %v5278_v42 = vmax.f32 %v5246_v27, 0.0  ;;  %v4619_v37 = vadd.f32 %v16626_v56, %v3626_v24  ;;  %v7105_v34 = vcombine.high %v5822_v36, %v5822_v36  ;;  %v6099_v41 = vrot.slane %v6091_v32, %v16594_v63 }
 0x3af   : > { %v3627_v45 = vadd.f32 %v16641_v18, %v3531_v57  ;;  %v6106_v15 = vrot.slane %v6092_v2, %v16594_v63  ;;  %10287 = vmatmul.mubr.msk.bf16.gmra.mrb[56].mxu0 %vm700_vm5, %v7378_v22  ;;  %v7119_v57 = vrot.slane %v10257_v58, %v16594_v63  ;;  %v7127_v56 = vcombine.high %v10258_v5, %v10258_v5 }
 0x3b0   : > { %v13536_v10 = vcombine.low %v5277_v21, %v5278_v42  ;;  %v4851_v12 = vadd.f32 %v4786_v26, %v4619_v37  ;;  %v7134_v7 = vrot.slane %v10258_v5, %v16594_v63  ;;  %7633 = vmatprep.mubr.bf16.mxu0 %v16621_v1  ;;  %v7379_v40 = vcombine.low %v5822_v36, %v7104_v61 }
 0x3b1   : > { %v4620_v9 = vadd.f32 %v16633_v49, %v3627_v45  ;;  %v6107_v6 = vcombine.low %v6099_v41, %v6106_v15  ;;  %v16642_v27 = vrot.slane %v16633_v49, 2  ;;  %v7141_v13 = vrot.slane %v7127_v56, %v16594_v63  ;;  %v10261_v15 = vld.sshfl [vmem:[#allocation2 + $0x34] sm:$0x1 pattern:$0x75316420] }
 0x3b2   : > { %v5440_v19 = vrot.slane %v13536_v10, %v11349_v51  ;;  %v7380_v30 = vcombine.low %v7105_v34, %v7119_v57  ;;  %v5861_v54 = vcombine.high %v7134_v7, %v7134_v7  ;;  %v7389_v58 = vrot.slane %v7379_v40, %v16594_v63  ;;  %v10262_v56 = vld.sshfl [vmem:[#allocation2 + $0x38] sm:$0x33 pattern:$0x75316420] }
 0x3b3   : > { %v4852_v20 = vadd.f32 %v4788_v48, %v4620_v9  ;;  %v4947_v21 = vadd.f32 %v16642_v27, %v4851_v12  ;;  %10239 = vmatmul.mubr.msk.bf16.gmra.mrb[48].mxu1 %vm700_vm5, %v6107_v6  ;;  %v5876_v42 = vrot.slane %v10220_v3, %v16594_v63  ;;  %v5884_v32 = vcombine.high %v10221_v28, %v10221_v28 }
 0x3b4   : > { %v7381_v36 = vcombine.low %v7134_v7, %v7141_v13  ;;  %v10276_v26 = vcombine.high %v7134_v7, %v7141_v13  ;;  %v7396_v49 = vrot.slane %v7380_v30, %v16594_v63  ;;  %6323 = vmatprep.mubr.bf16.mxu1 %v16621_v1  ;;  %v5862_v45 = vcombine.high %v7141_v13, %v7141_v13 }
 0x3b5   : > { %v4948_v24 = vadd.f32 %v4884_v38, %v4852_v20  ;;  %v5188_v2 = vmul.f32 %v12794_v0, %v4947_v21  ;;  %v5891_v5 = vrot.slane %v10221_v28, %v16594_v63  ;;  %v5898_v50 = vrot.slane %v5884_v32, %v16594_v63 }
 0x3b6   : > { %v7403_v22 = vrot.slane %v7381_v36, %v16594_v63  ;;  %v7410_v37 = vrot.slane %v10276_v26, %v16594_v63  ;;  %v7411_v0 = vcombine.low %v7389_v58, %v7396_v49  ;;  %v6108_v61 = vcombine.low %v7119_v57, %v7134_v7 }
 0x3b7   : > { %v5189_v18 = vmul.f32 %v12820_v4, %v4948_v24  ;;  %v5247_v38 = vadd.f32 %v12797_v62, %v5188_v2  ;;  %v6109_v34 = vcombine.low %v7141_v13, %v5861_v54  ;;  %v6110_v41 = vcombine.low %v5862_v45, %v5876_v42 }
 0x3b8   : > { %v7412_v4 = vcombine.low %v7403_v22, %v7410_v37  ;;  %v7419_v3 = vrot.slane %v7411_v0, %v16594_v63  ;;  %v6111_v12 = vcombine.low %v5891_v5, %v5898_v50  ;;  %v13567_v62 = vrot.slane %v6108_v61, %v16594_v63 }
 0x3b9   : > { %v5248_v48 = vadd.f32 %v12824_v46, %v5189_v18  ;;  %v5279_v9 = vmax.f32 %v5247_v38, 0.0  ;;  %v13570_v6 = vrot.slane %v6109_v34, %v16594_v63  ;;  %v13573_v20 = vrot.slane %v6110_v41, %v16594_v63  ;;  %v10224_v18 = vld.sshfl [vmem:[#allocation2 + $0x3c] sm:$0x1 pattern:$0x75316420] }
 0x3ba   : > { %v7426_v46 = vrot.slane %v7412_v4, %v16594_v63  ;;  %v13577_v57 = vrot.slane %v6111_v12, %v16594_v63  ;;  %v7180_v7 = vcombine.high %v5891_v5, %v5891_v5  ;;  %v7181_v40 = vcombine.high %v5898_v50, %v5898_v50 }
 0x3bb   : > { %v5280_v28 = vmax.f32 %v5248_v48, 0.0  ;;  %v6140_v21 = vcombine.low %v13567_v62, %v13570_v6  ;;  %v7195_v13 = vrot.slane %v10261_v15, %v16594_v63  ;;  %v7203_v30 = vcombine.high %v10262_v56, %v10262_v56 }
 0x3bc   : > { %v7427_v54 = vcombine.low %v7419_v3, %v7426_v46  ;;  %v6141_v24 = vcombine.low %v13573_v20, %v13577_v57  ;;  %v13585_v58 = vrot.slane %v10262_v56, %v16594_v63  ;;  %v7428_v32 = vcombine.low %v5876_v42, %v5891_v5 }
 0x3bd   : > { %v5433_v27 = vcombine.low %v5279_v9, %v5280_v28  ;;  %v6148_v36 = vrot.slane %v6140_v21, %v16594_v63  ;;  %v13590_v26 = vrot.slane %v7203_v30, %v16594_v63  ;;  %v7429_v49 = vcombine.low %v5898_v50, %v7180_v7 }
 0x3be   : > { %10288 = vmatmul.mubr.msk.bf16.gmra.mrb[60].mxu0 %vm700_vm5, %v7427_v54  ;;  %v6155_v45 = vrot.slane %v6141_v24, %v16594_v63  ;;  %v7430_v38 = vcombine.low %v7181_v40, %v7195_v13  ;;  %v7438_v22 = vrot.slane %v7428_v32, %v16594_v63  ;;  %v5937_v37 = vcombine.high %v13585_v58, %v13585_v58 }
 0x3bf   : > { %v5447_v2 = vrot.slane %v5433_v27, %v11349_v51  ;;  %7643 = vmatprep.mubr.bf16.mxu0 %v16621_v1  ;;  %v7431_v0 = vcombine.low %v13585_v58, %v13590_v26  ;;  %v7445_v48 = vrot.slane %v7429_v49, %v16594_v63  ;;  %v5938_v61 = vcombine.high %v13590_v26, %v13590_v26  ;;  %v5611_v49 = vld [vmem:[#allocation2 + $0x40] sm:$0xf] }
 0x3c0   : > { %v6156_v34 = vcombine.low %v6148_v36, %v6155_v45  ;;  %v7452_v41 = vrot.slane %v7430_v38, %v16594_v63  ;;  %v13608_v15 = vrot.slane %v10224_v18, %v16594_v63  ;;  %v10228_v9 = vcombine.high %v5891_v5, %v5898_v50  ;;  %v5614_v18 = vld [vmem:[#allocation2 + $0x44] sm:$0x1] }
 0x3c1   : > { %v5448_v42 = vcombine.low %v5440_v19, %v5447_v2  ;;  %v7459_v10 = vrot.slane %v7431_v0, %v16594_v63  ;;  %v7460_v19 = vcombine.low %v7438_v22, %v7445_v48  ;;  %v6158_v3 = vcombine.low %v7195_v13, %v13585_v58 }
 0x3c2   : > { %10240 = vmatmul.mubr.msk.bf16.gmra.mrb[52].mxu1 %vm700_vm5, %v6156_v34  ;;  %v6159_v12 = vcombine.low %v13590_v26, %v5937_v37  ;;  %v6160_v56 = vcombine.low %v5938_v61, %v13608_v15  ;;  %v6167_v7 = vrot.slane %v10228_v9, %v16594_v63  ;;  %v8683_v0 = vcombine.low %v13520_v59, %v13567_v62  ;;  %v10314_v9 = vld.sshfl [vmem:[#allocation2 + $0x4c] sm:$0x1 pattern:$0x75316420] }
 0x3c3   : > { %v10369_v4 = vpack.c.bf16 %v5448_v42, %v5448_v42  ;;  %v7461_v46 = vcombine.low %v7452_v41, %v7459_v10  ;;  %6333 = vmatprep.mubr.bf16.mxu1 %v16621_v1  ;;  %v13618_v5 = vrot.slane %v6158_v3, %v16594_v63  ;;  %v7468_v13 = vrot.slane %v7460_v19, %v16594_v63 }
 0x3c4   : > { %v13621_v50 = vrot.slane %v6159_v12, %v16594_v63  ;;  %v13624_v27 = vrot.slane %v6160_v56, %v16594_v63  ;;  %v8682_v48 = vcombine.low %v13514_v43, %v13517_v52  ;;  %v8732_v23 = vcombine.low %v13577_v57, %v6167_v7 }
 0x3c5   : > { %v5546_v28 = vshrl.u32 %v10369_v4, 16  ;;  %v5549_v40 = vshll.u32 %v10369_v4, 16  ;;  %v7475_v30 = vrot.slane %v7461_v46, %v16594_v63  ;;  %v6189_v54 = vcombine.low %v6167_v7, %v13618_v5 }
 0x3c6   : > { %v6190_v24 = vcombine.low %v13621_v50, %v13624_v27  ;;  %v8697_v61 = vrot.slane %v8683_v0, %v16594_v63  ;;  %v8634_v34 = vcombine.low %v13437_v60, %v13510_v53  ;;  %v8561_v41 = vcombine.high %v10313_v11, %v10313_v11 }
 0x3c7   : > { %v5548_v21 = vrot.slane %v5546_v28, 7  ;;  %v7476_v36 = vcombine.low %v7468_v13, %v7475_v30  ;;  %v6197_v45 = vrot.slane %v6189_v54, %v16594_v63  ;;  %v8690_v59 = vrot.slane %v8682_v48, %v16594_v63 }
 0x3c8   : > { %v6204_v38 = vrot.slane %v6190_v24, %v16594_v63  ;;  %v10277_v62 = vcombine.high %v13585_v58, %v13590_v26  ;;  %v8746_v4 = vrot.slane %v8732_v23, %v16594_v63  ;;  %v8568_v52 = vrot.slane %v10313_v11, %v16594_v63 }
 0x3c9   : > { %v5551_v32 = vor.u32 %v5549_v40, %v5548_v21  ;;  %v5552_v2 = vrot.slane %v5548_v21, 4  ;;  %10289 = vmatmul.mubr.msk.bf16.gmra.mrb[64].mxu0 %vm700_vm5, %v7476_v36  ;;  %v8575_v10 = vrot.slane %v8561_v41, %v16594_v63  ;;  %v8698_v57 = vcombine.low %v8690_v59, %v8697_v61 }
 0x3ca   : > { %v6205_v42 = vcombine.low %v6197_v45, %v6204_v38  ;;  %7653 = vmatprep.mubr.bf16.mxu0 %v16621_v1  ;;  %v8633_v60 = vcombine.low %v13423_v47, %v13434_v17  ;;  %v8731_v53 = vcombine.low %v13570_v6, %v13573_v20  ;;  %v8648_v58 = vrot.slane %v8634_v34, %v16594_v63 }
 0x3cb   : > { %v5612_v22 = vsel %vm10952_vm9, %v5551_v32, %v5611_v49  ;;  %v5615_v37 = vsel %vm10961_vm10, %v5552_v2, %v5614_v18  ;;  %v8591_v46 = vrot.slane %v10314_v9, %v16594_v63  ;;  %v8576_v17 = vcombine.high %v8568_v52, %v8568_v52 }
 0x3cc   : > { %5613 = vst [vmem:[#allocation2 + $0x40] sm:$0xf] %v5612_v22  ;;  %5616 = vst [vmem:[#allocation2 + $0x44] sm:$0x1] %v5615_v37  ;;  %10241 = vmatmul.mubr.msk.bf16.gmra.mrb[56].mxu1 %vm700_vm5, %v6205_v42  ;;  %v8641_v47 = vrot.slane %v8633_v60, %v16594_v63  ;;  %v8577_v40 = vcombine.high %v8575_v10, %v8575_v10  ;;  %v8739_v30 = vrot.slane %v8731_v53, %v16594_v63 }
 0x3cd   : > { %8943 = vmatprep.mubr.bf16.mxu1 %v16621_v1  ;;  %v7487_v54 = vrot.slane %v10277_v62, %v16594_v63  ;;  %v8799_v49 = vcombine.low %v8575_v10, %v8576_v17  ;;  %v8780_v0 = vcombine.low %v13618_v5, %v13621_v50 }
 0x3ce   : > { %v8747_v2 = vcombine.low %v8739_v30, %v8746_v4  ;;  %v8800_v18 = vcombine.low %v8577_v40, %v8591_v46 }
 0x3cf   : > { %v8821_v23 = vrot.slane %v8799_v49, %v16594_v63  ;;  %v8788_v62 = vrot.slane %v8780_v0, %v16594_v63 }
 0x3d3   : > { %v10264_v43 = vld.sshfl [vmem:[#allocation2 + $0x40] sm:$0x33 pattern:$0x75316420] }
 0x3d4   : > { %v10265_v19 = vld.sshfl [vmem:[#allocation2 + $0x44] sm:$0x1 pattern:$0x75316420]  ;;  %v7241_v3 = vcombine.high %v10264_v43, %v10264_v43  ;;  %v7248_v12 = vrot.slane %v10264_v43, %v16594_v63  ;;  %10336 = vmatmul.mubr.msk.bf16.vlgmr.msra.gmra.mrb[60].mxu1 %vm700_vm5, %v8698_v57 }
 0x3d5   : > { %8953 = vmatprep.mubr.bf16.mxu1 %v16621_v1  ;;  %v7271_v7 = vrot.slane %v10265_v19, %v16594_v63 }
 0x3d6   : > { %v7255_v26 = vrot.slane %v7241_v3, %v16594_v63  ;;  %v7256_v56 = vcombine.high %v7248_v12, %v7248_v12  ;;  %v7478_v28 = vcombine.low %v13608_v15, %v7248_v12  ;;  %v8649_v15 = vcombine.low %v8641_v47, %v8648_v58 }
 0x3d7   : > { %v8798_v48 = vcombine.low %v7271_v7, %v8568_v52 }
 0x3d8   : > { %v7257_v6 = vcombine.high %v7255_v26, %v7255_v26  ;;  %v7479_v20 = vcombine.low %v7255_v26, %v7256_v56  ;;  %v7494_v21 = vrot.slane %v7478_v28, %v16594_v63  ;;  %v8751_v13 = vcombine.low %v7248_v12, %v7255_v26 }
 0x3d9   : > { %v10326_v36 = vcombine.high %v7248_v12, %v7255_v26  ;;  %v8814_v5 = vrot.slane %v8798_v48, %v16594_v63 }
 0x3da   : > { %v7480_v24 = vcombine.low %v7257_v6, %v7271_v7  ;;  %v8779_v32 = vrot.slane %v8751_v13, %v16594_v63  ;;  %v7501_v45 = vrot.slane %v7479_v20, %v16594_v63  ;;  %v7509_v22 = vcombine.low %v7487_v54, %v7494_v21 }
 0x3db   : > { %v8807_v11 = vrot.slane %v10326_v36, %v16594_v63 }
 0x3dc   : > { %v7508_v38 = vrot.slane %v7480_v24, %v16594_v63  ;;  %v8781_v37 = vcombine.low %v13624_v27, %v8779_v32  ;;  %10337 = vmatmul.mubr.msk.bf16.gmra.mrb[64].mxu1 %vm700_vm5, %v8747_v2  ;;  %v7517_v61 = vrot.slane %v7509_v22, %v16594_v63  ;;  %v8828_v27 = vrot.slane %v8800_v18, %v16594_v63 }
 0x3dd   : > { %8963 = vmatprep.mubr.bf16.mxu1 %v16621_v1  ;;  %v8829_v9 = vcombine.low %v8807_v11, %v8814_v5 }
 0x3de   : > { %v7510_v42 = vcombine.low %v7501_v45, %v7508_v38  ;;  %v8795_v41 = vrot.slane %v8781_v37, %v16594_v63  ;;  %v8830_v4 = vcombine.low %v8821_v23, %v8828_v27 }
 0x3df   : > { %v8837_v43 = vrot.slane %v8829_v9, %v16594_v63 }
 0x3e0   : > { %v7524_v34 = vrot.slane %v7510_v42, %v16594_v63  ;;  %v8796_v50 = vcombine.low %v8788_v62, %v8795_v41  ;;  %v8844_v52 = vrot.slane %v8830_v4, %v16594_v63 }
 0x3e2   : > { %v7525_v59 = vcombine.low %v7517_v61, %v7524_v34  ;;  %v8845_v10 = vcombine.low %v8837_v43, %v8844_v52 }
 0x3e4   : > { %10290 = vmatmul.mubr.msk.bf16.gmra.mrb[68].mxu0 %vm700_vm5, %v7525_v59  ;;  %10338 = vmatmul.mubr.msk.bf16.gmra.mrb[68].mxu1 %vm700_vm5, %v8796_v50 }
 0x3e5   : > { %8933 = vmatprep.mubr.bf16.mxu0 %v16621_v1  ;;  %8973 = vmatprep.mubr.bf16.mxu1 %v16621_v1 }
 0x3ec   : > { %10335 = vmatmul.mubr.msk.bf16.vlgmr.msra.gmra.mrb[72].mxu0 %vm700_vm5, %v8649_v15  ;;  %10339 = vmatmul.mubr.msk.bf16.gmra.mrb[72].mxu1 %vm700_vm5, %v8845_v10 }
 0x464   : > { %v6295_v57 = vpop.f32.mrb[40].mxu1 }
 0x465   : > { %v6297_v19 = vpop.f32.mrb[41].mxu1 }
 0x466   : > { %v6364_v3 = vcombine.low %v6295_v57, %v6297_v19  ;;  %v6365_v12 = vcombine.high %v6295_v57, %v6297_v19  ;;  %v6299_v60 = vpop.f32.mrb[42].mxu1 }
 0x467   : > { %v6301_v53 = vpop.f32.mrb[43].mxu1 }
 0x468   : > { %v13696_v58 = vrot.slane %v6364_v3, %v11349_v51  ;;  %v13699_v1 = vrot.slane %v6365_v12, %v11349_v51  ;;  %v6382_v26 = vcombine.low %v6299_v60, %v6301_v53  ;;  %v6383_v56 = vcombine.high %v6299_v60, %v6301_v53 }
 0x46a   : > { %v13703_v63 = vcombine.high %v13696_v58, %v13696_v58  ;;  %v13707_v28 = vcombine.high %v13699_v1, %v13699_v1  ;;  %v13710_v46 = vrot.slane %v6382_v26, %v11349_v51  ;;  %v6613_v7 = vrot.slane %v13699_v1, 7 }
 0x46b   : > { %v13714_v47 = vrot.slane %v6383_v56, %v11349_v51  ;;  %v10242_v17 = vrot.slane %v13696_v58, 9 }
 0x46c   : > { %v6610_v40 = vrot.slane %v13703_v63, 7  ;;  %v6616_v6 = vrot.slane %v13707_v28, 7  ;;  %v13721_v21 = vcombine.high %v13710_v46, %v13710_v46  ;;  %v6615_v24 = vrot.slane %v6613_v7, 2 }
 0x46d   : > { %v13728_v49 = vcombine.high %v13714_v47, %v13714_v47  ;;  %v6623_v22 = vrot.slane %v13714_v47, 7  ;;  %v6619_v48 = vrot.slane %v13710_v46, 7 }
 0x46e   : > { %v7615_v20 = vpop.f32.mrb[52].mxu0  ;;  %v6611_v54 = vsel %vm11371_vm1, %v10242_v17, %v6610_v40  ;;  %v6612_v15 = vrot.slane %v6610_v40, 2  ;;  %v6618_v38 = vrot.slane %v6616_v6, 2  ;;  %v6617_v0 = vsel %vm11371_vm1, %v6615_v24, %v6616_v6 }
 0x46f   : > { %v7617_v13 = vpop.f32.mrb[53].mxu0  ;;  %6712 = vrot.lane.b32.xlu0 %v6611_v54, %s10547_s9  ;;  %v10243_v11 = vrot.slane %v13721_v21, 9  ;;  %v6625_v61 = vrot.slane %v6623_v22, 2  ;;  %v6626_v34 = vrot.slane %v13728_v49, 7 }
 0x470   : > { %v7684_v32 = vcombine.low %v7615_v20, %v7617_v13  ;;  %v7685_v2 = vcombine.high %v7615_v20, %v7617_v13  ;;  %v7619_v36 = vpop.f32.mrb[54].mxu0  ;;  %v6614_v45 = vsel %vm11371_vm1, %v6612_v15, %v6613_v7  ;;  %v6620_v23 = vsel %vm11371_vm1, %v6618_v38, %v6619_v48 }
 0x471   : > { %v7621_v18 = vpop.f32.mrb[55].mxu0  ;;  %6714 = vrot.lane.b32.xlu1 %v6614_v45, %s10547_s9  ;;  %v6624_v59 = vsel %vm11371_vm1, %v10243_v11, %v6623_v22  ;;  %v6627_v4 = vsel %vm11371_vm1, %v6625_v61, %v6626_v34  ;;  %v6628_v12 = vrot.slane %v6626_v34, 2 }
 0x472   : > { %v7702_v37 = vcombine.low %v7619_v36, %v7621_v18  ;;  %v7703_v42 = vcombine.high %v7619_v36, %v7621_v18  ;;  %v13743_v41 = vrot.slane %v7684_v32, %v11349_v51  ;;  %v13754_v43 = vrot.slane %v7685_v2, %v11349_v51 }
 0x473   : > { %6716 = vrot.lane.b32.xlu0 %v6617_v0, %s10547_s9 }
 0x474   : > { %v13758_v52 = vcombine.high %v13743_v41, %v13743_v41  ;;  %v13773_v53 = vcombine.high %v13754_v43, %v13754_v43  ;;  %v7933_v6 = vrot.slane %v13754_v43, 7  ;;  %v13789_v13 = vrot.slane %v7702_v37, %v11349_v51 }
 0x475   : > { %6718 = vrot.lane.b32.xlu1 %v6620_v23, %s10547_s9  ;;  %v13792_v54 = vrot.slane %v7703_v42, %v11349_v51  ;;  %v10291_v15 = vrot.slane %v13743_v41, 9 }
 0x476   : > { %v7930_v56 = vrot.slane %v13758_v52, 7  ;;  %v7936_v36 = vrot.slane %v13773_v53, 7  ;;  %v7935_v22 = vrot.slane %v7933_v6, 2  ;;  %v13810_v48 = vcombine.high %v13789_v13, %v13789_v13 }
 0x477   : > { %v6305_v27 = vpop.f32.mrb[44].mxu1  ;;  %6720 = vrot.lane.b32.xlu0 %v6624_v59, %s10547_s9  ;;  %v13814_v11 = vcombine.high %v13792_v54, %v13792_v54 }
 0x478   : > { %v6307_v62 = vpop.f32.mrb[45].mxu1  ;;  %v7932_v2 = vrot.slane %v7930_v56, 2  ;;  %v7931_v38 = vsel %vm11371_vm1, %v10291_v15, %v7930_v56  ;;  %v7937_v56 = vsel %vm11371_vm1, %v7935_v22, %v7936_v36  ;;  %v10292_v22 = vrot.slane %v13810_v48, 9 }
 0x479   : > { %v6400_v5 = vcombine.low %v6305_v27, %v6307_v62  ;;  %v6401_v50 = vcombine.high %v6305_v27, %v6307_v62  ;;  %v13749_v9 = vpop.f32.mrb[46].mxu1  ;;  %6722 = vrot.lane.b32.xlu1 %v6627_v4, %s10547_s9  ;;  %16646 = vst [vmem:[#allocation101_spill] sm:$0xff] %v13814_v11  ;;  %v7943_v27 = vrot.slane %v13792_v54, 7  ;;  %v7938_v4 = vrot.slane %v7936_v36, 2 }
 0x47a   : > { %v13760_v10 = vpop.f32.mrb[47].mxu1 }
 0x47b   : > { %v13764_v57 = vrot.slane %v6400_v5, %v11349_v51  ;;  %v6418_v19 = vcombine.low %v13749_v9, %v13760_v10  ;;  %v6419_v3 = vcombine.high %v13749_v9, %v13760_v10  ;;  %v13781_v7 = vrot.slane %v6401_v50, %v11349_v51 }
 0x47c   : > { %v7934_v50 = vsel %vm11371_vm1, %v7932_v2, %v7933_v6  ;;  %v7945_v36 = vrot.slane %v7943_v27, 2 }
 0x47d   : > { %v6629_v60 = vrot.slane %v13764_v57, 7  ;;  %v13777_v26 = vcombine.high %v13764_v57, %v13764_v57  ;;  %16644 = vst [vmem:[#allocation98_spill] sm:$0xff] %v13781_v7  ;;  %v13800_v18 = vcombine.high %v13781_v7, %v13781_v7  ;;  %v13817_v23 = vrot.slane %v6418_v19, %v11349_v51 }
 0x47f   : > { %v6630_v17 = vsel %vm11371_vm1, %v6628_v12, %v6629_v60  ;;  %v6631_v40 = vrot.slane %v6629_v60, 2  ;;  %v6632_v20 = vrot.slane %v13777_v26, 7  ;;  %16645 = vst [vmem:[#allocation26_spill] sm:$0xff] %v13800_v18  ;;  %16647 = vst [vmem:[#allocation104_spill] sm:$0xff] %v13817_v23  ;;  %v13840_v6 = vcombine.high %v13817_v23, %v13817_v23 }
 0x480   : > { %6724 = vrot.lane.b32.xlu0 %v6630_v17, %s10547_s9  ;;  %v6636_v17 = vrot.slane %v13800_v18, 7 }
 0x481   : > { %v6633_v32 = vsel %vm11371_vm1, %v6631_v40, %v6632_v20  ;;  %v7939_v20 = vrot.slane %v13789_v13, 7  ;;  %16648 = vst [vmem:[#allocation103_spill] sm:$0xff] %v13840_v6 }
 0x482   : > { %v7625_v24 = vpop.f32.mrb[56].mxu0  ;;  %6726 = vrot.lane.b32.xlu1 %v6633_v32, %s10547_s9  ;;  %v10244_v32 = vrot.slane %v13781_v7, 9 }
 0x483   : > { %v7627_v45 = vpop.f32.mrb[57].mxu0  ;;  %v7940_v2 = vsel %vm11371_vm1, %v7938_v4, %v7939_v20  ;;  %v13866_v20 = vrot.slane %v6419_v3, %v11349_v51 }
 0x484   : > { %v7720_v37 = vcombine.low %v7625_v24, %v7627_v45  ;;  %v7721_v42 = vcombine.high %v7625_v24, %v7627_v45  ;;  %v13805_v0 = vpop.f32.mrb[58].mxu0  ;;  %8032 = vrot.lane.b32.xlu0 %v7931_v38, %s10547_s9  ;;  %v7946_v45 = vrot.slane %v13814_v11, 7  ;;  %v6637_v38 = vsel %vm11371_vm1, %v10244_v32, %v6636_v17 }
 0x485   : > { %v13819_v34 = vpop.f32.mrb[59].mxu0  ;;  %16650 = vst [vmem:[#allocation102_spill] sm:$0xff] %v13866_v20  ;;  %v7944_v32 = vsel %vm11371_vm1, %v10292_v22, %v7943_v27 }
 0x486   : > { %v6315_v61 = vpop.f32.mrb[48].mxu1  ;;  %8034 = vrot.lane.b32.xlu1 %v7934_v50, %s10547_s9  ;;  %v6642_v50 = vrot.slane %v13840_v6, 7  ;;  %v7947_v4 = vsel %vm11371_vm1, %v7945_v36, %v7946_v45  ;;  %v16658_v39 = vcombine.low %v13805_v0, %v13819_v34 }
 0x487   : > { %v6317_v59 = vpop.f32.mrb[49].mxu1 }
 0x488   : > { %v6436_v12 = vcombine.low %v6315_v61, %v6317_v59  ;;  %v6437_v60 = vcombine.high %v6315_v61, %v6317_v59  ;;  %v13828_v19 = vpop.f32.mrb[50].mxu1  ;;  %8036 = vrot.lane.b32.xlu0 %v7937_v56, %s10547_s9  ;;  %v6639_v61 = vrot.slane %v13817_v23, 7  ;;  %v6638_v59 = vrot.slane %v6636_v17, 2 }
 0x489   : > { %v13834_v40 = vpop.f32.mrb[51].mxu1  ;;  %v13858_v56 = vrot.slane %v7720_v37, %v11349_v51  ;;  %v13875_v37 = vrot.slane %v7721_v42, %v11349_v51  ;;  %v6644_v10 = vrot.slane %v6642_v50, 2  ;;  %v13937_v33 = vrot.slane %v16658_v39, %v11349_v51 }
 0x48a   : > { %8038 = vrot.lane.b32.xlu1 %v7940_v2, %s10547_s9  ;;  %v6641_v17 = vrot.slane %v6639_v61, 2  ;;  %v13878_v36 = vrot.slane %v6436_v12, %v11349_v51  ;;  %v6640_v9 = vsel %vm11371_vm1, %v6638_v59, %v6639_v61  ;;  %v6645_v59 = vrot.slane %v13866_v20, 7 }
 0x48b   : > { %16649 = vst [vmem:[#allocation23_spill] sm:$0xff] %v13858_v56  ;;  %16651 = vst [vmem:[#allocation29_spill] sm:$0xff] %v13875_v37  ;;  %v7949_v42 = vrot.slane %v13858_v56, 7  ;;  %v13893_v12 = vcombine.high %v13858_v56, %v13858_v56  ;;  %v10293_v8 = vrot.slane %v13875_v37, 9  ;;  %v16662_v16 = vcombine.low %v13828_v19, %v13834_v40 }
 0x48c   : > { %6728 = vrot.lane.b32.xlu0 %v6637_v38, %s10547_s9  ;;  %16652 = vst [vmem:[#allocation18_spill] sm:$0xff] %v13878_v36  ;;  %v6643_v61 = vsel %vm11371_vm1, %v6641_v17, %v6642_v50  ;;  %v13914_v50 = vcombine.high %v13875_v37, %v13875_v37  ;;  %v13917_v17 = vrot.slane %v6437_v60, %v11349_v51  ;;  %v6649_v60 = vrot.slane %v13878_v36, 7 }
 0x48d   : > { %16653 = vst [vmem:[#allocation110_spill] sm:$0xff] %v13893_v12  ;;  %v13921_v24 = vcombine.high %v13878_v36, %v13878_v36  ;;  %v6646_v3 = vsel %vm11371_vm1, %v6644_v10, %v6645_v59  ;;  %v7951_v15 = vrot.slane %v7949_v42, 2  ;;  %v7952_v62 = vrot.slane %v13893_v12, 7  ;;  %16659 = vst [vmem:[#allocation34_spill] sm:$0xff] %v13937_v33 }
 0x48e   : > { %8042 = vrot.lane.b32.xlu1 %v7947_v4, %s10547_s9  ;;  %16655 = vst [vmem:[#allocation27_spill] sm:$0xff] %v13914_v50  ;;  %16656 = vst [vmem:[#allocation28_spill] sm:$0xff] %v13917_v17  ;;  %v7956_v44 = vrot.slane %v13914_v50, 7  ;;  %v6651_v14 = vrot.slane %v6649_v60, 2  ;;  %v13979_v55 = vrot.slane %v16662_v16, %v11349_v51 }
 0x48f   : > { %16657 = vst [vmem:[#allocation105_spill] sm:$0xff] %v13921_v24  ;;  %v6652_v25 = vrot.slane %v13921_v24, 7 }
 0x490   : > { %8040 = vrot.lane.b32.xlu0 %v7944_v32, %s10547_s9  ;;  %v13903_v32 = vcombine.high %v13866_v20, %v13866_v20  ;;  %16663 = vst [vmem:[#allocation113_spill] sm:$0xff] %v13979_v55  ;;  %v7957_v31 = vsel %vm11371_vm1, %v10293_v8, %v7956_v44  ;;  %v7958_v8 = vrot.slane %v7956_v44, 2 }
 0x491   : > { %v13871_v2 = vpop.f32.mrb[60].mxu0  ;;  %v6654_v37 = vrot.slane %v6652_v25, 2 }
 0x492   : > { %v13880_v38 = vpop.f32.mrb[61].mxu0  ;;  %6730 = vrot.lane.b32.xlu1 %v6640_v9, %s10547_s9  ;;  %16654 = vst [vmem:[#allocation30_spill] sm:$0xff] %v13903_v32  ;;  %v7948_v9 = vrot.slane %v7946_v45, 2  ;;  %v10245_v39 = vrot.slane %v13903_v32, 9 }
 0x493   : > { %v13888_v22 = vpop.f32.mrb[62].mxu0 }
 0x494   : > { %v13895_v4 = vpop.f32.mrb[63].mxu0  ;;  %6732 = vrot.lane.b32.xlu0 %v6643_v61, %s10547_s9  ;;  %v7950_v59 = vsel %vm11371_vm1, %v7948_v9, %v7949_v42  ;;  %v13958_v42 = vcombine.high %v13917_v17, %v13917_v17  ;;  %v6655_v9 = vrot.slane %v13917_v17, 7  ;;  %v6650_v61 = vsel %vm11371_vm1, %v10245_v39, %v6649_v60 }
 0x495   : > { %v13909_v5 = vpop.f32.mrb[52].mxu1  ;;  %v14013_v60 = vcombine.high %v13979_v55, %v13979_v55 }
 0x496   : > { %v13923_v27 = vpop.f32.mrb[53].mxu1  ;;  %6734 = vrot.lane.b32.xlu1 %v6646_v3, %s10547_s9  ;;  %v7953_v3 = vsel %vm11371_vm1, %v7951_v15, %v7952_v62  ;;  %16660 = vst [vmem:[#allocation107_spill] sm:$0xff] %v13958_v42  ;;  %v7959_v62 = vrot.slane %v13937_v33, 7  ;;  %v6657_v16 = vrot.slane %v6655_v9, 2  ;;  %v6658_v17 = vrot.slane %v13958_v42, 7 }
 0x497   : > { %v13929_v45 = vpop.f32.mrb[54].mxu1  ;;  %16664 = vst [vmem:[#allocation80_spill] sm:$0xff] %v14013_v60 }
 0x498   : > { %v13941_v10 = vpop.f32.mrb[55].mxu1  ;;  %8044 = vrot.lane.b32.xlu0 %v7950_v59, %s10547_s9  ;;  %v13963_v59 = vcombine.high %v13937_v33, %v13937_v33  ;;  %v7961_v36 = vrot.slane %v7959_v62, 2 }
 0x49a   : > { %16661 = vst [vmem:[#allocation31_spill] sm:$0xff] %v13963_v59  ;;  %8046 = vrot.lane.b32.xlu1 %v7953_v3, %s10547_s9  ;;  %v7962_v32 = vrot.slane %v13963_v59, 7  ;;  %v16667_v59 = vcombine.high %v13805_v0, %v13819_v34  ;;  %v6656_v0 = vsel %vm11371_vm1, %v6654_v37, %v6655_v9  ;;  %v16672_v37 = vcombine.low %v13909_v5, %v13923_v27 }
 0x49c   : > { %v13966_v12 = vpop.f32.mrb[64].mxu0  ;;  %6736 = vrot.lane.b32.xlu0 %v6650_v61, %s10547_s9  ;;  %v6653_v61 = vsel %vm11371_vm1, %v6651_v14, %v6652_v25  ;;  %v6659_v14 = vsel %vm11371_vm1, %v6657_v16, %v6658_v17  ;;  %v7963_v33 = vsel %vm11371_vm1, %v7961_v36, %v7962_v32  ;;  %v6662_v17 = vrot.slane %v14013_v60, 7 }
 0x49d   : > { %v13971_v15 = vpop.f32.mrb[65].mxu0  ;;  %v16670_v16 = vcombine.low %v13871_v2, %v13880_v38  ;;  %v14072_v9 = vrot.slane %v16672_v37, %v11349_v51 }
 0x49e   : > { %v13985_v39 = vpop.f32.mrb[66].mxu0  ;;  %6738 = vrot.lane.b32.xlu1 %v6653_v61, %s10547_s9  ;;  %v14036_v61 = vrot.slane %v16667_v59, %v11349_v51  ;;  %v6664_v34 = vrot.slane %v6662_v17, 2 }
 0x49f   : > { %v13987_v29 = vpop.f32.mrb[56].mxu1  ;;  %v13989_v35 = vpop.f32.mrb[67].mxu0  ;;  %16673 = vst [vmem:[#allocation116_spill] sm:$0xff] %v14072_v9 }
 0x4a0   : > { %v13996_v24 = vpop.f32.mrb[57].mxu1  ;;  %8048 = vrot.lane.b32.xlu0 %v7957_v31, %s10547_s9  ;;  %v16665_v31 = vcombine.high %v13828_v19, %v13834_v40  ;;  %16668 = vst [vmem:[#allocation33_spill] sm:$0xff] %v14036_v61  ;;  %v7960_v19 = vsel %vm11371_vm1, %v7958_v8, %v7959_v62  ;;  %v7964_v40 = vrot.slane %v7962_v32, 2  ;;  %v7965_v62 = vrot.slane %v14036_v61, 7 }
 0x4a1   : > { %v14008_v42 = vpop.f32.mrb[58].mxu1 }
 0x4a2   : > { %v14015_v3 = vpop.f32.mrb[59].mxu1  ;;  %v14027_v50 = vrot.slane %v16665_v31, %v11349_v51  ;;  %6742 = vrot.lane.b32.xlu1 %v6659_v14, %s10547_s9  ;;  %v14066_v14 = vrot.slane %v16670_v16, %v11349_v51  ;;  %v10246_v31 = vrot.slane %v13979_v55, 9  ;;  %v7966_v16 = vsel %vm11371_vm1, %v7964_v40, %v7965_v62 }
 0x4a3   : > { %v6671_v40 = vrot.slane %v14072_v9, 7 }
 0x4a4   : > { %16666 = vst [vmem:[#allocation114_spill] sm:$0xff] %v14027_v50  ;;  %8052 = vrot.lane.b32.xlu0 %v7963_v33, %s10547_s9  ;;  %v14046_v36 = vcombine.high %v14027_v50, %v14027_v50  ;;  %v6665_v33 = vrot.slane %v14027_v50, 7  ;;  %16671 = vst [vmem:[#allocation32_spill] sm:$0xff] %v14066_v14  ;;  %v6663_v37 = vsel %vm11371_vm1, %v10246_v31, %v6662_v17  ;;  %v7969_v62 = vrot.slane %v14066_v14, 7 }
 0x4a5   : > { %v16676_v17 = vcombine.high %v13871_v2, %v13880_v38  ;;  %v16679_v2 = vcombine.high %v13909_v5, %v13923_v27 }
 0x4a6   : > { %16669 = vst [vmem:[#allocation36_spill] sm:$0xff] %v14046_v36  ;;  %8050 = vrot.lane.b32.xlu1 %v7960_v19, %s10547_s9  ;;  %v6667_v32 = vrot.slane %v6665_v33, 2  ;;  %v6668_v50 = vrot.slane %v14046_v36, 7  ;;  %v14090_v19 = vcombine.high %v14036_v61, %v14036_v61  ;;  %v14110_v61 = vcombine.high %v14072_v9, %v14072_v9 }
 0x4a7   : > { %v14039_v44 = vpop.f32.mrb[60].mxu1  ;;  %v14102_v31 = vrot.slane %v16676_v17, %v11349_v51  ;;  %v14121_v38 = vrot.slane %v16679_v2, %v11349_v51  ;;  %v7971_v5 = vrot.slane %v7969_v62, 2 }
 0x4a8   : > { %v14048_v25 = vpop.f32.mrb[61].mxu1  ;;  %6740 = vrot.lane.b32.xlu0 %v6656_v0, %s10547_s9  ;;  %16674 = vst [vmem:[#allocation125_spill] sm:$0xff] %v14090_v19  ;;  %v14094_v0 = vcombine.high %v14066_v14, %v14066_v14  ;;  %16678 = vst [vmem:[#allocation4_spill] sm:$0xff] %v14110_v61  ;;  %v6669_v60 = vsel %vm11371_vm1, %v6667_v32, %v6668_v50  ;;  %v6670_v55 = vrot.slane %v6668_v50, 2  ;;  %v10294_v32 = vrot.slane %v14090_v19, 9 }
 0x4a9   : > { %v14058_v59 = vpop.f32.mrb[62].mxu1  ;;  %16677 = vst [vmem:[#allocation120_spill] sm:$0xff] %v14102_v31  ;;  %16680 = vst [vmem:[#allocation6_spill] sm:$0xff] %v14121_v38  ;;  %v10247_v9 = vrot.slane %v14110_v61, 9 }
 0x4aa   : > { %v14074_v8 = vpop.f32.mrb[63].mxu1  ;;  %8054 = vrot.lane.b32.xlu1 %v7966_v16, %s10547_s9  ;;  %16675 = vst [vmem:[#allocation35_spill] sm:$0xff] %v14094_v0  ;;  %v6672_v50 = vsel %vm11371_vm1, %v6670_v55, %v6671_v40  ;;  %v7972_v27 = vrot.slane %v14094_v0, 7  ;;  %v16683_v55 = vcombine.low %v13888_v22, %v13895_v4  ;;  %v7970_v2 = vsel %vm11371_vm1, %v10294_v32, %v7969_v62 }
 0x4ab   : > { %v14172_v62 = vcombine.high %v14121_v38, %v14121_v38 }
 0x4ac   : > { %6744 = vrot.lane.b32.xlu0 %v6663_v37, %s10547_s9  ;;  %v6666_v37 = vsel %vm11371_vm1, %v6664_v34, %v6665_v33  ;;  %v14142_v33 = vcombine.high %v14102_v31, %v14102_v31  ;;  %v14149_v40 = vrot.slane %v16683_v55, %v11349_v51  ;;  %v16685_v34 = vcombine.high %v13888_v22, %v13895_v4 }
 0x4ad   : > { %16689 = vst [vmem:[#allocation37_spill] sm:$0xff] %v14172_v62  ;;  %v7973_v32 = vsel %vm11371_vm1, %v7971_v5, %v7972_v27  ;;  %v6675_v4 = vrot.slane %v14121_v38, 7  ;;  %v6678_v6 = vrot.slane %v14172_v62, 7 }
 0x4ae   : > { %6746 = vrot.lane.b32.xlu1 %v6666_v37, %s10547_s9  ;;  %16682 = vst [vmem:[#allocation123_spill] sm:$0xff] %v14142_v33  ;;  %16684 = vst [vmem:[#allocation109_spill] sm:$0xff] %v14149_v40  ;;  %v14159_v0 = vrot.slane %v16685_v34, %v11349_v51  ;;  %v7974_v34 = vrot.slane %v7972_v27, 2  ;;  %v7978_v23 = vrot.slane %v14142_v33, 7  ;;  %v14190_v5 = vcombine.high %v14149_v40, %v14149_v40 }
 0x4af   : > { %v14104_v16 = vpop.f32.mrb[64].mxu1  ;;  %v6676_v38 = vsel %vm11371_vm1, %v10247_v9, %v6675_v4  ;;  %v6677_v20 = vrot.slane %v6675_v4, 2  ;;  %v10295_v4 = vrot.slane %v14149_v40, 9  ;;  %v6680_v18 = vrot.slane %v6678_v6, 2 }
 0x4b0   : > { %v14112_v36 = vpop.f32.mrb[65].mxu1  ;;  %6748 = vrot.lane.b32.xlu0 %v6669_v60, %s10547_s9  ;;  %v7975_v60 = vrot.slane %v14102_v31, 7  ;;  %16686 = vst [vmem:[#allocation40_spill] sm:$0xff] %v14159_v0  ;;  %v16687_v31 = vcombine.low %v13929_v45, %v13941_v10  ;;  %16691 = vst [vmem:[#allocation43_spill] sm:$0xff] %v14190_v5  ;;  %v7982_v62 = vrot.slane %v14190_v5, 7 }
 0x4b1   : > { %v14127_v17 = vpop.f32.mrb[66].mxu1  ;;  %v6679_v9 = vsel %vm11371_vm1, %v6677_v20, %v6678_v6 }
 0x4b2   : > { %v14130_v37 = vpop.f32.mrb[67].mxu1  ;;  %6750 = vrot.lane.b32.xlu1 %v6672_v50, %s10547_s9  ;;  %v14165_v14 = vrot.slane %v16687_v31, %v11349_v51  ;;  %v7977_v19 = vrot.slane %v7975_v60, 2  ;;  %v7976_v56 = vsel %vm11371_vm1, %v7974_v34, %v7975_v60  ;;  %v16697_v60 = vcombine.high %v13929_v45, %v13941_v10 }
 0x4b3   : > { %16681 = vst [vmem:[#allocation38_spill] sm:$0xff] %v14130_v37  ;;  %v7983_v10 = vsel %vm11371_vm1, %v10295_v4, %v7982_v62 }
 0x4b4   : > { %16688 = vst [vmem:[#allocation111_spill] sm:$0xff] %v14165_v14  ;;  %8056 = vrot.lane.b32.xlu0 %v7970_v2, %s10547_s9  ;;  %v14201_v2 = vcombine.high %v14159_v0, %v14159_v0  ;;  %v7979_v33 = vsel %vm11371_vm1, %v7977_v19, %v7978_v23  ;;  %v7985_v23 = vrot.slane %v14159_v0, 7  ;;  %v14238_v34 = vrot.slane %v16697_v60, %v11349_v51 }
 0x4b6   : > { %8058 = vrot.lane.b32.xlu1 %v7973_v32, %s10547_s9  ;;  %16693 = vst [vmem:[#allocation130_spill] sm:$0xff] %v14201_v2  ;;  %v6681_v32 = vrot.slane %v14165_v14, 7  ;;  %16698 = vst [vmem:[#allocation129_spill] sm:$0xff] %v14238_v34  ;;  %v7987_v60 = vrot.slane %v7985_v23, 2  ;;  %v7988_v40 = vrot.slane %v14201_v2, 7  ;;  %v14271_v2 = vcombine.high %v14238_v34, %v14238_v34 }
 0x4b7   : > { %v14168_v50 = vpop.f32.mrb[68].mxu0  ;;  %v14179_v55 = vpop.f32.mrb[68].mxu1 }
 0x4b8   : > { %v14176_v22 = vpop.f32.mrb[69].mxu0  ;;  %16690 = vst [vmem:[#allocation44_spill] sm:$0xff] %v14179_v55  ;;  %v14193_v27 = vpop.f32.mrb[69].mxu1  ;;  %6752 = vrot.lane.b32.xlu0 %v6676_v38, %s10547_s9  ;;  %v14223_v38 = vcombine.high %v14165_v14, %v14165_v14  ;;  %16701 = vst [vmem:[#allocation41_spill] sm:$0xff] %v14271_v2  ;;  %v7989_v55 = vsel %vm11371_vm1, %v7987_v60, %v7988_v40 }
 0x4b9   : > { %v14185_v61 = vpop.f32.mrb[70].mxu0  ;;  %16692 = vst [vmem:[#allocation121_spill] sm:$0xff] %v14193_v27  ;;  %v14207_v11 = vpop.f32.mrb[70].mxu1 }
 0x4ba   : > { %v14197_v31 = vpop.f32.mrb[71].mxu0  ;;  %16694 = vst [vmem:[#allocation134_spill] sm:$0xff] %v14207_v11  ;;  %v14214_v7 = vpop.f32.mrb[71].mxu1  ;;  %16696 = vst [vmem:[#allocation39_spill] sm:$0xff] %v14223_v38  ;;  %8062 = vrot.lane.b32.xlu1 %v7979_v33, %s10547_s9  ;;  %v6684_v11 = vrot.slane %v14223_v38, 7 }
 0x4bb   : > { %16695 = vst [vmem:[#allocation79_spill] sm:$0xff] %v14214_v7 }
 0x4bc   : > { %8060 = vrot.lane.b32.xlu0 %v7976_v56, %s10547_s9  ;;  %v6683_v56 = vrot.slane %v6681_v32, 2 }
 0x4be   : > { %6754 = vrot.lane.b32.xlu1 %v6679_v9, %s10547_s9 }
 0x4bf   : > { %v8935_v19 = vpop.f32.mrb[72].mxu0  ;;  %v14243_v33 = vpop.f32.mrb[72].mxu1 }
 0x4c0   : > { %v8937_v14 = vpop.f32.mrb[73].mxu0  ;;  %16699 = vst [vmem:[#allocation48_spill] sm:$0xff] %v14243_v33  ;;  %v14249_v45 = vpop.f32.mrb[73].mxu1  ;;  %8064 = vrot.lane.b32.xlu0 %v7983_v10, %s10547_s9  ;;  %v6685_v10 = vsel %vm11371_vm1, %v6683_v56, %v6684_v11  ;;  %v16706_v11 = vcombine.low %v13987_v29, %v13996_v24 }
 0x4c1   : > { %v9004_v5 = vcombine.low %v8935_v19, %v8937_v14  ;;  %v9005_v7 = vcombine.high %v8935_v19, %v8937_v14  ;;  %v14245_v0 = vpop.f32.mrb[74].mxu0  ;;  %16700 = vst [vmem:[#allocation82_spill] sm:$0xff] %v14249_v45  ;;  %v14260_v27 = vpop.f32.mrb[74].mxu1  ;;  %v16702_v19 = vcombine.low %v13966_v12, %v13971_v15  ;;  %v7984_v45 = vrot.slane %v7982_v62, 2 }
 0x4c2   : > { %v14253_v20 = vpop.f32.mrb[75].mxu0  ;;  %v14267_v38 = vpop.f32.mrb[75].mxu1  ;;  %6758 = vrot.lane.b32.xlu1 %v6685_v10, %s10547_s9  ;;  %v14299_v62 = vrot.slane %v16706_v11, %v11349_v51  ;;  %v10248_v11 = vrot.slane %v14238_v34, 9 }
 0x4c3   : > { %v9022_v9 = vcombine.low %v14245_v0, %v14253_v20  ;;  %v14277_v14 = vrot.slane %v16702_v19, %v11349_v51  ;;  %v16704_v19 = vcombine.high %v13966_v12, %v13971_v15  ;;  %v14302_v56 = vrot.slane %v9004_v5, %v11349_v51 }
 0x4c4   : > { %8068 = vrot.lane.b32.xlu0 %v7989_v55, %s10547_s9  ;;  %16707 = vst [vmem:[#allocation42_spill] sm:$0xff] %v14299_v62  ;;  %v7986_v6 = vsel %vm11371_vm1, %v7984_v45, %v7985_v23  ;;  %v6682_v15 = vsel %vm11371_vm1, %v6680_v18, %v6681_v32  ;;  %v6688_v55 = vrot.slane %v14271_v2, 7  ;;  %v14320_v10 = vrot.slane %v9005_v7, %v11349_v51 }
 0x4c5   : > { %16703 = vst [vmem:[#allocation137_spill] sm:$0xff] %v14277_v14  ;;  %v14292_v37 = vrot.slane %v16704_v19, %v11349_v51  ;;  %v7991_v60 = vrot.slane %v14277_v14, 7  ;;  %v14309_v12 = vcombine.high %v14277_v14, %v14277_v14  ;;  %v7990_v23 = vrot.slane %v7988_v40, 2 }
 0x4c6   : > { %8066 = vrot.lane.b32.xlu1 %v7986_v6, %s10547_s9  ;;  %16710 = vst [vmem:[#allocation46_spill] sm:$0xff] %v14320_v10  ;;  %v16711_v45 = vcombine.high %v13987_v29, %v13996_v24  ;;  %v16712_v18 = vcombine.low %v13985_v39, %v13989_v35  ;;  %v14339_v6 = vcombine.high %v14302_v56, %v14302_v56  ;;  %v6691_v29 = vrot.slane %v14299_v62, 7 }
 0x4c7   : > { %16705 = vst [vmem:[#allocation47_spill] sm:$0xff] %v14292_v37  ;;  %16708 = vst [vmem:[#allocation131_spill] sm:$0xff] %v14309_v12  ;;  %v14317_v5 = vcombine.high %v14292_v37, %v14292_v37  ;;  %v7995_v7 = vrot.slane %v14292_v37, 7  ;;  %v7992_v40 = vsel %vm11371_vm1, %v7990_v23, %v7991_v60  ;;  %v14346_v24 = vcombine.high %v14299_v62, %v14299_v62 }
 0x4c8   : > { %6756 = vrot.lane.b32.xlu0 %v6682_v15, %s10547_s9  ;;  %v14327_v19 = vrot.slane %v16711_v45, %v11349_v51  ;;  %v14333_v32 = vrot.slane %v16712_v18, %v11349_v51  ;;  %16714 = vst [vmem:[#allocation51_spill] sm:$0xff] %v14339_v6  ;;  %v6689_v15 = vsel %vm11371_vm1, %v10248_v11, %v6688_v55  ;;  %v10296_v45 = vrot.slane %v14309_v12, 9 }
 0x4c9   : > { %16709 = vst [vmem:[#allocation136_spill] sm:$0xff] %v14317_v5  ;;  %16715 = vst [vmem:[#allocation45_spill] sm:$0xff] %v14346_v24  ;;  %v14354_v18 = vcombine.high %v14320_v10, %v14320_v10  ;;  %v6690_v60 = vrot.slane %v6688_v55, 2  ;;  %v7997_v4 = vrot.slane %v7995_v7, 2  ;;  %v7998_v33 = vrot.slane %v14317_v5, 7 }
 0x4ca   : > { %16713 = vst [vmem:[#allocation133_spill] sm:$0xff] %v14333_v32  ;;  %8070 = vrot.lane.b32.xlu1 %v7992_v40, %s10547_s9  ;;  %v14359_v23 = vcombine.high %v14327_v19, %v14327_v19  ;;  %v8001_v40 = vrot.slane %v14333_v32, 7  ;;  %v14364_v11 = vrot.slane %v9022_v9, %v11349_v51  ;;  %v14370_v14 = vcombine.high %v14333_v32, %v14333_v32 }
 0x4cb   : > { %16716 = vst [vmem:[#allocation50_spill] sm:$0xff] %v14354_v18  ;;  %v6692_v62 = vsel %vm11371_vm1, %v6690_v60, %v6691_v29  ;;  %v7996_v9 = vsel %vm11371_vm1, %v10296_v45, %v7995_v7  ;;  %v6693_v5 = vrot.slane %v6691_v29, 2  ;;  %v6694_v60 = vrot.slane %v14346_v24, 7 }
 0x4cc   : > { %6760 = vrot.lane.b32.xlu0 %v6689_v15, %s10547_s9  ;;  %16717 = vst [vmem:[#allocation86_spill] sm:$0xff] %v14359_v23  ;;  %16718 = vst [vmem:[#allocation135_spill] sm:$0xff] %v14364_v11  ;;  %v16720_v15 = vcombine.low %v14008_v42, %v14015_v3  ;;  %v16049_v34 = vrot.slane %v14320_v10, 7  ;;  %v16048_v55 = vrot.slane %v14354_v18, 7  ;;  %v16721_v32 = vrot.slane %v14339_v6, 7 }
 0x4cd   : > { %16719 = vst [vmem:[#allocation17_spill] sm:$0xff] %v14370_v14  ;;  %v8003_v12 = vrot.slane %v8001_v40, 2  ;;  %v8004_v7 = vrot.slane %v14370_v14, 7  ;;  %v10249_v24 = vrot.slane %v14359_v23, 9 }
 0x4ce   : > { %v14377_v2 = vrot.slane %v16720_v15, %v11349_v51  ;;  %6762 = vrot.lane.b32.xlu1 %v6692_v62, %s10547_s9  ;;  %v9252_v37 = vrot.slane %v16721_v32, 2  ;;  %v7999_v15 = vsel %vm11371_vm1, %v7997_v4, %v7998_v33  ;;  %v9259_v62 = vrot.slane %v14364_v11, 7 }
 0x4cf   : > { %v9258_v45 = vrot.slane %v16048_v55, 2  ;;  %v16722_v32 = vcombine.high %v13985_v39, %v13989_v35  ;;  %v6695_v4 = vsel %vm11371_vm1, %v6693_v5, %v6694_v60  ;;  %v6696_v55 = vrot.slane %v6694_v60, 2 }
 0x4d0   : > { %8072 = vrot.lane.b32.xlu0 %v7996_v9, %s10547_s9  ;;  %v14396_v29 = vsel %vm11371_vm1, %v9252_v37, %v16049_v34  ;;  %v6701_v14 = vrot.slane %v14377_v2, 7  ;;  %v16723_v35 = vcombine.high %v14008_v42, %v14015_v3  ;;  %v14424_v5 = vcombine.high %v14377_v2, %v14377_v2 }
 0x4d1   : > { %v14404_v9 = vrot.slane %v16722_v32, %v11349_v51  ;;  %v14414_v37 = vsel %vm11371_vm1, %v9258_v45, %v9259_v62  ;;  %v6697_v42 = vrot.slane %v14327_v19, 7  ;;  %v8000_v3 = vrot.slane %v7998_v33, 2 }
 0x4d2   : > { %8074 = vrot.lane.b32.xlu1 %v7999_v15, %s10547_s9  ;;  %v14420_v39 = vrot.slane %v16723_v35, %v11349_v51  ;;  %v8005_v15 = vsel %vm11371_vm1, %v8003_v12, %v8004_v7  ;;  %v6702_v60 = vsel %vm11371_vm1, %v10249_v24, %v6701_v14  ;;  %v6703_v45 = vrot.slane %v6701_v14, 2 }
 0x4d3   : > { %v14430_v32 = vcombine.high %v14404_v9, %v14404_v9  ;;  %v6698_v62 = vsel %vm11371_vm1, %v6696_v55, %v6697_v42  ;;  %v16726_v12 = vcombine.low %v14168_v50, %v14176_v22  ;;  %v8002_v55 = vsel %vm11371_vm1, %v8000_v3, %v8001_v40 }
 0x4d4   : > { %6764 = vrot.lane.b32.xlu0 %v6695_v4, %s10547_s9  ;;  %16724 = vst [vmem:[#allocation53_spill] sm:$0xff] %v14420_v39  ;;  %v6704_v4 = vrot.slane %v14424_v5, 7  ;;  %v14448_v24 = vcombine.high %v14420_v39, %v14420_v39  ;;  %v6707_v33 = vrot.slane %v14420_v39, 7  ;;  %v10297_v35 = vrot.slane %v14404_v9, 9 }
 0x4d5   : > { %16725 = vst [vmem:[#allocation140_spill] sm:$0xff] %v14430_v32  ;;  %v14443_v7 = vrot.slane %v16726_v12, %v11349_v51  ;;  %v8008_v14 = vrot.slane %v14430_v32, 7  ;;  %v16730_v40 = vcombine.high %v14168_v50, %v14176_v22 }
 0x4d6   : > { %8078 = vrot.lane.b32.xlu1 %v8005_v15, %s10547_s9  ;;  %16728 = vst [vmem:[#allocation138_spill] sm:$0xff] %v14448_v24  ;;  %v6709_v42 = vrot.slane %v6707_v33, 2  ;;  %v6710_v12 = vrot.slane %v14448_v24, 7 }
 0x4d7   : > { %16727 = vst [vmem:[#allocation49_spill] sm:$0xff] %v14443_v7  ;;  %v14459_v15 = vcombine.high %v14443_v7, %v14443_v7  ;;  %v14468_v3 = vrot.slane %v16730_v40, %v11349_v51  ;;  %v8011_v34 = vrot.slane %v14443_v7, 7 }
 0x4d8   : > { %6768 = vrot.lane.b32.xlu0 %v6702_v60, %s10547_s9  ;;  %v6705_v60 = vsel %vm11371_vm1, %v6703_v45, %v6704_v4  ;;  %v16732_v45 = vcombine.low %v14185_v61, %v14197_v31  ;;  %v6711_v50 = vsel %vm11371_vm1, %v6709_v42, %v6710_v12  ;;  %v8010_v42 = vrot.slane %v8008_v14, 2 }
 0x4d9   : > { %16729 = vst [vmem:[#allocation89_spill] sm:$0xff] %v14459_v15  ;;  %16731 = vst [vmem:[#allocation60_spill] sm:$0xff] %v14468_v3  ;;  %v14492_v40 = vcombine.high %v14468_v3, %v14468_v3 }
 0x4da   : > { %6766 = vrot.lane.b32.xlu1 %v6698_v62, %s10547_s9  ;;  %v8009_v62 = vsel %vm11371_vm1, %v10297_v35, %v8008_v14  ;;  %v14479_v23 = vrot.slane %v16732_v45, %v11349_v51  ;;  %v8013_v45 = vrot.slane %v8011_v34, 2 }
 0x4db   : > { %16736 = vst [vmem:[#allocation64_spill] sm:$0xff] %v14492_v40 }
 0x4dc   : > { %8076 = vrot.lane.b32.xlu0 %v8002_v55, %s10547_s9  ;;  %v6706_v55 = vrot.slane %v6704_v4, 2  ;;  %16733 = vst [vmem:[#allocation8_spill] sm:$0xff] %v14479_v23  ;;  %v16734_v4 = vcombine.high %v14039_v44, %v14048_v25 }
 0x4de   : > { %6770 = vrot.lane.b32.xlu1 %v6705_v60, %s10547_s9  ;;  %v8014_v60 = vrot.slane %v14459_v15, 7  ;;  %v14488_v35 = vrot.slane %v16734_v4, %v11349_v51  ;;  %v14500_v15 = vcombine.high %v14479_v23, %v14479_v23  ;;  %v16738_v4 = vcombine.high %v14185_v61, %v14197_v31 }
 0x4df   : > { %v10298_v61 = vrot.slane %v14492_v40, 9  ;;  %v8017_v31 = vrot.slane %v14468_v3, 7 }
 0x4e0   : > { %8080 = vrot.lane.b32.xlu0 %v8009_v62, %s10547_s9  ;;  %16735 = vst [vmem:[#allocation54_spill] sm:$0xff] %v14488_v35  ;;  %v6708_v62 = vsel %vm11371_vm1, %v6706_v55, %v6707_v33  ;;  %16737 = vst [vmem:[#allocation85_spill] sm:$0xff] %v14500_v15  ;;  %v14506_v7 = vrot.slane %v16738_v4, %v11349_v51  ;;  %v8016_v33 = vrot.slane %v8014_v60, 2  ;;  %v8021_v55 = vrot.slane %v14479_v23, 7 }
 0x4e1   : > { %v6713_v22 = vpop.permute.xlu0 %6712  ;;  %v14513_v14 = vcombine.high %v14488_v35, %v14488_v35  ;;  %v6843_v23 = vrot.slane %v13710_v46, 2  ;;  %v8024_v24 = vrot.slane %v14500_v15, 7  ;;  %v10342_v15 = vrot.slane %v14488_v35, 9 }
 0x4e2   : > { %6774 = vrot.lane.b32.xlu1 %v6711_v50, %s10547_s9  ;;  %16739 = vst [vmem:[#allocation52_spill] sm:$0xff] %v14506_v7  ;;  %v8012_v50 = vsel %vm11371_vm1, %v8010_v42, %v8011_v34  ;;  %v16741_v42 = vcombine.low %v14039_v44, %v14048_v25  ;;  %v8027_v40 = vrot.slane %v14506_v7, 7  ;;  %v16744_v44 = vcombine.low %v14058_v59, %v14074_v8 }
 0x4e3   : > { %v6715_v12 = vpop.permute.xlu1 %6714  ;;  %16740 = vst [vmem:[#allocation139_spill] sm:$0xff] %v14513_v14  ;;  %v8022_v46 = vsel %vm11371_vm1, %v10298_v61, %v8021_v55 }
 0x4e4   : > { %6772 = vrot.lane.b32.xlu0 %v6708_v62, %s10547_s9  ;;  %v8015_v62 = vsel %vm11371_vm1, %v8013_v45, %v8014_v60  ;;  %v14525_v4 = vrot.slane %v16741_v42, %v11349_v51  ;;  %v8018_v60 = vsel %vm11371_vm1, %v8016_v33, %v8017_v31  ;;  %v8023_v45 = vrot.slane %v8021_v55, 2 }
 0x4e5   : > { %v6717_v39 = vpop.permute.xlu0 %6716  ;;  %v14541_v25 = vrot.slane %v16744_v44, %v11349_v51  ;;  %v9276_v33 = vrot.slane %v14513_v14, 7  ;;  %v6840_v42 = vrot.slane %v13703_v63, 2  ;;  %v6841_v14 = vrot.slane %v13699_v1, 2 }
 0x4e6   : > { %8082 = vrot.lane.b32.xlu1 %v8012_v50, %s10547_s9  ;;  %16742 = vst [vmem:[#allocation11_spill] sm:$0xff] %v14525_v4  ;;  %v14555_v44 = vcombine.high %v14525_v4, %v14525_v4  ;;  %v8025_v55 = vsel %vm11371_vm1, %v8023_v45, %v8024_v24  ;;  %v6809_v45 = vadd.f32 %v6715_v12, %v13703_v63  ;;  %v6844_v12 = vrot.slane %v13714_v47, 2 }
 0x4e7   : > { %v6719_v34 = vpop.permute.xlu1 %6718  ;;  %16745 = vst [vmem:[#allocation56_spill] sm:$0xff] %v14541_v25  ;;  %v9279_v35 = vrot.slane %v14541_v25, 7 }
 0x4e8   : > { %8084 = vrot.lane.b32.xlu0 %v8015_v62, %s10547_s9  ;;  %v6811_v50 = vadd.f32 %v6719_v34, %v13707_v28  ;;  %v14534_v62 = vcombine.high %v14506_v7, %v14506_v7  ;;  %v6808_v7 = vadd.f32 %v6713_v22, %v13696_v58  ;;  %16746 = vst [vmem:[#allocation19_spill] sm:$0xff] %v14555_v44 }
 0x4e9   : > { %v6721_v31 = vpop.permute.xlu0 %6720  ;;  %v9277_v58 = vsel %vm11371_vm1, %v10342_v15, %v9276_v33  ;;  %v16747_v15 = vrot.slane %v14525_v4, 7 }
 0x4ea   : > { %16743 = vst [vmem:[#allocation115_spill] sm:$0xff] %v14534_v62  ;;  %8086 = vrot.lane.b32.xlu1 %v8018_v60, %s10547_s9  ;;  %v14546_v34 = vadd.f32 %v6843_v23, %v6811_v50  ;;  %v8029_v23 = vrot.slane %v8027_v40, 2  ;;  %v8030_v61 = vrot.slane %v14534_v62, 7  ;;  %v14563_v60 = vcombine.high %v14541_v25, %v14541_v25 }
 0x4eb   : > { %v6723_v22 = vpop.permute.xlu1 %6722  ;;  %v6904_v62 = vadd.f32 %v6840_v42, %v6808_v7  ;;  %v6810_v50 = vadd.f32 %v6717_v39, %v13699_v1  ;;  %v9271_v32 = vrot.slane %v16747_v15, 2  ;;  %v6842_v25 = vrot.slane %v13707_v28, 2 }
 0x4ec   : > { %8088 = vrot.lane.b32.xlu0 %v8022_v46, %s10547_s9  ;;  %v8026_v46 = vrot.slane %v8024_v24, 2  ;;  %v9272_v24 = vrot.slane %v14555_v44, 7  ;;  %v9281_v39 = vrot.slane %v9279_v35, 2  ;;  %v9282_v1 = vrot.slane %v14563_v60, 7 }
 0x4ed   : > { %v6905_v7 = vadd.f32 %v6841_v14, %v6809_v45  ;;  %v6845_v42 = vrot.slane %v13728_v49, 2  ;;  %v8160_v28 = vrot.slane %v13758_v52, 2  ;;  %v9278_v45 = vrot.slane %v9276_v33, 2 }
 0x4ee   : > { %8090 = vrot.lane.b32.xlu1 %v8025_v55, %s10547_s9  ;;  %v8031_v55 = vsel %vm11371_vm1, %v8029_v23, %v8030_v61  ;;  %v8028_v63 = vsel %vm11371_vm1, %v8026_v46, %v8027_v40  ;;  %v6906_v23 = vadd.f32 %v6842_v25, %v6810_v50  ;;  %v6847_v40 = vrot.slane %v13777_v26, 2 }
 0x4ef   : > { %v9273_v14 = vsel %vm11371_vm1, %v9271_v32, %v9272_v24  ;;  %v16748_v25 = vcombine.high %v14058_v59, %v14074_v8  ;;  %v8162_v26 = vrot.slane %v13773_v53, 2  ;;  %v6813_v33 = vadd.f32 %v6723_v22, %v13714_v47 }
 0x4f0   : > { %9368 = vrot.lane.b32.xlu0 %v9277_v58, %s10547_s9  ;;  %v7896_v58 = vadd.f32 %v13743_v41, %v6904_v62  ;;  %v9283_v62 = vsel %vm11371_vm1, %v9281_v39, %v9282_v1  ;;  %v7897_v59 = vadd.f32 %v13758_v52, %v6905_v7  ;;  %v6812_v8 = vadd.f32 %v6721_v31, %v13721_v21 }
 0x4f1   : > { %v14599_v50 = vrot.slane %v16748_v25, %v11349_v51  ;;  %v9284_v52 = vrot.slane %v9282_v1, 2  ;;  %v16752_v21 = vrot.slane %v14339_v6, 7  ;;  %v16753_v31 = vrot.slane %v14320_v10, 7 }
 0x4f2   : > { %v14573_v3 = vpop.permute.xlu0 %6724  ;;  %8094 = vrot.lane.b32.xlu1 %v8031_v55, %s10547_s9  ;;  %v8161_v55 = vrot.slane %v13754_v43, 2 }
 0x4f3   : > { %16749 = vst [vmem:[#allocation65_spill] sm:$0xff] %v14599_v50  ;;  %v9285_v1 = vrot.slane %v14599_v50, 7 }
 0x4f4   : > { %8092 = vrot.lane.b32.xlu0 %v8028_v63, %s10547_s9  ;;  %v6727_v61 = vpop.permute.xlu1 %6726  ;;  %v16750_v63 = vcombine.low %v14104_v16, %v14112_v36 }
 0x4f5   : > { %v6815_v46 = vadd.f32 %v6727_v61, %v13764_v57 }
 0x4f6   : > { %v8033_v15 = vpop.permute.xlu0 %8032  ;;  %9366 = vrot.lane.b32.xlu1 %v9273_v14, %s10547_s9  ;;  %v14609_v32 = vrot.slane %v16750_v63, %v11349_v51  ;;  %v16751_v14 = vcombine.high %v14245_v0, %v14253_v20  ;;  %v6909_v20 = vadd.f32 %v6845_v42, %v6813_v33  ;;  %v8163_v42 = vrot.slane %v13789_v13, 2 }
 0x4f7   : > { %v8128_v41 = vadd.f32 %v8033_v15, %v7896_v58  ;;  %v14612_v24 = vadd.f32 %v6847_v40, %v6815_v46  ;;  %v7898_v58 = vadd.f32 %v13754_v43, %v6906_v23  ;;  %v10340_v15 = vrot.slane %v14302_v56, 9  ;;  %v14644_v46 = vld [vmem:[%s15737_s4 + $0x6] ss:$0 sm:$0xff] }
 0x4f8   : > { %9372 = vrot.lane.b32.xlu0 %v9283_v62, %s10547_s9  ;;  %v8035_v39 = vpop.permute.xlu1 %8034  ;;  %v14623_v25 = vrot.slane %v16751_v14, %v11349_v51  ;;  %v9280_v40 = vsel %vm11371_vm1, %v9278_v45, %v9279_v35  ;;  %v9255_v23 = vrot.slane %v16753_v31, 2  ;;  %v7899_v35 = vadd.f32 %v13773_v53, %v14546_v34 }
 0x4f9   : > { %v8224_v61 = vadd.f32 %v8160_v28, %v8128_v41  ;;  %v8129_v47 = vadd.f32 %v8035_v39, %v7897_v59  ;;  %v9251_v43 = vsel %vm11371_vm1, %v10340_v15, %v16752_v21  ;;  %v14648_v45 = vcombine.high %v14599_v50, %v14599_v50 }
 0x4fa   : > { %v8037_v22 = vpop.permute.xlu0 %8036  ;;  %9370 = vrot.lane.b32.xlu1 %v9280_v40, %s10547_s9  ;;  %v9038_v62 = vcombine.high %v14364_v11, %v14364_v11  ;;  %v9286_v63 = vsel %vm11371_vm1, %v9284_v52, %v9285_v1  ;;  %v14660_v59 = vcombine.high %v14623_v25, %v14623_v25  ;;  %v16758_v13 = vrot.slane %v14354_v18, 7 }
 0x4fb   : > { %v8130_v7 = vadd.f32 %v8037_v22, %v7898_v58  ;;  %v14635_v0 = vadd.f32 %v14302_v56, %v8224_v61  ;;  %v8225_v28 = vadd.f32 %v8161_v55, %v8129_v47  ;;  %16755 = vst [vmem:[#allocation66_spill] sm:$0xff] %v14648_v45  ;;  %v6908_v56 = vadd.f32 %v6844_v12, %v6812_v8 }
 0x4fc   : > { %9352 = vrot.lane.b32.xlu0 %v9251_v43, %s10547_s9  ;;  %v8039_v55 = vpop.permute.xlu1 %8038  ;;  %16757 = vst [vmem:[#allocation62_spill] sm:$0xff] %v14660_v59  ;;  %v9257_v12 = vsel %vm11371_vm1, %v9255_v23, %v16758_v13  ;;  %v14673_v61 = vrot.slane %v14644_v46, %v11349_v51  ;;  %v6846_v39 = vrot.slane %v13764_v57, 2  ;;  %v7901_v15 = vadd.f32 %v13792_v54, %v6909_v20  ;;  %v16763_v20 = vld [vmem:[#allocation38_spill] sm:$0xff] }
 0x4fd   : > { %16754 = vst [vmem:[#allocation69_spill] sm:$0xff] %v14635_v0  ;;  %v8226_v41 = vadd.f32 %v8162_v26, %v8130_v7  ;;  %v8131_v53 = vadd.f32 %v8039_v55, %v7899_v35  ;;  %v14656_v33 = vadd.f32 %v14339_v6, %v8225_v28  ;;  %v9289_v26 = vrot.slane %v14609_v32, 7 }
 0x4fe   : > { %v6729_v34 = vpop.permute.xlu0 %6728  ;;  %9374 = vrot.lane.b32.xlu1 %v9286_v63, %s10547_s9  ;;  %v6814_v14 = vadd.f32 %v14573_v3, %v13728_v49  ;;  %v7900_v22 = vadd.f32 %v13810_v48, %v6908_v56  ;;  %v8164_v40 = vrot.slane %v13792_v54, 2  ;;  %v10343_v52 = vrot.slane %v14648_v45, 9  ;;  %v14696_v49 = vld [vmem:[%s15737_s4 + $0x7] ss:$0 sm:$0xff] }
 0x4ff   : > { %16756 = vst [vmem:[#allocation13_spill] sm:$0xff] %v14656_v33  ;;  %v14669_v8 = vadd.f32 %v14320_v10, %v8226_v41  ;;  %v8227_v58 = vadd.f32 %v8163_v42, %v8131_v53  ;;  %v14685_v7 = vcombine.high %v14609_v32, %v14609_v32  ;;  %v9263_v43 = vrot.slane %v14623_v25, 7 }
 0x500   : > { %9356 = vrot.lane.b32.xlu0 %v9257_v12, %s10547_s9  ;;  %v8043_v47 = vpop.permute.xlu1 %8042  ;;  %v9290_v48 = vsel %vm11371_vm1, %v10343_v52, %v9289_v26  ;;  %v10341_v3 = vrot.slane %v9038_v62, 9  ;;  %v9266_v23 = vrot.slane %v14660_v59, 7  ;;  %v16764_v28 = vcombine.low %v14127_v17, %v16763_v20 }
 0x501   : > { %16759 = vst [vmem:[#allocation15_spill] sm:$0xff] %v14669_v8  ;;  %16760 = vst [vmem:[#allocation10_spill] sm:$0xff] %v14685_v7  ;;  %v14687_v57 = vadd.f32 %v8043_v47, %v7901_v15  ;;  %v14691_v31 = vadd.f32 %v14354_v18, %v8227_v58  ;;  %v6910_v1 = vadd.f32 %v6846_v39, %v6814_v14  ;;  %v9265_v13 = vrot.slane %v9263_v43, 2 }
 0x502   : > { %v8041_v21 = vpop.permute.xlu0 %8040  ;;  %9354 = vrot.lane.b32.xlu1 %v14396_v29, %s10547_s9  ;;  %v14708_v35 = vrot.slane %v16764_v28, %v11349_v51  ;;  %v14712_v29 = vrot.slane %v14696_v49, %v11349_v51  ;;  %v14716_v42 = vcombine.high %v14673_v61, %v14673_v61  ;;  %v16766_v55 = vcombine.high %v14104_v16, %v14112_v36  ;;  %v16771_v16 = vld [vmem:[#allocation26_spill] sm:$0xff] }
 0x503   : > { %16761 = vst [vmem:[#allocation93_spill] sm:$0xff] %v14687_v57  ;;  %16762 = vst [vmem:[#allocation67_spill] sm:$0xff] %v14691_v31  ;;  %v8132_v54 = vadd.f32 %v8041_v21, %v7900_v22  ;;  %v9264_v12 = vsel %vm11371_vm1, %v10341_v3, %v9263_v43  ;;  %v9268_v39 = vrot.slane %v9266_v23, 2  ;;  %v9292_v58 = vrot.slane %v14685_v7, 7  ;;  %v16772_v22 = vld [vmem:[#allocation103_spill] sm:$0xff] }
 0x504   : > { %9376 = vrot.lane.b32.xlu0 %v9290_v48, %s10547_s9  ;;  %16765 = vst [vmem:[#allocation16_spill] sm:$0xff] %v14708_v35  ;;  %v6731_v41 = vpop.permute.xlu1 %6730  ;;  %v14722_v53 = vrot.slane %v16766_v55, %v11349_v51  ;;  %v16769_v14 = vcombine.high %v14127_v17, %v16763_v20  ;;  %v6848_v47 = vrot.slane %v16771_v16, 2  ;;  %v14743_v21 = vcombine.high %v14708_v35, %v14708_v35  ;;  %v16776_v48 = vld [vmem:[#allocation101_spill] sm:$0xff] }
 0x505   : > { %v8228_v56 = vadd.f32 %v8164_v40, %v8132_v54  ;;  %v6850_v40 = vrot.slane %v16772_v22, 2  ;;  %v7902_v3 = vadd.f32 %v16776_v48, %v6910_v1  ;;  %v9291_v17 = vrot.slane %v9289_v26, 2 }
 0x506   : > { %16767 = vst [vmem:[#allocation5_spill] sm:$0xff] %v14722_v53  ;;  %v6733_v63 = vpop.permute.xlu0 %6732  ;;  %9358 = vrot.lane.b32.xlu1 %v14414_v37, %s10547_s9  ;;  %v14735_v36 = vrot.slane %v16769_v14, %v11349_v51  ;;  %v16773_v37 = vld [vmem:[#allocation102_spill] sm:$0xff]  ;;  %16774 = vst [vmem:[#allocation71_spill] sm:$0xff] %v14743_v21  ;;  %v9295_v55 = vrot.slane %v14722_v53, 7  ;;  %v16778_v14 = vld [vmem:[#allocation23_spill] sm:$0xff]  ;;  %v9294_v1 = vrot.slane %v9292_v58, 2 }
 0x507   : > { %v14729_v15 = vadd.f32 %v9038_v62, %v8228_v56  ;;  %v6851_v52 = vrot.slane %v16773_v37, 2  ;;  %v16775_v62 = vld [vmem:[#allocation98_spill] sm:$0xff]  ;;  %v9267_v56 = vsel %vm11371_vm1, %v9265_v13, %v9266_v23  ;;  %v8166_v37 = vrot.slane %v16778_v14, 2  ;;  %v16781_v13 = vld [vmem:[#allocation44_spill] sm:$0xff] }
 0x508   : > { %16770 = vst [vmem:[#allocation112_spill] sm:$0xff] %v14735_v36  ;;  %9360 = vrot.lane.b32.xlu0 %v9264_v12, %s10547_s9  ;;  %v6816_v43 = vadd.f32 %v6729_v34, %v16775_v62  ;;  %v6735_v54 = vpop.permute.xlu1 %6734  ;;  %v14753_v12 = vcombine.high %v14722_v53, %v14722_v53  ;;  %v16779_v34 = vrot.slane %v14525_v4, 7  ;;  %v14763_v23 = vcombine.high %v14735_v36, %v14735_v36 }
 0x509   : > { %16768 = vst [vmem:[#allocation24_spill] sm:$0xff] %v14729_v15  ;;  %v6819_v20 = vadd.f32 %v6735_v54, %v16772_v22  ;;  %v16782_v22 = vld [vmem:[#allocation121_spill] sm:$0xff]  ;;  %v9293_v8 = vsel %vm11371_vm1, %v9291_v17, %v9292_v58  ;;  %v5019_v17 = vcombine.high %v14644_v46, %v14644_v46  ;;  %v16981_v10 = vrot.slane %v16776_v48, 2 }
 0x50a   : > { %v8045_v28 = vpop.permute.xlu0 %8044  ;;  %16777 = vst [vmem:[#allocation70_spill] sm:$0xff] %v14753_v12  ;;  %9362 = vrot.lane.b32.xlu1 %v9267_v56, %s10547_s9  ;;  %v9270_v26 = vsel %vm11371_vm1, %v9268_v39, %v16779_v34  ;;  %16780 = vst [vmem:[#allocation118_spill] sm:$0xff] %v14763_v23  ;;  %v16783_v62 = vcombine.low %v16781_v13, %v16782_v22  ;;  %v16785_v39 = vld [vmem:[#allocation104_spill] sm:$0xff] }
 0x50b   : > { %v8134_v15 = vadd.f32 %v8045_v28, %v7902_v3  ;;  %v14771_v31 = vadd.f32 %v6851_v52, %v6819_v20  ;;  %v7903_v3 = vadd.f32 %v16778_v14, %v14612_v24  ;;  %v6912_v28 = vadd.f32 %v6848_v47, %v6816_v43 }
 0x50c   : > { %v14769_v54 = vrot.slane %v16783_v62, %v11349_v51  ;;  %9364 = vrot.lane.b32.xlu0 %v9270_v26, %s10547_s9  ;;  %v6818_v56 = vadd.f32 %v6733_v63, %v16785_v39  ;;  %v8047_v33 = vpop.permute.xlu1 %8046  ;;  %v9297_v62 = vrot.slane %v9295_v55, 2  ;;  %v9298_v52 = vrot.slane %v14753_v12, 7 }
 0x50d   : > { %v8230_v34 = vadd.f32 %v8166_v37, %v8134_v15  ;;  %v14779_v0 = vadd.f32 %v8047_v33, %v7903_v3  ;;  %v9302_v20 = vrot.slane %v14743_v21, 7  ;;  %v16787_v24 = vcombine.high %v16781_v13, %v16782_v22  ;;  %v16790_v15 = vld [vmem:[#allocation55_spill] sm:$0xff]  ;;  %v16827_v21 = vld [vmem:[#allocation18_spill] sm:$0xff]  ;;  %v16960_v6 = vld [vmem:[#allocation5_spill] sm:$0xff] }
 0x50e   : > { %16784 = vst [vmem:[#allocation12_spill] sm:$0xff] %v14769_v54  ;;  %v14781_v45 = vpop.permute.xlu0 %6736  ;;  %9378 = vrot.lane.b32.xlu1 %v9293_v8, %s10547_s9  ;;  %v9296_v63 = vsel %vm11371_vm1, %v9294_v1, %v9295_v55  ;;  %v9305_v33 = vrot.slane %v14735_v36, 7  ;;  %v4949_v43 = vrot.slane %v16790_v15, 2  ;;  %v5078_v14 = vcombine.high %v14696_v49, %v14696_v49  ;;  %v16791_v1 = vld [vmem:[#allocation29_spill] sm:$0xff] }
 0x50f   : > { %16786 = vst [vmem:[#allocation72_spill] sm:$0xff] %v14779_v0  ;;  %v14789_v47 = vrot.slane %v16787_v24, %v11349_v51  ;;  %v14796_v58 = vadd.f32 %v14660_v59, %v8230_v34  ;;  %v6817_v37 = vadd.f32 %v6731_v41, %v16771_v16  ;;  %v6849_v8 = vrot.slane %v16785_v39, 2 }
 0x510   : > { %9380 = vrot.lane.b32.xlu0 %v9296_v63, %s10547_s9  ;;  %v6914_v55 = vadd.f32 %v6850_v40, %v6818_v56  ;;  %v14806_v26 = vpop.permute.xlu1 %6738  ;;  %v7904_v13 = vadd.f32 %v16791_v1, %v6912_v28  ;;  %v10344_v22 = vrot.slane %v14708_v35, 9  ;;  %v14812_v3 = vcombine.high %v14769_v54, %v14769_v54  ;;  %v16796_v63 = vld [vmem:[#allocation57_spill] sm:$0xff]  ;;  %v16797_v1 = vld [vmem:[#allocation134_spill] sm:$0xff] }
 0x511   : > { %16788 = vst [vmem:[#allocation96_spill] sm:$0xff] %v14789_v47  ;;  %16789 = vst [vmem:[#allocation122_spill] sm:$0xff] %v14796_v58  ;;  %v9299_v49 = vsel %vm11371_vm1, %v9297_v62, %v9298_v52  ;;  %v9304_v41 = vrot.slane %v9302_v20, 2  ;;  %v9308_v16 = vrot.slane %v14763_v23, 7  ;;  %v14819_v40 = vcombine.high %v14789_v47, %v14789_v47 }
 0x512   : > { %16792 = vst [vmem:[#allocation108_spill] sm:$0xff] %v14812_v3  ;;  %v8049_v46 = vpop.permute.xlu0 %8048  ;;  %9382 = vrot.lane.b32.xlu1 %v9299_v49, %s10547_s9  ;;  %v9303_v28 = vsel %vm11371_vm1, %v10344_v22, %v9302_v20  ;;  %v9307_v56 = vrot.slane %v9305_v33, 2  ;;  %v5040_v34 = vmul.f32 %v14673_v61, %v4949_v43  ;;  %v14828_v24 = vrot.slane %v5019_v17, %v11349_v51  ;;  %v16801_v43 = vld [vmem:[#allocation34_spill] sm:$0xff] }
 0x513   : > { %16793 = vst [vmem:[#allocation117_spill] sm:$0xff] %v14819_v40  ;;  %v14821_v39 = vadd.f32 %v8049_v46, %v7904_v13  ;;  %v14831_v62 = vrot.slane %v5078_v14, %v11349_v51  ;;  %v6913_v52 = vadd.f32 %v6849_v8, %v6817_v37  ;;  %v4950_v15 = vrot.slane %v16796_v63, 2  ;;  %v16798_v13 = vld [vmem:[#allocation79_spill] sm:$0xff] }
 0x514   : > { %9384 = vrot.lane.b32.xlu0 %v9303_v28, %s10547_s9  ;;  %v16799_v46 = vcombine.low %v16797_v1, %v16798_v13  ;;  %v14841_v20 = vpop.permute.xlu1 %6742  ;;  %v7906_v22 = vadd.f32 %v16801_v43, %v6914_v55  ;;  %v9311_v17 = vrot.slane %v14769_v54, 7  ;;  %v16802_v14 = vcombine.high %v16797_v1, %v16798_v13  ;;  %v16818_v54 = vld [vmem:[#allocation63_spill] sm:$0xff] }
 0x515   : > { %16794 = vst [vmem:[#allocation127_spill] sm:$0xff] %v14821_v39  ;;  %16795 = vst [vmem:[#allocation119_spill] sm:$0xff] %v14831_v62  ;;  %v9306_v28 = vsel %vm11371_vm1, %v9304_v41, %v9305_v33  ;;  %v9310_v63 = vrot.slane %v9308_v16, 2  ;;  %v9309_v55 = vsel %vm11371_vm1, %v9307_v56, %v9308_v16  ;;  %v10345_v35 = vrot.slane %v14812_v3, 9  ;;  %v16811_v3 = vld [vmem:[#allocation82_spill] sm:$0xff] }
 0x516   : > { %v14839_v49 = vrot.slane %v16799_v46, %v11349_v51  ;;  %v14849_v37 = vrot.slane %v16802_v14, %v11349_v51  ;;  %v8053_v8 = vpop.permute.xlu0 %8052  ;;  %v9315_v46 = vrot.slane %v14789_v47, 7  ;;  %9386 = vrot.lane.b32.xlu1 %v9306_v28, %s10547_s9  ;;  %v9318_v1 = vrot.slane %v14819_v40, 7  ;;  %v16805_v14 = vld [vmem:[#allocation58_spill] sm:$0xff]  ;;  %v16810_v28 = vld [vmem:[#allocation48_spill] sm:$0xff] }
 0x517   : > { %v14854_v58 = vadd.f32 %v8053_v8, %v7906_v22  ;;  %v14863_v13 = vcombine.high %v14712_v29, %v14712_v29  ;;  %v4951_v33 = vrot.slane %v16805_v14, 2  ;;  %v14868_v41 = vcombine.high %v14828_v24, %v14828_v24  ;;  %v16807_v22 = vld [vmem:[#allocation27_spill] sm:$0xff] }
 0x518   : > { %16800 = vst [vmem:[#allocation128_spill] sm:$0xff] %v14839_v49  ;;  %16803 = vst [vmem:[#allocation124_spill] sm:$0xff] %v14849_v37  ;;  %9388 = vrot.lane.b32.xlu0 %v9309_v55, %s10547_s9  ;;  %v7905_v8 = vadd.f32 %v16807_v22, %v6913_v52  ;;  %v14873_v16 = vadd.f32 %v14712_v29, %v5040_v34  ;;  %v14877_v56 = vcombine.high %v14831_v62, %v14831_v62  ;;  %v8051_v0 = vpop.permute.xlu1 %8050 }
 0x519   : > { %16804 = vst [vmem:[#allocation132_spill] sm:$0xff] %v14854_v58  ;;  %16806 = vst [vmem:[#allocation126_spill] sm:$0xff] %v14868_v41  ;;  %v16812_v58 = vcombine.low %v16810_v28, %v16811_v3  ;;  %v9312_v57 = vsel %vm11371_vm1, %v9310_v63, %v9311_v17  ;;  %v9317_v40 = vrot.slane %v9315_v46, 2  ;;  %v9321_v34 = vrot.slane %v14839_v49, 7 }
 0x51a   : > { %16808 = vst [vmem:[#allocation9_spill] sm:$0xff] %v14873_v16  ;;  %16809 = vst [vmem:[#allocation38_spill] sm:$0xff] %v14877_v56  ;;  %v14887_v55 = vadd.f32 %v8051_v0, %v7905_v8  ;;  %v6741_v52 = vpop.permute.xlu0 %6740  ;;  %v14892_v16 = vcombine.high %v14839_v49, %v14839_v49  ;;  %v5041_v47 = vmul.f32 %v14716_v42, %v4950_v15  ;;  %9390 = vrot.lane.b32.xlu1 %v9312_v57, %s10547_s9  ;;  %v16817_v8 = vld [vmem:[#allocation61_spill] sm:$0xff]  ;;  %v16819_v15 = vld [vmem:[#allocation31_spill] sm:$0xff] }
 0x51b   : > { %v14883_v14 = vrot.slane %v16812_v58, %v11349_v51  ;;  %v14897_v58 = vcombine.high %v14849_v37, %v14849_v37  ;;  %v9316_v0 = vsel %vm11371_vm1, %v10345_v35, %v9315_v46  ;;  %v9320_v17 = vrot.slane %v9318_v1, 2 }
 0x51c   : > { %16814 = vst [vmem:[#allocation103_spill] sm:$0xff] %v14887_v55  ;;  %16815 = vst [vmem:[#allocation102_spill] sm:$0xff] %v14892_v16  ;;  %v5042_v63 = vmul.f32 %v14828_v24, %v4951_v33  ;;  %v4952_v55 = vrot.slane %v16817_v8, 2  ;;  %v4953_v39 = vrot.slane %v16818_v54, 2  ;;  %9392 = vrot.lane.b32.xlu0 %v9316_v0, %s10547_s9  ;;  %v7907_v49 = vadd.f32 %v16819_v15, %v14771_v31  ;;  %v16825_v33 = vld [vmem:[#allocation30_spill] sm:$0xff]  ;;  %v8055_v31 = vpop.permute.xlu1 %8054  ;;  %v16965_v11 = vld [vmem:[#allocation127_spill] sm:$0xff] }
 0x51d   : > { %16813 = vst [vmem:[#allocation26_spill] sm:$0xff] %v14883_v14  ;;  %16816 = vst [vmem:[#allocation98_spill] sm:$0xff] %v14897_v58  ;;  %v16820_v23 = vcombine.high %v16810_v28, %v16811_v3  ;;  %v14916_v35 = vcombine.high %v14883_v14, %v14883_v14  ;;  %v16823_v46 = vcombine.low %v14260_v27, %v14267_v38  ;;  %v9323_v3 = vrot.slane %v9321_v34, 2 }
 0x51e   : > { %v6820_v0 = vadd.f32 %v14781_v45, %v16825_v33  ;;  %v14926_v8 = vadd.f32 %v8055_v31, %v7907_v49  ;;  %v6745_v36 = vpop.permute.xlu0 %6744  ;;  %v9324_v28 = vrot.slane %v14892_v16, 7  ;;  %v6852_v12 = vrot.slane %v16827_v21, 2 }
 0x51f   : > { %v14912_v57 = vrot.slane %v16820_v23, %v11349_v51  ;;  %16822 = vst [vmem:[#allocation23_spill] sm:$0xff] %v14916_v35  ;;  %v14922_v54 = vrot.slane %v16823_v46, %v11349_v51  ;;  %v9319_v23 = vsel %vm11371_vm1, %v9317_v40, %v9318_v1  ;;  %v9322_v46 = vsel %vm11371_vm1, %v9320_v17, %v9321_v34  ;;  %v16971_v18 = vld [vmem:[#allocation128_spill] sm:$0xff] }
 0x520   : > { %16826 = vst [vmem:[#allocation121_spill] sm:$0xff] %v14926_v8  ;;  %9394 = vrot.lane.b32.xlu1 %v9319_v23, %s10547_s9  ;;  %v9328_v53 = vrot.slane %v14897_v58, 7  ;;  %v9331_v45 = vrot.slane %v14883_v14, 7  ;;  %v14938_v49 = vadd.f32 %v14863_v13, %v5041_v47  ;;  %v14941_v33 = vadd.f32 %v14831_v62, %v5042_v63  ;;  %9396 = vrot.lane.b32.xlu0 %v9322_v46, %s10547_s9  ;;  %v14948_v17 = vpop.permute.xlu1 %6746  ;;  %v16831_v63 = vld [vmem:[#allocation59_spill] sm:$0xff]  ;;  %v16832_v14 = vld [vmem:[#allocation105_spill] sm:$0xff] }
 0x521   : > { %16821 = vst [vmem:[#allocation101_spill] sm:$0xff] %v14912_v57  ;;  %16824 = vst [vmem:[#allocation44_spill] sm:$0xff] %v14922_v54  ;;  %v5043_v40 = vmul.f32 %v14868_v41, %v4952_v55  ;;  %v6821_v1 = vadd.f32 %v14806_v26, %v16827_v21  ;;  %v5044_v31 = vmul.f32 %v14673_v61, %v4953_v39  ;;  %v10346_v23 = vrot.slane %v14849_v37, 9 }
 0x522   : > { %16828 = vst [vmem:[#allocation104_spill] sm:$0xff] %v14938_v49  ;;  %16829 = vst [vmem:[#allocation55_spill] sm:$0xff] %v14941_v33  ;;  %v6916_v34 = vadd.f32 %v6852_v12, %v6820_v0  ;;  %v9334_v47 = vrot.slane %v14916_v35, 7  ;;  %v16830_v49 = vld [vmem:[#allocation22_spill] sm:$0xff]  ;;  %v4955_v33 = vrot.slane %v16831_v63, 2  ;;  %v6853_v55 = vrot.slane %v16832_v14, 2  ;;  %v6749_v58 = vpop.permute.xlu0 %6748 }
 0x523   : > { %v4954_v8 = vrot.slane %v16830_v49, 2  ;;  %v9325_v21 = vsel %vm11371_vm1, %v9323_v3, %v9324_v28  ;;  %v14959_v26 = vcombine.high %v14912_v57, %v14912_v57  ;;  %v14963_v12 = vcombine.high %v14922_v54, %v14922_v54  ;;  %v16837_v28 = vld [vmem:[#allocation28_spill] sm:$0xff]  ;;  %v16838_v35 = vld [vmem:[#allocation107_spill] sm:$0xff] }
 0x524   : > { %9398 = vrot.lane.b32.xlu1 %v9325_v21, %s10547_s9  ;;  %v9329_v39 = vsel %vm11371_vm1, %v10346_v23, %v9328_v53  ;;  %v9333_v0 = vrot.slane %v9331_v45, 2  ;;  %v16835_v46 = vcombine.high %v14260_v27, %v14267_v38  ;;  %v6917_v3 = vadd.f32 %v6853_v55, %v6821_v1  ;;  %v14979_v7 = vpop.permute.xlu1 %6750  ;;  %v16839_v23 = vld [vmem:[#allocation125_spill] sm:$0xff] }
 0x525   : > { %16833 = vst [vmem:[#allocation29_spill] sm:$0xff] %v14959_v26  ;;  %16834 = vst [vmem:[#allocation57_spill] sm:$0xff] %v14963_v12  ;;  %v6823_v63 = vadd.f32 %v14841_v20, %v16837_v28  ;;  %9400 = vrot.lane.b32.xlu0 %v9329_v39, %s10547_s9  ;;  %v9330_v37 = vrot.slane %v9328_v53, 2  ;;  %v6855_v16 = vrot.slane %v16838_v35, 2  ;;  %v6822_v21 = vadd.f32 %v6741_v52, %v16832_v14 }
 0x526   : > { %v14972_v49 = vrot.slane %v16835_v46, %v11349_v51  ;;  %v7908_v4 = vadd.f32 %v16839_v23, %v6916_v34  ;;  %v9336_v59 = vrot.slane %v9334_v47, 2  ;;  %v6854_v27 = vrot.slane %v16837_v28, 2  ;;  %v8057_v38 = vpop.permute.xlu0 %8056  ;;  %v16843_v23 = vld [vmem:[#allocation113_spill] sm:$0xff] }
 0x527   : > { %v9332_v1 = vsel %vm11371_vm1, %v9330_v37, %v9331_v45  ;;  %v9337_v20 = vrot.slane %v14912_v57, 7  ;;  %v9341_v55 = vrot.slane %v14922_v54, 7  ;;  %v9335_v14 = vsel %vm11371_vm1, %v9333_v0, %v9334_v47  ;;  %v16841_v45 = vld [vmem:[#allocation32_spill] sm:$0xff]  ;;  %v16867_v54 = vld [vmem:[#allocation90_spill] sm:$0xff]  ;;  %v16908_v57 = vld [vmem:[#allocation47_spill] sm:$0xff] }
 0x528   : > { %16836 = vst [vmem:[#allocation134_spill] sm:$0xff] %v14972_v49  ;;  %v14987_v53 = vadd.f32 %v8057_v38, %v7908_v4  ;;  %9402 = vrot.lane.b32.xlu1 %v9332_v1, %s10547_s9  ;;  %v10347_v52 = vrot.slane %v14959_v26, 9  ;;  %v9344_v35 = vrot.slane %v14963_v12, 7  ;;  %v5045_v34 = vmul.f32 %v14716_v42, %v4954_v8  ;;  %v8059_v47 = vpop.permute.xlu1 %8058  ;;  %v16853_v26 = vld [vmem:[#allocation114_spill] sm:$0xff] }
 0x529   : > { %v5046_v39 = vmul.f32 %v14828_v24, %v4955_v33  ;;  %v6919_v37 = vadd.f32 %v6855_v16, %v6823_v63  ;;  %9404 = vrot.lane.b32.xlu0 %v9335_v14, %s10547_s9  ;;  %v7909_v46 = vadd.f32 %v16841_v45, %v6917_v3  ;;  %v14999_v4 = vadd.f32 %v14877_v56, %v5043_v40  ;;  %v16846_v40 = vld [vmem:[#allocation76_spill] sm:$0xff] }
 0x52a   : > { %16840 = vst [vmem:[#allocation79_spill] sm:$0xff] %v14987_v53  ;;  %v6918_v28 = vadd.f32 %v6854_v27, %v6822_v21  ;;  %v6824_v38 = vadd.f32 %v6745_v36, %v16843_v23  ;;  %v9338_v0 = vsel %vm11371_vm1, %v9336_v59, %v9337_v20  ;;  %v15006_v8 = vpop.permute.xlu0 %6752  ;;  %v9343_v33 = vrot.slane %v9341_v55, 2  ;;  %v16847_v21 = vld [vmem:[#allocation80_spill] sm:$0xff] }
 0x52b   : > { %16842 = vst [vmem:[#allocation34_spill] sm:$0xff] %v14999_v4  ;;  %v15004_v1 = vadd.f32 %v8059_v47, %v7909_v46  ;;  %v9347_v16 = vrot.slane %v14972_v49, 7  ;;  %v15011_v3 = vcombine.high %v14972_v49, %v14972_v49  ;;  %v4956_v63 = vrot.slane %v16846_v40, 2  ;;  %v16851_v23 = vld [vmem:[#allocation120_spill] sm:$0xff]  ;;  %v16852_v40 = vld [vmem:[#allocation73_spill] sm:$0xff] }
 0x52c   : > { %v6856_v27 = vrot.slane %v16847_v21, 2  ;;  %9406 = vrot.lane.b32.xlu1 %v9338_v0, %s10547_s9  ;;  %v9342_v59 = vsel %vm11371_vm1, %v10347_v52, %v9341_v55  ;;  %v9346_v36 = vrot.slane %v9344_v35, 2  ;;  %v15019_v20 = vadd.f32 %v14712_v29, %v5044_v31  ;;  %v8063_v55 = vpop.permute.xlu1 %8062  ;;  %v16854_v52 = vld [vmem:[#allocation35_spill] sm:$0xff] }
 0x52d   : > { %16844 = vst [vmem:[#allocation58_spill] sm:$0xff] %v15004_v1  ;;  %16845 = vst [vmem:[#allocation27_spill] sm:$0xff] %v15011_v3  ;;  %v15022_v14 = vadd.f32 %v14863_v13, %v5045_v34  ;;  %v15025_v46 = vadd.f32 %v14831_v62, %v5046_v39  ;;  %9408 = vrot.lane.b32.xlu0 %v9342_v59, %s10547_s9  ;;  %v7911_v47 = vadd.f32 %v16851_v23, %v6919_v37  ;;  %v16856_v37 = vld [vmem:[#allocation36_spill] sm:$0xff] }
 0x52e   : > { %16848 = vst [vmem:[#allocation48_spill] sm:$0xff] %v15019_v20  ;;  %v4957_v4 = vrot.slane %v16852_v40, 2  ;;  %v6920_v0 = vadd.f32 %v6856_v27, %v6824_v38  ;;  %v6826_v1 = vadd.f32 %v6749_v58, %v16853_v26  ;;  %v7910_v53 = vadd.f32 %v16854_v52, %v6918_v28  ;;  %v8061_v20 = vpop.permute.xlu0 %8060  ;;  %v16858_v28 = vld [vmem:[#allocation74_spill] sm:$0xff]  ;;  %v16859_v27 = vld [vmem:[#allocation75_spill] sm:$0xff] }
 0x52f   : > { %16849 = vst [vmem:[#allocation82_spill] sm:$0xff] %v15022_v14  ;;  %16850 = vst [vmem:[#allocation61_spill] sm:$0xff] %v15025_v46  ;;  %v15032_v31 = vadd.f32 %v8063_v55, %v7911_v47  ;;  %v9345_v34 = vsel %vm11371_vm1, %v9343_v33, %v9344_v35  ;;  %v9349_v39 = vrot.slane %v9347_v16, 2  ;;  %v9350_v46 = vrot.slane %v15011_v3, 7  ;;  %v16860_v55 = vld [vmem:[#allocation77_spill] sm:$0xff] }
 0x530   : > { %v5047_v59 = vmul.f32 %v14868_v41, %v4956_v63  ;;  %v6858_v14 = vrot.slane %v16856_v37, 2  ;;  %v15039_v40 = vadd.f32 %v8061_v20, %v7910_v53  ;;  %9410 = vrot.lane.b32.xlu1 %v9345_v34, %s10547_s9  ;;  %v9348_v58 = vsel %vm11371_vm1, %v9346_v36, %v9347_v16  ;;  %v16861_v63 = vld [vmem:[#allocation78_spill] sm:$0xff]  ;;  %v16862_v53 = vld [vmem:[#allocation81_spill] sm:$0xff]  ;;  %v6755_v34 = vpop.permute.xlu1 %6754 }
 0x531   : > { %16855 = vst [vmem:[#allocation63_spill] sm:$0xff] %v15032_v31  ;;  %v4958_v38 = vrot.slane %v16858_v28, 2  ;;  %v4959_v47 = vrot.slane %v16859_v27, 2  ;;  %v4960_v35 = vrot.slane %v16860_v55, 2  ;;  %v6825_v33 = vadd.f32 %v14948_v17, %v16847_v21  ;;  %9412 = vrot.lane.b32.xlu0 %v9348_v58, %s10547_s9  ;;  %v16863_v31 = vld [vmem:[#allocation109_spill] sm:$0xff]  ;;  %v16864_v16 = vld [vmem:[#allocation14_spill] sm:$0xff] }
 0x532   : > { %16857 = vst [vmem:[#allocation31_spill] sm:$0xff] %v15039_v40  ;;  %v4961_v3 = vrot.slane %v16861_v63, 2  ;;  %v4962_v20 = vrot.slane %v16862_v53, 2  ;;  %v6922_v40 = vadd.f32 %v6858_v14, %v6826_v1  ;;  %v7912_v49 = vadd.f32 %v16863_v31, %v6920_v0  ;;  %v16865_v28 = vld [vmem:[#allocation84_spill] sm:$0xff]  ;;  %v8065_v55 = vpop.permute.xlu0 %8064  ;;  %v16866_v58 = vld [vmem:[#allocation83_spill] sm:$0xff] }
 0x533   : > { %v4963_v36 = vrot.slane %v16864_v16, 2  ;;  %v4964_v12 = vrot.slane %v16865_v28, 2  ;;  %v6857_v27 = vrot.slane %v16853_v26, 2  ;;  %v9351_v17 = vsel %vm11371_vm1, %v9349_v39, %v9350_v46 }
 0x534   : > { %v5048_v21 = vmul.f32 %v14673_v61, %v4957_v4  ;;  %v4965_v63 = vrot.slane %v16866_v58, 2  ;;  %v4966_v53 = vrot.slane %v16867_v54, 2  ;;  %v15061_v1 = vadd.f32 %v8065_v55, %v7912_v49  ;;  %9414 = vrot.lane.b32.xlu1 %v9351_v17, %s10547_s9  ;;  %v6759_v54 = vpop.permute.xlu1 %6758  ;;  %v16870_v49 = vld [vmem:[#allocation40_spill] sm:$0xff] }
 0x535   : > { %v15065_v14 = vadd.f32 %v14877_v56, %v5047_v59  ;;  %v5049_v0 = vmul.f32 %v14716_v42, %v4958_v38  ;;  %v6921_v26 = vadd.f32 %v6857_v27, %v6825_v33  ;;  %v6827_v30 = vadd.f32 %v14979_v7, %v16856_v37  ;;  %v16871_v38 = vld [vmem:[#allocation116_spill] sm:$0xff] }
 0x536   : > { %16868 = vst [vmem:[#allocation30_spill] sm:$0xff] %v15061_v1  ;;  %v5050_v46 = vmul.f32 %v14828_v24, %v4959_v47  ;;  %v5051_v4 = vmul.f32 %v14868_v41, %v4960_v35  ;;  %v5052_v31 = vmul.f32 %v14673_v61, %v4961_v3  ;;  %v7914_v39 = vadd.f32 %v16870_v49, %v6922_v40  ;;  %v8069_v27 = vpop.permute.xlu0 %8068  ;;  %v16872_v47 = vld [vmem:[#allocation68_spill] sm:$0xff] }
 0x537   : > { %16869 = vst [vmem:[#allocation18_spill] sm:$0xff] %v15065_v14  ;;  %v5053_v16 = vmul.f32 %v14716_v42, %v4962_v20  ;;  %v5054_v59 = vmul.f32 %v14828_v24, %v4963_v36  ;;  %v5055_v28 = vmul.f32 %v14868_v41, %v4964_v12  ;;  %v6859_v33 = vrot.slane %v16871_v38, 2  ;;  %v16876_v36 = vld [vmem:[#allocation43_spill] sm:$0xff]  ;;  %v16894_v14 = vld [vmem:[#allocation25_spill] sm:$0xff] }
 0x538   : > { %v5056_v7 = vmul.f32 %v14673_v61, %v4965_v63  ;;  %v5057_v37 = vmul.f32 %v14716_v42, %v4966_v53  ;;  %v4967_v35 = vrot.slane %v16872_v47, 2  ;;  %v15081_v55 = vadd.f32 %v8069_v27, %v7914_v39  ;;  %v16880_v53 = vld [vmem:[#allocation4_spill] sm:$0xff]  ;;  %v16888_v27 = vld [vmem:[#allocation91_spill] sm:$0xff] }
 0x539   : > { %v15084_v3 = vadd.f32 %v14712_v29, %v5048_v21  ;;  %v15087_v40 = vadd.f32 %v14863_v13, %v5049_v0  ;;  %v6923_v20 = vadd.f32 %v6859_v33, %v6827_v30  ;;  %v7913_v12 = vadd.f32 %v16876_v36, %v6921_v26  ;;  %v8067_v21 = vpop.permute.xlu1 %8066  ;;  %v16887_v33 = vld [vmem:[#allocation6_spill] sm:$0xff] }
 0x53a   : > { %16873 = vst [vmem:[#allocation22_spill] sm:$0xff] %v15081_v55  ;;  %v15091_v17 = vadd.f32 %v14831_v62, %v5050_v46  ;;  %v15094_v58 = vadd.f32 %v14877_v56, %v5051_v4  ;;  %v15097_v63 = vadd.f32 %v14712_v29, %v5052_v31  ;;  %v6828_v39 = vadd.f32 %v15006_v8, %v16880_v53  ;;  %v6757_v46 = vpop.permute.xlu0 %6756 }
 0x53b   : > { %16874 = vst [vmem:[#allocation59_spill] sm:$0xff] %v15084_v3  ;;  %16875 = vst [vmem:[#allocation105_spill] sm:$0xff] %v15087_v40  ;;  %v15102_v38 = vadd.f32 %v14863_v13, %v5053_v16  ;;  %v15105_v0 = vadd.f32 %v14831_v62, %v5054_v59  ;;  %v15108_v26 = vadd.f32 %v14877_v56, %v5055_v28  ;;  %v6860_v16 = vrot.slane %v16887_v33, 2  ;;  %v16889_v59 = vld [vmem:[#allocation87_spill] sm:$0xff]  ;;  %v16896_v40 = vld [vmem:[#allocation37_spill] sm:$0xff] }
 0x53c   : > { %16877 = vst [vmem:[#allocation28_spill] sm:$0xff] %v15091_v17  ;;  %16878 = vst [vmem:[#allocation107_spill] sm:$0xff] %v15094_v58  ;;  %v15110_v30 = vadd.f32 %v8067_v21, %v7913_v12  ;;  %v15113_v4 = vadd.f32 %v14712_v29, %v5056_v7  ;;  %v15116_v31 = vadd.f32 %v14863_v13, %v5057_v37  ;;  %v4968_v47 = vrot.slane %v16888_v27, 2  ;;  %v16891_v21 = vld [vmem:[#allocation94_spill] sm:$0xff]  ;;  %v16895_v58 = vld [vmem:[#allocation100_spill] sm:$0xff] }
 0x53d   : > { %16879 = vst [vmem:[#allocation125_spill] sm:$0xff] %v15097_v63  ;;  %16881 = vst [vmem:[#allocation32_spill] sm:$0xff] %v15102_v38  ;;  %v5058_v8 = vmul.f32 %v14828_v24, %v4967_v35  ;;  %v4969_v53 = vrot.slane %v16889_v59, 2  ;;  %v6829_v28 = vadd.f32 %v6755_v34, %v16887_v33  ;;  %v16892_v38 = vld [vmem:[#allocation88_spill] sm:$0xff]  ;;  %v6924_v37 = vadd.f32 %v6860_v16, %v6828_v39 }
 0x53e   : > { %16882 = vst [vmem:[#allocation113_spill] sm:$0xff] %v15105_v0  ;;  %16883 = vst [vmem:[#allocation76_spill] sm:$0xff] %v15108_v26  ;;  %v16890_v26 = vld [vmem:[#allocation130_spill] sm:$0xff]  ;;  %v4970_v0 = vrot.slane %v16891_v21, 2  ;;  %v4971_v7 = vrot.slane %v16892_v38, 2  ;;  %v4973_v35 = vrot.slane %v16894_v14, 2  ;;  %v6761_v59 = vpop.permute.xlu0 %6760  ;;  %v5059_v39 = vmul.f32 %v14868_v41, %v4968_v47 }
 0x53f   : > { %16884 = vst [vmem:[#allocation80_spill] sm:$0xff] %v15110_v30  ;;  %16885 = vst [vmem:[#allocation120_spill] sm:$0xff] %v15113_v4  ;;  %v7915_v12 = vadd.f32 %v16890_v26, %v6923_v20  ;;  %v16893_v4 = vld [vmem:[#allocation92_spill] sm:$0xff]  ;;  %v4974_v17 = vrot.slane %v16895_v58, 2  ;;  %v6861_v27 = vrot.slane %v16896_v40, 2  ;;  %v15133_v34 = vadd.f32 %v14831_v62, %v5058_v8  ;;  %v16899_v20 = vld [vmem:[#allocation99_spill] sm:$0xff] }
 0x540   : > { %16886 = vst [vmem:[#allocation73_spill] sm:$0xff] %v15116_v31  ;;  %v4972_v63 = vrot.slane %v16893_v4, 2  ;;  %v8071_v31 = vpop.permute.xlu1 %8070  ;;  %v4975_v33 = vrot.slane %v16899_v20, 2  ;;  %v16900_v21 = vld [vmem:[#allocation97_spill] sm:$0xff]  ;;  %v16902_v16 = vld [vmem:[#allocation20_spill] sm:$0xff]  ;;  %v16903_v58 = vld [vmem:[#allocation111_spill] sm:$0xff]  ;;  %v5062_v8 = vmul.f32 %v14828_v24, %v4971_v7 }
 0x541   : > { %v15130_v3 = vadd.f32 %v8071_v31, %v7915_v12  ;;  %16898 = vst [vmem:[#allocation35_spill] sm:$0xff] %v15133_v34  ;;  %v4976_v38 = vrot.slane %v16900_v21, 2  ;;  %v16901_v30 = vld [vmem:[#allocation21_spill] sm:$0xff]  ;;  %v4978_v14 = vrot.slane %v16902_v16, 2  ;;  %v6925_v55 = vadd.f32 %v6861_v27, %v6829_v28  ;;  %v16905_v20 = vld [vmem:[#allocation131_spill] sm:$0xff] }
 0x542   : > { %v4977_v4 = vrot.slane %v16901_v30, 2  ;;  %v6831_v1 = vadd.f32 %v6759_v54, %v16903_v58  ;;  %v5060_v31 = vmul.f32 %v14673_v61, %v4969_v53  ;;  %v5061_v12 = vmul.f32 %v14716_v42, %v4970_v0  ;;  %v16906_v16 = vld [vmem:[#allocation39_spill] sm:$0xff]  ;;  %v8073_v27 = vpop.permute.xlu0 %8072 }
 0x543   : > { %16897 = vst [vmem:[#allocation114_spill] sm:$0xff] %v15130_v3  ;;  %v7916_v3 = vadd.f32 %v16905_v20, %v6924_v37  ;;  %v5063_v21 = vmul.f32 %v14868_v41, %v4972_v63  ;;  %v5064_v30 = vmul.f32 %v14673_v61, %v4973_v35  ;;  %v5065_v47 = vmul.f32 %v14716_v42, %v4974_v17  ;;  %v16907_v37 = vld [vmem:[#allocation95_spill] sm:$0xff] }
 0x544   : > { %v15144_v34 = vpop.permute.xlu1 %6762  ;;  %v6863_v28 = vrot.slane %v16906_v16, 2  ;;  %v5066_v54 = vmul.f32 %v14828_v24, %v4975_v33  ;;  %v5067_v53 = vmul.f32 %v14868_v41, %v4976_v38  ;;  %v5068_v0 = vmul.f32 %v14673_v61, %v4977_v4  ;;  %v16938_v41 = vld [vmem:[#allocation49_spill] sm:$0xff] }
 0x545   : > { %16904 = vst [vmem:[#allocation36_spill] sm:$0xff] %v15144_v34  ;;  %v15154_v7 = vadd.f32 %v8073_v27, %v7916_v3  ;;  %v5069_v34 = vmul.f32 %v14716_v42, %v4978_v14  ;;  %v4979_v20 = vrot.slane %v16907_v37, 2  ;;  %v7917_v35 = vadd.f32 %v16908_v57, %v6925_v55 }
 0x546   : > { %v6927_v63 = vadd.f32 %v6863_v28, %v6831_v1  ;;  %v15160_v17 = vadd.f32 %v14877_v56, %v5059_v39  ;;  %v15163_v16 = vadd.f32 %v14712_v29, %v5060_v31  ;;  %v15166_v33 = vadd.f32 %v14863_v13, %v5061_v12  ;;  %v15180_v4 = vpop.permute.xlu0 %6764  ;;  %v10348_v28 = vld [vmem:[%s15737_s4 + $0x4] ss:$0 sm:$0xff] }
 0x547   : > { %v6830_v61 = vadd.f32 %v6757_v46, %v16896_v40  ;;  %v15170_v38 = vadd.f32 %v14831_v62, %v5062_v8  ;;  %v15173_v42 = vadd.f32 %v14877_v56, %v5063_v21  ;;  %v15176_v1 = vadd.f32 %v14712_v29, %v5064_v30  ;;  %v16921_v21 = vld [vmem:[#allocation133_spill] sm:$0xff] }
 0x548   : > { %16909 = vst [vmem:[#allocation74_spill] sm:$0xff] %v15160_v17  ;;  %16910 = vst [vmem:[#allocation75_spill] sm:$0xff] %v15163_v16  ;;  %v8075_v3 = vpop.permute.xlu1 %8074  ;;  %v15183_v39 = vadd.f32 %v14863_v13, %v5065_v47  ;;  %v15186_v14 = vadd.f32 %v14831_v62, %v5066_v54  ;;  %v15189_v40 = vadd.f32 %v14877_v56, %v5067_v53  ;;  %v6862_v46 = vrot.slane %v16903_v58, 2  ;;  %v16923_v53 = vld [vmem:[#allocation129_spill] sm:$0xff]  ;;  %v16924_v58 = vld [vmem:[#allocation110_spill] sm:$0xff] }
 0x549   : > { %16911 = vst [vmem:[#allocation77_spill] sm:$0xff] %v15166_v33  ;;  %16912 = vst [vmem:[#allocation78_spill] sm:$0xff] %v15170_v38  ;;  %v15178_v55 = vadd.f32 %v8075_v3, %v7917_v35  ;;  %v15193_v31 = vadd.f32 %v14712_v29, %v5068_v0  ;;  %v15196_v12 = vadd.f32 %v14863_v13, %v5069_v34  ;;  %v16925_v0 = vld [vmem:[#allocation17_spill] sm:$0xff]  ;;  %v16930_v29 = vld [vmem:[#allocation136_spill] sm:$0xff] }
 0x54a   : > { %16913 = vst [vmem:[#allocation81_spill] sm:$0xff] %v15173_v42  ;;  %16914 = vst [vmem:[#allocation109_spill] sm:$0xff] %v15176_v1  ;;  %v15199_v8 = vmul.f32 %v14828_v24, %v4979_v20  ;;  %v7919_v30 = vadd.f32 %v16921_v21, %v6927_v63  ;;  %v6926_v54 = vadd.f32 %v6862_v46, %v6830_v61  ;;  %v8183_v13 = vrot.slane %v16925_v0, 2  ;;  %v6769_v56 = vpop.permute.xlu0 %6768  ;;  %v16926_v63 = vld [vmem:[#allocation33_spill] sm:$0xff]  ;;  %v16928_v46 = vld [vmem:[#allocation123_spill] sm:$0xff] }
 0x54b   : > { %16915 = vst [vmem:[#allocation14_spill] sm:$0xff] %v15183_v39  ;;  %16916 = vst [vmem:[#allocation84_spill] sm:$0xff] %v15186_v14  ;;  %v6832_v37 = vadd.f32 %v6761_v59, %v16923_v53  ;;  %v16931_v62 = vld [vmem:[#allocation137_spill] sm:$0xff]  ;;  %v6868_v59 = vrot.slane %v14377_v2, 2  ;;  %v6867_v53 = vrot.slane %v14327_v19, 2  ;;  %v16936_v39 = vld [vmem:[#allocation138_spill] sm:$0xff] }
 0x54c   : > { %16917 = vst [vmem:[#allocation83_spill] sm:$0xff] %v15189_v40  ;;  %16918 = vst [vmem:[#allocation90_spill] sm:$0xff] %v15193_v31  ;;  %v8079_v35 = vpop.permute.xlu1 %8078  ;;  %v7918_v20 = vadd.f32 %v16930_v29, %v6926_v54  ;;  %v16934_v61 = vld [vmem:[#allocation45_spill] sm:$0xff]  ;;  %v6871_v1 = vrot.slane %v16936_v39, 2  ;;  %v16946_v21 = vld [vmem:[#allocation139_spill] sm:$0xff] }
 0x54d   : > { %16919 = vst [vmem:[#allocation40_spill] sm:$0xff] %v15196_v12  ;;  %16920 = vst [vmem:[#allocation116_spill] sm:$0xff] %v15199_v8  ;;  %v8151_v34 = vadd.f32 %v8079_v35, %v7919_v30  ;;  %v16927_v12 = vld [vmem:[#allocation41_spill] sm:$0xff]  ;;  %v9582_v30 = vcombine.high %v10348_v28, %v10348_v28  ;;  %v16950_v39 = vld [vmem:[#allocation52_spill] sm:$0xff] }
 0x54e   : > { %v6864_v27 = vrot.slane %v16927_v12, 2  ;;  %v8077_v8 = vpop.permute.xlu0 %8076  ;;  %v16937_v31 = vld [vmem:[#allocation53_spill] sm:$0xff]  ;;  %v16958_v38 = vld [vmem:[#allocation11_spill] sm:$0xff] }
 0x54f   : > { %v15215_v3 = vadd.f32 %v8183_v13, %v8151_v34  ;;  %v16932_v13 = vld [vmem:[#allocation42_spill] sm:$0xff]  ;;  %v15231_v54 = vadd.f32 %v8077_v8, %v7918_v20  ;;  %v16935_v8 = vld [vmem:[#allocation140_spill] sm:$0xff]  ;;  %v16939_v33 = vld [vmem:[#allocation89_spill] sm:$0xff]  ;;  %v15251_v47 = vrot.slane %v9582_v30, %v11349_v51 }
 0x550   : > { %v6928_v35 = vadd.f32 %v6864_v27, %v6832_v37  ;;  %v6767_v24 = vpop.permute.xlu1 %6766  ;;  %v10349_v27 = vld [vmem:[%s15737_s4 + $0x5] ss:$0 sm:$0xff]  ;;  %v16941_v34 = vld [vmem:[#allocation60_spill] sm:$0xff]  ;;  %v16999_v29 = vld [vmem:[#allocation31_spill] sm:$0xff] }
 0x551   : > { %16929 = vst [vmem:[#allocation68_spill] sm:$0xff] %v15215_v3  ;;  %16933 = vst [vmem:[#allocation43_spill] sm:$0xff] %v15231_v54  ;;  %v9641_v0 = vcombine.high %v10349_v27, %v10349_v27  ;;  %v8187_v17 = vrot.slane %v16941_v34, 2  ;;  %v16947_v54 = vld [vmem:[#allocation86_spill] sm:$0xff]  ;;  %v15265_v30 = vrot.slane %v10349_v27, %v11349_v51  ;;  %v16949_v34 = vld [vmem:[#allocation115_spill] sm:$0xff] }
 0x552   : > { %v7920_v37 = vadd.f32 %v14404_v9, %v6928_v35  ;;  %v8081_v14 = vpop.permute.xlu0 %8080  ;;  %16942 = vst [vmem:[#allocation6_spill] sm:$0xff] %v15251_v47  ;;  %v6835_v35 = vadd.f32 %v6767_v24, %v16934_v61  ;;  %v6836_v16 = vadd.f32 %v6769_v56, %v16947_v54  ;;  %v15276_v56 = vcombine.high %v15251_v47, %v15251_v47  ;;  %v16953_v27 = vld [vmem:[#allocation56_spill] sm:$0xff] }
 0x553   : > { %v15254_v9 = vrot.slane %v9641_v0, %v11349_v51  ;;  %16948 = vst [vmem:[#allocation87_spill] sm:$0xff] %v15265_v30  ;;  %v15289_v42 = vcombine.high %v15265_v30, %v15265_v30  ;;  %v16973_v30 = vld [vmem:[#allocation98_spill] sm:$0xff] }
 0x554   : > { %v15239_v40 = vpop.permute.xlu1 %6770  ;;  %v15247_v19 = vadd.f32 %v8081_v14, %v7920_v37  ;;  %v15262_v37 = vrot.slane %v10348_v28, %v11349_v51  ;;  %16951 = vst [vmem:[#allocation130_spill] sm:$0xff] %v15276_v56  ;;  %v6931_v0 = vadd.f32 %v6867_v53, %v6835_v35  ;;  %v6932_v51 = vadd.f32 %v6868_v59, %v6836_v16  ;;  %v16959_v59 = vld [vmem:[#allocation10_spill] sm:$0xff]  ;;  %v16967_v16 = vld [vmem:[#allocation64_spill] sm:$0xff] }
 0x555   : > { %16943 = vst [vmem:[#allocation91_spill] sm:$0xff] %v15254_v9  ;;  %v15280_v28 = vcombine.high %v15254_v9, %v15254_v9  ;;  %16955 = vst [vmem:[#allocation92_spill] sm:$0xff] %v15289_v42  ;;  %v16969_v9 = vld [vmem:[#allocation96_spill] sm:$0xff] }
 0x556   : > { %16940 = vst [vmem:[#allocation4_spill] sm:$0xff] %v15247_v19  ;;  %v15269_v24 = vpop.permute.xlu0 %6772  ;;  %v7923_v54 = vadd.f32 %v16939_v33, %v6931_v0  ;;  %v16980_v0 = vld [vmem:[#allocation93_spill] sm:$0xff]  ;;  %v16988_v33 = vld [vmem:[#allocation103_spill] sm:$0xff] }
 0x557   : > { %16952 = vst [vmem:[#allocation94_spill] sm:$0xff] %v15280_v28  ;;  %v8229_v47 = vadd.f32 %v16981_v10, %v16980_v0  ;;  %v6834_v10 = vadd.f32 %v15180_v4, %v16932_v13 }
 0x558   : > { %v6775_v14 = vpop.permute.xlu1 %6774 }
 0x559   : > { %v6839_v19 = vadd.f32 %v6775_v14, %v16937_v31  ;;  %v15285_v14 = vcombine.high %v15262_v37, %v15262_v37  ;;  %v7924_v31 = vadd.f32 %v16967_v16, %v6932_v51 }
 0x55a   : > { %v15297_v3 = vpop.permute.xlu0 %8084 }
 0x55b   : > { %16954 = vst [vmem:[#allocation88_spill] sm:$0xff] %v15285_v14  ;;  %v6935_v20 = vadd.f32 %v6871_v1, %v6839_v19  ;;  %16956 = vst [vmem:[#allocation25_spill] sm:$0xff] %v15297_v3  ;;  %v16966_v19 = vrot.slane %v16807_v22, 2  ;;  %v16986_v3 = vld [vmem:[#allocation132_spill] sm:$0xff]  ;;  %v16989_v14 = vrot.slane %v16801_v43, 2 }
 0x55c   : > { %v15292_v56 = vpop.permute.xlu1 %8082 }
 0x55d   : > { %v8232_v42 = vadd.f32 %v16966_v19, %v16965_v11  ;;  %v16974_v11 = vld [vmem:[#allocation26_spill] sm:$0xff]  ;;  %v16984_v19 = vld [vmem:[#allocation36_spill] sm:$0xff]  ;;  %v8233_v48 = vadd.f32 %v16989_v14, %v16988_v33  ;;  %v16997_v33 = vld [vmem:[#allocation63_spill] sm:$0xff]  ;;  %v16998_v14 = vrot.slane %v16928_v46, 2  ;;  %v15374_v46 = vadd.f32 %v14623_v25, %v8229_v47 }
 0x55e   : > { %v8089_v50 = vpop.permute.xlu0 %8088  ;;  %v6833_v53 = vadd.f32 %v16984_v19, %v16927_v12  ;;  %v16992_v12 = vrot.slane %v16926_v63, 2  ;;  %v7927_v63 = vadd.f32 %v16950_v39, %v6935_v20 }
 0x55f   : > { %v15320_v1 = vadd.f32 %v8089_v50, %v7924_v31  ;;  %v16982_v50 = vld [vmem:[#allocation72_spill] sm:$0xff]  ;;  %v16983_v31 = vrot.slane %v16924_v58, 2  ;;  %v8239_v4 = vadd.f32 %v16998_v14, %v16997_v33  ;;  %v17010_v14 = vrot.slane %v16949_v34, 2 }
 0x560   : > { %v8087_v35 = vpop.permute.xlu1 %8086 }
 0x561   : > { %v8155_v28 = vadd.f32 %v8087_v35, %v7923_v54  ;;  %v8231_v22 = vadd.f32 %v16983_v31, %v16982_v50  ;;  %v16987_v35 = vrot.slane %v16819_v15, 2  ;;  %v16991_v31 = vld [vmem:[#allocation121_spill] sm:$0xff]  ;;  %v16993_v54 = vld [vmem:[#allocation79_spill] sm:$0xff]  ;;  %v16995_v15 = vld [vmem:[#allocation58_spill] sm:$0xff]  ;;  %v17000_v50 = vrot.slane %v16851_v23, 2 }
 0x562   : > { %v9369_v58 = vpop.permute.xlu0 %9368  ;;  %v8235_v19 = vadd.f32 %v16992_v12, %v16991_v31  ;;  %v17005_v23 = vrot.slane %v16934_v61, 2  ;;  %v17008_v61 = vld [vmem:[#allocation22_spill] sm:$0xff] }
 0x563   : > { %v15325_v16 = vadd.f32 %v8187_v17, %v8155_v28  ;;  %v16985_v17 = vld [vmem:[#allocation54_spill] sm:$0xff]  ;;  %v8234_v44 = vadd.f32 %v16987_v35, %v16986_v3  ;;  %v16996_v3 = vrot.slane %v16854_v52, 2  ;;  %v8238_v0 = vadd.f32 %v17000_v50, %v16999_v29 }
 0x564   : > { %v15338_v51 = vpop.permute.xlu1 %8090  ;;  %v9224_v28 = vadd.f32 %v16985_v17, %v8232_v42  ;;  %v16994_v42 = vrot.slane %v16841_v45, 2  ;;  %v17003_v45 = vrot.slane %v16876_v36, 2  ;;  %v17004_v52 = vrot.slane %v16932_v13, 2 }
 0x565   : > { %16976 = vst [vmem:[#allocation100_spill] sm:$0xff] %v15325_v16  ;;  %v8237_v35 = vadd.f32 %v16996_v3, %v16995_v15  ;;  %v17002_v16 = vld [vmem:[#allocation30_spill] sm:$0xff]  ;;  %v6930_v29 = vadd.f32 %v17005_v23, %v6834_v10  ;;  %v9226_v15 = vadd.f32 %v16953_v27, %v8234_v44  ;;  %v9225_v36 = vadd.f32 %v16946_v21, %v8233_v48 }
 0x566   : > { %v8236_v17 = vadd.f32 %v16994_v42, %v16993_v54  ;;  %v9456_v43 = vadd.f32 %v9369_v58, %v9224_v28  ;;  %v8240_v54 = vadd.f32 %v17003_v45, %v17002_v16  ;;  %v6929_v42 = vadd.f32 %v17004_v52, %v6833_v53  ;;  %v15378_v20 = vpop.permute.xlu0 %8092  ;;  %v17007_v3 = vld [vmem:[#allocation66_spill] sm:$0xff]  ;;  %v17014_v45 = vld [vmem:[#allocation16_spill] sm:$0xff] }
 0x567   : > { %v9223_v58 = vadd.f32 %v16958_v38, %v8231_v22  ;;  %v17006_v16 = vrot.slane %v16946_v21, 2  ;;  %v9227_v53 = vadd.f32 %v14563_v60, %v8235_v19  ;;  %v15389_v47 = vadd.f32 %v14609_v32, %v8237_v35  ;;  %v17012_v19 = vld [vmem:[#allocation80_spill] sm:$0xff]  ;;  %v17015_v52 = vld [vmem:[#allocation114_spill] sm:$0xff] }
 0x568   : > { %v8095_v28 = vpop.permute.xlu1 %8094  ;;  %v15386_v22 = vadd.f32 %v17007_v3, %v8236_v17  ;;  %v17009_v10 = vrot.slane %v16890_v26, 2  ;;  %v15399_v48 = vadd.f32 %v16959_v59, %v8238_v0  ;;  %v15402_v21 = vadd.f32 %v16960_v6, %v8239_v4  ;;  %v17018_v3 = vld [vmem:[#allocation136_spill] sm:$0xff] }
 0x569   : > { %v8159_v50 = vadd.f32 %v8095_v28, %v7927_v63  ;;  %v9552_v13 = vadd.f32 %v17006_v16, %v9456_v43  ;;  %v17013_v17 = vrot.slane %v16870_v49, 2  ;;  %v6837_v35 = vadd.f32 %v15239_v40, %v14377_v2 }
 0x56a   : > { %v8242_v33 = vadd.f32 %v17009_v10, %v17008_v61  ;;  %v7921_v26 = vadd.f32 %v16935_v8, %v6929_v42  ;;  %v15411_v34 = vadd.f32 %v17014_v45, %v8240_v54  ;;  %v17016_v0 = vrot.slane %v16931_v62, 2  ;;  %v17020_v10 = vld [vmem:[#allocation25_spill] sm:$0xff] }
 0x56b   : > { %v15396_v44 = vadd.f32 %v17010_v14, %v8159_v50  ;;  %v8241_v43 = vadd.f32 %v17013_v17, %v17012_v19  ;;  %v6838_v4 = vadd.f32 %v15269_v24, %v14424_v5  ;;  %v7922_v23 = vadd.f32 %v16938_v41, %v6930_v29  ;;  %v9373_v50 = vpop.permute.xlu0 %9372  ;;  %v17021_v24 = vld [vmem:[#allocation19_spill] sm:$0xff] }
 0x56c   : > { %v9367_v63 = vpop.permute.xlu1 %9366  ;;  %v8243_v28 = vadd.f32 %v17016_v0, %v17015_v52  ;;  %v17017_v2 = vrot.slane %v16908_v57, 2  ;;  %v8153_v42 = vadd.f32 %v15292_v56, %v7921_v26  ;;  %v9611_v54 = vmul.f32 %v15262_v37, %v9552_v13  ;;  %v17025_v57 = vld [vmem:[#allocation133_spill] sm:$0xff] }
 0x56d   : > { %17011 = vst [vmem:[#allocation37_spill] sm:$0xff] %v15396_v44  ;;  %v9455_v49 = vadd.f32 %v9367_v63, %v9223_v58  ;;  %v9458_v16 = vadd.f32 %v9373_v50, %v9226_v15  ;;  %v17019_v62 = vrot.slane %v17018_v3, 2  ;;  %v8154_v14 = vadd.f32 %v17020_v10, %v7922_v23  ;;  %v17023_v58 = vld [vmem:[#allocation112_spill] sm:$0xff]  ;;  %v17024_v63 = vld [vmem:[#allocation43_spill] sm:$0xff]  ;;  %v17057_v44 = vld [vmem:[#allocation65_spill] sm:$0xff] }
 0x56e   : > { %v8244_v40 = vadd.f32 %v17017_v2, %v15154_v7  ;;  %v17022_v19 = vrot.slane %v17021_v24, 2  ;;  %v15431_v17 = vadd.f32 %v17023_v58, %v8242_v33  ;;  %v17026_v7 = vrot.slane %v17025_v57, 2  ;;  %v17030_v23 = vld [vmem:[#allocation4_spill] sm:$0xff]  ;;  %v17032_v33 = vld [vmem:[#allocation53_spill] sm:$0xff]  ;;  %v17034_v24 = vld [vmem:[#allocation118_spill] sm:$0xff] }
 0x56f   : > { %v8245_v61 = vadd.f32 %v17019_v62, %v15178_v55  ;;  %v17027_v56 = vrot.slane %v14424_v5, 2  ;;  %v17028_v15 = vrot.slane %v14563_v60, 2  ;;  %v17029_v55 = vld [vmem:[#allocation71_spill] sm:$0xff]  ;;  %v17033_v2 = vrot.slane %v17032_v33, 2  ;;  %v9353_v10 = vpop.permute.xlu0 %9352  ;;  %v17038_v57 = vld [vmem:[#allocation108_spill] sm:$0xff] }
 0x570   : > { %v9551_v29 = vadd.f32 %v17022_v19, %v9455_v49  ;;  %v8246_v45 = vadd.f32 %v17026_v7, %v17024_v63  ;;  %v9371_v52 = vpop.permute.xlu1 %9370  ;;  %v15441_v0 = vadd.f32 %v17029_v55, %v8241_v43  ;;  %v17031_v49 = vrot.slane %v16935_v8, 2  ;;  %v17037_v63 = vld [vmem:[#allocation69_spill] sm:$0xff] }
 0x571   : > { %v6933_v13 = vadd.f32 %v17027_v56, %v6837_v35  ;;  %v9554_v26 = vadd.f32 %v17028_v15, %v9458_v16  ;;  %v6934_v3 = vadd.f32 %v17033_v2, %v6838_v4  ;;  %v9457_v62 = vadd.f32 %v9371_v52, %v9225_v36  ;;  %v17036_v35 = vld [vmem:[#allocation87_spill] sm:$0xff]  ;;  %v17039_v8 = vld [vmem:[#allocation89_spill] sm:$0xff] }
 0x572   : > { %v8248_v50 = vadd.f32 %v17031_v49, %v17030_v23  ;;  %v15449_v19 = vadd.f32 %v17034_v24, %v8243_v28  ;;  %v17035_v5 = vrot.slane %v16938_v41, 2  ;;  %v9670_v16 = vadd.f32 %v17036_v35, %v9611_v54  ;;  %v17041_v23 = vld [vmem:[#allocation6_spill] sm:$0xff]  ;;  %v17043_v41 = vld [vmem:[#allocation8_spill] sm:$0xff]  ;;  %v17044_v49 = vld [vmem:[#allocation51_spill] sm:$0xff] }
 0x573   : > { %v9448_v43 = vadd.f32 %v9353_v10, %v17037_v63  ;;  %v15456_v7 = vadd.f32 %v17038_v57, %v8244_v40  ;;  %v17040_v56 = vrot.slane %v17039_v8, 2  ;;  %v9613_v4 = vmul.f32 %v17041_v23, %v9554_v26  ;;  %v17046_v10 = vld [vmem:[#allocation117_spill] sm:$0xff]  ;;  %v9357_v57 = vpop.permute.xlu0 %9356  ;;  %v17050_v8 = vld [vmem:[#allocation124_spill] sm:$0xff] }
 0x574   : > { %v8249_v60 = vadd.f32 %v17035_v5, %v8153_v42  ;;  %v17042_v36 = vrot.slane %v16953_v27, 2  ;;  %v15464_v28 = vadd.f32 %v16969_v9, %v8245_v61  ;;  %v7925_v42 = vadd.f32 %v17043_v41, %v6933_v13  ;;  %v9375_v2 = vpop.permute.xlu1 %9374  ;;  %v17047_v5 = vld [vmem:[#allocation68_spill] sm:$0xff]  ;;  %v17048_v26 = vld [vmem:[#allocation85_spill] sm:$0xff] }
 0x575   : > { %v8250_v15 = vadd.f32 %v17040_v56, %v8154_v14  ;;  %v17045_v54 = vrot.slane %v17044_v49, 2  ;;  %v15470_v40 = vadd.f32 %v17046_v10, %v8246_v45  ;;  %v15474_v14 = vadd.f32 %v16971_v18, %v17047_v5  ;;  %v17049_v27 = vld [vmem:[#allocation88_spill] sm:$0xff]  ;;  %v17052_v56 = vld [vmem:[#allocation59_spill] sm:$0xff] }
 0x576   : > { %v9553_v52 = vadd.f32 %v17042_v36, %v9457_v62  ;;  %v15477_v63 = vadd.f32 %v17048_v26, %v6934_v3  ;;  %v9459_v61 = vadd.f32 %v9375_v2, %v9227_v53  ;;  %v15481_v13 = vadd.f32 %v17050_v8, %v8248_v50  ;;  %v17053_v45 = vld [vmem:[#allocation15_spill] sm:$0xff]  ;;  %v17056_v3 = vld [vmem:[#allocation92_spill] sm:$0xff] }
 0x577   : > { %v9544_v33 = vadd.f32 %v17045_v54, %v9448_v43  ;;  %v9702_v43 = vadd.f32 %v9670_v16, %v17052_v56  ;;  %v9450_v49 = vadd.f32 %v9357_v57, %v17053_v45  ;;  %v15487_v54 = vadd.f32 %v16973_v30, %v8249_v60  ;;  %v17055_v5 = vld [vmem:[#allocation91_spill] sm:$0xff]  ;;  %v17062_v60 = vld [vmem:[#allocation50_spill] sm:$0xff]  ;;  %v17064_v30 = vld [vmem:[#allocation105_spill] sm:$0xff] }
 0x578   : > { %v9612_v62 = vmul.f32 %v17049_v27, %v9553_v52  ;;  %17051 = vst [vmem:[#allocation99_spill] sm:$0xff] %v15481_v13  ;;  %v9672_v12 = vadd.f32 %v17055_v5, %v9613_v4  ;;  %v17058_v52 = vrot.slane %v17057_v44, 2  ;;  %v15494_v2 = vadd.f32 %v16974_v11, %v8250_v15  ;;  %v9355_v4 = vpop.permute.xlu1 %9354  ;;  %v17065_v15 = vld [vmem:[#allocation13_spill] sm:$0xff]  ;;  %v9377_v11 = vpop.permute.xlu0 %9376 }
 0x579   : > { %v9603_v36 = vmul.f32 %v15262_v37, %v9544_v33  ;;  %17054 = vst [vmem:[#allocation97_spill] sm:$0xff] %v15487_v54  ;;  %v17060_v50 = vrot.slane %v17043_v41, 2  ;;  %v17061_v33 = vld [vmem:[#allocation130_spill] sm:$0xff]  ;;  %v17063_v56 = vrot.slane %v17062_v60, 2  ;;  %v17066_v41 = vld [vmem:[#allocation100_spill] sm:$0xff] }
 0x57a   : > { %v9671_v31 = vadd.f32 %v17056_v3, %v9612_v62  ;;  %v9555_v53 = vadd.f32 %v17058_v52, %v9459_v61  ;;  %17059 = vst [vmem:[#allocation21_spill] sm:$0xff] %v15494_v2  ;;  %v9610_v8 = vmul.f32 %v17061_v33, %v9551_v29  ;;  %v8157_v62 = vadd.f32 %v15338_v51, %v7925_v42  ;;  %v17070_v51 = vld [vmem:[#allocation94_spill] sm:$0xff] }
 0x57b   : > { %v8252_v16 = vadd.f32 %v17060_v50, %v15320_v1  ;;  %v9662_v57 = vadd.f32 %v17036_v35, %v9603_v36  ;;  %v9546_v45 = vadd.f32 %v17063_v56, %v9450_v49  ;;  %v9449_v52 = vadd.f32 %v9355_v4, %v17065_v15  ;;  %v17067_v36 = vld [vmem:[#allocation23_spill] sm:$0xff]  ;;  %v17069_v49 = vld [vmem:[#allocation28_spill] sm:$0xff]  ;;  %v17073_v15 = vld [vmem:[#allocation9_spill] sm:$0xff] }
 0x57c   : > { %v9703_v44 = vadd.f32 %v9671_v31, %v17064_v30  ;;  %v9614_v61 = vmul.f32 %v17061_v33, %v9555_v53  ;;  %v9734_v2 = vmax.f32 %v9702_v43, 0.0  ;;  %v9460_v29 = vadd.f32 %v9377_v11, %v15386_v22  ;;  %v17071_v30 = vld [vmem:[#allocation46_spill] sm:$0xff]  ;;  %v9359_v11 = vpop.permute.xlu1 %9358  ;;  %v17075_v22 = vld [vmem:[#allocation29_spill] sm:$0xff] }
 0x57d   : > { %v9605_v1 = vmul.f32 %v17041_v23, %v9546_v45  ;;  %v15511_v50 = vadd.f32 %v17067_v36, %v17066_v41  ;;  %v9704_v60 = vadd.f32 %v9672_v12, %v17069_v49  ;;  %v17072_v31 = vrot.slane %v17071_v30, 2  ;;  %v9361_v30 = vpop.permute.xlu0 %9360 }
 0x57e   : > { %v9735_v56 = vmax.f32 %v9703_v44, 0.0  ;;  %v9673_v42 = vadd.f32 %v17070_v51, %v9614_v61  ;;  %v9669_v4 = vadd.f32 %v17070_v51, %v9610_v8  ;;  %v9694_v43 = vadd.f32 %v9662_v57, %v17073_v15  ;;  %v17077_v61 = vld [vmem:[#allocation67_spill] sm:$0xff] }
 0x57f   : > { %17068 = vst [vmem:[#allocation20_spill] sm:$0xff] %v15511_v50  ;;  %v9545_v53 = vadd.f32 %v17072_v31, %v9449_v52  ;;  %v17074_v45 = vrot.slane %v14609_v32, 2  ;;  %v15522_v13 = vadd.f32 %v17075_v22, %v8252_v16  ;;  %v17076_v50 = vld [vmem:[#allocation107_spill] sm:$0xff]  ;;  %v9451_v49 = vadd.f32 %v9359_v11, %v17077_v61  ;;  %v17084_v61 = vld [vmem:[#allocation104_spill] sm:$0xff] }
 0x580   : > { %v9824_v41 = vcombine.low %v9734_v2, %v9735_v56  ;;  %v9705_v12 = vadd.f32 %v9673_v42, %v17076_v50  ;;  %v17078_v52 = vrot.slane %v17048_v26, 2  ;;  %v9664_v57 = vadd.f32 %v17055_v5, %v9605_v1  ;;  %v17080_v50 = vld [vmem:[#allocation135_spill] sm:$0xff] }
 0x581   : > { %v9556_v54 = vadd.f32 %v17074_v45, %v9460_v29  ;;  %v9604_v44 = vmul.f32 %v17049_v27, %v9545_v53  ;;  %v17079_v29 = vld [vmem:[#allocation24_spill] sm:$0xff]  ;;  %v9736_v16 = vmax.f32 %v9704_v60, 0.0  ;;  %v17081_v56 = vrot.slane %v17080_v50, 2  ;;  %v17082_v53 = vld [vmem:[#allocation18_spill] sm:$0xff] }
 0x582   : > { %v15529_v8 = vadd.f32 %v17078_v52, %v8157_v62  ;;  %v9452_v31 = vadd.f32 %v9361_v30, %v17079_v29  ;;  %v9737_v15 = vmax.f32 %v9705_v12, 0.0  ;;  %v15538_v45 = vadd.f32 %v9669_v4, %v17082_v53  ;;  %v9365_v30 = vpop.permute.xlu0 %9364  ;;  %v17085_v52 = vld [vmem:[#allocation7_spill] sm:$0xff]  ;;  %v17087_v50 = vld [vmem:[#allocation122_spill] sm:$0xff] }
 0x583   : > { %v9615_v32 = vmul.f32 %v15262_v37, %v9556_v54  ;;  %v9663_v2 = vadd.f32 %v17056_v3, %v9604_v44  ;;  %v9547_v42 = vadd.f32 %v17081_v56, %v9451_v49  ;;  %v9726_v26 = vmax.f32 %v9694_v43, 0.0  ;;  %v9363_v54 = vpop.permute.xlu1 %9362  ;;  %v17086_v29 = vld [vmem:[#allocation55_spill] sm:$0xff] }
 0x584   : > { %v17083_v1 = vrot.slane %v14623_v25, 2  ;;  %v9825_v22 = vcombine.low %v9736_v16, %v9737_v15  ;;  %v9453_v44 = vadd.f32 %v9363_v54, %v15374_v46  ;;  %v9832_v49 = vrot.slane %v9824_v41, %v17085_v52  ;;  %v17088_v15 = vld [vmem:[#allocation62_spill] sm:$0xff] }
 0x585   : > { %v9674_v62 = vadd.f32 %v17036_v35, %v9615_v32  ;;  %v9695_v60 = vadd.f32 %v9663_v2, %v17084_v61  ;;  %v9606_v12 = vmul.f32 %v17061_v33, %v9547_v42  ;;  %v9696_v4 = vadd.f32 %v9664_v57, %v17086_v29  ;;  %v17090_v42 = vld [vmem:[#allocation125_spill] sm:$0xff]  ;;  %v17093_v29 = vld [vmem:[#allocation48_spill] sm:$0xff] }
 0x586   : > { %v9548_v11 = vadd.f32 %v17083_v1, %v9452_v31  ;;  %v9454_v32 = vadd.f32 %v9365_v30, %v17087_v50  ;;  %v9839_v25 = vrot.slane %v9825_v22, %v17085_v52  ;;  %v17089_v2 = vrot.slane %v17088_v15, 2  ;;  %v17092_v22 = vld [vmem:[#allocation34_spill] sm:$0xff]  ;;  %v9381_v30 = vpop.permute.xlu0 %9380 }
 0x587   : > { %v9727_v31 = vmax.f32 %v9695_v60, 0.0  ;;  %v9665_v16 = vadd.f32 %v17070_v51, %v9606_v12  ;;  %v9733_v46 = vmax.f32 %v15538_v45, 0.0  ;;  %v15557_v53 = vadd.f32 %v9674_v62, %v17090_v42 }
 0x588   : > { %v9607_v43 = vmul.f32 %v15262_v37, %v9548_v11  ;;  %v9549_v56 = vadd.f32 %v17089_v2, %v9453_v44  ;;  %v17091_v57 = vrot.slane %v16958_v38, 2  ;;  %v9379_v11 = vpop.permute.xlu1 %9378  ;;  %v9840_v54 = vcombine.low %v9832_v49, %v9839_v25 }
 0x589   : > { %v9790_v61 = vcombine.low %v9726_v26, %v9727_v31  ;;  %v9697_v60 = vadd.f32 %v9665_v16, %v17092_v22  ;;  %v9728_v45 = vmax.f32 %v9696_v4, 0.0  ;;  %v9461_v38 = vadd.f32 %v9379_v11, %v15389_v47 }
 0x58a   : > { %v9666_v41 = vadd.f32 %v17036_v35, %v9607_v43  ;;  %v9550_v1 = vadd.f32 %v17091_v57, %v9454_v32  ;;  %v9608_v12 = vmul.f32 %v17049_v27, %v9549_v56  ;;  %v9462_v44 = vadd.f32 %v9381_v30, %v15399_v48  ;;  %v17096_v56 = vld [vmem:[#allocation82_spill] sm:$0xff]  ;;  %v9385_v57 = vpop.permute.xlu0 %9384 }
 0x58b   : > { %v9936_v49 = vpack.c.bf16 %v9840_v54, %v9840_v54  ;;  %v9729_v26 = vmax.f32 %v9697_v60, 0.0  ;;  %v9738_v32 = vmax.f32 %v15557_v53, 0.0  ;;  %v17094_v31 = vrot.slane %v16959_v59, 2  ;;  %v17097_v53 = vld [vmem:[#allocation61_spill] sm:$0xff] }
 0x58c   : > { %v9609_v62 = vmul.f32 %v17041_v23, %v9550_v1  ;;  %v9698_v43 = vadd.f32 %v9666_v41, %v17093_v29  ;;  %v9667_v50 = vadd.f32 %v17056_v3, %v9608_v12  ;;  %v17095_v4 = vrot.slane %v16960_v6, 2  ;;  %v9383_v2 = vpop.permute.xlu1 %9382  ;;  %v17098_v12 = vld [vmem:[#allocation70_spill] sm:$0xff] }
 0x58d   : > { %v9557_v16 = vadd.f32 %v17094_v31, %v9461_v38  ;;  %9944 = vst.msk [vmem:[%s15567_s29 + $0x8] sm:$0xf] %vm785_vm3, %v9936_v49  ;;  %v9798_v47 = vrot.slane %v9790_v61, %v17085_v52  ;;  %v9791_v48 = vcombine.low %v9728_v45, %v9729_v26  ;;  %v9463_v41 = vadd.f32 %v9383_v2, %v15402_v21  ;;  %v17101_v31 = vld [vmem:[#allocation32_spill] sm:$0xff] }
 0x58e   : > { %v9668_v25 = vadd.f32 %v17055_v5, %v9609_v62  ;;  %v9558_v15 = vadd.f32 %v17095_v4, %v9462_v44  ;;  %v9699_v42 = vadd.f32 %v9667_v50, %v17096_v56  ;;  %v9464_v6 = vadd.f32 %v9385_v57, %v15411_v34  ;;  %v9389_v50 = vpop.permute.xlu0 %9388  ;;  %v17102_v4 = vld [vmem:[#allocation113_spill] sm:$0xff] }
 0x58f   : > { %v9616_v11 = vmul.f32 %v17049_v27, %v9557_v16  ;;  %v9805_v54 = vrot.slane %v9791_v48, %v17085_v52  ;;  %v9730_v22 = vmax.f32 %v9698_v43, 0.0  ;;  %v17099_v61 = vrot.slane %v17098_v12, 2  ;;  %v17105_v12 = vld [vmem:[#allocation120_spill] sm:$0xff] }
 0x590   : > { %v9700_v1 = vadd.f32 %v9668_v25, %v17097_v53  ;;  %v9617_v59 = vmul.f32 %v17041_v23, %v9558_v15  ;;  %v9731_v60 = vmax.f32 %v9699_v42, 0.0  ;;  %v17100_v38 = vrot.slane %v17029_v55, 2  ;;  %v9387_v49 = vpop.permute.xlu1 %9386 }
 0x591   : > { %v9559_v30 = vadd.f32 %v17099_v61, %v9463_v41  ;;  %v9675_v62 = vadd.f32 %v17056_v3, %v9616_v11  ;;  %v9806_v26 = vcombine.low %v9798_v47, %v9805_v54  ;;  %v9465_v43 = vadd.f32 %v9387_v49, %v15441_v0 }
 0x592   : > { %v9732_v45 = vmax.f32 %v9700_v1, 0.0  ;;  %v9676_v21 = vadd.f32 %v17055_v5, %v9617_v59  ;;  %v9560_v44 = vadd.f32 %v17100_v38, %v9464_v6  ;;  %v9807_v29 = vcombine.low %v9730_v22, %v9731_v60  ;;  %v17104_v1 = vld [vmem:[#allocation76_spill] sm:$0xff]  ;;  %v9393_v22 = vpop.permute.xlu0 %9392 }
 0x593   : > { %v9618_v34 = vmul.f32 %v17061_v33, %v9559_v30  ;;  %v9707_v16 = vadd.f32 %v9675_v62, %v17101_v31  ;;  %v9934_v48 = vpack.c.bf16 %v9806_v26, %v9806_v26  ;;  %v17103_v47 = vrot.slane %v17023_v58, 2 }
 0x594   : > { %v9808_v25 = vcombine.low %v9732_v45, %v9733_v46  ;;  %v9708_v15 = vadd.f32 %v9676_v21, %v17102_v4  ;;  %v9619_v2 = vmul.f32 %v15262_v37, %v9560_v44  ;;  %v9815_v55 = vrot.slane %v9807_v29, %v17085_v52  ;;  %v9391_v53 = vpop.permute.xlu1 %9390  ;;  %v17107_v44 = vld [vmem:[#allocation12_spill] sm:$0xff] }
 0x595   : > { %v9677_v56 = vadd.f32 %v17070_v51, %v9618_v34  ;;  %v9561_v42 = vadd.f32 %v17103_v47, %v9465_v43  ;;  %v9739_v57 = vmax.f32 %v9707_v16, 0.0  ;;  %9942 = vst.msk [vmem:[%s15567_s29] sm:$0xf] %vm785_vm3, %v9934_v48  ;;  %v9466_v6 = vadd.f32 %v9389_v50, %v15431_v17  ;;  %v17110_v50 = vld [vmem:[#allocation73_spill] sm:$0xff] }
 0x596   : > { %v9822_v41 = vrot.slane %v9808_v25, %v17085_v52  ;;  %v9740_v0 = vmax.f32 %v9708_v15, 0.0  ;;  %v9678_v46 = vadd.f32 %v17036_v35, %v9619_v2  ;;  %v9467_v54 = vadd.f32 %v9391_v53, %v15449_v19  ;;  %v9397_v16 = vpop.permute.xlu0 %9396 }
 0x597   : > { %v9709_v11 = vadd.f32 %v9677_v56, %v17104_v1  ;;  %v9620_v59 = vmul.f32 %v17049_v27, %v9561_v42  ;;  %v9841_v60 = vcombine.low %v9738_v32, %v9739_v57  ;;  %v9468_v30 = vadd.f32 %v9393_v22, %v15456_v7  ;;  %v17114_v1 = vld [vmem:[#allocation35_spill] sm:$0xff] }
 0x598   : > { %v9823_v58 = vcombine.low %v9815_v55, %v9822_v41  ;;  %v9710_v61 = vadd.f32 %v9678_v46, %v17105_v12  ;;  %v17106_v21 = vrot.slane %v17034_v24, 2  ;;  %v17108_v49 = vrot.slane %v17107_v44, 2  ;;  %v9395_v43 = vpop.permute.xlu1 %9394 }
 0x599   : > { %v9741_v45 = vmax.f32 %v9709_v11, 0.0  ;;  %v9679_v62 = vadd.f32 %v17056_v3, %v9620_v59  ;;  %v8158_v17 = vadd.f32 %v15378_v20, %v15477_v63  ;;  %v9849_v32 = vrot.slane %v9841_v60, %v17085_v52  ;;  %v17115_v59 = vld [vmem:[#allocation74_spill] sm:$0xff] }
 0x59a   : > { %v9562_v38 = vadd.f32 %v17106_v21, %v9466_v6  ;;  %v9563_v26 = vadd.f32 %v17108_v49, %v9467_v54  ;;  %v9935_v19 = vpack.c.bf16 %v9823_v58, %v9823_v58  ;;  %v17109_v29 = vrot.slane %v16969_v9, 2  ;;  %v9401_v54 = vpop.permute.xlu0 %9400 }
 0x59b   : > { %v9842_v7 = vcombine.low %v9740_v0, %v9741_v45  ;;  %v9711_v25 = vadd.f32 %v9679_v62, %v17110_v50  ;;  %v9742_v4 = vmax.f32 %v9710_v61, 0.0  ;;  %v9469_v63 = vadd.f32 %v9395_v43, %v15464_v28  ;;  %v17124_v50 = vld [vmem:[#allocation57_spill] sm:$0xff] }
 0x59c   : > { %v9564_v34 = vadd.f32 %v17109_v29, %v9468_v30  ;;  %v9621_v31 = vmul.f32 %v17041_v23, %v9562_v38  ;;  %v9622_v24 = vmul.f32 %v17061_v33, %v9563_v26  ;;  %9943 = vst.msk [vmem:[%s15567_s29 + $0x4] sm:$0xf] %vm785_vm3, %v9935_v19  ;;  %v9470_v15 = vadd.f32 %v9397_v16, %v15470_v40  ;;  %v9399_v46 = vpop.permute.xlu1 %9398  ;;  %v17117_v30 = vld [vmem:[#allocation75_spill] sm:$0xff]  ;;  %v17118_v38 = vld [vmem:[#allocation102_spill] sm:$0xff] }
 0x59d   : > { %v9856_v9 = vrot.slane %v9842_v7, %v17085_v52  ;;  %v9743_v2 = vmax.f32 %v9711_v25, 0.0  ;;  %v17111_v56 = vrot.slane %v16950_v39, 2  ;;  %v17112_v41 = vrot.slane %v17046_v10, 2  ;;  %v17116_v10 = vld [vmem:[#allocation44_spill] sm:$0xff]  ;;  %v17121_v19 = vld [vmem:[#allocation134_spill] sm:$0xff] }
 0x59e   : > { %v9623_v20 = vmul.f32 %v15262_v37, %v9564_v34  ;;  %v9680_v48 = vadd.f32 %v17055_v5, %v9621_v31  ;;  %v9681_v55 = vadd.f32 %v17070_v51, %v9622_v24  ;;  %v17113_v0 = vrot.slane %v16971_v18, 2  ;;  %v17123_v34 = vld [vmem:[#allocation97_spill] sm:$0xff]  ;;  %v9405_v7 = vpop.permute.xlu0 %9404 }
 0x59f   : > { %v8254_v47 = vadd.f32 %v17111_v56, %v8158_v17  ;;  %v9565_v57 = vadd.f32 %v17112_v41, %v9469_v63  ;;  %v9857_v40 = vcombine.low %v9849_v32, %v9856_v9  ;;  %v9858_v53 = vcombine.low %v9742_v4, %v9743_v2  ;;  %v17120_v17 = vld [vmem:[#allocation37_spill] sm:$0xff]  ;;  %v17127_v2 = vld [vmem:[#allocation98_spill] sm:$0xff] }
 0x5a0   : > { %v9682_v42 = vadd.f32 %v17036_v35, %v9623_v20  ;;  %v9566_v28 = vadd.f32 %v17113_v0, %v9470_v15  ;;  %v9712_v11 = vadd.f32 %v9680_v48, %v17114_v1  ;;  %v9713_v6 = vadd.f32 %v9681_v55, %v17115_v59  ;;  %v9403_v26 = vpop.permute.xlu1 %9402  ;;  %v17125_v24 = vld [vmem:[#allocation77_spill] sm:$0xff]  ;;  %v17129_v56 = vld [vmem:[#allocation26_spill] sm:$0xff] }
 0x5a1   : > { %v9624_v39 = vmul.f32 %v17049_v27, %v9565_v57  ;;  %v9471_v58 = vadd.f32 %v9399_v46, %v15474_v14  ;;  %v9245_v60 = vadd.f32 %v17116_v10, %v15529_v8  ;;  %v9937_v18 = vpack.c.bf16 %v9857_v40, %v9857_v40  ;;  %v17122_v8 = vld [vmem:[#allocation99_spill] sm:$0xff]  ;;  %v17126_v20 = vld [vmem:[#allocation21_spill] sm:$0xff]  ;;  %v17131_v0 = vld [vmem:[#allocation78_spill] sm:$0xff] }
 0x5a2   : > { %v9625_v22 = vmul.f32 %v17041_v23, %v9566_v28  ;;  %v9744_v12 = vmax.f32 %v9712_v11, 0.0  ;;  %v9745_v61 = vmax.f32 %v9713_v6, 0.0  ;;  %v9714_v45 = vadd.f32 %v9682_v42, %v17117_v30  ;;  %v17133_v6 = vld [vmem:[#allocation20_spill] sm:$0xff] }
 0x5a3   : > { %v9683_v62 = vadd.f32 %v17056_v3, %v9624_v39  ;;  %v17119_v44 = vrot.slane %v17118_v38, 2  ;;  %v9247_v32 = vadd.f32 %v17121_v19, %v17120_v17  ;;  %9945 = vst.msk [vmem:[%s15567_s29 + $0xc] sm:$0xf] %vm785_vm3, %v9937_v18  ;;  %v9472_v29 = vadd.f32 %v9401_v54, %v17122_v8  ;;  %v9409_v39 = vpop.permute.xlu0 %9408 }
 0x5a4   : > { %v9684_v21 = vadd.f32 %v17055_v5, %v9625_v22  ;;  %v9859_v14 = vcombine.low %v9744_v12, %v9745_v61  ;;  %v9473_v43 = vadd.f32 %v9403_v26, %v17123_v34  ;;  %v9246_v25 = vadd.f32 %v17124_v50, %v8254_v47  ;;  %v17139_v34 = vld [vmem:[#allocation14_spill] sm:$0xff] }
 0x5a5   : > { %v9567_v49 = vadd.f32 %v17119_v44, %v9471_v58  ;;  %v9866_v31 = vrot.slane %v9858_v53, %v17085_v52  ;;  %v9715_v16 = vadd.f32 %v9683_v62, %v17125_v24  ;;  %v9474_v63 = vadd.f32 %v9405_v7, %v17126_v20  ;;  %v9407_v53 = vpop.permute.xlu1 %9406  ;;  %v17134_v58 = vld [vmem:[#allocation81_spill] sm:$0xff] }
 0x5a6   : > { %v9873_v15 = vrot.slane %v9859_v14, %v17085_v52  ;;  %v9746_v9 = vmax.f32 %v9714_v45, 0.0  ;;  %v17128_v48 = vrot.slane %v17127_v2, 2  ;;  %v17130_v42 = vrot.slane %v17129_v56, 2  ;;  %v17135_v62 = vld [vmem:[#allocation101_spill] sm:$0xff] }
 0x5a7   : > { %v9626_v4 = vmul.f32 %v17061_v33, %v9567_v49  ;;  %v9747_v57 = vmax.f32 %v9715_v16, 0.0  ;;  %v9716_v47 = vadd.f32 %v9684_v21, %v17131_v0  ;;  %v17132_v46 = vrot.slane %v17067_v36, 2  ;;  %v9413_v24 = vpop.permute.xlu0 %9412 }
 0x5a8   : > { %v9568_v55 = vadd.f32 %v17128_v48, %v9472_v29  ;;  %v9569_v41 = vadd.f32 %v17130_v42, %v9473_v43  ;;  %v9874_v1 = vcombine.low %v9866_v31, %v9873_v15  ;;  %v9475_v54 = vadd.f32 %v9407_v53, %v17133_v6  ;;  %v17138_v29 = vld [vmem:[#allocation109_spill] sm:$0xff] }
 0x5a9   : > { %v9685_v28 = vadd.f32 %v17070_v51, %v9626_v4  ;;  %v9570_v40 = vadd.f32 %v17132_v46, %v9474_v63  ;;  %v9875_v22 = vcombine.low %v9746_v9, %v9747_v57  ;;  %v9476_v61 = vadd.f32 %v9409_v39, %v15522_v13  ;;  %v9411_v8 = vpop.permute.xlu1 %9410  ;;  %v17140_v4 = vld [vmem:[#allocation84_spill] sm:$0xff] }
 0x5aa   : > { %v9627_v11 = vmul.f32 %v15262_v37, %v9568_v55  ;;  %v9628_v59 = vmul.f32 %v17049_v27, %v9569_v41  ;;  %v9938_v30 = vpack.c.bf16 %v9874_v1, %v9874_v1  ;;  %v17136_v21 = vrot.slane %v17135_v62, 2 }
 0x5ab   : > { %v9717_v18 = vadd.f32 %v9685_v28, %v17134_v58  ;;  %v9629_v12 = vmul.f32 %v17041_v23, %v9570_v40  ;;  %v9748_v44 = vmax.f32 %v9716_v47, 0.0  ;;  %v17137_v17 = vrot.slane %v17116_v10, 2  ;;  %v17144_v40 = vld [vmem:[#allocation106_spill] sm:$0xff] }
 0x5ac   : > { %v9686_v36 = vadd.f32 %v17036_v35, %v9627_v11  ;;  %v9687_v45 = vadd.f32 %v17056_v3, %v9628_v59  ;;  %v9571_v38 = vadd.f32 %v17136_v21, %v9475_v54  ;;  %9946 = vst.msk [vmem:[%s15567_s29 + $0x10] sm:$0xf] %vm785_vm3, %v9938_v30  ;;  %v9477_v31 = vadd.f32 %v9411_v8, %v9245_v60  ;;  %v17147_v59 = vld [vmem:[#allocation90_spill] sm:$0xff] }
 0x5ad   : > { %v9749_v49 = vmax.f32 %v9717_v18, 0.0  ;;  %v9688_v26 = vadd.f32 %v17055_v5, %v9629_v12  ;;  %v9572_v14 = vadd.f32 %v17137_v17, %v9476_v61  ;;  %v9478_v15 = vadd.f32 %v9413_v24, %v9246_v25  ;;  %v9415_v0 = vpop.permute.xlu1 %9414  ;;  %v17151_v61 = vld [vmem:[#allocation119_spill] sm:$0xff] }
 0x5ae   : > { %v9718_v13 = vadd.f32 %v9686_v36, %v17138_v29  ;;  %v9719_v43 = vadd.f32 %v9687_v45, %v17139_v34  ;;  %v9630_v7 = vmul.f32 %v17061_v33, %v9571_v38  ;;  %v17141_v48 = vrot.slane %v17124_v50, 2  ;;  %v17146_v50 = vld [vmem:[#allocation126_spill] sm:$0xff]  ;;  %v17152_v45 = vld [vmem:[#allocation40_spill] sm:$0xff] }
 0x5af   : > { %v9876_v16 = vcombine.low %v9748_v44, %v9749_v49  ;;  %v9720_v20 = vadd.f32 %v9688_v26, %v17140_v4  ;;  %v9631_v63 = vmul.f32 %v15262_v37, %v9572_v14  ;;  %v9883_v56 = vrot.slane %v9875_v22, %v17085_v52  ;;  %v17143_v37 = vld [vmem:[#allocation83_spill] sm:$0xff] }
 0x5b0   : > { %v9750_v9 = vmax.f32 %v9718_v13, 0.0  ;;  %v9751_v10 = vmax.f32 %v9719_v43, 0.0  ;;  %v9689_v2 = vadd.f32 %v17070_v51, %v9630_v7  ;;  %v9573_v55 = vadd.f32 %v17141_v48, %v9477_v31  ;;  %v17148_v22 = vld [vmem:[#allocation27_spill] sm:$0xff] }
 0x5b1   : > { %v9890_v42 = vrot.slane %v9876_v16, %v17085_v52  ;;  %v9690_v60 = vadd.f32 %v17036_v35, %v9631_v63  ;;  %v17142_v41 = vrot.slane %v17121_v19, 2  ;;  %v9479_v46 = vadd.f32 %v9415_v0, %v9247_v32  ;;  %v17150_v32 = vld [vmem:[#allocation116_spill] sm:$0xff] }
 0x5b2   : > { %v9892_v47 = vcombine.low %v9750_v9, %v9751_v10  ;;  %v9721_v25 = vadd.f32 %v9689_v2, %v17143_v37  ;;  %v9632_v28 = vmul.f32 %v17049_v27, %v9573_v55  ;;  %v17145_v53 = vrot.slane %v17144_v40, 2 }
 0x5b3   : > { %v9574_v57 = vadd.f32 %v17142_v41, %v9478_v15  ;;  %v9891_v11 = vcombine.low %v9883_v56, %v9890_v42  ;;  %v9722_v6 = vadd.f32 %v9690_v60, %v17147_v59  ;;  %v9752_v54 = vmax.f32 %v9720_v20, 0.0 }
 0x5b4   : > { %v5071_v1 = vmul.f32 %v17146_v50, %v17145_v53  ;;  %v9753_v19 = vmax.f32 %v9721_v25, 0.0  ;;  %v9691_v39 = vadd.f32 %v17056_v3, %v9632_v28  ;;  %v17149_v58 = vrot.slane %v17148_v22, 2 }
 0x5b5   : > { %v9633_v35 = vmul.f32 %v17041_v23, %v9574_v57  ;;  %v9939_v12 = vpack.c.bf16 %v9891_v11, %v9891_v11  ;;  %v5129_v30 = vadd.f32 %v17151_v61, %v17150_v32  ;;  %v17153_v23 = vld [vmem:[#allocation38_spill] sm:$0xff]  ;;  %v9900_v3 = vrot.slane %v9892_v47, %v17085_v52 }
 0x5b6   : > { %v9575_v18 = vadd.f32 %v17149_v58, %v9479_v46  ;;  %v9893_v36 = vcombine.low %v9752_v54, %v9753_v19  ;;  %v9723_v62 = vadd.f32 %v9691_v39, %v17152_v45  ;;  %v5130_v38 = vadd.f32 %v17153_v23, %v5071_v1 }
 0x5b7   : > { %v9692_v27 = vadd.f32 %v17055_v5, %v9633_v35  ;;  %9947 = vst.msk [vmem:[%s15567_s29 + $0x14] sm:$0xf] %vm785_vm3, %v9939_v12  ;;  %v9754_v44 = vmax.f32 %v9722_v6, 0.0 }
 0x5b8   : > { %v9634_v21 = vmul.f32 %v17061_v33, %v9575_v18  ;;  %v9907_v49 = vrot.slane %v9893_v36, %v17085_v52  ;;  %v9755_v5 = vmax.f32 %v9723_v62, 0.0 }
 0x5b9   : > { %v9724_v26 = vadd.f32 %v9692_v27, %v5129_v30 }
 0x5ba   : > { %v9693_v17 = vadd.f32 %v17070_v51, %v9634_v21  ;;  %v9908_v14 = vcombine.low %v9900_v3, %v9907_v49  ;;  %v9909_v8 = vcombine.low %v9754_v44, %v9755_v5 }
 0x5bb   : > { %v9756_v34 = vmax.f32 %v9724_v26, 0.0 }
 0x5bc   : > { %v9725_v29 = vadd.f32 %v9693_v17, %v5130_v38  ;;  %v9940_v13 = vpack.c.bf16 %v9908_v14, %v9908_v14  ;;  %v9917_v7 = vrot.slane %v9909_v8, %v17085_v52 }
 0x5be   : > { %v9757_v33 = vmax.f32 %v9725_v29, 0.0  ;;  %9948 = vst.msk [vmem:[%s15567_s29 + $0x18] sm:$0xf] %vm785_vm3, %v9940_v13 }
 0x5c0   : > { %v9910_v43 = vcombine.low %v9756_v34, %v9757_v33 }
 0x5c2   : > { %v9924_v31 = vrot.slane %v9910_v43, %v17085_v52 }
 0x5c4   : > { %v9925_v24 = vcombine.low %v9917_v7, %v9924_v31 }
 0x5c6   : > { %v9941_v16 = vpack.c.bf16 %v9925_v24, %v9925_v24 }
 0x5c8   : > { %9949 = vst.msk [vmem:[%s15567_s29 + $0x1c] sm:$0xf] %vm785_vm3, %v9941_v16 }
 0x5c9 PF: > { %s15_s18 = sadd.s32 1, %s10541_s18  }
 0x5ca   : > { %p12_p4 = scmp.ge.s32.totalorder %s15_s18, 4  }
 0x5cc   :  { %14 = sbr.rel (!%p12_p4) target bundleno = 1 (0x1), region = 77 }

</bundles_post_ra>
